<compile_context>
chip_gen: v5e
topology: v5e:2x2
jax: 0.10.0
libtpu: 0.0.40
codegen_flags: <defaults>
</compile_context>

<pallas_src>
import jax
import jax.numpy as jnp
from jax.experimental import pallas as pl
from jax.experimental.pallas import tpu as pltpu


def _brm_kernel(x_ref, w_ref, b_ref, out_ref, pad_ref):
    # x_ref:   (N, H, W, C)      NHWC input block (whole batch, one grid step)
    # w_ref:   (2, 9C, C)        im2col-flattened conv1/conv2 weights
    # b_ref:   (2, 1, C)         conv1/conv2 biases
    # out_ref: (N, H, W, C)      NHWC output block
    # pad_ref: (N, H+2, W+2, C)  zero-padded scratch, reused by both convs
    N, Hp, Wp, C = pad_ref.shape
    H, W = Hp - 2, Wp - 2
    M = N * H * W
    K = 9 * C

    # Zero the padded scratch once (single grid step, ~10 KB).  The interior
    # is fully overwritten below; the halo stays zero for both convs.
    pad_ref[...] = jnp.zeros(pad_ref.shape, jnp.float32)

    x = x_ref[...].astype(jnp.float32)                      # (N, H, W, C)

    def conv3x3(idx):
        # im2col: the 9 shifted windows concatenated along channels -> (M, 9C)
        # then a single MXU matmul against the pre-flattened (9C, C) weight.
        taps = [pad_ref[:, ky:ky + H, kx:kx + W, :]
                for ky in range(3) for kx in range(3)]
        patches = jnp.concatenate(taps, axis=-1).reshape(M, K)
        w = w_ref[idx].astype(jnp.float32)                  # (9C, C)
        b = b_ref[idx].astype(jnp.float32)                  # (1, C)
        return jnp.dot(patches, w, preferred_element_type=jnp.float32) + b

    # conv1 + ReLU
    pad_ref[:, 1:H + 1, 1:W + 1, :] = x
    r = jnp.maximum(conv3x3(0), 0.0)                        # (M, C)

    # conv2 (reuse the same padded scratch; halo is still zero)
    pad_ref[:, 1:H + 1, 1:W + 1, :] = r.reshape(N, H, W, C)
    res = conv3x3(1)                                        # (M, C)

    # Residual add on the already-loaded input.
    out_ref[...] = (x + res.reshape(N, H, W, C)).astype(out_ref.dtype)


def boundary_refine(x_nchw, w1_oihw, b1, w2_oihw, b2):
    """x_nchw: (N, C, H, W) float32; conv weights in PyTorch OIHW layout."""
    N, C, H, W = x_nchw.shape
    K = 9 * C

    x_nhwc = jnp.transpose(x_nchw, (0, 2, 3, 1))            # NCHW -> NHWC
    # OIHW -> HWIO -> (9C, C); row index = ky*3C + kx*C + cin, matching the
    # kernel's im2col column order.  Stack both convs into one parameter pair.
    w = jnp.stack([jnp.transpose(w1_oihw, (2, 3, 1, 0)).reshape(K, C),
                   jnp.transpose(w2_oihw, (2, 3, 1, 0)).reshape(K, C)])
    b = jnp.stack([b1.reshape(1, C), b2.reshape(1, C)])

    out_nhwc = pl.pallas_call(
        _brm_kernel,
        out_shape=jax.ShapeDtypeStruct((N, H, W, C), x_nchw.dtype),
        grid_spec=pltpu.PrefetchScalarGridSpec(
            num_scalar_prefetch=0,
            grid=(1,),  # whole batch in one step: no per-step fixed overhead
            in_specs=[
                pl.BlockSpec((N, H, W, C), lambda i: (0, 0, 0, 0)),
                pl.BlockSpec((2, K, C), lambda i: (0, 0, 0)),
                pl.BlockSpec((2, 1, C), lambda i: (0, 0, 0)),
            ],
            out_specs=pl.BlockSpec((N, H, W, C), lambda i: (0, 0, 0, 0)),
            scratch_shapes=[pltpu.VMEM((N, H + 2, W + 2, C), jnp.float32)],
        ),
        compiler_params=pltpu.CompilerParams(
            dimension_semantics=("arbitrary",),
            vmem_limit_bytes=32 * 1024 * 1024,
        ),
    )(x_nhwc, w, b)

    return jnp.transpose(out_nhwc, (0, 3, 1, 2))            # NHWC -> NCHW


if __name__ == "__main__":
    N, C, H, W = 2, 4, 16, 16  # dim = 4
    key = jax.random.PRNGKey(0)
    kx, kw1, kb1, kw2, kb2 = jax.random.split(key, 5)

    x = jax.random.normal(kx, (N, C, H, W), jnp.float32)

    # Deterministic parameter init, same shapes as nn.Conv2d(dim, dim, 3, padding=1)
    fan_in = C * 3 * 3
    bound = float(1.0 / (fan_in ** 0.5))
    w1 = jax.random.uniform(kw1, (C, C, 3, 3), jnp.float32, -bound, bound)
    b1 = jax.random.uniform(kb1, (C,), jnp.float32, -bound, bound)
    w2 = jax.random.uniform(kw2, (C, C, 3, 3), jnp.float32, -bound, bound)
    b2 = jax.random.uniform(kb2, (C,), jnp.float32, -bound, bound)

    out = jax.block_until_ready(boundary_refine(x, w1, b1, w2, b2))

    # Pure-JAX reference (NCHW, same as PyTorch semantics)
    def conv(inp, w, b):
        y = jax.lax.conv_general_dilated(
            inp, w, window_strides=(1, 1), padding=((1, 1), (1, 1)),
            dimension_numbers=("NCHW", "OIHW", "NCHW"))
        return y + b.reshape(1, C, 1, 1)

    ref = x + conv(jnp.maximum(conv(x, w1, b1), 0.0), w2, b2)
    assert out.shape == (N, C, H, W) and out.dtype == jnp.float32
    assert jnp.allclose(out, ref, atol=1e-4, rtol=1e-4), "mismatch vs reference"
    print("KERNEL_OK")
</pallas_src>

<mosaic_0001>
module attributes {stable_mosaic.version = 11 : i64} {
  func.func @_brm_kernel(%arg0: i32, %arg1: memref<2x16x16x4xf32, #tpu.memory_space<vmem>>, %arg2: memref<2x36x4xf32, #tpu.memory_space<vmem>>, %arg3: memref<2x1x4xf32, #tpu.memory_space<vmem>>, %arg4: memref<2x16x16x4xf32, #tpu.memory_space<vmem>>, %arg5: memref<2x18x18x4xf32, #tpu.memory_space<vmem>>) attributes {dimension_semantics = [#tpu.dimension_semantics<arbitrary>], iteration_bounds = array<i64: 1>, scalar_prefetch = 0 : i64, scratch_operands = 1 : i64, tpu.core_type = #tpu.core_type<tc>, window_params = [{pipeline_mode = #tpu.pipeline_mode<synchronous>, transform_indices = @transform_0, window_bounds = array<i64: 2, 16, 16, 4>}, {pipeline_mode = #tpu.pipeline_mode<synchronous>, transform_indices = @transform_1, window_bounds = array<i64: 2, 36, 4>}, {pipeline_mode = #tpu.pipeline_mode<synchronous>, transform_indices = @transform_2, window_bounds = array<i64: 2, 1, 4>}, {pipeline_mode = #tpu.pipeline_mode<synchronous>, transform_indices = @transform_3, window_bounds = array<i64: 2, 16, 16, 4>}]} {
    %cst = arith.constant 0.000000e+00 : f32
    %0 = vector.broadcast %cst : f32 to vector<2x18x18x4xf32>
    %c0 = arith.constant 0 : index
    %c0_0 = arith.constant 0 : index
    %c0_1 = arith.constant 0 : index
    %c0_2 = arith.constant 0 : index
    %1 = vector.load %arg5[%c0, %c0_0, %c0_1, %c0_2] : memref<2x18x18x4xf32, #tpu.memory_space<vmem>>, vector<2x18x18x4xf32>
    tpu.vector_store %arg5[%c0, %c0_0, %c0_1, %c0_2], %0 {strides = array<i32>} : memref<2x18x18x4xf32, #tpu.memory_space<vmem>>, vector<2x18x18x4xf32>,
    %c0_3 = arith.constant 0 : index
    %c0_4 = arith.constant 0 : index
    %c0_5 = arith.constant 0 : index
    %c0_6 = arith.constant 0 : index
    %2 = vector.load %arg1[%c0_3, %c0_4, %c0_5, %c0_6] : memref<2x16x16x4xf32, #tpu.memory_space<vmem>>, vector<2x16x16x4xf32>
    %c0_7 = arith.constant 0 : index
    %c1 = arith.constant 1 : index
    %c1_8 = arith.constant 1 : index
    %c0_9 = arith.constant 0 : index
    %3 = vector.load %arg5[%c0_7, %c1, %c1_8, %c0_9] : memref<2x18x18x4xf32, #tpu.memory_space<vmem>>, vector<2x16x16x4xf32>
    tpu.vector_store %arg5[%c0_7, %c1, %c1_8, %c0_9], %2 {strides = array<i32>} : memref<2x18x18x4xf32, #tpu.memory_space<vmem>>, vector<2x16x16x4xf32>,
    %c0_10 = arith.constant 0 : index
    %c0_11 = arith.constant 0 : index
    %c0_12 = arith.constant 0 : index
    %c0_13 = arith.constant 0 : index
    %4 = vector.load %arg5[%c0_10, %c0_11, %c0_12, %c0_13] : memref<2x18x18x4xf32, #tpu.memory_space<vmem>>, vector<2x16x16x4xf32>
    %c0_14 = arith.constant 0 : index
    %c0_15 = arith.constant 0 : index
    %c1_16 = arith.constant 1 : index
    %c0_17 = arith.constant 0 : index
    %5 = vector.load %arg5[%c0_14, %c0_15, %c1_16, %c0_17] : memref<2x18x18x4xf32, #tpu.memory_space<vmem>>, vector<2x16x16x4xf32>
    %c0_18 = arith.constant 0 : index
    %c0_19 = arith.constant 0 : index
    %c2 = arith.constant 2 : index
    %c0_20 = arith.constant 0 : index
    %6 = vector.load %arg5[%c0_18, %c0_19, %c2, %c0_20] : memref<2x18x18x4xf32, #tpu.memory_space<vmem>>, vector<2x16x16x4xf32>
    %c0_21 = arith.constant 0 : index
    %c1_22 = arith.constant 1 : index
    %c0_23 = arith.constant 0 : index
    %c0_24 = arith.constant 0 : index
    %7 = vector.load %arg5[%c0_21, %c1_22, %c0_23, %c0_24] : memref<2x18x18x4xf32, #tpu.memory_space<vmem>>, vector<2x16x16x4xf32>
    %c0_25 = arith.constant 0 : index
    %c1_26 = arith.constant 1 : index
    %c1_27 = arith.constant 1 : index
    %c0_28 = arith.constant 0 : index
    %8 = vector.load %arg5[%c0_25, %c1_26, %c1_27, %c0_28] : memref<2x18x18x4xf32, #tpu.memory_space<vmem>>, vector<2x16x16x4xf32>
    %c0_29 = arith.constant 0 : index
    %c1_30 = arith.constant 1 : index
    %c2_31 = arith.constant 2 : index
    %c0_32 = arith.constant 0 : index
    %9 = vector.load %arg5[%c0_29, %c1_30, %c2_31, %c0_32] : memref<2x18x18x4xf32, #tpu.memory_space<vmem>>, vector<2x16x16x4xf32>
    %c0_33 = arith.constant 0 : index
    %c2_34 = arith.constant 2 : index
    %c0_35 = arith.constant 0 : index
    %c0_36 = arith.constant 0 : index
    %10 = vector.load %arg5[%c0_33, %c2_34, %c0_35, %c0_36] : memref<2x18x18x4xf32, #tpu.memory_space<vmem>>, vector<2x16x16x4xf32>
    %c0_37 = arith.constant 0 : index
    %c2_38 = arith.constant 2 : index
    %c1_39 = arith.constant 1 : index
    %c0_40 = arith.constant 0 : index
    %11 = vector.load %arg5[%c0_37, %c2_38, %c1_39, %c0_40] : memref<2x18x18x4xf32, #tpu.memory_space<vmem>>, vector<2x16x16x4xf32>
    %c0_41 = arith.constant 0 : index
    %c2_42 = arith.constant 2 : index
    %c2_43 = arith.constant 2 : index
    %c0_44 = arith.constant 0 : index
    %12 = vector.load %arg5[%c0_41, %c2_42, %c2_43, %c0_44] : memref<2x18x18x4xf32, #tpu.memory_space<vmem>>, vector<2x16x16x4xf32>
    %13 = tpu.concatenate %4, %5, %6, %7, %8, %9, %10, %11, %12 in 3 : vector<2x16x16x4xf32>, vector<2x16x16x4xf32>, vector<2x16x16x4xf32>, vector<2x16x16x4xf32>, vector<2x16x16x4xf32>, vector<2x16x16x4xf32>, vector<2x16x16x4xf32>, vector<2x16x16x4xf32>, vector<2x16x16x4xf32> -> vector<2x16x16x36xf32>
    %14 = vector.shape_cast %13 : vector<2x16x16x36xf32> to vector<512x36xf32>
    %c0_45 = arith.constant 0 : index
    %c0_46 = arith.constant 0 : index
    %c0_47 = arith.constant 0 : index
    %15 = vector.load %arg2[%c0_45, %c0_46, %c0_47] : memref<2x36x4xf32, #tpu.memory_space<vmem>>, vector<1x36x4xf32>
    %16 = vector.shape_cast %15 : vector<1x36x4xf32> to vector<36x4xf32>
    %c0_48 = arith.constant 0 : index
    %c0_49 = arith.constant 0 : index
    %c0_50 = arith.constant 0 : index
    %17 = vector.load %arg3[%c0_48, %c0_49, %c0_50] : memref<2x1x4xf32, #tpu.memory_space<vmem>>, vector<1x1x4xf32>
    %18 = vector.shape_cast %17 : vector<1x1x4xf32> to vector<1x4xf32>
    %cst_51 = arith.constant dense<0.000000e+00> : vector<512x4xf32>
    %19 = tpu.matmul %14, %16, %cst_51 {dimension_numbers = #tpu.dot_dimension_numbers<[1], [0], [0], [1], [0, 0, 1, 1], [], []>} : vector<512x36xf32>, vector<36x4xf32>, vector<512x4xf32> -> vector<512x4xf32>
    %20 = vector.broadcast %18 : vector<1x4xf32> to vector<512x4xf32>
    %21 = arith.addf %19, %20 : vector<512x4xf32>
    %cst_52 = arith.constant 0.000000e+00 : f32
    %22 = vector.broadcast %cst_52 : f32 to vector<512x4xf32>
    %23 = arith.maximumf %21, %22 : vector<512x4xf32>
    %24 = vector.shape_cast %23 : vector<512x4xf32> to vector<2x16x16x4xf32>
    %c0_53 = arith.constant 0 : index
    %c1_54 = arith.constant 1 : index
    %c1_55 = arith.constant 1 : index
    %c0_56 = arith.constant 0 : index
    %25 = vector.load %arg5[%c0_53, %c1_54, %c1_55, %c0_56] : memref<2x18x18x4xf32, #tpu.memory_space<vmem>>, vector<2x16x16x4xf32>
    tpu.vector_store %arg5[%c0_53, %c1_54, %c1_55, %c0_56], %24 {strides = array<i32>} : memref<2x18x18x4xf32, #tpu.memory_space<vmem>>, vector<2x16x16x4xf32>,
    %c0_57 = arith.constant 0 : index
    %c0_58 = arith.constant 0 : index
    %c0_59 = arith.constant 0 : index
    %c0_60 = arith.constant 0 : index
    %26 = vector.load %arg5[%c0_57, %c0_58, %c0_59, %c0_60] : memref<2x18x18x4xf32, #tpu.memory_space<vmem>>, vector<2x16x16x4xf32>
    %c0_61 = arith.constant 0 : index
    %c0_62 = arith.constant 0 : index
    %c1_63 = arith.constant 1 : index
    %c0_64 = arith.constant 0 : index
    %27 = vector.load %arg5[%c0_61, %c0_62, %c1_63, %c0_64] : memref<2x18x18x4xf32, #tpu.memory_space<vmem>>, vector<2x16x16x4xf32>
    %c0_65 = arith.constant 0 : index
    %c0_66 = arith.constant 0 : index
    %c2_67 = arith.constant 2 : index
    %c0_68 = arith.constant 0 : index
    %28 = vector.load %arg5[%c0_65, %c0_66, %c2_67, %c0_68] : memref<2x18x18x4xf32, #tpu.memory_space<vmem>>, vector<2x16x16x4xf32>
    %c0_69 = arith.constant 0 : index
    %c1_70 = arith.constant 1 : index
    %c0_71 = arith.constant 0 : index
    %c0_72 = arith.constant 0 : index
    %29 = vector.load %arg5[%c0_69, %c1_70, %c0_71, %c0_72] : memref<2x18x18x4xf32, #tpu.memory_space<vmem>>, vector<2x16x16x4xf32>
    %c0_73 = arith.constant 0 : index
    %c1_74 = arith.constant 1 : index
    %c1_75 = arith.constant 1 : index
    %c0_76 = arith.constant 0 : index
    %30 = vector.load %arg5[%c0_73, %c1_74, %c1_75, %c0_76] : memref<2x18x18x4xf32, #tpu.memory_space<vmem>>, vector<2x16x16x4xf32>
    %c0_77 = arith.constant 0 : index
    %c1_78 = arith.constant 1 : index
    %c2_79 = arith.constant 2 : index
    %c0_80 = arith.constant 0 : index
    %31 = vector.load %arg5[%c0_77, %c1_78, %c2_79, %c0_80] : memref<2x18x18x4xf32, #tpu.memory_space<vmem>>, vector<2x16x16x4xf32>
    %c0_81 = arith.constant 0 : index
    %c2_82 = arith.constant 2 : index
    %c0_83 = arith.constant 0 : index
    %c0_84 = arith.constant 0 : index
    %32 = vector.load %arg5[%c0_81, %c2_82, %c0_83, %c0_84] : memref<2x18x18x4xf32, #tpu.memory_space<vmem>>, vector<2x16x16x4xf32>
    %c0_85 = arith.constant 0 : index
    %c2_86 = arith.constant 2 : index
    %c1_87 = arith.constant 1 : index
    %c0_88 = arith.constant 0 : index
    %33 = vector.load %arg5[%c0_85, %c2_86, %c1_87, %c0_88] : memref<2x18x18x4xf32, #tpu.memory_space<vmem>>, vector<2x16x16x4xf32>
    %c0_89 = arith.constant 0 : index
    %c2_90 = arith.constant 2 : index
    %c2_91 = arith.constant 2 : index
    %c0_92 = arith.constant 0 : index
    %34 = vector.load %arg5[%c0_89, %c2_90, %c2_91, %c0_92] : memref<2x18x18x4xf32, #tpu.memory_space<vmem>>, vector<2x16x16x4xf32>
    %35 = tpu.concatenate %26, %27, %28, %29, %30, %31, %32, %33, %34 in 3 : vector<2x16x16x4xf32>, vector<2x16x16x4xf32>, vector<2x16x16x4xf32>, vector<2x16x16x4xf32>, vector<2x16x16x4xf32>, vector<2x16x16x4xf32>, vector<2x16x16x4xf32>, vector<2x16x16x4xf32>, vector<2x16x16x4xf32> -> vector<2x16x16x36xf32>
    %36 = vector.shape_cast %35 : vector<2x16x16x36xf32> to vector<512x36xf32>
    %c1_93 = arith.constant 1 : index
    %c0_94 = arith.constant 0 : index
    %c0_95 = arith.constant 0 : index
    %37 = vector.load %arg2[%c1_93, %c0_94, %c0_95] : memref<2x36x4xf32, #tpu.memory_space<vmem>>, vector<1x36x4xf32>
    %38 = vector.shape_cast %37 : vector<1x36x4xf32> to vector<36x4xf32>
    %c1_96 = arith.constant 1 : index
    %c0_97 = arith.constant 0 : index
    %c0_98 = arith.constant 0 : index
    %39 = vector.load %arg3[%c1_96, %c0_97, %c0_98] : memref<2x1x4xf32, #tpu.memory_space<vmem>>, vector<1x1x4xf32>
    %40 = vector.shape_cast %39 : vector<1x1x4xf32> to vector<1x4xf32>
    %cst_99 = arith.constant dense<0.000000e+00> : vector<512x4xf32>
    %41 = tpu.matmul %36, %38, %cst_99 {dimension_numbers = #tpu.dot_dimension_numbers<[1], [0], [0], [1], [0, 0, 1, 1], [], []>} : vector<512x36xf32>, vector<36x4xf32>, vector<512x4xf32> -> vector<512x4xf32>
    %42 = vector.broadcast %40 : vector<1x4xf32> to vector<512x4xf32>
    %43 = arith.addf %41, %42 : vector<512x4xf32>
    %44 = vector.shape_cast %43 : vector<512x4xf32> to vector<2x16x16x4xf32>
    %45 = arith.addf %2, %44 : vector<2x16x16x4xf32>
    %c0_100 = arith.constant 0 : index
    %c0_101 = arith.constant 0 : index
    %c0_102 = arith.constant 0 : index
    %c0_103 = arith.constant 0 : index
    %46 = vector.load %arg4[%c0_100, %c0_101, %c0_102, %c0_103] : memref<2x16x16x4xf32, #tpu.memory_space<vmem>>, vector<2x16x16x4xf32>
    tpu.vector_store %arg4[%c0_100, %c0_101, %c0_102, %c0_103], %45 {strides = array<i32>} : memref<2x16x16x4xf32, #tpu.memory_space<vmem>>, vector<2x16x16x4xf32>,
    return
  }
  func.func @transform_0(%arg0: i32) -> (i32, i32, i32, i32) {
    %c0_i32 = arith.constant 0 : i32
    %c0_i32_0 = arith.constant 0 : i32
    %c0_i32_1 = arith.constant 0 : i32
    %c0_i32_2 = arith.constant 0 : i32
    %c0_i32_3 = arith.constant 0 : i32
    return %c0_i32, %c0_i32_0, %c0_i32_1, %c0_i32_2 : i32, i32, i32, i32
  }
  func.func @transform_1(%arg0: i32) -> (i32, i32, i32) {
    %c0_i32 = arith.constant 0 : i32
    %c0_i32_0 = arith.constant 0 : i32
    %c0_i32_1 = arith.constant 0 : i32
    %c0_i32_2 = arith.constant 0 : i32
    return %c0_i32, %c0_i32_0, %c0_i32_1 : i32, i32, i32
  }
  func.func @transform_2(%arg0: i32) -> (i32, i32, i32) {
    %c0_i32 = arith.constant 0 : i32
    %c0_i32_0 = arith.constant 0 : i32
    %c0_i32_1 = arith.constant 0 : i32
    %c0_i32_2 = arith.constant 0 : i32
    return %c0_i32, %c0_i32_0, %c0_i32_1 : i32, i32, i32
  }
  func.func @transform_3(%arg0: i32) -> (i32, i32, i32, i32) {
    %c0_i32 = arith.constant 0 : i32
    %c0_i32_0 = arith.constant 0 : i32
    %c0_i32_1 = arith.constant 0 : i32
    %c0_i32_2 = arith.constant 0 : i32
    %c0_i32_3 = arith.constant 0 : i32
    return %c0_i32, %c0_i32_0, %c0_i32_1, %c0_i32_2 : i32, i32, i32, i32
  }
}

</mosaic_0001>

<bundles_post_ra>
// kernel: tpu_custom_call.1
= control target key start
LH: loop header
LB: loop body
LE: loop exit
PB: predicated region body
PF: predicated region fallthrough
CT: control target
= control target key end

     0   :  { %vm14_vm0 = vcmask 31744   ;;  %v7887_v0 = vmov 0.0   ;;  %s7888_s12 = smov 4   ;;  %vm17_vm1 = vcmask 25600   ;;  %s7889_s29 = smov 8   ;;  %vm3599_vm2 = vcmask 1043456   ;;  %s14007_s0 = inlined_call_operand.vmem [shape: f32[2,16,16,4], index: 0, kind: input, shape index: {}]   ;;  %s14008_s1 = inlined_call_operand.vmem [shape: f32[2,36,4], index: 1, kind: input, shape index: {}]   ;;  %s14009_s2 = inlined_call_operand.vmem [shape: f32[2,1,4], index: 2, kind: input, shape index: {}]   ;;  %s14010_s3 = inlined_call_operand.vmem [shape: f32[2,16,16,4], index: 3, kind: output, shape index: {}]  }
   0x1   :  { %15 = vst.msk [vmem:[#allocation2] sm:$0xff] %vm14_vm0, %v7887_v0  ;;  %v8060_v2 = vld [vmem:[%s14007_s0 + $0x10] sm:$0xff]  ;;  %v8067_v3 = vld [vmem:[%s14007_s0] sm:$0xff]  ;;  %v8149_v7 = vld [vmem:[%s14007_s0 + $0x18] sm:$0xff]  ;;  %s7890_s30 = smov 12   ;;  %s7892_s13 = smov 20  }
   0x2   :  { %16 = vst.msk [vmem:[#allocation2 + $0x8] sm:$0xff] %vm14_vm0, %v7887_v0  ;;  %v8156_v8 = vld [vmem:[%s14007_s0 + $0x8] sm:$0xff]  ;;  %v8163_v9 = vld [vmem:[%s14007_s0 + $0x20] sm:$0xff]  ;;  %v8170_v10 = vld [vmem:[%s14007_s0 + $0x30] sm:$0xff]  ;;  %s7893_s14 = smov 24   ;;  %s7894_s15 = smov 28  }
   0x3   :  { %19 = vst.msk [vmem:[#allocation2 + $0x18] sm:$0xff] %vm14_vm0, %v7887_v0  ;;  %v8177_v11 = vld [vmem:[%s14007_s0 + $0x28] sm:$0xff]  ;;  %v8184_v12 = vld [vmem:[%s14007_s0 + $0x38] sm:$0xff]  ;;  %v8198_v14 = vld [vmem:[%s14007_s0 + $0x40] sm:$0xff]  ;;  %s7895_s16 = smov 32   ;;  %vm3007_vm3 = vcmask 97280  }
   0x4   :  { %20 = vst.msk [vmem:[#allocation2 + $0x20] sm:$0xff] %vm14_vm0, %v7887_v0  ;;  %v8191_v13 = vld [vmem:[%s14007_s0 + $0x48] sm:$0xff]  ;;  %v8205_v15 = vld [vmem:[%s14007_s0 + $0x50] sm:$0xff]  ;;  %v8212_v16 = vld [vmem:[%s14007_s0 + $0x60] sm:$0xff]  ;;  %vm2942_vm4 = vcmask 64512   ;;  %vm3072_vm5 = vcmask 130048  }
   0x5   :  { %22 = vst.msk [vmem:[#allocation2 + $0x30] sm:$0xff] %vm14_vm0, %v7887_v0  ;;  %v8219_v18 = vld [vmem:[%s14007_s0 + $0x58] sm:$0xff]  ;;  %v8227_v20 = vld [vmem:[%s14007_s0 + $0x68] sm:$0xff]  ;;  %v8243_v23 = vld [vmem:[%s14007_s0 + $0x70] sm:$0xff]  ;;  %vm3202_vm6 = vcmask 195584   ;;  %vm3137_vm7 = vcmask 162816  }
   0x6   :  { %23 = vst.msk [vmem:[#allocation2 + $0x38] sm:$0xff] %vm14_vm0, %v7887_v0  ;;  %v8235_v22 = vld [vmem:[%s14007_s0 + $0x78] sm:$0xff]  ;;  %v8250_v24 = vld [vmem:[%s14007_s0 + $0x80] sm:$0xff]  ;;  %v8257_v25 = vld [vmem:[%s14007_s0 + $0x90] sm:$0xff]  ;;  %vm3267_vm8 = vcmask 228352   ;;  %vm3406_vm9 = vcmask 293888  }
   0x7   :  { %25 = vst.msk [vmem:[#allocation2 + $0x48] sm:$0xff] %vm14_vm0, %v7887_v0  ;;  %v8264_v27 = vld [vmem:[%s14007_s0 + $0x88] sm:$0xff]  ;;  %v8273_v30 = vld [vmem:[%s14007_s0 + $0x98] sm:$0xff]  ;;  %v8286_v32 = vld [vmem:[%s14007_s0 + $0xa0] sm:$0xff]  ;;  %vm3332_vm10 = vcmask 261120  }
   0x8   :  { %26 = vst.msk [vmem:[#allocation2 + $0x50] sm:$0xff] %vm14_vm0, %v7887_v0  ;;  %v8281_v31 = vld [vmem:[%s14007_s0 + $0xa8] sm:$0xff]  ;;  %v8299_v36 = vld [vmem:[%s14007_s0 + $0xb0] sm:$0xff]  ;;  %v8307_v37 = vld [vmem:[%s14007_s0 + $0xc0] sm:$0xff] }
   0x9   :  { %v317_v1 = vld [vmem:[#allocation2 + $0x1] sm:$0xff]  ;;  %28 = vst.msk [vmem:[#allocation2 + $0x60] sm:$0xff] %vm14_vm0, %v7887_v0  ;;  %v8312_v38 = vld [vmem:[%s14007_s0 + $0xb8] sm:$0xff]  ;;  %v8336_v44 = vld [vmem:[%s14007_s0 + $0xd0] sm:$0xff] }
   0xa   :  { %894 = vrot.lane.b32.xlu0 %v317_v1, %s7888_s12  ;;  %29 = vst.msk [vmem:[#allocation2 + $0x68] sm:$0xff] %vm14_vm0, %v7887_v0  ;;  %v8323_v42 = vld [vmem:[%s14007_s0 + $0xc8] sm:$0xff]  ;;  %v8331_v43 = vld [vmem:[%s14007_s0 + $0xd8] sm:$0xff]  ;;  %v8347_v48 = vld [vmem:[%s14007_s0 + $0xe0] sm:$0xff] }
   0xb   :  { %31 = vst.msk [vmem:[#allocation2 + $0x78] sm:$0xff] %vm14_vm0, %v7887_v0  ;;  %v8355_v49 = vld [vmem:[%s14007_s0 + $0xe8] sm:$0xff]  ;;  %v8370_v54 = vld [vmem:[%s14007_s0 + $0x100] sm:$0xff]  ;;  %v8381_v58 = vld [vmem:[%s14007_s0 + $0x110] sm:$0xff] }
   0xc   :  { %32 = vst.msk [vmem:[#allocation2 + $0x80] sm:$0xff] %vm14_vm0, %v7887_v0  ;;  %v8365_v53 = vld [vmem:[%s14007_s0 + $0x108] sm:$0xff]  ;;  %v8389_v59 = vld [vmem:[%s14007_s0 + $0x120] sm:$0xff]  ;;  %v8394_v60 = vld [vmem:[%s14007_s0 + $0x118] sm:$0xff] }
   0xd   :  { %34 = vst.msk [vmem:[#allocation2 + $0x90] sm:$0xff] %vm14_vm0, %v7887_v0  ;;  %v8413_v1 = vld [vmem:[%s14007_s0 + $0x138] sm:$0xff] }
   0xe   :  { %35 = vst.msk [vmem:[#allocation2 + $0x98] sm:$0xff] %vm14_vm0, %v7887_v0 }
   0xf   :  { %37 = vst.msk [vmem:[#allocation2 + $0xa8] sm:$0xff] %vm14_vm0, %v7887_v0 }
  0x10   :  { %38 = vst.msk [vmem:[#allocation2 + $0xb0] sm:$0xff] %vm14_vm0, %v7887_v0 }
  0x11   :  { %40 = vst.msk [vmem:[#allocation2 + $0xc0] sm:$0xff] %vm14_vm0, %v7887_v0 }
  0x12   :  { %41 = vst.msk [vmem:[#allocation2 + $0xc8] sm:$0xff] %vm14_vm0, %v7887_v0 }
  0x13   :  { %43 = vst.msk [vmem:[#allocation2 + $0xd8] sm:$0xff] %vm14_vm0, %v7887_v0 }
  0x14   :  { %44 = vst.msk [vmem:[#allocation2 + $0xe0] sm:$0xff] %vm14_vm0, %v7887_v0 }
  0x15   :  { %46 = vst.msk [vmem:[#allocation2 + $0xf0] sm:$0xff] %vm14_vm0, %v7887_v0 }
  0x16   :  { %47 = vst.msk [vmem:[#allocation2 + $0xf8] sm:$0xff] %vm14_vm0, %v7887_v0 }
  0x17   :  { %49 = vst.msk [vmem:[#allocation2 + $0x108] sm:$0xff] %vm14_vm0, %v7887_v0 }
  0x18   :  { %50 = vst.msk [vmem:[#allocation2 + $0x110] sm:$0xff] %vm14_vm0, %v7887_v0 }
  0x19   :  { %52 = vst.msk [vmem:[#allocation2 + $0x120] sm:$0xff] %vm14_vm0, %v7887_v0 }
  0x1a   :  { %53 = vst.msk [vmem:[#allocation2 + $0x128] sm:$0xff] %vm14_vm0, %v7887_v0 }
  0x1b   :  { %55 = vst.msk [vmem:[#allocation2 + $0x138] sm:$0xff] %vm14_vm0, %v7887_v0 }
  0x1c   :  { %56 = vst.msk [vmem:[#allocation2 + $0x140] sm:$0xff] %vm14_vm0, %v7887_v0 }
  0x1d   :  { %58 = vst.msk [vmem:[#allocation2 + $0x150] sm:$0xff] %vm14_vm0, %v7887_v0 }
  0x1e   :  { %59 = vst.msk [vmem:[#allocation2 + $0x158] sm:$0xff] %vm14_vm0, %v7887_v0 }
  0x1f   :  { %61 = vst.msk [vmem:[#allocation2 + $0x168] sm:$0xff] %vm14_vm0, %v7887_v0 }
  0x20   :  { %62 = vst.msk [vmem:[#allocation2 + $0x170] sm:$0xff] %vm14_vm0, %v7887_v0 }
  0x21   :  { %64 = vst.msk [vmem:[#allocation2 + $0x180] sm:$0xff] %vm14_vm0, %v7887_v0 }
  0x22   :  { %65 = vst.msk [vmem:[#allocation2 + $0x188] sm:$0xff] %vm14_vm0, %v7887_v0 }
  0x23   :  { %67 = vst.msk [vmem:[#allocation2 + $0x198] sm:$0xff] %vm14_vm0, %v7887_v0 }
  0x24   :  { %68 = vst.msk [vmem:[#allocation2 + $0x1a0] sm:$0xff] %vm14_vm0, %v7887_v0 }
  0x25   :  { %70 = vst.msk [vmem:[#allocation2 + $0x1b0] sm:$0xff] %vm14_vm0, %v7887_v0 }
  0x26   :  { %71 = vst.msk [vmem:[#allocation2 + $0x1b8] sm:$0xff] %vm14_vm0, %v7887_v0 }
  0x27   :  { %73 = vst.msk [vmem:[#allocation2 + $0x1c8] sm:$0xff] %vm14_vm0, %v7887_v0 }
  0x28   :  { %74 = vst.msk [vmem:[#allocation2 + $0x1d0] sm:$0xff] %vm14_vm0, %v7887_v0 }
  0x29   :  { %76 = vst.msk [vmem:[#allocation2 + $0x1e0] sm:$0xff] %vm14_vm0, %v7887_v0 }
  0x2a   :  { %77 = vst.msk [vmem:[#allocation2 + $0x1e8] sm:$0xff] %vm14_vm0, %v7887_v0 }
  0x2b   :  { %79 = vst.msk [vmem:[#allocation2 + $0x1f8] sm:$0xff] %vm14_vm0, %v7887_v0 }
  0x2c   :  { %80 = vst.msk [vmem:[#allocation2 + $0x200] sm:$0xff] %vm14_vm0, %v7887_v0 }
  0x2d   :  { %82 = vst.msk [vmem:[#allocation2 + $0x210] sm:$0xff] %vm14_vm0, %v7887_v0 }
  0x2e   :  { %83 = vst.msk [vmem:[#allocation2 + $0x218] sm:$0xff] %vm14_vm0, %v7887_v0 }
  0x2f   :  { %85 = vst.msk [vmem:[#allocation2 + $0x228] sm:$0xff] %vm14_vm0, %v7887_v0 }
  0x30   :  { %86 = vst.msk [vmem:[#allocation2 + $0x230] sm:$0xff] %vm14_vm0, %v7887_v0 }
  0x31   :  { %88 = vst.msk [vmem:[#allocation2 + $0x240] sm:$0xff] %vm14_vm0, %v7887_v0 }
  0x32   :  { %89 = vst.msk [vmem:[#allocation2 + $0x248] sm:$0xff] %vm14_vm0, %v7887_v0 }
  0x33   :  { %91 = vst.msk [vmem:[#allocation2 + $0x258] sm:$0xff] %vm14_vm0, %v7887_v0 }
  0x34   :  { %92 = vst.msk [vmem:[#allocation2 + $0x260] sm:$0xff] %vm14_vm0, %v7887_v0 }
  0x35   :  { %94 = vst.msk [vmem:[#allocation2 + $0x270] sm:$0xff] %vm14_vm0, %v7887_v0 }
  0x36   :  { %95 = vst.msk [vmem:[#allocation2 + $0x278] sm:$0xff] %vm14_vm0, %v7887_v0 }
  0x37   :  { %97 = vst.msk [vmem:[#allocation2 + $0x288] sm:$0xff] %vm14_vm0, %v7887_v0 }
  0x38   :  { %98 = vst.msk [vmem:[#allocation2 + $0x290] sm:$0xff] %vm14_vm0, %v7887_v0 }
  0x39   :  { %100 = vst.msk [vmem:[#allocation2 + $0x2a0] sm:$0xff] %vm14_vm0, %v7887_v0 }
  0x3a   :  { %101 = vst.msk [vmem:[#allocation2 + $0x2a8] sm:$0xff] %vm14_vm0, %v7887_v0 }
  0x3b   :  { %103 = vst.msk [vmem:[#allocation2 + $0x2b8] sm:$0xff] %vm14_vm0, %v7887_v0 }
  0x3c   :  { %104 = vst.msk [vmem:[#allocation2 + $0x2c0] sm:$0xff] %vm14_vm0, %v7887_v0 }
  0x3d   :  { %106 = vst.msk [vmem:[#allocation2 + $0x2d0] sm:$0xff] %vm14_vm0, %v7887_v0 }
  0x3e   :  { %107 = vst.msk [vmem:[#allocation2 + $0x2d8] sm:$0xff] %vm14_vm0, %v7887_v0 }
  0x3f   :  { %109 = vst.msk [vmem:[#allocation2 + $0x2e8] sm:$0xff] %vm14_vm0, %v7887_v0 }
  0x40   :  { %110 = vst.msk [vmem:[#allocation2 + $0x2f0] sm:$0xff] %vm14_vm0, %v7887_v0 }
  0x41   :  { %112 = vst.msk [vmem:[#allocation2 + $0x300] sm:$0xff] %vm14_vm0, %v7887_v0 }
  0x42   :  { %113 = vst.msk [vmem:[#allocation2 + $0x308] sm:$0xff] %vm14_vm0, %v7887_v0 }
  0x43   :  { %115 = vst.msk [vmem:[#allocation2 + $0x318] sm:$0xff] %vm14_vm0, %v7887_v0 }
  0x44   :  { %116 = vst.msk [vmem:[#allocation2 + $0x320] sm:$0xff] %vm14_vm0, %v7887_v0 }
  0x45   :  { %118 = vst.msk [vmem:[#allocation2 + $0x330] sm:$0xff] %vm14_vm0, %v7887_v0 }
  0x46   :  { %119 = vst.msk [vmem:[#allocation2 + $0x338] sm:$0xff] %vm14_vm0, %v7887_v0 }
  0x47   :  { %14076 = vst [vmem:[#allocation3_spill] sm:$0xff] %v8060_v2 }
  0x48   :  { %121 = vst.msk [vmem:[#allocation2 + $0x348] sm:$0xff] %vm14_vm0, %v7887_v0 }
  0x49   :  { %14077 = vst [vmem:[#allocation4_spill] sm:$0xff] %v8067_v3 }
  0x4a   :  { %122 = vst.msk [vmem:[#allocation2 + $0x350] sm:$0xff] %vm14_vm0, %v7887_v0 }
  0x4b   :  { %191 = vst.msk [vmem:[#allocation2 + $0x31] sm:$0xff] %vm14_vm0, %v8060_v2 }
  0x4c   :  { %189 = vst.msk [vmem:[#allocation2 + $0x19] sm:$0xff] %vm14_vm0, %v8067_v3 }
  0x4d   :  { %18 = vst.msk [vmem:[#allocation2 + $0x10] sm:$0x3] %vm17_vm1, %v7887_v0 }
  0x4e   :  { %21 = vst.msk [vmem:[#allocation2 + $0x28] sm:$0x3] %vm17_vm1, %v7887_v0 }
  0x4f   :  { %24 = vst.msk [vmem:[#allocation2 + $0x40] sm:$0x3] %vm17_vm1, %v7887_v0 }
  0x50   :  { %27 = vst.msk [vmem:[#allocation2 + $0x58] sm:$0x3] %vm17_vm1, %v7887_v0 }
  0x51   :  { %30 = vst.msk [vmem:[#allocation2 + $0x70] sm:$0x3] %vm17_vm1, %v7887_v0 }
  0x52   :  { %v321_v4 = vld [vmem:[#allocation2 + $0x31] sm:$0xff]  ;;  %33 = vst.msk [vmem:[#allocation2 + $0x88] sm:$0x3] %vm17_vm1, %v7887_v0 }
  0x53   :  { %902 = vrot.lane.b32.xlu2 %v321_v4, %s7888_s12  ;;  %v319_v5 = vld [vmem:[#allocation2 + $0x19] sm:$0xff]  ;;  %36 = vst.msk [vmem:[#allocation2 + $0xa0] sm:$0x3] %vm17_vm1, %v7887_v0  ;;  %v8418_v4 = vld [vmem:[%s14007_s0 + $0x130] sm:$0xff] }
  0x54   :  { %898 = vrot.lane.b32.xlu1 %v319_v5, %s7888_s12  ;;  %v318_v6 = vld [vmem:[#allocation2 + $0x9] sm:$0xff]  ;;  %39 = vst.msk [vmem:[#allocation2 + $0xb8] sm:$0x3] %vm17_vm1, %v7887_v0 }
  0x55   :  { %896 = vrot.lane.b32.xlu0 %v318_v6, %s7888_s12  ;;  %42 = vst.msk [vmem:[#allocation2 + $0xd0] sm:$0x3] %vm17_vm1, %v7887_v0 }
  0x56   :  { %45 = vst.msk [vmem:[#allocation2 + $0xe8] sm:$0x3] %vm17_vm1, %v7887_v0 }
  0x57   :  { %48 = vst.msk [vmem:[#allocation2 + $0x100] sm:$0x3] %vm17_vm1, %v7887_v0 }
  0x58   :  { %51 = vst.msk [vmem:[#allocation2 + $0x118] sm:$0x3] %vm17_vm1, %v7887_v0 }
  0x59   :  { %54 = vst.msk [vmem:[#allocation2 + $0x130] sm:$0x3] %vm17_vm1, %v7887_v0 }
  0x5a   :  { %57 = vst.msk [vmem:[#allocation2 + $0x148] sm:$0x3] %vm17_vm1, %v7887_v0 }
  0x5b   :  { %60 = vst.msk [vmem:[#allocation2 + $0x160] sm:$0x3] %vm17_vm1, %v7887_v0 }
  0x5c   :  { %63 = vst.msk [vmem:[#allocation2 + $0x178] sm:$0x3] %vm17_vm1, %v7887_v0 }
  0x5d   :  { %66 = vst.msk [vmem:[#allocation2 + $0x190] sm:$0x3] %vm17_vm1, %v7887_v0 }
  0x5e   :  { %69 = vst.msk [vmem:[#allocation2 + $0x1a8] sm:$0x3] %vm17_vm1, %v7887_v0 }
  0x5f   :  { %72 = vst.msk [vmem:[#allocation2 + $0x1c0] sm:$0x3] %vm17_vm1, %v7887_v0 }
  0x60   :  { %75 = vst.msk [vmem:[#allocation2 + $0x1d8] sm:$0x3] %vm17_vm1, %v7887_v0 }
  0x61   :  { %78 = vst.msk [vmem:[#allocation2 + $0x1f0] sm:$0x3] %vm17_vm1, %v7887_v0 }
  0x62   :  { %81 = vst.msk [vmem:[#allocation2 + $0x208] sm:$0x3] %vm17_vm1, %v7887_v0 }
  0x63   :  { %84 = vst.msk [vmem:[#allocation2 + $0x220] sm:$0x3] %vm17_vm1, %v7887_v0 }
  0x64   :  { %87 = vst.msk [vmem:[#allocation2 + $0x238] sm:$0x3] %vm17_vm1, %v7887_v0 }
  0x65   :  { %90 = vst.msk [vmem:[#allocation2 + $0x250] sm:$0x3] %vm17_vm1, %v7887_v0 }
  0x66   :  { %93 = vst.msk [vmem:[#allocation2 + $0x268] sm:$0x3] %vm17_vm1, %v7887_v0  ;;  %v414_v3 = vld [vmem:[#allocation2 + $0x1ba] sm:$0xff] }
  0x67   :  { %96 = vst.msk [vmem:[#allocation2 + $0x280] sm:$0x3] %vm17_vm1, %v7887_v0 }
  0x68   :  { %99 = vst.msk [vmem:[#allocation2 + $0x298] sm:$0x3] %vm17_vm1, %v7887_v0 }
  0x69   :  { %102 = vst.msk [vmem:[#allocation2 + $0x2b0] sm:$0x3] %vm17_vm1, %v7887_v0 }
  0x6a   :  { %105 = vst.msk [vmem:[#allocation2 + $0x2c8] sm:$0x3] %vm17_vm1, %v7887_v0 }
  0x6b   :  { %108 = vst.msk [vmem:[#allocation2 + $0x2e0] sm:$0x3] %vm17_vm1, %v7887_v0 }
  0x6c   :  { %111 = vst.msk [vmem:[#allocation2 + $0x2f8] sm:$0x3] %vm17_vm1, %v7887_v0 }
  0x6d   :  { %114 = vst.msk [vmem:[#allocation2 + $0x310] sm:$0x3] %vm17_vm1, %v7887_v0 }
  0x6e   :  { %117 = vst.msk [vmem:[#allocation2 + $0x328] sm:$0x3] %vm17_vm1, %v7887_v0 }
  0x6f   :  { %14078 = vst [vmem:[#allocation5_spill] sm:$0xff] %v8149_v7 }
  0x70   :  { %120 = vst.msk [vmem:[#allocation2 + $0x340] sm:$0x3] %vm17_vm1, %v7887_v0 }
  0x71   :  { %14079 = vst [vmem:[#allocation6_spill] sm:$0xff] %v8156_v8 }
  0x72   :  { %123 = vst.msk [vmem:[#allocation2 + $0x358] sm:$0x3] %vm17_vm1, %v7887_v0  ;;  %v8405_v0 = vld [vmem:[%s14007_s0 + $0x128] sm:$0xff] }
  0x73   :  { %14080 = vst [vmem:[#allocation7_spill] sm:$0xff] %v8163_v9 }
  0x74   :  { %192 = vst.msk [vmem:[#allocation2 + $0x39] sm:$0xff] %vm14_vm0, %v8149_v7 }
  0x75   :  { %14081 = vst [vmem:[#allocation8_spill] sm:$0xff] %v8170_v10 }
  0x76   :  { %190 = vst.msk [vmem:[#allocation2 + $0x21] sm:$0xff] %vm14_vm0, %v8156_v8 }
  0x77   :  { %14082 = vst [vmem:[#allocation9_spill] sm:$0xff] %v8177_v11 }
  0x78   :  { %193 = vst.msk [vmem:[#allocation2 + $0x49] sm:$0xff] %vm14_vm0, %v8163_v9 }
  0x79   :  { %14083 = vst [vmem:[#allocation10_spill] sm:$0xff] %v8184_v12 }
  0x7a   :  { %195 = vst.msk [vmem:[#allocation2 + $0x61] sm:$0xff] %vm14_vm0, %v8170_v10 }
  0x7b   :  { %14084 = vst [vmem:[#allocation11_spill] sm:$0xff] %v8191_v13  ;;  %v322_v17 = vld [vmem:[#allocation2 + $0x39] sm:$0xff] }
  0x7c   :  { %194 = vst.msk [vmem:[#allocation2 + $0x51] sm:$0xff] %vm14_vm0, %v8177_v11  ;;  %904 = vrot.lane.b32.xlu2 %v322_v17, %s7888_s12 }
  0x7d   :  { %14085 = vst [vmem:[#allocation12_spill] sm:$0xff] %v8198_v14  ;;  %v320_v19 = vld [vmem:[#allocation2 + $0x21] sm:$0xff] }
  0x7e   :  { %196 = vst.msk [vmem:[#allocation2 + $0x69] sm:$0xff] %vm14_vm0, %v8184_v12  ;;  %900 = vrot.lane.b32.xlu1 %v320_v19, %s7888_s12  ;;  %v8429_v19 = vld [vmem:[%s14007_s0 + $0x140] sm:$0xff] }
  0x7f   :  { %14086 = vst [vmem:[#allocation13_spill] sm:$0xff] %v8205_v15  ;;  %v323_v21 = vld [vmem:[#allocation2 + $0x49] sm:$0xff] }
  0x80   :  { %198 = vst.msk [vmem:[#allocation2 + $0x81] sm:$0xff] %vm14_vm0, %v8191_v13  ;;  %906 = vrot.lane.b32.xlu0 %v323_v21, %s7888_s12  ;;  %v8437_v21 = vld [vmem:[%s14007_s0 + $0x150] sm:$0xff] }
  0x81   :  { %14087 = vst [vmem:[#allocation14_spill] sm:$0xff] %v8212_v16  ;;  %v325_v26 = vld [vmem:[#allocation2 + $0x61] sm:$0xff] }
  0x82   :  { %197 = vst.msk [vmem:[#allocation2 + $0x79] sm:$0xff] %vm14_vm0, %v8198_v14 }
  0x83   :  { %14088 = vst [vmem:[#allocation15_spill] sm:$0xff] %v8219_v18  ;;  %v324_v28 = vld [vmem:[#allocation2 + $0x51] sm:$0xff] }
  0x84   :  { %199 = vst.msk [vmem:[#allocation2 + $0x91] sm:$0xff] %vm14_vm0, %v8205_v15  ;;  %910 = vrot.lane.b32.xlu2 %v325_v26, %s7888_s12  ;;  %v8442_v26 = vld [vmem:[%s14007_s0 + $0x148] sm:$0xff] }
  0x85   :  { %14089 = vst [vmem:[#allocation16_spill] sm:$0xff] %v8227_v20  ;;  %v326_v29 = vld [vmem:[#allocation2 + $0x69] sm:$0xff] }
  0x86   :  { %201 = vst.msk [vmem:[#allocation2 + $0xa9] sm:$0xff] %vm14_vm0, %v8212_v16  ;;  %908 = vrot.lane.b32.xlu1 %v324_v28, %s7888_s12  ;;  %v349_v28 = vld [vmem:[#allocation2 + $0x1b1] sm:$0xff] }
  0x87   :  { %14090 = vst [vmem:[#allocation17_spill] sm:$0xff] %v8235_v22  ;;  %v328_v33 = vld [vmem:[#allocation2 + $0x81] sm:$0xff]  ;;  %v390_v16 = vld [vmem:[#allocation2 + $0x6a] sm:$0xff] }
  0x88   :  { %200 = vst.msk [vmem:[#allocation2 + $0x99] sm:$0xff] %vm14_vm0, %v8219_v18  ;;  %912 = vrot.lane.b32.xlu0 %v326_v29, %s7888_s12 }
  0x89   :  { %14091 = vst [vmem:[#allocation18_spill] sm:$0xff] %v8243_v23  ;;  %v327_v34 = vld [vmem:[#allocation2 + $0x79] sm:$0xff] }
  0x8a   :  { %202 = vst.msk [vmem:[#allocation2 + $0xb1] sm:$0xff] %vm14_vm0, %v8227_v20 }
  0x8b   :  { %14092 = vst [vmem:[#allocation19_spill] sm:$0xff] %v8250_v24  ;;  %v329_v35 = vld [vmem:[#allocation2 + $0x91] sm:$0xff] }
  0x8c   :  { %204 = vst.msk [vmem:[#allocation2 + $0xc9] sm:$0xff] %vm14_vm0, %v8235_v22  ;;  %916 = vrot.lane.b32.xlu2 %v328_v33, %s7888_s12  ;;  %v350_v33 = vld [vmem:[#allocation2 + $0x1b9] sm:$0xff]  ;;  %v384_v22 = vld [vmem:[#allocation2 + $0x22] sm:$0xff] }
  0x8d   :  { %14093 = vst [vmem:[#allocation20_spill] sm:$0xff] %v8257_v25  ;;  %v331_v39 = vld [vmem:[#allocation2 + $0xa9] sm:$0xff] }
  0x8e   :  { %203 = vst.msk [vmem:[#allocation2 + $0xc1] sm:$0xff] %vm14_vm0, %v8243_v23  ;;  %914 = vrot.lane.b32.xlu1 %v327_v34, %s7888_s12  ;;  %v8453_v34 = vld [vmem:[%s14007_s0 + $0x158] sm:$0xff] }
  0x8f   :  { %14094 = vst [vmem:[#allocation21_spill] sm:$0xff] %v8264_v27  ;;  %v330_v40 = vld [vmem:[#allocation2 + $0x99] sm:$0xff] }
  0x90   :  { %205 = vst.msk [vmem:[#allocation2 + $0xd9] sm:$0xff] %vm14_vm0, %v8250_v24  ;;  %918 = vrot.lane.b32.xlu0 %v329_v35, %s7888_s12  ;;  %v8461_v35 = vld [vmem:[%s14007_s0 + $0x168] sm:$0xff] }
  0x91   :  { %207 = vst.msk [vmem:[#allocation2 + $0xf1] sm:$0xff] %vm14_vm0, %v8257_v25  ;;  %v332_v41 = vld [vmem:[#allocation2 + $0xb1] sm:$0xff] }
  0x92   :  { %14095 = vst [vmem:[#allocation22_spill] sm:$0xff] %v8273_v30  ;;  %v396_v13 = vld [vmem:[#allocation2 + $0xb2] sm:$0xff] }
  0x93   :  { %206 = vst.msk [vmem:[#allocation2 + $0xe1] sm:$0xff] %vm14_vm0, %v8264_v27  ;;  %v334_v45 = vld [vmem:[#allocation2 + $0xc9] sm:$0xff] }
  0x94   :  { %14096 = vst [vmem:[#allocation23_spill] sm:$0xff] %v8281_v31  ;;  %922 = vrot.lane.b32.xlu2 %v331_v39, %s7888_s12  ;;  %v8466_v39 = vld [vmem:[%s14007_s0 + $0x160] sm:$0xff] }
  0x95   :  { %14097 = vst [vmem:[#allocation24_spill] sm:$0xff] %v8286_v32  ;;  %v333_v46 = vld [vmem:[#allocation2 + $0xc1] sm:$0xff] }
  0x96   :  { %208 = vst.msk [vmem:[#allocation2 + $0xf9] sm:$0xff] %vm14_vm0, %v8273_v30  ;;  %920 = vrot.lane.b32.xlu1 %v330_v40, %s7888_s12 }
  0x97   :  { %210 = vst.msk [vmem:[#allocation2 + $0x111] sm:$0xff] %vm14_vm0, %v8281_v31  ;;  %v335_v47 = vld [vmem:[#allocation2 + $0xd9] sm:$0xff] }
  0x98   :  { %209 = vst.msk [vmem:[#allocation2 + $0x109] sm:$0xff] %vm14_vm0, %v8286_v32  ;;  %924 = vrot.lane.b32.xlu0 %v332_v41, %s7888_s12  ;;  %v337_v50 = vld [vmem:[#allocation2 + $0xf1] sm:$0xff] }
  0x99   :  { %14098 = vst [vmem:[#allocation25_spill] sm:$0xff] %v8299_v36 }
  0x9a   :  { %211 = vst.msk [vmem:[#allocation2 + $0x121] sm:$0xff] %vm14_vm0, %v8299_v36  ;;  %v336_v51 = vld [vmem:[#allocation2 + $0xe1] sm:$0xff] }
  0x9b   :  { %14099 = vst [vmem:[#allocation26_spill] sm:$0xff] %v8307_v37 }
  0x9c   :  { %14100 = vst [vmem:[#allocation27_spill] sm:$0xff] %v8312_v38  ;;  %928 = vrot.lane.b32.xlu2 %v334_v45, %s7888_s12 }
  0x9d   :  { %213 = vst.msk [vmem:[#allocation2 + $0x139] sm:$0xff] %vm14_vm0, %v8307_v37  ;;  %v338_v52 = vld [vmem:[#allocation2 + $0xf9] sm:$0xff] }
  0x9e   :  { %212 = vst.msk [vmem:[#allocation2 + $0x129] sm:$0xff] %vm14_vm0, %v8312_v38  ;;  %926 = vrot.lane.b32.xlu1 %v333_v46, %s7888_s12  ;;  %v340_v55 = vld [vmem:[#allocation2 + $0x111] sm:$0xff]  ;;  %v402_v10 = vld [vmem:[#allocation2 + $0xfa] sm:$0xff] }
  0x9f   :  { %14101 = vst [vmem:[#allocation28_spill] sm:$0xff] %v8323_v42  ;;  %v339_v56 = vld [vmem:[#allocation2 + $0x109] sm:$0xff] }
  0xa0   :  { %214 = vst.msk [vmem:[#allocation2 + $0x141] sm:$0xff] %vm14_vm0, %v8323_v42  ;;  %930 = vrot.lane.b32.xlu0 %v335_v47, %s7888_s12  ;;  %v8477_v46 = vld [vmem:[%s14007_s0 + $0x170] sm:$0xff]  ;;  %v8600_v42 = vld [vmem:[%s14007_s0 + $0x1d8] sm:$0xff] }
  0xa1   :  { %14102 = vst [vmem:[#allocation29_spill] sm:$0xff] %v8331_v43  ;;  %v341_v57 = vld [vmem:[#allocation2 + $0x121] sm:$0xff] }
  0xa2   :  { %14103 = vst [vmem:[#allocation30_spill] sm:$0xff] %v8336_v44 }
  0xa3   :  { %216 = vst.msk [vmem:[#allocation2 + $0x159] sm:$0xff] %vm14_vm0, %v8331_v43 }
  0xa4   :  { %215 = vst.msk [vmem:[#allocation2 + $0x151] sm:$0xff] %vm14_vm0, %v8336_v44  ;;  %934 = vrot.lane.b32.xlu2 %v337_v50, %s7888_s12  ;;  %v343_v61 = vld [vmem:[#allocation2 + $0x139] sm:$0xff] }
  0xa5   :  { %14104 = vst [vmem:[#allocation31_spill] sm:$0xff] %v8347_v48  ;;  %v342_v62 = vld [vmem:[#allocation2 + $0x129] sm:$0xff]  ;;  %v8487_v50 = vld [vmem:[%s14007_s0 + $0x180] sm:$0xff] }
  0xa6   :  { %217 = vst.msk [vmem:[#allocation2 + $0x169] sm:$0xff] %vm14_vm0, %v8347_v48  ;;  %932 = vrot.lane.b32.xlu1 %v336_v51, %s7888_s12  ;;  %v8492_v51 = vld [vmem:[%s14007_s0 + $0x178] sm:$0xff] }
  0xa7   :  { %14105 = vst [vmem:[#allocation32_spill] sm:$0xff] %v8355_v49  ;;  %v344_v63 = vld [vmem:[#allocation2 + $0x141] sm:$0xff] }
  0xa8   :  { %218 = vst.msk [vmem:[#allocation2 + $0x171] sm:$0xff] %vm14_vm0, %v8355_v49  ;;  %936 = vrot.lane.b32.xlu0 %v338_v52, %s7888_s12  ;;  %v408_v7 = vld [vmem:[#allocation2 + $0x142] sm:$0xff] }
  0xa9   :  { %14106 = vst [vmem:[#allocation33_spill] sm:$0xff] %v8365_v53 }
  0xaa   :  { %14107 = vst [vmem:[#allocation34_spill] sm:$0xff] %v8370_v54  ;;  %v346_v5 = vld [vmem:[#allocation2 + $0x159] sm:$0xff] }
  0xab   :  { %222 = vst.msk [vmem:[#allocation2 + $0x1d1] sm:$0xff] %vm14_vm0, %v8365_v53  ;;  %v345_v6 = vld [vmem:[#allocation2 + $0x151] sm:$0xff] }
  0xac   :  { %221 = vst.msk [vmem:[#allocation2 + $0x1c9] sm:$0xff] %vm14_vm0, %v8370_v54  ;;  %940 = vrot.lane.b32.xlu2 %v340_v55, %s7888_s12  ;;  %v413_v53 = vld [vmem:[#allocation2 + $0x1b2] sm:$0xff] }
  0xad   :  { %14108 = vst [vmem:[#allocation35_spill] sm:$0xff] %v8381_v58  ;;  %v347_v17 = vld [vmem:[#allocation2 + $0x169] sm:$0xff]  ;;  %v8480_v47 = vpop.permute.xlu2 %902 }
  0xae   :  { %223 = vst.msk [vmem:[#allocation2 + $0x1e1] sm:$0xff] %vm14_vm0, %v8381_v58  ;;  %938 = vrot.lane.b32.xlu1 %v339_v56, %s7888_s12 }
  0xaf   :  { %14109 = vst [vmem:[#allocation36_spill] sm:$0xff] %v8389_v59  ;;  %v348_v29 = vld [vmem:[#allocation2 + $0x171] sm:$0xff] }
  0xb0   :  { %14110 = vst [vmem:[#allocation37_spill] sm:$0xff] %v8394_v60  ;;  %942 = vrot.lane.b32.xlu0 %v341_v57, %s7888_s12  ;;  %v8503_v57 = vld [vmem:[%s14007_s0 + $0x188] sm:$0xff] }
  0xb1   :  { %225 = vst.msk [vmem:[#allocation2 + $0x1f9] sm:$0xff] %vm14_vm0, %v8389_v59  ;;  %v407_v59 = vld [vmem:[#allocation2 + $0x13a] sm:$0xff]  ;;  %v411_v58 = vld [vmem:[#allocation2 + $0x16a] sm:$0xff] }
  0xb2   :  { %224 = vst.msk [vmem:[#allocation2 + $0x1e9] sm:$0xff] %vm14_vm0, %v8394_v60  ;;  %v352_v40 = vld [vmem:[#allocation2 + $0x1d1] sm:$0xff]  ;;  %v410_v60 = vld [vmem:[#allocation2 + $0x15a] sm:$0xff] }
  0xb3   :  { %14111 = vst [vmem:[#allocation38_spill] sm:$0xff] %v8405_v0  ;;  %v351_v41 = vld [vmem:[#allocation2 + $0x1c9] sm:$0xff]  ;;  %v416_v54 = vld [vmem:[#allocation2 + $0x1d2] sm:$0xff] }
  0xb4   :  { %946 = vrot.lane.b32.xlu2 %v343_v61, %s7888_s12  ;;  %226 = vst.msk [vmem:[#allocation2 + $0x201] sm:$0xff] %vm14_vm0, %v8405_v0  ;;  %v8511_v61 = vld [vmem:[%s14007_s0 + $0x198] sm:$0xff]  ;;  %v405_v0 = vld [vmem:[#allocation2 + $0x122] sm:$0xff] }
  0xb5   :  { %14112 = vst [vmem:[#allocation39_spill] sm:$0xff] %v8413_v1  ;;  %v353_v45 = vld [vmem:[#allocation2 + $0x1e1] sm:$0xff] }
  0xb6   :  { %14113 = vst [vmem:[#allocation40_spill] sm:$0xff] %v8418_v4  ;;  %944 = vrot.lane.b32.xlu1 %v342_v62, %s7888_s12  ;;  %v8516_v62 = vld [vmem:[%s14007_s0 + $0x190] sm:$0xff] }
  0xb7   :  { %228 = vst.msk [vmem:[#allocation2 + $0x219] sm:$0xff] %vm14_vm0, %v8413_v1  ;;  %v401_v1 = vld [vmem:[#allocation2 + $0xf2] sm:$0xff] }
  0xb8   :  { %948 = vrot.lane.b32.xlu0 %v344_v63, %s7888_s12  ;;  %227 = vst.msk [vmem:[#allocation2 + $0x211] sm:$0xff] %vm14_vm0, %v8418_v4  ;;  %v355_v52 = vld [vmem:[#allocation2 + $0x1f9] sm:$0xff] }
  0xb9   :  { %14114 = vst [vmem:[#allocation41_spill] sm:$0xff] %v8429_v19  ;;  %v354_v55 = vld [vmem:[#allocation2 + $0x1e9] sm:$0xff]  ;;  %v404_v4 = vld [vmem:[#allocation2 + $0x112] sm:$0xff] }
  0xba   :  { %229 = vst.msk [vmem:[#allocation2 + $0x229] sm:$0xff] %vm14_vm0, %v8429_v19  ;;  %v399_v19 = vld [vmem:[#allocation2 + $0xda] sm:$0xff] }
  0xbb   :  { %14115 = vst [vmem:[#allocation42_spill] sm:$0xff] %v8437_v21  ;;  %v356_v56 = vld [vmem:[#allocation2 + $0x201] sm:$0xff] }
  0xbc   :  { %952 = vrot.lane.b32.xlu2 %v346_v5, %s7888_s12  ;;  %14116 = vst [vmem:[#allocation43_spill] sm:$0xff] %v8442_v26 }
  0xbd   :  { %231 = vst.msk [vmem:[#allocation2 + $0x241] sm:$0xff] %vm14_vm0, %v8437_v21  ;;  %v395_v21 = vld [vmem:[#allocation2 + $0xaa] sm:$0xff] }
  0xbe   :  { %950 = vrot.lane.b32.xlu1 %v345_v6, %s7888_s12  ;;  %230 = vst.msk [vmem:[#allocation2 + $0x231] sm:$0xff] %vm14_vm0, %v8442_v26  ;;  %v358_v5 = vld [vmem:[#allocation2 + $0x219] sm:$0xff]  ;;  %v398_v26 = vld [vmem:[#allocation2 + $0xca] sm:$0xff] }
  0xbf   :  { %14117 = vst [vmem:[#allocation44_spill] sm:$0xff] %v8453_v34  ;;  %v357_v6 = vld [vmem:[#allocation2 + $0x211] sm:$0xff] }
  0xc0   :  { %954 = vrot.lane.b32.xlu0 %v347_v17, %s7888_s12  ;;  %232 = vst.msk [vmem:[#allocation2 + $0x249] sm:$0xff] %vm14_vm0, %v8453_v34  ;;  %v393_v34 = vld [vmem:[#allocation2 + $0x92] sm:$0xff] }
  0xc1   :  { %14118 = vst [vmem:[#allocation45_spill] sm:$0xff] %v8461_v35  ;;  %v359_v17 = vld [vmem:[#allocation2 + $0x229] sm:$0xff] }
  0xc2   :  { %14119 = vst [vmem:[#allocation46_spill] sm:$0xff] %v8466_v39 }
  0xc3   :  { %234 = vst.msk [vmem:[#allocation2 + $0x261] sm:$0xff] %vm14_vm0, %v8461_v35  ;;  %v389_v35 = vld [vmem:[#allocation2 + $0x62] sm:$0xff] }
  0xc4   :  { %958 = vrot.lane.b32.xlu2 %v349_v28, %s7888_s12  ;;  %233 = vst.msk [vmem:[#allocation2 + $0x259] sm:$0xff] %vm14_vm0, %v8466_v39  ;;  %v8529_v28 = vld [vmem:[%s14007_s0 + $0x1a0] sm:$0xff] }
  0xc5   :  { %14120 = vst [vmem:[#allocation47_spill] sm:$0xff] %v8477_v46  ;;  %v392_v39 = vld [vmem:[#allocation2 + $0x82] sm:$0xff] }
  0xc6   :  { %956 = vrot.lane.b32.xlu1 %v348_v29, %s7888_s12  ;;  %235 = vst.msk [vmem:[#allocation2 + $0x271] sm:$0xff] %vm14_vm0, %v8477_v46  ;;  %v8532_v29 = vpop.permute.xlu0 %894  ;;  %v387_v46 = vld [vmem:[#allocation2 + $0x4a] sm:$0xff] }
  0xc7   :  { %14121 = vst [vmem:[#allocation48_spill] sm:$0xff] %v8487_v50 }
  0xc8   :  { %960 = vrot.lane.b32.xlu0 %v350_v33, %s7888_s12  ;;  %14122 = vst [vmem:[#allocation49_spill] sm:$0xff] %v8492_v51  ;;  %v8539_v33 = vld [vmem:[%s14007_s0 + $0x1b0] sm:$0xff] }
  0xc9   :  { %237 = vst.msk [vmem:[#allocation2 + $0x289] sm:$0xff] %vm14_vm0, %v8487_v50  ;;  %v383_v50 = vld [vmem:[#allocation2 + $0x1a] sm:$0xff] }
  0xca   :  { %236 = vst.msk [vmem:[#allocation2 + $0x279] sm:$0xff] %vm14_vm0, %v8492_v51  ;;  %v364_v48 = vld [vmem:[#allocation2 + $0x261] sm:$0xff] }
  0xcb   :  { %14123 = vst [vmem:[#allocation50_spill] sm:$0xff] %v8503_v57  ;;  %v363_v43 = vld [vmem:[#allocation2 + $0x259] sm:$0xff] }
  0xcc   :  { %964 = vrot.lane.b32.xlu2 %v352_v40, %s7888_s12  ;;  %238 = vst.msk [vmem:[#allocation2 + $0x291] sm:$0xff] %vm14_vm0, %v8503_v57  ;;  %v8544_v40 = vld [vmem:[%s14007_s0 + $0x1a8] sm:$0xff]  ;;  %v386_v51 = vld [vmem:[#allocation2 + $0x3a] sm:$0xff] }
  0xcd   :  { %14124 = vst [vmem:[#allocation51_spill] sm:$0xff] %v8511_v61  ;;  %v365_v44 = vld [vmem:[#allocation2 + $0x271] sm:$0xff]  ;;  %v381_v57 = vld [vmem:[#allocation2 + $0x2] sm:$0xff] }
  0xce   :  { %962 = vrot.lane.b32.xlu1 %v351_v41, %s7888_s12  ;;  %14125 = vst [vmem:[#allocation52_spill] sm:$0xff] %v8516_v62  ;;  %v8580_v49 = vpop.permute.xlu0 %896 }
  0xcf   :  { %240 = vst.msk [vmem:[#allocation2 + $0x2a9] sm:$0xff] %vm14_vm0, %v8511_v61 }
  0xd0   :  { %966 = vrot.lane.b32.xlu0 %v353_v45, %s7888_s12  ;;  %239 = vst.msk [vmem:[#allocation2 + $0x2a1] sm:$0xff] %vm14_vm0, %v8516_v62  ;;  %v361_v45 = vld [vmem:[#allocation2 + $0x241] sm:$0xff]  ;;  %v367_v37 = vld [vmem:[#allocation2 + $0x289] sm:$0xff] }
  0xd1   :  { %14126 = vst [vmem:[#allocation53_spill] sm:$0xff] %v8529_v28 }
  0xd2   :  { %241 = vst.msk [vmem:[#allocation2 + $0x2b9] sm:$0xff] %vm14_vm0, %v8529_v28 }
  0xd3   :  { %14127 = vst [vmem:[#allocation54_spill] sm:$0xff] %v8539_v33  ;;  %v368_v38 = vld [vmem:[#allocation2 + $0x291] sm:$0xff] }
  0xd4   :  { %970 = vrot.lane.b32.xlu2 %v355_v52, %s7888_s12  ;;  %14128 = vst [vmem:[#allocation55_spill] sm:$0xff] %v8544_v40  ;;  %v360_v52 = vld [vmem:[#allocation2 + $0x231] sm:$0xff] }
  0xd5   :  { %243 = vst.msk [vmem:[#allocation2 + $0x2d1] sm:$0xff] %vm14_vm0, %v8539_v33 }
  0xd6   :  { %968 = vrot.lane.b32.xlu1 %v354_v55, %s7888_s12  ;;  %v8521_v63 = vpop.permute.xlu2 %904  ;;  %242 = vst.msk [vmem:[#allocation2 + $0x2c1] sm:$0xff] %vm14_vm0, %v8544_v40  ;;  %v362_v55 = vld [vmem:[#allocation2 + $0x249] sm:$0xff] }
  0xd7   :  { %14136 = vst [vmem:[#allocation63_spill] sm:$0xff] %v8600_v42  ;;  %v369_v36 = vld [vmem:[#allocation2 + $0x2a1] sm:$0xff] }
  0xd8   :  { %972 = vrot.lane.b32.xlu0 %v356_v56, %s7888_s12  ;;  %v8557_v56 = vld [vmem:[%s14007_s0 + $0x1b8] sm:$0xff]  ;;  %248 = vst.msk [vmem:[#allocation2 + $0x309] sm:$0xff] %vm14_vm0, %v8600_v42 }
  0xd9   :  { %14130 = vst [vmem:[#allocation57_spill] sm:$0xff] %v8557_v56  ;;  %v371_v33 = vld [vmem:[#allocation2 + $0x2b9] sm:$0xff] }
  0xda   :  { %244 = vst.msk [vmem:[#allocation2 + $0x2d9] sm:$0xff] %vm14_vm0, %v8557_v56  ;;  %v370_v56 = vld [vmem:[#allocation2 + $0x2a9] sm:$0xff] }
  0xdc   :  { %976 = vrot.lane.b32.xlu2 %v358_v5, %s7888_s12  ;;  %v8565_v5 = vld [vmem:[%s14007_s0 + $0x1c8] sm:$0xff] }
  0xdd   :  { %14131 = vst [vmem:[#allocation58_spill] sm:$0xff] %v8565_v5  ;;  %v372_v31 = vld [vmem:[#allocation2 + $0x2c1] sm:$0xff] }
  0xde   :  { %974 = vrot.lane.b32.xlu1 %v357_v6, %s7888_s12  ;;  %v8549_v41 = vpop.permute.xlu2 %910  ;;  %v8570_v6 = vld [vmem:[%s14007_s0 + $0x1c0] sm:$0xff]  ;;  %246 = vst.msk [vmem:[#allocation2 + $0x2f1] sm:$0xff] %vm14_vm0, %v8565_v5 }
  0xdf   :  { %14129 = vst [vmem:[#allocation56_spill] sm:$0xff] %v8549_v41  ;;  %v378_v25 = vld [vmem:[#allocation2 + $0x309] sm:$0xff] }
  0xe0   :  { %978 = vrot.lane.b32.xlu0 %v359_v17, %s7888_s12  ;;  %14132 = vst [vmem:[#allocation59_spill] sm:$0xff] %v8570_v6  ;;  %v8573_v17 = vpop.permute.xlu1 %898 }
  0xe1   :  { %245 = vst.msk [vmem:[#allocation2 + $0x2e9] sm:$0xff] %vm14_vm0, %v8570_v6  ;;  %v366_v6 = vld [vmem:[#allocation2 + $0x279] sm:$0xff] }
  0xe2   :  { %v374_v40 = vld [vmem:[#allocation2 + $0x2d9] sm:$0xff] }
  0xe4   :  { %982 = vrot.lane.b32.xlu2 %v361_v45, %s7888_s12 }
  0xe6   :  { %980 = vrot.lane.b32.xlu1 %v360_v52, %s7888_s12  ;;  %v8577_v45 = vpop.permute.xlu2 %916  ;;  %v8587_v52 = vld [vmem:[%s14007_s0 + $0x1d0] sm:$0xff] }
  0xe7   :  { %14133 = vst [vmem:[#allocation60_spill] sm:$0xff] %v8577_v45 }
  0xe8   :  { %984 = vrot.lane.b32.xlu0 %v362_v55, %s7888_s12  ;;  %14134 = vst [vmem:[#allocation61_spill] sm:$0xff] %v8587_v52  ;;  %v8595_v55 = vld [vmem:[%s14007_s0 + $0x1e0] sm:$0xff]  ;;  %v375_v28 = vld [vmem:[#allocation2 + $0x2e9] sm:$0xff] }
  0xe9   :  { %247 = vst.msk [vmem:[#allocation2 + $0x301] sm:$0xff] %vm14_vm0, %v8587_v52  ;;  %v756_v41 = vld [vmem:[#allocation2 + $0x2e9] sm:$0xff] }
  0xea   :  { %14135 = vst [vmem:[#allocation62_spill] sm:$0xff] %v8595_v55 }
  0xeb   :  { %249 = vst.msk [vmem:[#allocation2 + $0x319] sm:$0xff] %vm14_vm0, %v8595_v55 }
  0xec   :  { %988 = vrot.lane.b32.xlu2 %v364_v48, %s7888_s12 }
  0xee   :  { %986 = vrot.lane.b32.xlu1 %v363_v43, %s7888_s12  ;;  %v8605_v5 = vpop.permute.xlu2 %922  ;;  %v8617_v43 = vld [vmem:[%s14007_s0 + $0x1e8] sm:$0xff] }
  0xef   :  { %14137 = vst [vmem:[#allocation64_spill] sm:$0xff] %v8605_v5  ;;  %v530_v5 = vld [vmem:[#allocation2 + $0x111] sm:$0xff] }
  0xf0   :  { %990 = vrot.lane.b32.xlu0 %v365_v44, %s7888_s12  ;;  %v8610_v48 = vpop.permute.xlu1 %900  ;;  %14138 = vst [vmem:[#allocation65_spill] sm:$0xff] %v8617_v43  ;;  %v377_v30 = vld [vmem:[#allocation2 + $0x301] sm:$0xff] }
  0xf1   :  { %250 = vst.msk [vmem:[#allocation2 + $0x321] sm:$0xff] %vm14_vm0, %v8617_v43 }
  0xf2   :  { %v8612_v52 = vpop.permute.xlu0 %906 }
  0xf4   :  { %994 = vrot.lane.b32.xlu2 %v367_v37, %s7888_s12 }
  0xf6   :  { %992 = vrot.lane.b32.xlu1 %v366_v6, %s7888_s12  ;;  %v8623_v44 = vpop.permute.xlu2 %928 }
  0xf7   :  { %14139 = vst [vmem:[#allocation66_spill] sm:$0xff] %v8623_v44  ;;  %v306_v44 = vld [vmem:[#allocation2 + $0x2a8] sm:$0xff] }
  0xf8   :  { %996 = vrot.lane.b32.xlu0 %v368_v38, %s7888_s12  ;;  %v8626_v55 = vpop.permute.xlu1 %908  ;;  %v373_v38 = vld [vmem:[#allocation2 + $0x2d1] sm:$0xff]  ;;  %v380_v62 = vld [vmem:[#allocation2 + $0x321] sm:$0xff] }
  0xfa   :  { %v8628_v42 = vpop.permute.xlu0 %912 }
  0xfb   :  { %14140 = vst [vmem:[#allocation67_spill] sm:$0xff] %v8628_v42  ;;  %v696_v42 = vld [vmem:[#allocation2 + $0x318] sm:$0xff] }
  0xfc   :  { %1000 = vrot.lane.b32.xlu2 %v370_v56, %s7888_s12 }
  0xfe   :  { %998 = vrot.lane.b32.xlu1 %v369_v36, %s7888_s12  ;;  %v8632_v37 = vpop.permute.xlu2 %934 }
  0xff   :  { %14141 = vst [vmem:[#allocation68_spill] sm:$0xff] %v8632_v37  ;;  %v8919_v37 = vld [vmem:[%s14007_s0 + $0xf8] sm:$0xff] }
 0x100   :  { %1002 = vrot.lane.b32.xlu0 %v371_v33, %s7888_s12  ;;  %v8635_v6 = vpop.permute.xlu1 %914  ;;  %v376_v33 = vld [vmem:[#allocation2 + $0x2f1] sm:$0xff]  ;;  %14227 = vst [vmem:[#allocation154_spill] sm:$0xff] %v8919_v37 }
 0x101   :  { %14142 = vst [vmem:[#allocation69_spill] sm:$0xff] %v8635_v6  ;;  %v685_v6 = vld [vmem:[#allocation2 + $0x290] sm:$0xff] }
 0x102   :  { %v8637_v43 = vpop.permute.xlu0 %918  ;;  %220 = vst.msk [vmem:[#allocation2 + $0x189] sm:$0xff] %vm14_vm0, %v8919_v37 }
 0x103   :  { %14143 = vst [vmem:[#allocation70_spill] sm:$0xff] %v8637_v43  ;;  %v569_v43 = vld [vmem:[#allocation2 + $0x319] sm:$0xff] }
 0x104   :  { %1006 = vrot.lane.b32.xlu2 %v373_v38, %s7888_s12 }
 0x106   :  { %1004 = vrot.lane.b32.xlu1 %v372_v31, %s7888_s12  ;;  %v8641_v32 = vpop.permute.xlu2 %940 }
 0x107   :  { %14144 = vst [vmem:[#allocation71_spill] sm:$0xff] %v8641_v32 }
 0x108   :  { %1008 = vrot.lane.b32.xlu0 %v374_v40, %s7888_s12  ;;  %v8644_v36 = vpop.permute.xlu1 %920  ;;  %v379_v40 = vld [vmem:[#allocation2 + $0x319] sm:$0xff] }
 0x109   :  { %14145 = vst [vmem:[#allocation72_spill] sm:$0xff] %v8644_v36  ;;  %v560_v36 = vld [vmem:[#allocation2 + $0x2a9] sm:$0xff] }
 0x10a   :  { %v8646_v56 = vpop.permute.xlu0 %924 }
 0x10b   :  { %14146 = vst [vmem:[#allocation73_spill] sm:$0xff] %v8646_v56 }
 0x10c   :  { %1012 = vrot.lane.b32.xlu2 %v376_v33, %s7888_s12 }
 0x10e   :  { %1010 = vrot.lane.b32.xlu1 %v375_v28, %s7888_s12  ;;  %v8650_v61 = vpop.permute.xlu2 %946 }
 0x10f   :  { %14147 = vst [vmem:[#allocation74_spill] sm:$0xff] %v8650_v61 }
 0x110   :  { %1014 = vrot.lane.b32.xlu0 %v377_v30, %s7888_s12  ;;  %v8653_v31 = vpop.permute.xlu1 %926  ;;  %v382_v30 = vld [vmem:[#allocation2 + $0xa] sm:$0xff] }
 0x111   :  { %14148 = vst [vmem:[#allocation75_spill] sm:$0xff] %v8653_v31  ;;  %v310_v31 = vld [vmem:[#allocation2 + $0x2d8] sm:$0xff] }
 0x112   :  { %v8655_v38 = vpop.permute.xlu0 %930 }
 0x113   :  { %14149 = vst [vmem:[#allocation76_spill] sm:$0xff] %v8655_v38  ;;  %v296_v38 = vld [vmem:[#allocation2 + $0x230] sm:$0xff] }
 0x114   :  { %1018 = vrot.lane.b32.xlu2 %v379_v40, %s7888_s12 }
 0x116   :  { %1016 = vrot.lane.b32.xlu1 %v378_v25, %s7888_s12  ;;  %v8659_v27 = vpop.permute.xlu2 %952 }
 0x117   :  { %14150 = vst [vmem:[#allocation77_spill] sm:$0xff] %v8659_v27 }
 0x118   :  { %1020 = vrot.lane.b32.xlu0 %v380_v62, %s7888_s12  ;;  %v8662_v28 = vpop.permute.xlu1 %932  ;;  %v385_v62 = vld [vmem:[#allocation2 + $0x32] sm:$0xff] }
 0x119   :  { %14151 = vst [vmem:[#allocation78_spill] sm:$0xff] %v8662_v28  ;;  %v275_v28 = vld [vmem:[#allocation2 + $0x108] sm:$0xff] }
 0x11a   :  { %v8664_v33 = vpop.permute.xlu0 %936 }
 0x11b   :  { %14152 = vst [vmem:[#allocation79_spill] sm:$0xff] %v8664_v33  ;;  %v263_v33 = vld [vmem:[#allocation2 + $0x78] sm:$0xff] }
 0x11c   :  { %1152 = vrot.lane.b32.xlu2 %v382_v30, %s7889_s29 }
 0x11e   :  { %1150 = vrot.lane.b32.xlu1 %v381_v57, %s7889_s29  ;;  %v8668_v24 = vpop.permute.xlu2 %958 }
 0x11f   :  { %14153 = vst [vmem:[#allocation80_spill] sm:$0xff] %v8668_v24  ;;  %v682_v24 = vld [vmem:[#allocation2 + $0x270] sm:$0xff] }
 0x120   :  { %1154 = vrot.lane.b32.xlu0 %v383_v50, %s7889_s29  ;;  %v8671_v25 = vpop.permute.xlu1 %938  ;;  %v388_v50 = vld [vmem:[#allocation2 + $0x52] sm:$0xff] }
 0x121   :  { %14154 = vst [vmem:[#allocation81_spill] sm:$0xff] %v8671_v25  ;;  %v259_v25 = vld [vmem:[#allocation2 + $0x48] sm:$0xff] }
 0x122   :  { %v8673_v40 = vpop.permute.xlu0 %942 }
 0x123   :  { %14155 = vst [vmem:[#allocation82_spill] sm:$0xff] %v8673_v40  ;;  %v441_v40 = vld [vmem:[#allocation2 + $0x302] sm:$0xff] }
 0x124   :  { %1158 = vrot.lane.b32.xlu2 %v385_v62, %s7889_s29 }
 0x126   :  { %1156 = vrot.lane.b32.xlu1 %v384_v22, %s7889_s29  ;;  %v8677_v23 = vpop.permute.xlu2 %964 }
 0x127   :  { %14156 = vst [vmem:[#allocation83_spill] sm:$0xff] %v8677_v23  ;;  %v558_v23 = vld [vmem:[#allocation2 + $0x291] sm:$0xff] }
 0x128   :  { %1160 = vrot.lane.b32.xlu0 %v386_v51, %s7889_s29  ;;  %v8680_v57 = vpop.permute.xlu1 %944  ;;  %v391_v51 = vld [vmem:[#allocation2 + $0x7a] sm:$0xff] }
 0x129   :  { %14157 = vst [vmem:[#allocation84_spill] sm:$0xff] %v8680_v57  ;;  %v440_v57 = vld [vmem:[#allocation2 + $0x2f2] sm:$0xff] }
 0x12a   :  { %v8682_v30 = vpop.permute.xlu0 %948 }
 0x12b   :  { %14158 = vst [vmem:[#allocation85_spill] sm:$0xff] %v8682_v30  ;;  %v435_v30 = vld [vmem:[#allocation2 + $0x2ba] sm:$0xff] }
 0x12c   :  { %1164 = vrot.lane.b32.xlu2 %v388_v50, %s7889_s29 }
 0x12e   :  { %1162 = vrot.lane.b32.xlu1 %v387_v46, %s7889_s29  ;;  %v8686_v20 = vpop.permute.xlu2 %970 }
 0x12f   :  { %14159 = vst [vmem:[#allocation86_spill] sm:$0xff] %v8686_v20  ;;  %v308_v20 = vld [vmem:[#allocation2 + $0x2c0] sm:$0xff] }
 0x130   :  { %1166 = vrot.lane.b32.xlu0 %v389_v35, %s7889_s29  ;;  %v8689_v22 = vpop.permute.xlu1 %950  ;;  %v394_v35 = vld [vmem:[#allocation2 + $0x9a] sm:$0xff] }
 0x131   :  { %14160 = vst [vmem:[#allocation87_spill] sm:$0xff] %v8689_v22  ;;  %v434_v22 = vld [vmem:[#allocation2 + $0x2aa] sm:$0xff] }
 0x132   :  { %v8691_v62 = vpop.permute.xlu0 %954 }
 0x133   :  { %14161 = vst [vmem:[#allocation88_spill] sm:$0xff] %v8691_v62  ;;  %v429_v62 = vld [vmem:[#allocation2 + $0x272] sm:$0xff] }
 0x134   :  { %1170 = vrot.lane.b32.xlu2 %v391_v51, %s7889_s29 }
 0x136   :  { %1168 = vrot.lane.b32.xlu1 %v390_v16, %s7889_s29  ;;  %v8695_v18 = vpop.permute.xlu2 %976 }
 0x137   :  { %14162 = vst [vmem:[#allocation89_spill] sm:$0xff] %v8695_v18  ;;  %v276_v18 = vld [vmem:[#allocation2 + $0x110] sm:$0xff] }
 0x138   :  { %1172 = vrot.lane.b32.xlu0 %v392_v39, %s7889_s29  ;;  %v8698_v46 = vpop.permute.xlu1 %956  ;;  %v397_v39 = vld [vmem:[#allocation2 + $0xc2] sm:$0xff] }
 0x139   :  { %14163 = vst [vmem:[#allocation90_spill] sm:$0xff] %v8698_v46  ;;  %v423_v46 = vld [vmem:[#allocation2 + $0x22a] sm:$0xff] }
 0x13a   :  { %v8700_v50 = vpop.permute.xlu0 %960 }
 0x13b   :  { %14164 = vst [vmem:[#allocation91_spill] sm:$0xff] %v8700_v50  ;;  %v623_v50 = vld [vmem:[#allocation2 + $0x2a2] sm:$0xff] }
 0x13c   :  { %1176 = vrot.lane.b32.xlu2 %v394_v35, %s7889_s29 }
 0x13e   :  { %1174 = vrot.lane.b32.xlu1 %v393_v34, %s7889_s29  ;;  %v8704_v15 = vpop.permute.xlu2 %982 }
 0x13f   :  { %14165 = vst [vmem:[#allocation92_spill] sm:$0xff] %v8704_v15 }
 0x140   :  { %1178 = vrot.lane.b32.xlu0 %v395_v21, %s7889_s29  ;;  %v8707_v16 = vpop.permute.xlu1 %962  ;;  %v400_v21 = vld [vmem:[#allocation2 + $0xe2] sm:$0xff] }
 0x141   :  { %14166 = vst [vmem:[#allocation93_spill] sm:$0xff] %v8707_v16 }
 0x142   :  { %v8709_v51 = vpop.permute.xlu0 %966 }
 0x143   :  { %14167 = vst [vmem:[#allocation94_spill] sm:$0xff] %v8709_v51 }
 0x144   :  { %1182 = vrot.lane.b32.xlu2 %v397_v39, %s7889_s29 }
 0x146   :  { %1180 = vrot.lane.b32.xlu1 %v396_v13, %s7889_s29  ;;  %v8713_v14 = vpop.permute.xlu2 %988 }
 0x147   :  { %14168 = vst [vmem:[#allocation95_spill] sm:$0xff] %v8713_v14  ;;  %v438_v14 = vld [vmem:[#allocation2 + $0x2da] sm:$0xff] }
 0x148   :  { %1184 = vrot.lane.b32.xlu0 %v398_v26, %s7889_s29  ;;  %v8716_v34 = vpop.permute.xlu1 %968  ;;  %v403_v26 = vld [vmem:[#allocation2 + $0x10a] sm:$0xff] }
 0x149   :  { %14169 = vst [vmem:[#allocation96_spill] sm:$0xff] %v8716_v34  ;;  %v316_v34 = vld [vmem:[#allocation2 + $0x320] sm:$0xff] }
 0x14a   :  { %v8718_v35 = vpop.permute.xlu0 %972 }
 0x14b   :  { %14170 = vst [vmem:[#allocation97_spill] sm:$0xff] %v8718_v35 }
 0x14c   :  { %1188 = vrot.lane.b32.xlu2 %v400_v21, %s7889_s29 }
 0x14e   :  { %1186 = vrot.lane.b32.xlu1 %v399_v19, %s7889_s29  ;;  %v8722_v12 = vpop.permute.xlu2 %994 }
 0x14f   :  { %14171 = vst [vmem:[#allocation98_spill] sm:$0xff] %v8722_v12  ;;  %v432_v12 = vld [vmem:[#allocation2 + $0x292] sm:$0xff] }
 0x150   :  { %1190 = vrot.lane.b32.xlu0 %v401_v1, %s7889_s29  ;;  %v8725_v13 = vpop.permute.xlu1 %974  ;;  %v406_v1 = vld [vmem:[#allocation2 + $0x12a] sm:$0xff] }
 0x151   :  { %14172 = vst [vmem:[#allocation99_spill] sm:$0xff] %v8725_v13  ;;  %v293_v13 = vld [vmem:[#allocation2 + $0x210] sm:$0xff] }
 0x152   :  { %v8727_v39 = vpop.permute.xlu0 %978 }
 0x153   :  { %14173 = vst [vmem:[#allocation100_spill] sm:$0xff] %v8727_v39  ;;  %v269_v39 = vld [vmem:[#allocation2 + $0xc0] sm:$0xff] }
 0x154   :  { %1194 = vrot.lane.b32.xlu2 %v403_v26, %s7889_s29 }
 0x156   :  { %1192 = vrot.lane.b32.xlu1 %v402_v10, %s7889_s29  ;;  %v8731_v11 = vpop.permute.xlu2 %1000 }
 0x157   :  { %14174 = vst [vmem:[#allocation101_spill] sm:$0xff] %v8731_v11  ;;  %v420_v11 = vld [vmem:[#allocation2 + $0x202] sm:$0xff] }
 0x158   :  { %1196 = vrot.lane.b32.xlu0 %v404_v4, %s7889_s29  ;;  %v8734_v19 = vpop.permute.xlu1 %980  ;;  %v409_v4 = vld [vmem:[#allocation2 + $0x152] sm:$0xff] }
 0x159   :  { %14175 = vst [vmem:[#allocation102_spill] sm:$0xff] %v8734_v19 }
 0x15a   :  { %v8736_v21 = vpop.permute.xlu0 %984 }
 0x15b   :  { %14176 = vst [vmem:[#allocation103_spill] sm:$0xff] %v8736_v21  ;;  %v443_v21 = vld [vmem:[#allocation2 + $0x31a] sm:$0xff] }
 0x15c   :  { %1200 = vrot.lane.b32.xlu2 %v406_v1, %s7889_s29 }
 0x15e   :  { %1198 = vrot.lane.b32.xlu1 %v405_v0, %s7889_s29  ;;  %v8740_v9 = vpop.permute.xlu2 %1006 }
 0x15f   :  { %14177 = vst [vmem:[#allocation104_spill] sm:$0xff] %v8740_v9  ;;  %v419_v9 = vld [vmem:[#allocation2 + $0x1fa] sm:$0xff] }
 0x160   :  { %1202 = vrot.lane.b32.xlu0 %v407_v59, %s7889_s29  ;;  %v8743_v10 = vpop.permute.xlu1 %986  ;;  %v412_v59 = vld [vmem:[#allocation2 + $0x172] sm:$0xff] }
 0x161   :  { %14178 = vst [vmem:[#allocation105_spill] sm:$0xff] %v8743_v10 }
 0x162   :  { %v8745_v26 = vpop.permute.xlu0 %990 }
 0x163   :  { %14179 = vst [vmem:[#allocation106_spill] sm:$0xff] %v8745_v26  ;;  %v437_v26 = vld [vmem:[#allocation2 + $0x2d2] sm:$0xff] }
 0x164   :  { %1206 = vrot.lane.b32.xlu2 %v409_v4, %s7889_s29 }
 0x166   :  { %1204 = vrot.lane.b32.xlu1 %v408_v7, %s7889_s29  ;;  %v8749_v2 = vpop.permute.xlu2 %1012 }
 0x167   :  { %14180 = vst [vmem:[#allocation107_spill] sm:$0xff] %v8749_v2 }
 0x168   :  { %1208 = vrot.lane.b32.xlu0 %v410_v60, %s7889_s29  ;;  %v8752_v0 = vpop.permute.xlu1 %992  ;;  %v415_v60 = vld [vmem:[#allocation2 + $0x1ca] sm:$0xff] }
 0x169   :  { %14181 = vst [vmem:[#allocation108_spill] sm:$0xff] %v8752_v0 }
 0x16a   :  { %v8754_v1 = vpop.permute.xlu0 %996 }
 0x16b   :  { %14182 = vst [vmem:[#allocation109_spill] sm:$0xff] %v8754_v1  ;;  %v431_v1 = vld [vmem:[#allocation2 + $0x28a] sm:$0xff] }
 0x16c   :  { %1212 = vrot.lane.b32.xlu2 %v412_v59, %s7889_s29 }
 0x16e   :  { %1210 = vrot.lane.b32.xlu1 %v411_v58, %s7889_s29  ;;  %v8758_v8 = vpop.permute.xlu2 %1018 }
 0x16f   :  { %14183 = vst [vmem:[#allocation110_spill] sm:$0xff] %v8758_v8  ;;  %v417_v8 = vld [vmem:[#allocation2 + $0x1e2] sm:$0xff] }
 0x170   :  { %1214 = vrot.lane.b32.xlu0 %v413_v53, %s7889_s29  ;;  %v8761_v7 = vpop.permute.xlu1 %998  ;;  %v418_v53 = vld [vmem:[#allocation2 + $0x1ea] sm:$0xff] }
 0x171   :  { %14184 = vst [vmem:[#allocation111_spill] sm:$0xff] %v8761_v7  ;;  %v426_v7 = vld [vmem:[#allocation2 + $0x24a] sm:$0xff] }
 0x172   :  { %v8763_v4 = vpop.permute.xlu0 %1002 }
 0x173   :  { %14185 = vst [vmem:[#allocation112_spill] sm:$0xff] %v8763_v4 }
 0x174   :  { %1218 = vrot.lane.b32.xlu2 %v415_v60, %s7889_s29 }
 0x176   :  { %1216 = vrot.lane.b32.xlu1 %v414_v3, %s7889_s29  ;;  %v8767_v2 = vpop.permute.xlu2 %1152 }
 0x178   :  { %1220 = vrot.lane.b32.xlu0 %v416_v54, %s7889_s29  ;;  %v8770_v58 = vpop.permute.xlu1 %1004  ;;  %v421_v54 = vld [vmem:[#allocation2 + $0x212] sm:$0xff] }
 0x179   :  { %14186 = vst [vmem:[#allocation113_spill] sm:$0xff] %v8770_v58  ;;  %v422_v58 = vld [vmem:[#allocation2 + $0x21a] sm:$0xff] }
 0x17a   :  { %v8772_v59 = vpop.permute.xlu0 %1008 }
 0x17b   :  { %14187 = vst [vmem:[#allocation114_spill] sm:$0xff] %v8772_v59 }
 0x17c   :  { %1224 = vrot.lane.b32.xlu2 %v418_v53, %s7889_s29 }
 0x17e   :  { %1222 = vrot.lane.b32.xlu1 %v417_v8, %s7889_s29  ;;  %v8776_v4 = vpop.permute.xlu2 %1158 }
 0x180   :  { %1226 = vrot.lane.b32.xlu0 %v419_v9, %s7889_s29  ;;  %v8779_v3 = vpop.permute.xlu1 %1010  ;;  %v424_v9 = vld [vmem:[#allocation2 + $0x232] sm:$0xff] }
 0x181   :  { %14188 = vst [vmem:[#allocation115_spill] sm:$0xff] %v8779_v3  ;;  %v425_v3 = vld [vmem:[#allocation2 + $0x242] sm:$0xff] }
 0x182   :  { %v8781_v60 = vpop.permute.xlu0 %1014 }
 0x183   :  { %14189 = vst [vmem:[#allocation116_spill] sm:$0xff] %v8781_v60 }
 0x184   :  { %1230 = vrot.lane.b32.xlu2 %v421_v54, %s7889_s29 }
 0x186   :  { %1228 = vrot.lane.b32.xlu1 %v420_v11, %s7889_s29  ;;  %v8785_v59 = vpop.permute.xlu2 %1164 }
 0x188   :  { %1232 = vrot.lane.b32.xlu0 %v422_v58, %s7889_s29  ;;  %v8788_v8 = vpop.permute.xlu1 %1016  ;;  %v427_v58 = vld [vmem:[#allocation2 + $0x25a] sm:$0xff] }
 0x189   :  { %14190 = vst [vmem:[#allocation117_spill] sm:$0xff] %v8788_v8  ;;  %v428_v8 = vld [vmem:[#allocation2 + $0x262] sm:$0xff] }
 0x18a   :  { %v8790_v53 = vpop.permute.xlu0 %1020 }
 0x18b   :  { %14191 = vst [vmem:[#allocation118_spill] sm:$0xff] %v8790_v53 }
 0x18c   :  { %1236 = vrot.lane.b32.xlu2 %v424_v9, %s7889_s29 }
 0x18e   :  { %1234 = vrot.lane.b32.xlu1 %v423_v46, %s7889_s29  ;;  %v8794_v60 = vpop.permute.xlu2 %1170 }
 0x18f   :  { %14192 = vst [vmem:[#allocation119_spill] sm:$0xff] %v8794_v60  ;;  %v679_v60 = vld [vmem:[#allocation2 + $0x248] sm:$0xff] }
 0x190   :  { %1238 = vrot.lane.b32.xlu0 %v425_v3, %s7889_s29  ;;  %v8797_v11 = vpop.permute.xlu1 %1150  ;;  %v430_v3 = vld [vmem:[#allocation2 + $0x27a] sm:$0xff] }
 0x192   :  { %v8799_v54 = vpop.permute.xlu0 %1154 }
 0x194   :  { %1242 = vrot.lane.b32.xlu2 %v427_v58, %s7889_s29 }
 0x196   :  { %1240 = vrot.lane.b32.xlu1 %v426_v7, %s7889_s29  ;;  %v8803_v53 = vpop.permute.xlu2 %1176 }
 0x197   :  { %14193 = vst [vmem:[#allocation120_spill] sm:$0xff] %v8803_v53 }
 0x198   :  { %1244 = vrot.lane.b32.xlu0 %v428_v8, %s7889_s29  ;;  %v8806_v46 = vpop.permute.xlu1 %1156  ;;  %v433_v8 = vld [vmem:[#allocation2 + $0x2a2] sm:$0xff] }
 0x19a   :  { %v8808_v9 = vpop.permute.xlu0 %1160 }
 0x19c   :  { %1248 = vrot.lane.b32.xlu2 %v430_v3, %s7889_s29 }
 0x19e   :  { %1246 = vrot.lane.b32.xlu1 %v429_v62, %s7889_s29  ;;  %v8812_v27 = vpop.permute.xlu2 %1182 }
 0x19f   :  { %14194 = vst [vmem:[#allocation121_spill] sm:$0xff] %v8812_v27  ;;  %v307_v27 = vld [vmem:[#allocation2 + $0x2b8] sm:$0xff] }
 0x1a0   :  { %1250 = vrot.lane.b32.xlu0 %v431_v1, %s7889_s29  ;;  %v8815_v7 = vpop.permute.xlu1 %1162  ;;  %v436_v1 = vld [vmem:[#allocation2 + $0x2c2] sm:$0xff] }
 0x1a2   :  { %v8817_v58 = vpop.permute.xlu0 %1166 }
 0x1a3   :  { %14195 = vst [vmem:[#allocation122_spill] sm:$0xff] %v8817_v58 }
 0x1a4   :  { %1254 = vrot.lane.b32.xlu2 %v433_v8, %s7889_s29 }
 0x1a6   :  { %1252 = vrot.lane.b32.xlu1 %v432_v12, %s7889_s29  ;;  %v8821_v0 = vpop.permute.xlu2 %1188 }
 0x1a7   :  { %14196 = vst [vmem:[#allocation123_spill] sm:$0xff] %v8821_v0  ;;  %v272_v0 = vld [vmem:[#allocation2 + $0xe0] sm:$0xff] }
 0x1a8   :  { %1256 = vrot.lane.b32.xlu0 %v434_v22, %s7889_s29  ;;  %v8824_v62 = vpop.permute.xlu1 %1168  ;;  %v439_v22 = vld [vmem:[#allocation2 + $0x2ea] sm:$0xff] }
 0x1a9   :  { %14197 = vst [vmem:[#allocation124_spill] sm:$0xff] %v8824_v62 }
 0x1aa   :  { %v8826_v3 = vpop.permute.xlu0 %1172 }
 0x1ab   :  { %14198 = vst [vmem:[#allocation125_spill] sm:$0xff] %v8826_v3  ;;  %v621_v3 = vld [vmem:[#allocation2 + $0x28a] sm:$0xff] }
 0x1ac   :  { %1260 = vrot.lane.b32.xlu2 %v436_v1, %s7889_s29 }
 0x1ae   :  { %1258 = vrot.lane.b32.xlu1 %v435_v30, %s7889_s29  ;;  %v8830_v61 = vpop.permute.xlu2 %1194 }
 0x1af   :  { %14199 = vst [vmem:[#allocation126_spill] sm:$0xff] %v8830_v61  ;;  %v256_v61 = vld [vmem:[#allocation2 + $0x20] sm:$0xff] }
 0x1b0   :  { %1262 = vrot.lane.b32.xlu0 %v437_v26, %s7889_s29  ;;  %v8833_v12 = vpop.permute.xlu1 %1174  ;;  %v442_v26 = vld [vmem:[#allocation2 + $0x30a] sm:$0xff] }
 0x1b1   :  { %14200 = vst [vmem:[#allocation127_spill] sm:$0xff] %v8833_v12  ;;  %v566_v12 = vld [vmem:[#allocation2 + $0x2f1] sm:$0xff] }
 0x1b2   :  { %v8835_v8 = vpop.permute.xlu0 %1178 }
 0x1b3   :  { %14201 = vst [vmem:[#allocation128_spill] sm:$0xff] %v8835_v8  ;;  %v527_v8 = vld [vmem:[#allocation2 + $0xf1] sm:$0xff] }
 0x1b4   :  { %1266 = vrot.lane.b32.xlu2 %v439_v22, %s7889_s29 }
 0x1b6   :  { %1264 = vrot.lane.b32.xlu1 %v438_v14, %s7889_s29  ;;  %v8839_v10 = vpop.permute.xlu2 %1200 }
 0x1b7   :  { %14202 = vst [vmem:[#allocation129_spill] sm:$0xff] %v8839_v10  ;;  %v255_v10 = vld [vmem:[#allocation2 + $0x18] sm:$0xff] }
 0x1b8   :  { %1268 = vrot.lane.b32.xlu0 %v440_v57, %s7889_s29  ;;  %v8842_v30 = vpop.permute.xlu1 %1180  ;;  %v444_v57 = vld [vmem:[#allocation2 + $0x322] sm:$0xff] }
 0x1b9   :  { %14203 = vst [vmem:[#allocation130_spill] sm:$0xff] %v8842_v30 }
 0x1ba   :  { %v8844_v1 = vpop.permute.xlu0 %1184 }
 0x1bb   :  { %14204 = vst [vmem:[#allocation131_spill] sm:$0xff] %v8844_v1  ;;  %v302_v1 = vld [vmem:[#allocation2 + $0x278] sm:$0xff] }
 0x1bc   :  { %1272 = vrot.lane.b32.xlu2 %v442_v26, %s7889_s29 }
 0x1be   :  { %1270 = vrot.lane.b32.xlu1 %v441_v40, %s7889_s29  ;;  %v8848_v32 = vpop.permute.xlu2 %1206 }
 0x1bf   :  { %14205 = vst [vmem:[#allocation132_spill] sm:$0xff] %v8848_v32  ;;  %v257_v32 = vld [vmem:[#allocation2 + $0x30] sm:$0xff] }
 0x1c0   :  { %1274 = vrot.lane.b32.xlu0 %v443_v21, %s7889_s29  ;;  %v8851_v14 = vpop.permute.xlu1 %1186  ;;  %v258_v21 = vld [vmem:[#allocation2 + $0x38] sm:$0xff] }
 0x1c1   :  { %14206 = vst [vmem:[#allocation133_spill] sm:$0xff] %v8851_v14 }
 0x1c2   :  { %v8853_v22 = vpop.permute.xlu0 %1190 }
 0x1c3   :  { %14207 = vst [vmem:[#allocation134_spill] sm:$0xff] %v8853_v22  ;;  %v266_v22 = vld [vmem:[#allocation2 + $0x98] sm:$0xff] }
 0x1c4   :  { %1406 = vrot.lane.b32.xlu2 %v255_v10, %s7890_s30 }
 0x1c6   :  { %1276 = vrot.lane.b32.xlu1 %v444_v57, %s7889_s29  ;;  %v8857_v15 = vpop.permute.xlu2 %1212 }
 0x1c7   :  { %14208 = vst [vmem:[#allocation135_spill] sm:$0xff] %v8857_v15  ;;  %v260_v15 = vld [vmem:[#allocation2 + $0x50] sm:$0xff] }
 0x1c8   :  { %1408 = vrot.lane.b32.xlu0 %v256_v61, %s7890_s30  ;;  %v8860_v40 = vpop.permute.xlu1 %1192  ;;  %v261_v61 = vld [vmem:[#allocation2 + $0x60] sm:$0xff] }
 0x1c9   :  { %14209 = vst [vmem:[#allocation136_spill] sm:$0xff] %v8860_v40 }
 0x1ca   :  { %v8862_v26 = vpop.permute.xlu0 %1196 }
 0x1cb   :  { %14210 = vst [vmem:[#allocation137_spill] sm:$0xff] %v8862_v26  ;;  %v262_v26 = vld [vmem:[#allocation2 + $0x68] sm:$0xff] }
 0x1cc   :  { %1412 = vrot.lane.b32.xlu2 %v258_v21, %s7890_s30 }
 0x1ce   :  { %1410 = vrot.lane.b32.xlu1 %v257_v32, %s7890_s30  ;;  %v8866_v19 = vpop.permute.xlu2 %1218 }
 0x1cf   :  { %14211 = vst [vmem:[#allocation138_spill] sm:$0xff] %v8866_v19 }
 0x1d0   :  { %1414 = vrot.lane.b32.xlu0 %v259_v25, %s7890_s30  ;;  %v8869_v10 = vpop.permute.xlu1 %1198  ;;  %v264_v25 = vld [vmem:[#allocation2 + $0x80] sm:$0xff] }
 0x1d1   :  { %14212 = vst [vmem:[#allocation139_spill] sm:$0xff] %v8869_v10 }
 0x1d2   :  { %v8871_v57 = vpop.permute.xlu0 %1202 }
 0x1d3   :  { %14213 = vst [vmem:[#allocation140_spill] sm:$0xff] %v8871_v57  ;;  %v265_v57 = vld [vmem:[#allocation2 + $0x90] sm:$0xff] }
 0x1d4   :  { %1418 = vrot.lane.b32.xlu2 %v261_v61, %s7890_s30 }
 0x1d6   :  { %1416 = vrot.lane.b32.xlu1 %v260_v15, %s7890_s30  ;;  %v8875_v40 = vpop.permute.xlu2 %1224 }
 0x1d7   :  { %14214 = vst [vmem:[#allocation141_spill] sm:$0xff] %v8875_v40  ;;  %v313_v40 = vld [vmem:[#allocation2 + $0x300] sm:$0xff] }
 0x1d8   :  { %1420 = vrot.lane.b32.xlu0 %v262_v26, %s7890_s30  ;;  %v8878_v32 = vpop.permute.xlu1 %1204  ;;  %v267_v26 = vld [vmem:[#allocation2 + $0xa8] sm:$0xff] }
 0x1d9   :  { %14215 = vst [vmem:[#allocation142_spill] sm:$0xff] %v8878_v32 }
 0x1da   :  { %v8880_v21 = vpop.permute.xlu0 %1208 }
 0x1db   :  { %14216 = vst [vmem:[#allocation143_spill] sm:$0xff] %v8880_v21  ;;  %v268_v21 = vld [vmem:[#allocation2 + $0xb0] sm:$0xff] }
 0x1dc   :  { %1424 = vrot.lane.b32.xlu2 %v264_v25, %s7890_s30 }
 0x1de   :  { %1422 = vrot.lane.b32.xlu1 %v263_v33, %s7890_s30  ;;  %v8884_v10 = vpop.permute.xlu2 %1230 }
 0x1df   :  { %14217 = vst [vmem:[#allocation144_spill] sm:$0xff] %v8884_v10  ;;  %v277_v10 = vld [vmem:[#allocation2 + $0x120] sm:$0xff] }
 0x1e0   :  { %1426 = vrot.lane.b32.xlu0 %v265_v57, %s7890_s30  ;;  %v8887_v15 = vpop.permute.xlu1 %1210  ;;  %v270_v57 = vld [vmem:[#allocation2 + $0xc8] sm:$0xff] }
 0x1e1   :  { %14218 = vst [vmem:[#allocation145_spill] sm:$0xff] %v8887_v15  ;;  %v8904_v15 = vld [vmem:[%s14007_s0 + $0xf0] sm:$0xff] }
 0x1e2   :  { %v8889_v61 = vpop.permute.xlu0 %1214  ;;  %14223 = vst [vmem:[#allocation150_spill] sm:$0xff] %v8904_v15 }
 0x1e3   :  { %14219 = vst [vmem:[#allocation146_spill] sm:$0xff] %v8889_v61  ;;  %v676_v61 = vld [vmem:[#allocation2 + $0x228] sm:$0xff] }
 0x1e4   :  { %1430 = vrot.lane.b32.xlu2 %v267_v26, %s7890_s30  ;;  %v271_v26 = vld [vmem:[#allocation2 + $0xd8] sm:$0xff]  ;;  %219 = vst.msk [vmem:[#allocation2 + $0x181] sm:$0xff] %vm14_vm0, %v8904_v15 }
 0x1e6   :  { %1428 = vrot.lane.b32.xlu1 %v266_v22, %s7890_s30  ;;  %v8893_v32 = vpop.permute.xlu2 %1236 }
 0x1e7   :  { %14220 = vst [vmem:[#allocation147_spill] sm:$0xff] %v8893_v32 }
 0x1e8   :  { %1432 = vrot.lane.b32.xlu0 %v268_v21, %s7890_s30  ;;  %v8896_v33 = vpop.permute.xlu1 %1216 }
 0x1e9   :  { %14221 = vst [vmem:[#allocation148_spill] sm:$0xff] %v8896_v33  ;;  %v618_v33 = vld [vmem:[#allocation2 + $0x262] sm:$0xff] }
 0x1ea   :  { %v8898_v25 = vpop.permute.xlu0 %1220 }
 0x1eb   :  { %14222 = vst [vmem:[#allocation149_spill] sm:$0xff] %v8898_v25  ;;  %v555_v25 = vld [vmem:[#allocation2 + $0x271] sm:$0xff] }
 0x1ec   :  { %1436 = vrot.lane.b32.xlu2 %v270_v57, %s7890_s30  ;;  %v273_v57 = vld [vmem:[#allocation2 + $0xf0] sm:$0xff] }
 0x1ee   :  { %1434 = vrot.lane.b32.xlu1 %v269_v39, %s7890_s30  ;;  %v8909_v22 = vpop.permute.xlu2 %1242  ;;  %v274_v39 = vld [vmem:[#allocation2 + $0xf8] sm:$0xff] }
 0x1ef   :  { %14224 = vst [vmem:[#allocation151_spill] sm:$0xff] %v8909_v22 }
 0x1f0   :  { %1438 = vrot.lane.b32.xlu0 %v271_v26, %s7890_s30  ;;  %v8912_v21 = vpop.permute.xlu1 %1222 }
 0x1f1   :  { %14225 = vst [vmem:[#allocation152_spill] sm:$0xff] %v8912_v21  ;;  %v516_v21 = vld [vmem:[#allocation2 + $0x69] sm:$0xff] }
 0x1f2   :  { %v8914_v32 = vpop.permute.xlu0 %1226 }
 0x1f3   :  { %14226 = vst [vmem:[#allocation153_spill] sm:$0xff] %v8914_v32  ;;  %v305_v32 = vld [vmem:[#allocation2 + $0x2a0] sm:$0xff] }
 0x1f4   :  { %1442 = vrot.lane.b32.xlu2 %v273_v57, %s7890_s30 }
 0x1f6   :  { %1440 = vrot.lane.b32.xlu1 %v272_v0, %s7890_s30  ;;  %v8925_v26 = vpop.permute.xlu2 %1248 }
 0x1f7   :  { %14228 = vst [vmem:[#allocation155_spill] sm:$0xff] %v8925_v26  ;;  %v278_v26 = vld [vmem:[#allocation2 + $0x128] sm:$0xff] }
 0x1f8   :  { %1444 = vrot.lane.b32.xlu0 %v274_v39, %s7890_s30  ;;  %v8928_v15 = vpop.permute.xlu1 %1228  ;;  %v279_v39 = vld [vmem:[#allocation2 + $0x138] sm:$0xff] }
 0x1f9   :  { %14229 = vst [vmem:[#allocation156_spill] sm:$0xff] %v8928_v15  ;;  %v299_v15 = vld [vmem:[#allocation2 + $0x258] sm:$0xff] }
 0x1fa   :  { %v8930_v22 = vpop.permute.xlu0 %1232 }
 0x1fb   :  { %14230 = vst [vmem:[#allocation157_spill] sm:$0xff] %v8930_v22  ;;  %v280_v22 = vld [vmem:[#allocation2 + $0x140] sm:$0xff] }
 0x1fc   :  { %1448 = vrot.lane.b32.xlu2 %v276_v18, %s7890_s30 }
 0x1fe   :  { %1446 = vrot.lane.b32.xlu1 %v275_v28, %s7890_s30  ;;  %v8934_v57 = vpop.permute.xlu2 %1254 }
 0x1ff   :  { %14231 = vst [vmem:[#allocation158_spill] sm:$0xff] %v8934_v57  ;;  %v281_v57 = vld [vmem:[#allocation2 + $0x150] sm:$0xff] }
 0x200   :  { %1450 = vrot.lane.b32.xlu0 %v277_v10, %s7890_s30  ;;  %v8937_v0 = vpop.permute.xlu1 %1234  ;;  %v282_v10 = vld [vmem:[#allocation2 + $0x158] sm:$0xff] }
 0x201   :  { %14232 = vst [vmem:[#allocation159_spill] sm:$0xff] %v8937_v0 }
 0x202   :  { %v8939_v37 = vpop.permute.xlu0 %1238 }
 0x203   :  { %14233 = vst [vmem:[#allocation160_spill] sm:$0xff] %v8939_v37  ;;  %v283_v37 = vld [vmem:[#allocation2 + $0x168] sm:$0xff] }
 0x204   :  { %1454 = vrot.lane.b32.xlu2 %v279_v39, %s7890_s30 }
 0x206   :  { %1452 = vrot.lane.b32.xlu1 %v278_v26, %s7890_s30  ;;  %v8943_v14 = vpop.permute.xlu2 %1260 }
 0x207   :  { %14234 = vst [vmem:[#allocation161_spill] sm:$0xff] %v8943_v14  ;;  %v476_v14 = vld [vmem:[#allocation2 + $0x188] sm:$0xff] }
 0x208   :  { %1456 = vrot.lane.b32.xlu0 %v280_v22, %s7890_s30  ;;  %v8946_v18 = vpop.permute.xlu1 %1240  ;;  %v475_v22 = vld [vmem:[#allocation2 + $0x180] sm:$0xff] }
 0x209   :  { %14235 = vst [vmem:[#allocation162_spill] sm:$0xff] %v8946_v18  ;;  %v284_v18 = vld [vmem:[#allocation2 + $0x170] sm:$0xff] }
 0x20a   :  { %v8948_v28 = vpop.permute.xlu0 %1244 }
 0x20b   :  { %14236 = vst [vmem:[#allocation163_spill] sm:$0xff] %v8948_v28 }
 0x20c   :  { %1460 = vrot.lane.b32.xlu2 %v282_v10, %s7890_s30 }
 0x20e   :  { %1458 = vrot.lane.b32.xlu1 %v281_v57, %s7890_s30  ;;  %v8952_v0 = vpop.permute.xlu2 %1266 }
 0x20f   :  { %14237 = vst [vmem:[#allocation164_spill] sm:$0xff] %v8952_v0  ;;  %v287_v0 = vld [vmem:[#allocation2 + $0x1c8] sm:$0xff] }
 0x210   :  { %1462 = vrot.lane.b32.xlu0 %v283_v37, %s7890_s30  ;;  %v8955_v26 = vpop.permute.xlu1 %1246  ;;  %v288_v37 = vld [vmem:[#allocation2 + $0x1d0] sm:$0xff] }
 0x211   :  { %14238 = vst [vmem:[#allocation165_spill] sm:$0xff] %v8955_v26 }
 0x212   :  { %v8957_v39 = vpop.permute.xlu0 %1250 }
 0x213   :  { %14239 = vst [vmem:[#allocation166_spill] sm:$0xff] %v8957_v39  ;;  %v289_v39 = vld [vmem:[#allocation2 + $0x1e0] sm:$0xff] }
 0x214   :  { %1466 = vrot.lane.b32.xlu2 %v475_v22, %s7890_s30 }
 0x216   :  { %1464 = vrot.lane.b32.xlu1 %v284_v18, %s7890_s30  ;;  %v8961_v28 = vpop.permute.xlu2 %1272 }
 0x217   :  { %14240 = vst [vmem:[#allocation167_spill] sm:$0xff] %v8961_v28  ;;  %v290_v28 = vld [vmem:[#allocation2 + $0x1e8] sm:$0xff] }
 0x218   :  { %1468 = vrot.lane.b32.xlu0 %v476_v14, %s7890_s30  ;;  %v8964_v57 = vpop.permute.xlu1 %1252  ;;  %v291_v14 = vld [vmem:[#allocation2 + $0x1f8] sm:$0xff] }
 0x219   :  { %14241 = vst [vmem:[#allocation168_spill] sm:$0xff] %v8964_v57 }
 0x21a   :  { %v8966_v10 = vpop.permute.xlu0 %1256 }
 0x21b   :  { %14242 = vst [vmem:[#allocation169_spill] sm:$0xff] %v8966_v10  ;;  %v292_v10 = vld [vmem:[#allocation2 + $0x200] sm:$0xff] }
 0x21c   :  { %1472 = vrot.lane.b32.xlu2 %v288_v37, %s7890_s30 }
 0x21e   :  { %1470 = vrot.lane.b32.xlu1 %v287_v0, %s7890_s30  ;;  %v8970_v26 = vpop.permute.xlu2 %1406 }
 0x220   :  { %1474 = vrot.lane.b32.xlu0 %v289_v39, %s7890_s30  ;;  %v8973_v18 = vpop.permute.xlu1 %1258  ;;  %v294_v39 = vld [vmem:[#allocation2 + $0x218] sm:$0xff] }
 0x221   :  { %14243 = vst [vmem:[#allocation170_spill] sm:$0xff] %v8973_v18 }
 0x222   :  { %v8975_v22 = vpop.permute.xlu0 %1262 }
 0x223   :  { %14244 = vst [vmem:[#allocation171_spill] sm:$0xff] %v8975_v22  ;;  %v295_v22 = vld [vmem:[#allocation2 + $0x228] sm:$0xff] }
 0x224   :  { %1478 = vrot.lane.b32.xlu2 %v291_v14, %s7890_s30 }
 0x226   :  { %1476 = vrot.lane.b32.xlu1 %v290_v28, %s7890_s30  ;;  %v8979_v57 = vpop.permute.xlu2 %1412 }
 0x228   :  { %1480 = vrot.lane.b32.xlu0 %v292_v10, %s7890_s30  ;;  %v8982_v0 = vpop.permute.xlu1 %1264  ;;  %v297_v10 = vld [vmem:[#allocation2 + $0x240] sm:$0xff] }
 0x229   :  { %14245 = vst [vmem:[#allocation172_spill] sm:$0xff] %v8982_v0 }
 0x22a   :  { %v8984_v37 = vpop.permute.xlu0 %1268 }
 0x22b   :  { %14246 = vst [vmem:[#allocation173_spill] sm:$0xff] %v8984_v37  ;;  %v298_v37 = vld [vmem:[#allocation2 + $0x248] sm:$0xff] }
 0x22c   :  { %1484 = vrot.lane.b32.xlu2 %v294_v39, %s7890_s30 }
 0x22e   :  { %1482 = vrot.lane.b32.xlu1 %v293_v13, %s7890_s30  ;;  %v8988_v18 = vpop.permute.xlu2 %1418 }
 0x230   :  { %1486 = vrot.lane.b32.xlu0 %v295_v22, %s7890_s30  ;;  %v8991_v28 = vpop.permute.xlu1 %1270  ;;  %v300_v22 = vld [vmem:[#allocation2 + $0x260] sm:$0xff] }
 0x231   :  { %14247 = vst [vmem:[#allocation174_spill] sm:$0xff] %v8991_v28 }
 0x232   :  { %v8993_v14 = vpop.permute.xlu0 %1274 }
 0x233   :  { %14248 = vst [vmem:[#allocation175_spill] sm:$0xff] %v8993_v14  ;;  %v301_v14 = vld [vmem:[#allocation2 + $0x270] sm:$0xff] }
 0x234   :  { %1490 = vrot.lane.b32.xlu2 %v297_v10, %s7890_s30 }
 0x236   :  { %1488 = vrot.lane.b32.xlu1 %v296_v38, %s7890_s30  ;;  %v8997_v0 = vpop.permute.xlu2 %1424 }
 0x237   :  { %14249 = vst [vmem:[#allocation176_spill] sm:$0xff] %v8997_v0  ;;  %v693_v0 = vld [vmem:[#allocation2 + $0x2f0] sm:$0xff] }
 0x238   :  { %1492 = vrot.lane.b32.xlu0 %v298_v37, %s7890_s30  ;;  %v9000_v13 = vpop.permute.xlu1 %1276  ;;  %v303_v37 = vld [vmem:[#allocation2 + $0x288] sm:$0xff] }
 0x239   :  { %14250 = vst [vmem:[#allocation177_spill] sm:$0xff] %v9000_v13  ;;  %v9017_v13 = vld [vmem:[%s14007_s0 + $0x1f0] sm:$0xff] }
 0x23a   :  { %v9002_v39 = vpop.permute.xlu0 %1408  ;;  %14252 = vst [vmem:[#allocation179_spill] sm:$0xff] %v9017_v13 }
 0x23b   :  { %251 = vst.msk [vmem:[#allocation2 + $0x331] sm:$0xff] %vm14_vm0, %v9017_v13 }
 0x23c   :  { %1496 = vrot.lane.b32.xlu2 %v300_v22, %s7890_s30  ;;  %v304_v22 = vld [vmem:[#allocation2 + $0x290] sm:$0xff] }
 0x23e   :  { %1494 = vrot.lane.b32.xlu1 %v299_v15, %s7890_s30  ;;  %v9006_v28 = vpop.permute.xlu2 %1430  ;;  %v9022_v15 = vld [vmem:[%s14007_s0 + $0x1f8] sm:$0xff]  ;;  %s7891_s0 = smov 16  }
 0x23f   :  { %14251 = vst [vmem:[#allocation178_spill] sm:$0xff] %v9006_v28  ;;  %v563_v28 = vld [vmem:[#allocation2 + $0x2d1] sm:$0xff] }
 0x240   :  { %1498 = vrot.lane.b32.xlu0 %v301_v14, %s7890_s30  ;;  %v9009_v38 = vpop.permute.xlu1 %1410  ;;  %14253 = vst [vmem:[#allocation180_spill] sm:$0xff] %v9022_v15 }
 0x241   :  { %252 = vst.msk [vmem:[#allocation2 + $0x339] sm:$0xff] %vm14_vm0, %v9022_v15  ;;  %v309_v15 = vld [vmem:[#allocation2 + $0x2d0] sm:$0xff] }
 0x242   :  { %v9011_v10 = vpop.permute.xlu0 %1414 }
 0x244   :  { %1502 = vrot.lane.b32.xlu2 %v303_v37, %s7890_s30 }
 0x246   :  { %1500 = vrot.lane.b32.xlu1 %v302_v1, %s7890_s30  ;;  %v9027_v14 = vpop.permute.xlu2 %1436 }
 0x247   :  { %14254 = vst [vmem:[#allocation181_spill] sm:$0xff] %v9027_v14 }
 0x248   :  { %1504 = vrot.lane.b32.xlu0 %v304_v22, %s7890_s30  ;;  %v9032_v37 = vpop.permute.xlu1 %1416 }
 0x24a   :  { %v9034_v35 = vpop.permute.xlu0 %1420 }
 0x24c   :  { %1508 = vrot.lane.b32.xlu2 %v306_v44, %s7890_s30 }
 0x24e   :  { %1506 = vrot.lane.b32.xlu1 %v305_v32, %s7890_s30  ;;  %v9038_v1 = vpop.permute.xlu2 %1442 }
 0x24f   :  { %14255 = vst [vmem:[#allocation182_spill] sm:$0xff] %v9038_v1  ;;  %v311_v1 = vld [vmem:[#allocation2 + $0x2e8] sm:$0xff] }
 0x250   :  { %1510 = vrot.lane.b32.xlu0 %v307_v27, %s7890_s30  ;;  %v9041_v13 = vpop.permute.xlu1 %1422  ;;  %v312_v27 = vld [vmem:[#allocation2 + $0x2f0] sm:$0xff] }
 0x251   :  { %14256 = vst [vmem:[#allocation183_spill] sm:$0xff] %v9041_v13  ;;  %v753_v13 = vld [vmem:[#allocation2 + $0x2c1] sm:$0xff] }
 0x252   :  { %v9043_v22 = vpop.permute.xlu0 %1426 }
 0x253   :  { %14257 = vst [vmem:[#allocation184_spill] sm:$0xff] %v9043_v22  ;;  %v632_v22 = vld [vmem:[#allocation2 + $0x30a] sm:$0xff] }
 0x254   :  { %1514 = vrot.lane.b32.xlu2 %v309_v15, %s7890_s30 }
 0x256   :  { %1512 = vrot.lane.b32.xlu1 %v308_v20, %s7890_s30  ;;  %v9047_v14 = vpop.permute.xlu2 %1448 }
 0x257   :  { %14258 = vst [vmem:[#allocation185_spill] sm:$0xff] %v9047_v14  ;;  %v314_v14 = vld [vmem:[#allocation2 + $0x308] sm:$0xff] }
 0x258   :  { %1516 = vrot.lane.b32.xlu0 %v310_v31, %s7890_s30  ;;  %v9050_v44 = vpop.permute.xlu1 %1428  ;;  %v315_v31 = vld [vmem:[#allocation2 + $0x318] sm:$0xff] }
 0x259   :  { %14259 = vst [vmem:[#allocation186_spill] sm:$0xff] %v9050_v44  ;;  %v615_v44 = vld [vmem:[#allocation2 + $0x242] sm:$0xff] }
 0x25a   :  { %v9052_v32 = vpop.permute.xlu0 %1432 }
 0x25b   :  { %14260 = vst [vmem:[#allocation187_spill] sm:$0xff] %v9052_v32  ;;  %v552_v32 = vld [vmem:[#allocation2 + $0x249] sm:$0xff] }
 0x25c   :  { %1520 = vrot.lane.b32.xlu2 %v312_v27, %s7890_s30 }
 0x25e   :  { %1518 = vrot.lane.b32.xlu1 %v311_v1, %s7890_s30  ;;  %v9056_v30 = vpop.permute.xlu2 %1454 }
 0x25f   :  { %14261 = vst [vmem:[#allocation188_spill] sm:$0xff] %v9056_v30  ;;  %v507_v30 = vld [vmem:[#allocation2 + $0x330] sm:$0xff] }
 0x260   :  { %1522 = vrot.lane.b32.xlu0 %v313_v40, %s7890_s30  ;;  %v9059_v20 = vpop.permute.xlu1 %1434  ;;  %v508_v40 = vld [vmem:[#allocation2 + $0x338] sm:$0xff] }
 0x261   :  { %14262 = vst [vmem:[#allocation189_spill] sm:$0xff] %v9059_v20  ;;  %v509_v20 = vld [vmem:[#allocation2 + $0x19] sm:$0xff] }
 0x262   :  { %v9061_v15 = vpop.permute.xlu0 %1438 }
 0x263   :  { %14263 = vst [vmem:[#allocation190_spill] sm:$0xff] %v9061_v15 }
 0x264   :  { %1526 = vrot.lane.b32.xlu2 %v315_v31, %s7890_s30 }
 0x266   :  { %1524 = vrot.lane.b32.xlu1 %v314_v14, %s7890_s30  ;;  %v9065_v56 = vpop.permute.xlu2 %1460 }
 0x267   :  { %14264 = vst [vmem:[#allocation191_spill] sm:$0xff] %v9065_v56  ;;  %v510_v56 = vld [vmem:[#allocation2 + $0x21] sm:$0xff] }
 0x268   :  { %1528 = vrot.lane.b32.xlu0 %v316_v34, %s7890_s30  ;;  %v9068_v1 = vpop.permute.xlu1 %1440  ;;  %v511_v34 = vld [vmem:[#allocation2 + $0x31] sm:$0xff] }
 0x269   :  { %14265 = vst [vmem:[#allocation192_spill] sm:$0xff] %v9068_v1  ;;  %v512_v1 = vld [vmem:[#allocation2 + $0x39] sm:$0xff] }
 0x26a   :  { %v9070_v27 = vpop.permute.xlu0 %1444 }
 0x26b   :  { %14266 = vst [vmem:[#allocation193_spill] sm:$0xff] %v9070_v27 }
 0x26c   :  { %1532 = vrot.lane.b32.xlu2 %v508_v40, %s7890_s30 }
 0x26e   :  { %1530 = vrot.lane.b32.xlu1 %v507_v30, %s7890_s30  ;;  %v9074_v15 = vpop.permute.xlu2 %1466 }
 0x26f   :  { %14267 = vst [vmem:[#allocation194_spill] sm:$0xff] %v9074_v15  ;;  %v513_v15 = vld [vmem:[#allocation2 + $0x49] sm:$0xff] }
 0x270   :  { %1662 = vrot.lane.b32.xlu0 %v509_v20, %s7891_s0  ;;  %v9077_v14 = vpop.permute.xlu1 %1446  ;;  %v514_v20 = vld [vmem:[#allocation2 + $0x51] sm:$0xff] }
 0x271   :  { %14268 = vst [vmem:[#allocation195_spill] sm:$0xff] %v9077_v14  ;;  %v515_v14 = vld [vmem:[#allocation2 + $0x61] sm:$0xff] }
 0x272   :  { %v9079_v31 = vpop.permute.xlu0 %1450 }
 0x273   :  { %14269 = vst [vmem:[#allocation196_spill] sm:$0xff] %v9079_v31 }
 0x274   :  { %1666 = vrot.lane.b32.xlu2 %v511_v34, %s7891_s0 }
 0x276   :  { %1664 = vrot.lane.b32.xlu1 %v510_v56, %s7891_s0  ;;  %v9083_v27 = vpop.permute.xlu2 %1472 }
 0x277   :  { %14270 = vst [vmem:[#allocation197_spill] sm:$0xff] %v9083_v27  ;;  %v612_v27 = vld [vmem:[#allocation2 + $0x21a] sm:$0xff] }
 0x278   :  { %1668 = vrot.lane.b32.xlu0 %v512_v1, %s7891_s0  ;;  %v9086_v30 = vpop.permute.xlu1 %1452  ;;  %v517_v1 = vld [vmem:[#allocation2 + $0x79] sm:$0xff] }
 0x279   :  { %14271 = vst [vmem:[#allocation198_spill] sm:$0xff] %v9086_v30  ;;  %v518_v30 = vld [vmem:[#allocation2 + $0x81] sm:$0xff] }
 0x27a   :  { %v9088_v40 = vpop.permute.xlu0 %1456 }
 0x27b   :  { %14272 = vst [vmem:[#allocation199_spill] sm:$0xff] %v9088_v40 }
 0x27c   :  { %1672 = vrot.lane.b32.xlu2 %v514_v20, %s7891_s0 }
 0x27e   :  { %1670 = vrot.lane.b32.xlu1 %v513_v15, %s7891_s0  ;;  %v9092_v31 = vpop.permute.xlu2 %1478 }
 0x27f   :  { %14273 = vst [vmem:[#allocation200_spill] sm:$0xff] %v9092_v31  ;;  %v519_v31 = vld [vmem:[#allocation2 + $0x91] sm:$0xff] }
 0x280   :  { %1674 = vrot.lane.b32.xlu0 %v515_v14, %s7891_s0  ;;  %v9095_v56 = vpop.permute.xlu1 %1458  ;;  %v520_v14 = vld [vmem:[#allocation2 + $0x99] sm:$0xff] }
 0x281   :  { %14274 = vst [vmem:[#allocation201_spill] sm:$0xff] %v9095_v56  ;;  %v521_v56 = vld [vmem:[#allocation2 + $0xa9] sm:$0xff] }
 0x282   :  { %v9097_v34 = vpop.permute.xlu0 %1462 }
 0x283   :  { %14275 = vst [vmem:[#allocation202_spill] sm:$0xff] %v9097_v34 }
 0x284   :  { %1678 = vrot.lane.b32.xlu2 %v517_v1, %s7891_s0 }
 0x286   :  { %1676 = vrot.lane.b32.xlu1 %v516_v21, %s7891_s0  ;;  %v9101_v40 = vpop.permute.xlu2 %1484 }
 0x287   :  { %14276 = vst [vmem:[#allocation203_spill] sm:$0xff] %v9101_v40  ;;  %v522_v40 = vld [vmem:[#allocation2 + $0xb1] sm:$0xff] }
 0x288   :  { %1680 = vrot.lane.b32.xlu0 %v518_v30, %s7891_s0  ;;  %v9104_v15 = vpop.permute.xlu1 %1464  ;;  %v523_v30 = vld [vmem:[#allocation2 + $0xc1] sm:$0xff] }
 0x289   :  { %14277 = vst [vmem:[#allocation204_spill] sm:$0xff] %v9104_v15  ;;  %v524_v15 = vld [vmem:[#allocation2 + $0xc9] sm:$0xff] }
 0x28a   :  { %v9106_v20 = vpop.permute.xlu0 %1468 }
 0x28b   :  { %14278 = vst [vmem:[#allocation205_spill] sm:$0xff] %v9106_v20 }
 0x28c   :  { %1684 = vrot.lane.b32.xlu2 %v520_v14, %s7891_s0 }
 0x28e   :  { %1682 = vrot.lane.b32.xlu1 %v519_v31, %s7891_s0  ;;  %v9110_v34 = vpop.permute.xlu2 %1490 }
 0x28f   :  { %14279 = vst [vmem:[#allocation206_spill] sm:$0xff] %v9110_v34  ;;  %v525_v34 = vld [vmem:[#allocation2 + $0xd9] sm:$0xff] }
 0x290   :  { %1686 = vrot.lane.b32.xlu0 %v521_v56, %s7891_s0  ;;  %v9113_v21 = vpop.permute.xlu1 %1470  ;;  %v526_v56 = vld [vmem:[#allocation2 + $0xe1] sm:$0xff] }
 0x291   :  { %14280 = vst [vmem:[#allocation207_spill] sm:$0xff] %v9113_v21 }
 0x292   :  { %v9115_v1 = vpop.permute.xlu0 %1474 }
 0x293   :  { %14281 = vst [vmem:[#allocation208_spill] sm:$0xff] %v9115_v1 }
 0x294   :  { %1690 = vrot.lane.b32.xlu2 %v523_v30, %s7891_s0 }
 0x296   :  { %1688 = vrot.lane.b32.xlu1 %v522_v40, %s7891_s0  ;;  %v9119_v20 = vpop.permute.xlu2 %1496 }
 0x297   :  { %14282 = vst [vmem:[#allocation209_spill] sm:$0xff] %v9119_v20  ;;  %v528_v20 = vld [vmem:[#allocation2 + $0xf9] sm:$0xff] }
 0x298   :  { %1692 = vrot.lane.b32.xlu0 %v524_v15, %s7891_s0  ;;  %v9122_v31 = vpop.permute.xlu1 %1476  ;;  %v529_v15 = vld [vmem:[#allocation2 + $0x109] sm:$0xff] }
 0x299   :  { %14283 = vst [vmem:[#allocation210_spill] sm:$0xff] %v9122_v31  ;;  %v549_v31 = vld [vmem:[#allocation2 + $0x229] sm:$0xff] }
 0x29a   :  { %v9124_v14 = vpop.permute.xlu0 %1480 }
 0x29b   :  { %14284 = vst [vmem:[#allocation211_spill] sm:$0xff] %v9124_v14 }
 0x29c   :  { %1696 = vrot.lane.b32.xlu2 %v526_v56, %s7891_s0 }
 0x29e   :  { %1694 = vrot.lane.b32.xlu1 %v525_v34, %s7891_s0  ;;  %v9128_v51 = vpop.permute.xlu2 %1502 }
 0x29f   :  { %14285 = vst [vmem:[#allocation212_spill] sm:$0xff] %v9128_v51  ;;  %v531_v51 = vld [vmem:[#allocation2 + $0x121] sm:$0xff] }
 0x2a0   :  { %1698 = vrot.lane.b32.xlu0 %v527_v8, %s7891_s0  ;;  %v9131_v40 = vpop.permute.xlu1 %1482  ;;  %v532_v8 = vld [vmem:[#allocation2 + $0x129] sm:$0xff] }
 0x2a1   :  { %14286 = vst [vmem:[#allocation213_spill] sm:$0xff] %v9131_v40  ;;  %v533_v40 = vld [vmem:[#allocation2 + $0x139] sm:$0xff] }
 0x2a2   :  { %v9133_v30 = vpop.permute.xlu0 %1486 }
 0x2a3   :  { %14287 = vst [vmem:[#allocation214_spill] sm:$0xff] %v9133_v30 }
 0x2a4   :  { %1702 = vrot.lane.b32.xlu2 %v529_v15, %s7891_s0 }
 0x2a6   :  { %1700 = vrot.lane.b32.xlu1 %v528_v20, %s7891_s0  ;;  %v9137_v14 = vpop.permute.xlu2 %1508 }
 0x2a7   :  { %14288 = vst [vmem:[#allocation215_spill] sm:$0xff] %v9137_v14  ;;  %v534_v14 = vld [vmem:[#allocation2 + $0x141] sm:$0xff] }
 0x2a8   :  { %1704 = vrot.lane.b32.xlu0 %v530_v5, %s7891_s0  ;;  %v9140_v34 = vpop.permute.xlu1 %1488  ;;  %v535_v5 = vld [vmem:[#allocation2 + $0x151] sm:$0xff] }
 0x2a9   :  { %14289 = vst [vmem:[#allocation216_spill] sm:$0xff] %v9140_v34  ;;  %v536_v34 = vld [vmem:[#allocation2 + $0x159] sm:$0xff] }
 0x2aa   :  { %v9142_v56 = vpop.permute.xlu0 %1492 }
 0x2ab   :  { %14290 = vst [vmem:[#allocation217_spill] sm:$0xff] %v9142_v56 }
 0x2ac   :  { %1708 = vrot.lane.b32.xlu2 %v532_v8, %s7891_s0 }
 0x2ae   :  { %1706 = vrot.lane.b32.xlu1 %v531_v51, %s7891_s0  ;;  %v9146_v30 = vpop.permute.xlu2 %1514 }
 0x2af   :  { %14291 = vst [vmem:[#allocation218_spill] sm:$0xff] %v9146_v30  ;;  %v537_v30 = vld [vmem:[#allocation2 + $0x169] sm:$0xff] }
 0x2b0   :  { %1710 = vrot.lane.b32.xlu0 %v533_v40, %s7891_s0  ;;  %v9149_v20 = vpop.permute.xlu1 %1494  ;;  %v538_v40 = vld [vmem:[#allocation2 + $0x171] sm:$0xff] }
 0x2b1   :  { %14292 = vst [vmem:[#allocation219_spill] sm:$0xff] %v9149_v20  ;;  %v539_v20 = vld [vmem:[#allocation2 + $0x181] sm:$0xff] }
 0x2b2   :  { %v9151_v15 = vpop.permute.xlu0 %1498 }
 0x2b3   :  { %14293 = vst [vmem:[#allocation220_spill] sm:$0xff] %v9151_v15 }
 0x2b4   :  { %1714 = vrot.lane.b32.xlu2 %v535_v5, %s7891_s0 }
 0x2b6   :  { %1712 = vrot.lane.b32.xlu1 %v534_v14, %s7891_s0  ;;  %v9155_v56 = vpop.permute.xlu2 %1520 }
 0x2b7   :  { %14294 = vst [vmem:[#allocation221_spill] sm:$0xff] %v9155_v56  ;;  %v540_v56 = vld [vmem:[#allocation2 + $0x189] sm:$0xff] }
 0x2b8   :  { %1716 = vrot.lane.b32.xlu0 %v536_v34, %s7891_s0  ;;  %v9158_v51 = vpop.permute.xlu1 %1500  ;;  %v541_v34 = vld [vmem:[#allocation2 + $0x1c9] sm:$0xff] }
 0x2b9   :  { %14295 = vst [vmem:[#allocation222_spill] sm:$0xff] %v9158_v51  ;;  %v542_v51 = vld [vmem:[#allocation2 + $0x1d1] sm:$0xff] }
 0x2ba   :  { %v9160_v8 = vpop.permute.xlu0 %1504 }
 0x2bb   :  { %14296 = vst [vmem:[#allocation223_spill] sm:$0xff] %v9160_v8 }
 0x2bc   :  { %1720 = vrot.lane.b32.xlu2 %v538_v40, %s7891_s0 }
 0x2be   :  { %1718 = vrot.lane.b32.xlu1 %v537_v30, %s7891_s0  ;;  %v9164_v15 = vpop.permute.xlu2 %1526 }
 0x2bf   :  { %14297 = vst [vmem:[#allocation224_spill] sm:$0xff] %v9164_v15  ;;  %v543_v15 = vld [vmem:[#allocation2 + $0x1e1] sm:$0xff] }
 0x2c0   :  { %1722 = vrot.lane.b32.xlu0 %v539_v20, %s7891_s0  ;;  %v9167_v14 = vpop.permute.xlu1 %1506  ;;  %v544_v20 = vld [vmem:[#allocation2 + $0x1e9] sm:$0xff] }
 0x2c1   :  { %14298 = vst [vmem:[#allocation225_spill] sm:$0xff] %v9167_v14  ;;  %v545_v14 = vld [vmem:[#allocation2 + $0x1f9] sm:$0xff] }
 0x2c2   :  { %v9169_v5 = vpop.permute.xlu0 %1510 }
 0x2c3   :  { %14299 = vst [vmem:[#allocation226_spill] sm:$0xff] %v9169_v5 }
 0x2c4   :  { %1726 = vrot.lane.b32.xlu2 %v541_v34, %s7891_s0 }
 0x2c6   :  { %1724 = vrot.lane.b32.xlu1 %v540_v56, %s7891_s0  ;;  %v9173_v8 = vpop.permute.xlu2 %1532 }
 0x2c7   :  { %14300 = vst [vmem:[#allocation227_spill] sm:$0xff] %v9173_v8  ;;  %v546_v8 = vld [vmem:[#allocation2 + $0x201] sm:$0xff] }
 0x2c8   :  { %1728 = vrot.lane.b32.xlu0 %v542_v51, %s7891_s0  ;;  %v9176_v30 = vpop.permute.xlu1 %1512  ;;  %v547_v51 = vld [vmem:[#allocation2 + $0x211] sm:$0xff] }
 0x2c9   :  { %14301 = vst [vmem:[#allocation228_spill] sm:$0xff] %v9176_v30  ;;  %v548_v30 = vld [vmem:[#allocation2 + $0x219] sm:$0xff] }
 0x2ca   :  { %v9178_v40 = vpop.permute.xlu0 %1516 }
 0x2cb   :  { %14302 = vst [vmem:[#allocation229_spill] sm:$0xff] %v9178_v40 }
 0x2cc   :  { %1732 = vrot.lane.b32.xlu2 %v544_v20, %s7891_s0 }
 0x2ce   :  { %1730 = vrot.lane.b32.xlu1 %v543_v15, %s7891_s0  ;;  %v9182_v5 = vpop.permute.xlu2 %1666 }
 0x2d0   :  { %1734 = vrot.lane.b32.xlu0 %v545_v14, %s7891_s0  ;;  %v9185_v56 = vpop.permute.xlu1 %1518  ;;  %v550_v14 = vld [vmem:[#allocation2 + $0x231] sm:$0xff] }
 0x2d1   :  { %14303 = vst [vmem:[#allocation230_spill] sm:$0xff] %v9185_v56  ;;  %v551_v56 = vld [vmem:[#allocation2 + $0x241] sm:$0xff] }
 0x2d2   :  { %v9187_v34 = vpop.permute.xlu0 %1522 }
 0x2d3   :  { %14304 = vst [vmem:[#allocation231_spill] sm:$0xff] %v9187_v34 }
 0x2d4   :  { %1738 = vrot.lane.b32.xlu2 %v547_v51, %s7891_s0 }
 0x2d6   :  { %1736 = vrot.lane.b32.xlu1 %v546_v8, %s7891_s0  ;;  %v9191_v40 = vpop.permute.xlu2 %1672 }
 0x2d8   :  { %1740 = vrot.lane.b32.xlu0 %v548_v30, %s7891_s0  ;;  %v9194_v15 = vpop.permute.xlu1 %1524  ;;  %v553_v30 = vld [vmem:[#allocation2 + $0x259] sm:$0xff] }
 0x2d9   :  { %14305 = vst [vmem:[#allocation232_spill] sm:$0xff] %v9194_v15  ;;  %v554_v15 = vld [vmem:[#allocation2 + $0x261] sm:$0xff] }
 0x2da   :  { %v9196_v20 = vpop.permute.xlu0 %1528 }
 0x2db   :  { %14306 = vst [vmem:[#allocation233_spill] sm:$0xff] %v9196_v20 }
 0x2dc   :  { %1744 = vrot.lane.b32.xlu2 %v550_v14, %s7891_s0 }
 0x2de   :  { %1742 = vrot.lane.b32.xlu1 %v549_v31, %s7891_s0  ;;  %v9200_v34 = vpop.permute.xlu2 %1678 }
 0x2df   :  { %14307 = vst [vmem:[#allocation234_spill] sm:$0xff] %v9200_v34 }
 0x2e0   :  { %1746 = vrot.lane.b32.xlu0 %v551_v56, %s7891_s0  ;;  %v9203_v8 = vpop.permute.xlu1 %1530  ;;  %v556_v56 = vld [vmem:[#allocation2 + $0x279] sm:$0xff] }
 0x2e1   :  { %14308 = vst [vmem:[#allocation235_spill] sm:$0xff] %v9203_v8  ;;  %v557_v8 = vld [vmem:[#allocation2 + $0x289] sm:$0xff] }
 0x2e2   :  { %v9205_v51 = vpop.permute.xlu0 %1662 }
 0x2e4   :  { %1750 = vrot.lane.b32.xlu2 %v553_v30, %s7891_s0 }
 0x2e6   :  { %1748 = vrot.lane.b32.xlu1 %v552_v32, %s7891_s0  ;;  %v9209_v20 = vpop.permute.xlu2 %1684 }
 0x2e7   :  { %14309 = vst [vmem:[#allocation236_spill] sm:$0xff] %v9209_v20  ;;  %v579_v20 = vld [vmem:[#allocation2 + $0x62] sm:$0xff] }
 0x2e8   :  { %1752 = vrot.lane.b32.xlu0 %v554_v15, %s7891_s0  ;;  %v9212_v31 = vpop.permute.xlu1 %1664  ;;  %v559_v15 = vld [vmem:[#allocation2 + $0x2a1] sm:$0xff] }
 0x2ea   :  { %v9214_v14 = vpop.permute.xlu0 %1668 }
 0x2ec   :  { %1756 = vrot.lane.b32.xlu2 %v556_v56, %s7891_s0 }
 0x2ee   :  { %1754 = vrot.lane.b32.xlu1 %v555_v25, %s7891_s0  ;;  %v9218_v53 = vpop.permute.xlu2 %1690 }
 0x2ef   :  { %14310 = vst [vmem:[#allocation237_spill] sm:$0xff] %v9218_v53  ;;  %v561_v53 = vld [vmem:[#allocation2 + $0x2b9] sm:$0xff] }
 0x2f0   :  { %1758 = vrot.lane.b32.xlu0 %v557_v8, %s7891_s0  ;;  %v9221_v32 = vpop.permute.xlu1 %1670  ;;  %v562_v8 = vld [vmem:[#allocation2 + $0x2c1] sm:$0xff] }
 0x2f2   :  { %v9223_v30 = vpop.permute.xlu0 %1674 }
 0x2f4   :  { %1762 = vrot.lane.b32.xlu2 %v559_v15, %s7891_s0 }
 0x2f6   :  { %1760 = vrot.lane.b32.xlu1 %v558_v23, %s7891_s0  ;;  %v9227_v1 = vpop.permute.xlu2 %1696 }
 0x2f7   :  { %14311 = vst [vmem:[#allocation238_spill] sm:$0xff] %v9227_v1  ;;  %v564_v1 = vld [vmem:[#allocation2 + $0x2d9] sm:$0xff] }
 0x2f8   :  { %1764 = vrot.lane.b32.xlu0 %v560_v36, %s7891_s0  ;;  %v9230_v25 = vpop.permute.xlu1 %1676  ;;  %v565_v36 = vld [vmem:[#allocation2 + $0x2e9] sm:$0xff] }
 0x2fa   :  { %v9232_v56 = vpop.permute.xlu0 %1680 }
 0x2fb   :  { %14312 = vst [vmem:[#allocation239_spill] sm:$0xff] %v9232_v56 }
 0x2fc   :  { %1768 = vrot.lane.b32.xlu2 %v562_v8, %s7891_s0 }
 0x2fe   :  { %1766 = vrot.lane.b32.xlu1 %v561_v53, %s7891_s0  ;;  %v9236_v19 = vpop.permute.xlu2 %1702 }
 0x2ff   :  { %14313 = vst [vmem:[#allocation240_spill] sm:$0xff] %v9236_v19  ;;  %v567_v19 = vld [vmem:[#allocation2 + $0x301] sm:$0xff] }
 0x300   :  { %1770 = vrot.lane.b32.xlu0 %v563_v28, %s7891_s0  ;;  %v9239_v23 = vpop.permute.xlu1 %1682  ;;  %v568_v28 = vld [vmem:[#allocation2 + $0x309] sm:$0xff] }
 0x301   :  { %14314 = vst [vmem:[#allocation241_spill] sm:$0xff] %v9239_v23  ;;  %v629_v23 = vld [vmem:[#allocation2 + $0x2ea] sm:$0xff] }
 0x302   :  { %v9241_v15 = vpop.permute.xlu0 %1686 }
 0x303   :  { %14315 = vst [vmem:[#allocation242_spill] sm:$0xff] %v9241_v15 }
 0x304   :  { %1774 = vrot.lane.b32.xlu2 %v565_v36, %s7891_s0 }
 0x306   :  { %1772 = vrot.lane.b32.xlu1 %v564_v1, %s7891_s0  ;;  %v9245_v16 = vpop.permute.xlu2 %1708 }
 0x307   :  { %14316 = vst [vmem:[#allocation243_spill] sm:$0xff] %v9245_v16  ;;  %v570_v16 = vld [vmem:[#allocation2 + $0x321] sm:$0xff] }
 0x308   :  { %1776 = vrot.lane.b32.xlu0 %v566_v12, %s7891_s0  ;;  %v9248_v53 = vpop.permute.xlu1 %1688  ;;  %v571_v12 = vld [vmem:[#allocation2 + $0x331] sm:$0xff] }
 0x309   :  { %14317 = vst [vmem:[#allocation244_spill] sm:$0xff] %v9248_v53  ;;  %v572_v53 = vld [vmem:[#allocation2 + $0x339] sm:$0xff] }
 0x30a   :  { %v9250_v8 = vpop.permute.xlu0 %1692 }
 0x30b   :  { %14318 = vst [vmem:[#allocation245_spill] sm:$0xff] %v9250_v8 }
 0x30c   :  { %1780 = vrot.lane.b32.xlu2 %v568_v28, %s7891_s0 }
 0x30e   :  { %1778 = vrot.lane.b32.xlu1 %v567_v19, %s7891_s0  ;;  %v9254_v15 = vpop.permute.xlu2 %1714 }
 0x30f   :  { %14319 = vst [vmem:[#allocation246_spill] sm:$0xff] %v9254_v15  ;;  %v573_v15 = vld [vmem:[#allocation2 + $0x1a] sm:$0xff] }
 0x310   :  { %1782 = vrot.lane.b32.xlu0 %v569_v43, %s7891_s0  ;;  %v9257_v1 = vpop.permute.xlu1 %1694  ;;  %v574_v43 = vld [vmem:[#allocation2 + $0x22] sm:$0xff] }
 0x311   :  { %14320 = vst [vmem:[#allocation247_spill] sm:$0xff] %v9257_v1  ;;  %v575_v1 = vld [vmem:[#allocation2 + $0x32] sm:$0xff] }
 0x312   :  { %v9259_v36 = vpop.permute.xlu0 %1698 }
 0x313   :  { %14321 = vst [vmem:[#allocation248_spill] sm:$0xff] %v9259_v36 }
 0x314   :  { %1786 = vrot.lane.b32.xlu2 %v571_v12, %s7891_s0 }
 0x316   :  { %1784 = vrot.lane.b32.xlu1 %v570_v16, %s7891_s0  ;;  %v9263_v8 = vpop.permute.xlu2 %1720 }
 0x317   :  { %14322 = vst [vmem:[#allocation249_spill] sm:$0xff] %v9263_v8  ;;  %v576_v8 = vld [vmem:[#allocation2 + $0x3a] sm:$0xff] }
 0x318   :  { %1788 = vrot.lane.b32.xlu0 %v572_v53, %s7891_s0  ;;  %v9266_v19 = vpop.permute.xlu1 %1700  ;;  %v577_v53 = vld [vmem:[#allocation2 + $0x4a] sm:$0xff] }
 0x319   :  { %14323 = vst [vmem:[#allocation250_spill] sm:$0xff] %v9266_v19  ;;  %v578_v19 = vld [vmem:[#allocation2 + $0x52] sm:$0xff] }
 0x31a   :  { %v9268_v28 = vpop.permute.xlu0 %1704 }
 0x31b   :  { %14324 = vst [vmem:[#allocation251_spill] sm:$0xff] %v9268_v28 }
 0x31c   :  { %1920 = vrot.lane.b32.xlu2 %v574_v43, %s7892_s13 }
 0x31e   :  { %1918 = vrot.lane.b32.xlu1 %v573_v15, %s7892_s13  ;;  %v9272_v36 = vpop.permute.xlu2 %1726 }
 0x31f   :  { %14325 = vst [vmem:[#allocation252_spill] sm:$0xff] %v9272_v36 }
 0x320   :  { %1922 = vrot.lane.b32.xlu0 %v575_v1, %s7892_s13  ;;  %v9275_v16 = vpop.permute.xlu1 %1706  ;;  %v580_v1 = vld [vmem:[#allocation2 + $0x6a] sm:$0xff] }
 0x321   :  { %14326 = vst [vmem:[#allocation253_spill] sm:$0xff] %v9275_v16  ;;  %v581_v16 = vld [vmem:[#allocation2 + $0x7a] sm:$0xff] }
 0x322   :  { %v9277_v12 = vpop.permute.xlu0 %1710 }
 0x323   :  { %14327 = vst [vmem:[#allocation254_spill] sm:$0xff] %v9277_v12 }
 0x324   :  { %1926 = vrot.lane.b32.xlu2 %v577_v53, %s7892_s13 }
 0x326   :  { %1924 = vrot.lane.b32.xlu1 %v576_v8, %s7892_s13  ;;  %v9281_v28 = vpop.permute.xlu2 %1732 }
 0x327   :  { %14328 = vst [vmem:[#allocation255_spill] sm:$0xff] %v9281_v28  ;;  %v582_v28 = vld [vmem:[#allocation2 + $0x82] sm:$0xff] }
 0x328   :  { %1928 = vrot.lane.b32.xlu0 %v578_v19, %s7892_s13  ;;  %v9284_v15 = vpop.permute.xlu1 %1712  ;;  %v583_v19 = vld [vmem:[#allocation2 + $0x92] sm:$0xff] }
 0x329   :  { %14329 = vst [vmem:[#allocation256_spill] sm:$0xff] %v9284_v15  ;;  %v584_v15 = vld [vmem:[#allocation2 + $0x9a] sm:$0xff] }
 0x32a   :  { %v9286_v43 = vpop.permute.xlu0 %1716 }
 0x32b   :  { %14330 = vst [vmem:[#allocation257_spill] sm:$0xff] %v9286_v43 }
 0x32c   :  { %1932 = vrot.lane.b32.xlu2 %v580_v1, %s7892_s13 }
 0x32e   :  { %1930 = vrot.lane.b32.xlu1 %v579_v20, %s7892_s13  ;;  %v9290_v12 = vpop.permute.xlu2 %1738 }
 0x32f   :  { %14331 = vst [vmem:[#allocation258_spill] sm:$0xff] %v9290_v12  ;;  %v585_v12 = vld [vmem:[#allocation2 + $0xaa] sm:$0xff] }
 0x330   :  { %1934 = vrot.lane.b32.xlu0 %v581_v16, %s7892_s13  ;;  %v9293_v8 = vpop.permute.xlu1 %1718  ;;  %v586_v16 = vld [vmem:[#allocation2 + $0xb2] sm:$0xff] }
 0x331   :  { %14332 = vst [vmem:[#allocation259_spill] sm:$0xff] %v9293_v8  ;;  %v587_v8 = vld [vmem:[#allocation2 + $0xc2] sm:$0xff] }
 0x332   :  { %v9295_v53 = vpop.permute.xlu0 %1722 }
 0x333   :  { %14333 = vst [vmem:[#allocation260_spill] sm:$0xff] %v9295_v53 }
 0x334   :  { %1938 = vrot.lane.b32.xlu2 %v583_v19, %s7892_s13 }
 0x336   :  { %1936 = vrot.lane.b32.xlu1 %v582_v28, %s7892_s13  ;;  %v9299_v43 = vpop.permute.xlu2 %1744 }
 0x337   :  { %14334 = vst [vmem:[#allocation261_spill] sm:$0xff] %v9299_v43  ;;  %v588_v43 = vld [vmem:[#allocation2 + $0xca] sm:$0xff] }
 0x338   :  { %1940 = vrot.lane.b32.xlu0 %v584_v15, %s7892_s13  ;;  %v9302_v20 = vpop.permute.xlu1 %1724  ;;  %v589_v15 = vld [vmem:[#allocation2 + $0xda] sm:$0xff] }
 0x339   :  { %14335 = vst [vmem:[#allocation262_spill] sm:$0xff] %v9302_v20  ;;  %v590_v20 = vld [vmem:[#allocation2 + $0xe2] sm:$0xff] }
 0x33a   :  { %v9304_v1 = vpop.permute.xlu0 %1728 }
 0x33b   :  { %14336 = vst [vmem:[#allocation263_spill] sm:$0xff] %v9304_v1 }
 0x33c   :  { %1944 = vrot.lane.b32.xlu2 %v586_v16, %s7892_s13 }
 0x33e   :  { %1942 = vrot.lane.b32.xlu1 %v585_v12, %s7892_s13  ;;  %v9308_v53 = vpop.permute.xlu2 %1750 }
 0x33f   :  { %14337 = vst [vmem:[#allocation264_spill] sm:$0xff] %v9308_v53  ;;  %v591_v53 = vld [vmem:[#allocation2 + $0xf2] sm:$0xff] }
 0x340   :  { %1946 = vrot.lane.b32.xlu0 %v587_v8, %s7892_s13  ;;  %v9311_v28 = vpop.permute.xlu1 %1730  ;;  %v592_v8 = vld [vmem:[#allocation2 + $0xfa] sm:$0xff] }
 0x341   :  { %14338 = vst [vmem:[#allocation265_spill] sm:$0xff] %v9311_v28  ;;  %v593_v28 = vld [vmem:[#allocation2 + $0x10a] sm:$0xff] }
 0x342   :  { %v9313_v19 = vpop.permute.xlu0 %1734 }
 0x343   :  { %14339 = vst [vmem:[#allocation266_spill] sm:$0xff] %v9313_v19 }
 0x344   :  { %1950 = vrot.lane.b32.xlu2 %v589_v15, %s7892_s13 }
 0x346   :  { %1948 = vrot.lane.b32.xlu1 %v588_v43, %s7892_s13  ;;  %v9317_v1 = vpop.permute.xlu2 %1756 }
 0x347   :  { %14340 = vst [vmem:[#allocation267_spill] sm:$0xff] %v9317_v1  ;;  %v594_v1 = vld [vmem:[#allocation2 + $0x112] sm:$0xff] }
 0x348   :  { %1952 = vrot.lane.b32.xlu0 %v590_v20, %s7892_s13  ;;  %v9320_v12 = vpop.permute.xlu1 %1736  ;;  %v595_v20 = vld [vmem:[#allocation2 + $0x122] sm:$0xff] }
 0x349   :  { %14341 = vst [vmem:[#allocation268_spill] sm:$0xff] %v9320_v12  ;;  %v596_v12 = vld [vmem:[#allocation2 + $0x12a] sm:$0xff] }
 0x34a   :  { %v9322_v16 = vpop.permute.xlu0 %1740 }
 0x34b   :  { %14342 = vst [vmem:[#allocation269_spill] sm:$0xff] %v9322_v16 }
 0x34c   :  { %1956 = vrot.lane.b32.xlu2 %v592_v8, %s7892_s13 }
 0x34e   :  { %1954 = vrot.lane.b32.xlu1 %v591_v53, %s7892_s13  ;;  %v9326_v19 = vpop.permute.xlu2 %1762 }
 0x34f   :  { %14343 = vst [vmem:[#allocation270_spill] sm:$0xff] %v9326_v19  ;;  %v597_v19 = vld [vmem:[#allocation2 + $0x13a] sm:$0xff] }
 0x350   :  { %1958 = vrot.lane.b32.xlu0 %v593_v28, %s7892_s13  ;;  %v9329_v43 = vpop.permute.xlu1 %1742  ;;  %v598_v28 = vld [vmem:[#allocation2 + $0x142] sm:$0xff] }
 0x351   :  { %14344 = vst [vmem:[#allocation271_spill] sm:$0xff] %v9329_v43  ;;  %v599_v43 = vld [vmem:[#allocation2 + $0x152] sm:$0xff] }
 0x352   :  { %v9331_v15 = vpop.permute.xlu0 %1746 }
 0x353   :  { %14345 = vst [vmem:[#allocation272_spill] sm:$0xff] %v9331_v15 }
 0x354   :  { %1962 = vrot.lane.b32.xlu2 %v595_v20, %s7892_s13 }
 0x356   :  { %1960 = vrot.lane.b32.xlu1 %v594_v1, %s7892_s13  ;;  %v9335_v16 = vpop.permute.xlu2 %1768 }
 0x357   :  { %14346 = vst [vmem:[#allocation273_spill] sm:$0xff] %v9335_v16  ;;  %v600_v16 = vld [vmem:[#allocation2 + $0x15a] sm:$0xff] }
 0x358   :  { %1964 = vrot.lane.b32.xlu0 %v596_v12, %s7892_s13  ;;  %v9338_v53 = vpop.permute.xlu1 %1748  ;;  %v601_v12 = vld [vmem:[#allocation2 + $0x16a] sm:$0xff] }
 0x359   :  { %14347 = vst [vmem:[#allocation274_spill] sm:$0xff] %v9338_v53  ;;  %v602_v53 = vld [vmem:[#allocation2 + $0x172] sm:$0xff] }
 0x35a   :  { %v9340_v8 = vpop.permute.xlu0 %1752 }
 0x35b   :  { %14348 = vst [vmem:[#allocation275_spill] sm:$0xff] %v9340_v8 }
 0x35c   :  { %1968 = vrot.lane.b32.xlu2 %v598_v28, %s7892_s13 }
 0x35e   :  { %1966 = vrot.lane.b32.xlu1 %v597_v19, %s7892_s13  ;;  %v9344_v15 = vpop.permute.xlu2 %1774 }
 0x35f   :  { %14349 = vst [vmem:[#allocation276_spill] sm:$0xff] %v9344_v15  ;;  %v603_v15 = vld [vmem:[#allocation2 + $0x182] sm:$0xff] }
 0x360   :  { %1970 = vrot.lane.b32.xlu0 %v599_v43, %s7892_s13  ;;  %v9347_v1 = vpop.permute.xlu1 %1754  ;;  %v604_v43 = vld [vmem:[#allocation2 + $0x18a] sm:$0xff] }
 0x361   :  { %14350 = vst [vmem:[#allocation277_spill] sm:$0xff] %v9347_v1  ;;  %v605_v1 = vld [vmem:[#allocation2 + $0x1ca] sm:$0xff] }
 0x362   :  { %v9349_v20 = vpop.permute.xlu0 %1758 }
 0x363   :  { %14351 = vst [vmem:[#allocation278_spill] sm:$0xff] %v9349_v20 }
 0x364   :  { %1974 = vrot.lane.b32.xlu2 %v601_v12, %s7892_s13 }
 0x366   :  { %1972 = vrot.lane.b32.xlu1 %v600_v16, %s7892_s13  ;;  %v9353_v8 = vpop.permute.xlu2 %1780 }
 0x367   :  { %14352 = vst [vmem:[#allocation279_spill] sm:$0xff] %v9353_v8  ;;  %v606_v8 = vld [vmem:[#allocation2 + $0x1d2] sm:$0xff] }
 0x368   :  { %1976 = vrot.lane.b32.xlu0 %v602_v53, %s7892_s13  ;;  %v9356_v19 = vpop.permute.xlu1 %1760  ;;  %v607_v53 = vld [vmem:[#allocation2 + $0x1e2] sm:$0xff] }
 0x369   :  { %14353 = vst [vmem:[#allocation280_spill] sm:$0xff] %v9356_v19  ;;  %v608_v19 = vld [vmem:[#allocation2 + $0x1ea] sm:$0xff] }
 0x36a   :  { %v9358_v28 = vpop.permute.xlu0 %1764 }
 0x36b   :  { %14354 = vst [vmem:[#allocation281_spill] sm:$0xff] %v9358_v28 }
 0x36c   :  { %1980 = vrot.lane.b32.xlu2 %v604_v43, %s7892_s13 }
 0x36e   :  { %1978 = vrot.lane.b32.xlu1 %v603_v15, %s7892_s13  ;;  %v9362_v20 = vpop.permute.xlu2 %1786 }
 0x36f   :  { %14355 = vst [vmem:[#allocation282_spill] sm:$0xff] %v9362_v20  ;;  %v609_v20 = vld [vmem:[#allocation2 + $0x1fa] sm:$0xff] }
 0x370   :  { %1982 = vrot.lane.b32.xlu0 %v605_v1, %s7892_s13  ;;  %v9365_v16 = vpop.permute.xlu1 %1766  ;;  %v610_v1 = vld [vmem:[#allocation2 + $0x202] sm:$0xff] }
 0x371   :  { %14356 = vst [vmem:[#allocation283_spill] sm:$0xff] %v9365_v16  ;;  %v611_v16 = vld [vmem:[#allocation2 + $0x212] sm:$0xff] }
 0x372   :  { %v9367_v12 = vpop.permute.xlu0 %1770 }
 0x373   :  { %14357 = vst [vmem:[#allocation284_spill] sm:$0xff] %v9367_v12 }
 0x374   :  { %1986 = vrot.lane.b32.xlu2 %v607_v53, %s7892_s13 }
 0x376   :  { %1984 = vrot.lane.b32.xlu1 %v606_v8, %s7892_s13  ;;  %v9371_v28 = vpop.permute.xlu2 %1920 }
 0x378   :  { %1988 = vrot.lane.b32.xlu0 %v608_v19, %s7892_s13  ;;  %v9374_v15 = vpop.permute.xlu1 %1772  ;;  %v613_v19 = vld [vmem:[#allocation2 + $0x22a] sm:$0xff] }
 0x379   :  { %14358 = vst [vmem:[#allocation285_spill] sm:$0xff] %v9374_v15  ;;  %v614_v15 = vld [vmem:[#allocation2 + $0x232] sm:$0xff] }
 0x37a   :  { %v9376_v43 = vpop.permute.xlu0 %1776 }
 0x37b   :  { %14359 = vst [vmem:[#allocation286_spill] sm:$0xff] %v9376_v43 }
 0x37c   :  { %1992 = vrot.lane.b32.xlu2 %v610_v1, %s7892_s13 }
 0x37e   :  { %1990 = vrot.lane.b32.xlu1 %v609_v20, %s7892_s13  ;;  %v9380_v12 = vpop.permute.xlu2 %1926 }
 0x380   :  { %1994 = vrot.lane.b32.xlu0 %v611_v16, %s7892_s13  ;;  %v9383_v8 = vpop.permute.xlu1 %1778  ;;  %v616_v16 = vld [vmem:[#allocation2 + $0x24a] sm:$0xff] }
 0x381   :  { %14360 = vst [vmem:[#allocation287_spill] sm:$0xff] %v9383_v8  ;;  %v617_v8 = vld [vmem:[#allocation2 + $0x25a] sm:$0xff] }
 0x382   :  { %v9385_v53 = vpop.permute.xlu0 %1782 }
 0x383   :  { %14361 = vst [vmem:[#allocation288_spill] sm:$0xff] %v9385_v53 }
 0x384   :  { %1998 = vrot.lane.b32.xlu2 %v613_v19, %s7892_s13 }
 0x386   :  { %1996 = vrot.lane.b32.xlu1 %v612_v27, %s7892_s13  ;;  %v9389_v43 = vpop.permute.xlu2 %1932 }
 0x387   :  { %14362 = vst [vmem:[#allocation289_spill] sm:$0xff] %v9389_v43  ;;  %v807_v43 = vld [vmem:[#allocation2 + $0x24a] sm:$0xff] }
 0x388   :  { %2000 = vrot.lane.b32.xlu0 %v614_v15, %s7892_s13  ;;  %v9392_v20 = vpop.permute.xlu1 %1784  ;;  %v619_v15 = vld [vmem:[#allocation2 + $0x272] sm:$0xff] }
 0x389   :  { %14363 = vst [vmem:[#allocation290_spill] sm:$0xff] %v9392_v20  ;;  %v620_v20 = vld [vmem:[#allocation2 + $0x27a] sm:$0xff] }
 0x38a   :  { %v9394_v1 = vpop.permute.xlu0 %1788 }
 0x38b   :  { %14364 = vst [vmem:[#allocation291_spill] sm:$0xff] %v9394_v1 }
 0x38c   :  { %2004 = vrot.lane.b32.xlu2 %v616_v16, %s7892_s13 }
 0x38e   :  { %2002 = vrot.lane.b32.xlu1 %v615_v44, %s7892_s13  ;;  %v9398_v53 = vpop.permute.xlu2 %1938 }
 0x38f   :  { %14365 = vst [vmem:[#allocation292_spill] sm:$0xff] %v9398_v53  ;;  %v626_v53 = vld [vmem:[#allocation2 + $0x2c2] sm:$0xff] }
 0x390   :  { %2006 = vrot.lane.b32.xlu0 %v617_v8, %s7892_s13  ;;  %v9401_v27 = vpop.permute.xlu1 %1918  ;;  %v622_v8 = vld [vmem:[#allocation2 + $0x292] sm:$0xff] }
 0x392   :  { %v9403_v19 = vpop.permute.xlu0 %1922 }
 0x394   :  { %2010 = vrot.lane.b32.xlu2 %v619_v15, %s7892_s13 }
 0x396   :  { %2008 = vrot.lane.b32.xlu1 %v618_v33, %s7892_s13  ;;  %v9407_v1 = vpop.permute.xlu2 %1944 }
 0x397   :  { %14366 = vst [vmem:[#allocation293_spill] sm:$0xff] %v9407_v1  ;;  %v624_v1 = vld [vmem:[#allocation2 + $0x2aa] sm:$0xff] }
 0x398   :  { %2012 = vrot.lane.b32.xlu0 %v620_v20, %s7892_s13  ;;  %v9410_v44 = vpop.permute.xlu1 %1924  ;;  %v625_v20 = vld [vmem:[#allocation2 + $0x2ba] sm:$0xff] }
 0x39a   :  { %v9412_v16 = vpop.permute.xlu0 %1928 }
 0x39c   :  { %2016 = vrot.lane.b32.xlu2 %v622_v8, %s7892_s13 }
 0x39e   :  { %2014 = vrot.lane.b32.xlu1 %v621_v3, %s7892_s13  ;;  %v9416_v45 = vpop.permute.xlu2 %1950 }
 0x39f   :  { %14367 = vst [vmem:[#allocation294_spill] sm:$0xff] %v9416_v45  ;;  %v627_v45 = vld [vmem:[#allocation2 + $0x2d2] sm:$0xff] }
 0x3a0   :  { %2018 = vrot.lane.b32.xlu0 %v623_v50, %s7892_s13  ;;  %v9419_v33 = vpop.permute.xlu1 %1930  ;;  %v628_v50 = vld [vmem:[#allocation2 + $0x2da] sm:$0xff] }
 0x3a2   :  { %v9421_v15 = vpop.permute.xlu0 %1934 }
 0x3a3   :  { %14368 = vst [vmem:[#allocation295_spill] sm:$0xff] %v9421_v15  ;;  %v745_v15 = vld [vmem:[#allocation2 + $0x261] sm:$0xff] }
 0x3a4   :  { %2022 = vrot.lane.b32.xlu2 %v625_v20, %s7892_s13 }
 0x3a6   :  { %2020 = vrot.lane.b32.xlu1 %v624_v1, %s7892_s13  ;;  %v9425_v36 = vpop.permute.xlu2 %1956 }
 0x3a7   :  { %14369 = vst [vmem:[#allocation296_spill] sm:$0xff] %v9425_v36  ;;  %v630_v36 = vld [vmem:[#allocation2 + $0x2f2] sm:$0xff] }
 0x3a8   :  { %2024 = vrot.lane.b32.xlu0 %v626_v53, %s7892_s13  ;;  %v9428_v3 = vpop.permute.xlu1 %1936  ;;  %v631_v53 = vld [vmem:[#allocation2 + $0x302] sm:$0xff] }
 0x3a9   :  { %14370 = vst [vmem:[#allocation297_spill] sm:$0xff] %v9428_v3  ;;  %v690_v3 = vld [vmem:[#allocation2 + $0x2d0] sm:$0xff] }
 0x3aa   :  { %v9430_v8 = vpop.permute.xlu0 %1940 }
 0x3ab   :  { %14371 = vst [vmem:[#allocation298_spill] sm:$0xff] %v9430_v8 }
 0x3ac   :  { %2028 = vrot.lane.b32.xlu2 %v628_v50, %s7892_s13 }
 0x3ae   :  { %2026 = vrot.lane.b32.xlu1 %v627_v45, %s7892_s13  ;;  %v9434_v21 = vpop.permute.xlu2 %1962 }
 0x3af   :  { %14372 = vst [vmem:[#allocation299_spill] sm:$0xff] %v9434_v21  ;;  %v633_v21 = vld [vmem:[#allocation2 + $0x31a] sm:$0xff] }
 0x3b0   :  { %2030 = vrot.lane.b32.xlu0 %v629_v23, %s7892_s13  ;;  %v9437_v1 = vpop.permute.xlu1 %1942  ;;  %v634_v23 = vld [vmem:[#allocation2 + $0x322] sm:$0xff] }
 0x3b1   :  { %14373 = vst [vmem:[#allocation300_spill] sm:$0xff] %v9437_v1  ;;  %v635_v1 = vld [vmem:[#allocation2 + $0x332] sm:$0xff] }
 0x3b2   :  { %v9439_v20 = vpop.permute.xlu0 %1946 }
 0x3b3   :  { %14374 = vst [vmem:[#allocation301_spill] sm:$0xff] %v9439_v20 }
 0x3b4   :  { %2034 = vrot.lane.b32.xlu2 %v631_v53, %s7892_s13 }
 0x3b6   :  { %2032 = vrot.lane.b32.xlu1 %v630_v36, %s7892_s13  ;;  %v9443_v8 = vpop.permute.xlu2 %1968 }
 0x3b7   :  { %14375 = vst [vmem:[#allocation302_spill] sm:$0xff] %v9443_v8  ;;  %v636_v8 = vld [vmem:[#allocation2 + $0x33a] sm:$0xff] }
 0x3b8   :  { %2036 = vrot.lane.b32.xlu0 %v632_v22, %s7892_s13  ;;  %v9446_v45 = vpop.permute.xlu1 %1948  ;;  %v638_v22 = vld [vmem:[#allocation2 + $0x30] sm:$0xff] }
 0x3b9   :  { %14376 = vst [vmem:[#allocation303_spill] sm:$0xff] %v9446_v45  ;;  %v639_v45 = vld [vmem:[#allocation2 + $0x38] sm:$0xff] }
 0x3ba   :  { %v9448_v50 = vpop.permute.xlu0 %1952 }
 0x3bb   :  { %14377 = vst [vmem:[#allocation304_spill] sm:$0xff] %v9448_v50 }
 0x3bc   :  { %2040 = vrot.lane.b32.xlu2 %v634_v23, %s7892_s13 }
 0x3be   :  { %2038 = vrot.lane.b32.xlu1 %v633_v21, %s7892_s13  ;;  %v9452_v20 = vpop.permute.xlu2 %1974 }
 0x3bf   :  { %14378 = vst [vmem:[#allocation305_spill] sm:$0xff] %v9452_v20  ;;  %v640_v20 = vld [vmem:[#allocation2 + $0x48] sm:$0xff] }
 0x3c0   :  { %2042 = vrot.lane.b32.xlu0 %v635_v1, %s7892_s13  ;;  %v9455_v36 = vpop.permute.xlu1 %1954  ;;  %v641_v1 = vld [vmem:[#allocation2 + $0x50] sm:$0xff] }
 0x3c1   :  { %14379 = vst [vmem:[#allocation306_spill] sm:$0xff] %v9455_v36  ;;  %v642_v36 = vld [vmem:[#allocation2 + $0x60] sm:$0xff] }
 0x3c2   :  { %v9457_v53 = vpop.permute.xlu0 %1958 }
 0x3c3   :  { %14380 = vst [vmem:[#allocation307_spill] sm:$0xff] %v9457_v53 }
 0x3c4   :  { %2174 = vrot.lane.b32.xlu2 %v638_v22, %s7893_s14 }
 0x3c6   :  { %2044 = vrot.lane.b32.xlu1 %v636_v8, %s7892_s13  ;;  %v9461_v50 = vpop.permute.xlu2 %1980 }
 0x3c7   :  { %14381 = vst [vmem:[#allocation308_spill] sm:$0xff] %v9461_v50  ;;  %v643_v50 = vld [vmem:[#allocation2 + $0x68] sm:$0xff] }
 0x3c8   :  { %2176 = vrot.lane.b32.xlu0 %v639_v45, %s7893_s14  ;;  %v9464_v21 = vpop.permute.xlu1 %1960  ;;  %v644_v45 = vld [vmem:[#allocation2 + $0x78] sm:$0xff] }
 0x3c9   :  { %14382 = vst [vmem:[#allocation309_spill] sm:$0xff] %v9464_v21  ;;  %v645_v21 = vld [vmem:[#allocation2 + $0x80] sm:$0xff] }
 0x3ca   :  { %v9466_v23 = vpop.permute.xlu0 %1964 }
 0x3cb   :  { %14383 = vst [vmem:[#allocation310_spill] sm:$0xff] %v9466_v23 }
 0x3cc   :  { %2180 = vrot.lane.b32.xlu2 %v641_v1, %s7893_s14 }
 0x3ce   :  { %2178 = vrot.lane.b32.xlu1 %v640_v20, %s7893_s14  ;;  %v9470_v53 = vpop.permute.xlu2 %1986 }
 0x3cf   :  { %14384 = vst [vmem:[#allocation311_spill] sm:$0xff] %v9470_v53  ;;  %v646_v53 = vld [vmem:[#allocation2 + $0x90] sm:$0xff] }
 0x3d0   :  { %2182 = vrot.lane.b32.xlu0 %v642_v36, %s7893_s14  ;;  %v9473_v8 = vpop.permute.xlu1 %1966  ;;  %v647_v36 = vld [vmem:[#allocation2 + $0x98] sm:$0xff] }
 0x3d1   :  { %14385 = vst [vmem:[#allocation312_spill] sm:$0xff] %v9473_v8  ;;  %v648_v8 = vld [vmem:[#allocation2 + $0xa8] sm:$0xff] }
 0x3d2   :  { %v9475_v22 = vpop.permute.xlu0 %1970 }
 0x3d3   :  { %14386 = vst [vmem:[#allocation313_spill] sm:$0xff] %v9475_v22 }
 0x3d4   :  { %2186 = vrot.lane.b32.xlu2 %v644_v45, %s7893_s14 }
 0x3d6   :  { %2184 = vrot.lane.b32.xlu1 %v643_v50, %s7893_s14  ;;  %v9479_v23 = vpop.permute.xlu2 %1992 }
 0x3d7   :  { %14387 = vst [vmem:[#allocation314_spill] sm:$0xff] %v9479_v23  ;;  %v649_v23 = vld [vmem:[#allocation2 + $0xb0] sm:$0xff] }
 0x3d8   :  { %2188 = vrot.lane.b32.xlu0 %v645_v21, %s7893_s14  ;;  %v9482_v20 = vpop.permute.xlu1 %1972  ;;  %v650_v21 = vld [vmem:[#allocation2 + $0xc0] sm:$0xff] }
 0x3d9   :  { %14388 = vst [vmem:[#allocation315_spill] sm:$0xff] %v9482_v20  ;;  %v651_v20 = vld [vmem:[#allocation2 + $0xc8] sm:$0xff] }
 0x3da   :  { %v9484_v1 = vpop.permute.xlu0 %1976 }
 0x3db   :  { %14389 = vst [vmem:[#allocation316_spill] sm:$0xff] %v9484_v1 }
 0x3dc   :  { %2192 = vrot.lane.b32.xlu2 %v647_v36, %s7893_s14 }
 0x3de   :  { %2190 = vrot.lane.b32.xlu1 %v646_v53, %s7893_s14  ;;  %v9488_v22 = vpop.permute.xlu2 %1998 }
 0x3df   :  { %14390 = vst [vmem:[#allocation317_spill] sm:$0xff] %v9488_v22  ;;  %v652_v22 = vld [vmem:[#allocation2 + $0xd8] sm:$0xff] }
 0x3e0   :  { %2194 = vrot.lane.b32.xlu0 %v648_v8, %s7893_s14  ;;  %v9491_v50 = vpop.permute.xlu1 %1978  ;;  %v653_v8 = vld [vmem:[#allocation2 + $0xe0] sm:$0xff] }
 0x3e1   :  { %14391 = vst [vmem:[#allocation318_spill] sm:$0xff] %v9491_v50  ;;  %v654_v50 = vld [vmem:[#allocation2 + $0xf0] sm:$0xff] }
 0x3e2   :  { %v9493_v45 = vpop.permute.xlu0 %1982 }
 0x3e3   :  { %14392 = vst [vmem:[#allocation319_spill] sm:$0xff] %v9493_v45 }
 0x3e4   :  { %2198 = vrot.lane.b32.xlu2 %v650_v21, %s7893_s14 }
 0x3e6   :  { %2196 = vrot.lane.b32.xlu1 %v649_v23, %s7893_s14  ;;  %v9497_v1 = vpop.permute.xlu2 %2004 }
 0x3e7   :  { %14393 = vst [vmem:[#allocation320_spill] sm:$0xff] %v9497_v1  ;;  %v655_v1 = vld [vmem:[#allocation2 + $0xf8] sm:$0xff] }
 0x3e8   :  { %2200 = vrot.lane.b32.xlu0 %v651_v20, %s7893_s14  ;;  %v9500_v53 = vpop.permute.xlu1 %1984  ;;  %v656_v20 = vld [vmem:[#allocation2 + $0x108] sm:$0xff] }
 0x3e9   :  { %14394 = vst [vmem:[#allocation321_spill] sm:$0xff] %v9500_v53  ;;  %v657_v53 = vld [vmem:[#allocation2 + $0x110] sm:$0xff] }
 0x3ea   :  { %v9502_v36 = vpop.permute.xlu0 %1988 }
 0x3eb   :  { %14395 = vst [vmem:[#allocation322_spill] sm:$0xff] %v9502_v36 }
 0x3ec   :  { %2204 = vrot.lane.b32.xlu2 %v653_v8, %s7893_s14 }
 0x3ee   :  { %2202 = vrot.lane.b32.xlu1 %v652_v22, %s7893_s14  ;;  %v9506_v45 = vpop.permute.xlu2 %2010 }
 0x3ef   :  { %14396 = vst [vmem:[#allocation323_spill] sm:$0xff] %v9506_v45  ;;  %v658_v45 = vld [vmem:[#allocation2 + $0x120] sm:$0xff] }
 0x3f0   :  { %2206 = vrot.lane.b32.xlu0 %v654_v50, %s7893_s14  ;;  %v9509_v23 = vpop.permute.xlu1 %1990  ;;  %v659_v50 = vld [vmem:[#allocation2 + $0x128] sm:$0xff] }
 0x3f1   :  { %14397 = vst [vmem:[#allocation324_spill] sm:$0xff] %v9509_v23  ;;  %v660_v23 = vld [vmem:[#allocation2 + $0x138] sm:$0xff] }
 0x3f2   :  { %v9511_v21 = vpop.permute.xlu0 %1994 }
 0x3f3   :  { %14398 = vst [vmem:[#allocation325_spill] sm:$0xff] %v9511_v21 }
 0x3f4   :  { %2210 = vrot.lane.b32.xlu2 %v656_v20, %s7893_s14 }
 0x3f6   :  { %2208 = vrot.lane.b32.xlu1 %v655_v1, %s7893_s14  ;;  %v9515_v36 = vpop.permute.xlu2 %2016 }
 0x3f7   :  { %14399 = vst [vmem:[#allocation326_spill] sm:$0xff] %v9515_v36  ;;  %v661_v36 = vld [vmem:[#allocation2 + $0x140] sm:$0xff] }
 0x3f8   :  { %2212 = vrot.lane.b32.xlu0 %v657_v53, %s7893_s14  ;;  %v9518_v22 = vpop.permute.xlu1 %1996  ;;  %v662_v53 = vld [vmem:[#allocation2 + $0x150] sm:$0xff] }
 0x3f9   :  { %14400 = vst [vmem:[#allocation327_spill] sm:$0xff] %v9518_v22  ;;  %v663_v22 = vld [vmem:[#allocation2 + $0x158] sm:$0xff] }
 0x3fa   :  { %v9520_v8 = vpop.permute.xlu0 %2000 }
 0x3fb   :  { %14401 = vst [vmem:[#allocation328_spill] sm:$0xff] %v9520_v8 }
 0x3fc   :  { %2216 = vrot.lane.b32.xlu2 %v659_v50, %s7893_s14 }
 0x3fe   :  { %2214 = vrot.lane.b32.xlu1 %v658_v45, %s7893_s14  ;;  %v9524_v21 = vpop.permute.xlu2 %2022 }
 0x3ff   :  { %14402 = vst [vmem:[#allocation329_spill] sm:$0xff] %v9524_v21  ;;  %v664_v21 = vld [vmem:[#allocation2 + $0x168] sm:$0xff] }
 0x400   :  { %2218 = vrot.lane.b32.xlu0 %v660_v23, %s7893_s14  ;;  %v9527_v1 = vpop.permute.xlu1 %2002  ;;  %v665_v23 = vld [vmem:[#allocation2 + $0x170] sm:$0xff] }
 0x401   :  { %14403 = vst [vmem:[#allocation330_spill] sm:$0xff] %v9527_v1  ;;  %v666_v1 = vld [vmem:[#allocation2 + $0x180] sm:$0xff] }
 0x402   :  { %v9529_v20 = vpop.permute.xlu0 %2006 }
 0x403   :  { %14404 = vst [vmem:[#allocation331_spill] sm:$0xff] %v9529_v20 }
 0x404   :  { %2222 = vrot.lane.b32.xlu2 %v662_v53, %s7893_s14 }
 0x406   :  { %2220 = vrot.lane.b32.xlu1 %v661_v36, %s7893_s14  ;;  %v9533_v8 = vpop.permute.xlu2 %2028 }
 0x407   :  { %14405 = vst [vmem:[#allocation332_spill] sm:$0xff] %v9533_v8  ;;  %v667_v8 = vld [vmem:[#allocation2 + $0x188] sm:$0xff] }
 0x408   :  { %2224 = vrot.lane.b32.xlu0 %v663_v22, %s7893_s14  ;;  %v9536_v45 = vpop.permute.xlu1 %2008  ;;  %v668_v22 = vld [vmem:[#allocation2 + $0x198] sm:$0xff] }
 0x409   :  { %14406 = vst [vmem:[#allocation333_spill] sm:$0xff] %v9536_v45  ;;  %v669_v45 = vld [vmem:[#allocation2 + $0x1a0] sm:$0xff] }
 0x40a   :  { %v9538_v50 = vpop.permute.xlu0 %2012 }
 0x40b   :  { %14407 = vst [vmem:[#allocation334_spill] sm:$0xff] %v9538_v50 }
 0x40c   :  { %2228 = vrot.lane.b32.xlu2 %v665_v23, %s7893_s14 }
 0x40e   :  { %2226 = vrot.lane.b32.xlu1 %v664_v21, %s7893_s14  ;;  %v9542_v20 = vpop.permute.xlu2 %2034 }
 0x40f   :  { %14408 = vst [vmem:[#allocation335_spill] sm:$0xff] %v9542_v20  ;;  %v670_v20 = vld [vmem:[#allocation2 + $0x1e0] sm:$0xff] }
 0x410   :  { %2230 = vrot.lane.b32.xlu0 %v666_v1, %s7893_s14  ;;  %v9545_v36 = vpop.permute.xlu1 %2014  ;;  %v671_v1 = vld [vmem:[#allocation2 + $0x1e8] sm:$0xff] }
 0x411   :  { %14409 = vst [vmem:[#allocation336_spill] sm:$0xff] %v9545_v36  ;;  %v672_v36 = vld [vmem:[#allocation2 + $0x1f8] sm:$0xff] }
 0x412   :  { %v9547_v53 = vpop.permute.xlu0 %2018 }
 0x413   :  { %14410 = vst [vmem:[#allocation337_spill] sm:$0xff] %v9547_v53 }
 0x414   :  { %2234 = vrot.lane.b32.xlu2 %v668_v22, %s7893_s14 }
 0x416   :  { %2232 = vrot.lane.b32.xlu1 %v667_v8, %s7893_s14  ;;  %v9551_v50 = vpop.permute.xlu2 %2040 }
 0x417   :  { %14411 = vst [vmem:[#allocation338_spill] sm:$0xff] %v9551_v50  ;;  %v673_v50 = vld [vmem:[#allocation2 + $0x200] sm:$0xff] }
 0x418   :  { %2236 = vrot.lane.b32.xlu0 %v669_v45, %s7893_s14  ;;  %v9554_v21 = vpop.permute.xlu1 %2020  ;;  %v674_v45 = vld [vmem:[#allocation2 + $0x210] sm:$0xff] }
 0x419   :  { %14412 = vst [vmem:[#allocation339_spill] sm:$0xff] %v9554_v21  ;;  %v675_v21 = vld [vmem:[#allocation2 + $0x218] sm:$0xff] }
 0x41a   :  { %v9556_v23 = vpop.permute.xlu0 %2024 }
 0x41b   :  { %14413 = vst [vmem:[#allocation340_spill] sm:$0xff] %v9556_v23 }
 0x41c   :  { %2240 = vrot.lane.b32.xlu2 %v671_v1, %s7893_s14 }
 0x41e   :  { %2238 = vrot.lane.b32.xlu1 %v670_v20, %s7893_s14  ;;  %v9560_v53 = vpop.permute.xlu2 %2174 }
 0x420   :  { %2242 = vrot.lane.b32.xlu0 %v672_v36, %s7893_s14  ;;  %v9563_v8 = vpop.permute.xlu1 %2026  ;;  %v677_v36 = vld [vmem:[#allocation2 + $0x230] sm:$0xff] }
 0x421   :  { %14414 = vst [vmem:[#allocation341_spill] sm:$0xff] %v9563_v8  ;;  %v678_v8 = vld [vmem:[#allocation2 + $0x240] sm:$0xff] }
 0x422   :  { %v9565_v22 = vpop.permute.xlu0 %2030 }
 0x423   :  { %14415 = vst [vmem:[#allocation342_spill] sm:$0xff] %v9565_v22 }
 0x424   :  { %2246 = vrot.lane.b32.xlu2 %v674_v45, %s7893_s14 }
 0x426   :  { %2244 = vrot.lane.b32.xlu1 %v673_v50, %s7893_s14  ;;  %v9569_v23 = vpop.permute.xlu2 %2180 }
 0x428   :  { %2248 = vrot.lane.b32.xlu0 %v675_v21, %s7893_s14  ;;  %v9572_v20 = vpop.permute.xlu1 %2032  ;;  %v680_v21 = vld [vmem:[#allocation2 + $0x258] sm:$0xff] }
 0x429   :  { %14416 = vst [vmem:[#allocation343_spill] sm:$0xff] %v9572_v20  ;;  %v681_v20 = vld [vmem:[#allocation2 + $0x260] sm:$0xff] }
 0x42a   :  { %v9574_v1 = vpop.permute.xlu0 %2036 }
 0x42b   :  { %14417 = vst [vmem:[#allocation344_spill] sm:$0xff] %v9574_v1 }
 0x42c   :  { %2252 = vrot.lane.b32.xlu2 %v677_v36, %s7893_s14 }
 0x42e   :  { %2250 = vrot.lane.b32.xlu1 %v676_v61, %s7893_s14  ;;  %v9578_v22 = vpop.permute.xlu2 %2186 }
 0x430   :  { %2254 = vrot.lane.b32.xlu0 %v678_v8, %s7893_s14  ;;  %v9581_v50 = vpop.permute.xlu1 %2038  ;;  %v683_v8 = vld [vmem:[#allocation2 + $0x278] sm:$0xff] }
 0x431   :  { %14418 = vst [vmem:[#allocation345_spill] sm:$0xff] %v9581_v50  ;;  %v684_v50 = vld [vmem:[#allocation2 + $0x288] sm:$0xff] }
 0x432   :  { %v9583_v45 = vpop.permute.xlu0 %2042 }
 0x433   :  { %14419 = vst [vmem:[#allocation346_spill] sm:$0xff] %v9583_v45 }
 0x434   :  { %2258 = vrot.lane.b32.xlu2 %v680_v21, %s7893_s14 }
 0x436   :  { %2256 = vrot.lane.b32.xlu1 %v679_v60, %s7893_s14  ;;  %v9587_v1 = vpop.permute.xlu2 %2192 }
 0x437   :  { %14420 = vst [vmem:[#allocation347_spill] sm:$0xff] %v9587_v1 }
 0x438   :  { %2260 = vrot.lane.b32.xlu0 %v681_v20, %s7893_s14  ;;  %v9590_v61 = vpop.permute.xlu1 %2044  ;;  %v686_v20 = vld [vmem:[#allocation2 + $0x2a0] sm:$0xff] }
 0x439   :  { %14421 = vst [vmem:[#allocation348_spill] sm:$0xff] %v9590_v61  ;;  %v687_v61 = vld [vmem:[#allocation2 + $0x2a8] sm:$0xff] }
 0x43a   :  { %v9592_v36 = vpop.permute.xlu0 %2176 }
 0x43c   :  { %2264 = vrot.lane.b32.xlu2 %v683_v8, %s7893_s14 }
 0x43e   :  { %2262 = vrot.lane.b32.xlu1 %v682_v24, %s7893_s14  ;;  %v9596_v45 = vpop.permute.xlu2 %2198 }
 0x43f   :  { %14422 = vst [vmem:[#allocation349_spill] sm:$0xff] %v9596_v45  ;;  %v688_v45 = vld [vmem:[#allocation2 + $0x2b8] sm:$0xff] }
 0x440   :  { %2266 = vrot.lane.b32.xlu0 %v684_v50, %s7893_s14  ;;  %v9599_v60 = vpop.permute.xlu1 %2178  ;;  %v689_v50 = vld [vmem:[#allocation2 + $0x2c0] sm:$0xff] }
 0x442   :  { %v9601_v21 = vpop.permute.xlu0 %2182 }
 0x444   :  { %2270 = vrot.lane.b32.xlu2 %v686_v20, %s7893_s14 }
 0x446   :  { %2268 = vrot.lane.b32.xlu1 %v685_v6, %s7893_s14  ;;  %v9605_v1 = vpop.permute.xlu2 %2204 }
 0x447   :  { %14423 = vst [vmem:[#allocation350_spill] sm:$0xff] %v9605_v1  ;;  %v691_v1 = vld [vmem:[#allocation2 + $0x2d8] sm:$0xff] }
 0x448   :  { %2272 = vrot.lane.b32.xlu0 %v687_v61, %s7893_s14  ;;  %v9608_v24 = vpop.permute.xlu1 %2184  ;;  %v692_v61 = vld [vmem:[#allocation2 + $0x2e8] sm:$0xff] }
 0x44a   :  { %v9610_v8 = vpop.permute.xlu0 %2188 }
 0x44b   :  { %14424 = vst [vmem:[#allocation351_spill] sm:$0xff] %v9610_v8 }
 0x44c   :  { %2276 = vrot.lane.b32.xlu2 %v689_v50, %s7893_s14 }
 0x44e   :  { %2274 = vrot.lane.b32.xlu1 %v688_v45, %s7893_s14  ;;  %v9614_v56 = vpop.permute.xlu2 %2210 }
 0x44f   :  { %14425 = vst [vmem:[#allocation352_spill] sm:$0xff] %v9614_v56  ;;  %v694_v56 = vld [vmem:[#allocation2 + $0x300] sm:$0xff] }
 0x450   :  { %2278 = vrot.lane.b32.xlu0 %v690_v3, %s7893_s14  ;;  %v9617_v6 = vpop.permute.xlu1 %2190  ;;  %v695_v3 = vld [vmem:[#allocation2 + $0x308] sm:$0xff] }
 0x451   :  { %14426 = vst [vmem:[#allocation353_spill] sm:$0xff] %v9617_v6  ;;  %v742_v6 = vld [vmem:[#allocation2 + $0x241] sm:$0xff] }
 0x452   :  { %v9619_v20 = vpop.permute.xlu0 %2194 }
 0x453   :  { %14427 = vst [vmem:[#allocation354_spill] sm:$0xff] %v9619_v20 }
 0x454   :  { %2282 = vrot.lane.b32.xlu2 %v692_v61, %s7893_s14 }
 0x456   :  { %2280 = vrot.lane.b32.xlu1 %v691_v1, %s7893_s14  ;;  %v9623_v62 = vpop.permute.xlu2 %2216 }
 0x457   :  { %14428 = vst [vmem:[#allocation355_spill] sm:$0xff] %v9623_v62  ;;  %v697_v62 = vld [vmem:[#allocation2 + $0x320] sm:$0xff] }
 0x458   :  { %2284 = vrot.lane.b32.xlu0 %v693_v0, %s7893_s14  ;;  %v9626_v45 = vpop.permute.xlu1 %2196  ;;  %v698_v0 = vld [vmem:[#allocation2 + $0x330] sm:$0xff] }
 0x459   :  { %14429 = vst [vmem:[#allocation356_spill] sm:$0xff] %v9626_v45  ;;  %v699_v45 = vld [vmem:[#allocation2 + $0x338] sm:$0xff] }
 0x45a   :  { %v9628_v50 = vpop.permute.xlu0 %2200 }
 0x45b   :  { %14430 = vst [vmem:[#allocation357_spill] sm:$0xff] %v9628_v50 }
 0x45c   :  { %2288 = vrot.lane.b32.xlu2 %v695_v3, %s7893_s14 }
 0x45e   :  { %2286 = vrot.lane.b32.xlu1 %v694_v56, %s7893_s14  ;;  %v9632_v20 = vpop.permute.xlu2 %2222 }
 0x45f   :  { %14431 = vst [vmem:[#allocation358_spill] sm:$0xff] %v9632_v20  ;;  %v700_v20 = vld [vmem:[#allocation2 + $0x348] sm:$0xff] }
 0x460   :  { %2290 = vrot.lane.b32.xlu0 %v696_v42, %s7893_s14  ;;  %v9635_v1 = vpop.permute.xlu1 %2202  ;;  %v701_v42 = vld [vmem:[#allocation2 + $0x350] sm:$0xff] }
 0x461   :  { %14432 = vst [vmem:[#allocation359_spill] sm:$0xff] %v9635_v1  ;;  %v702_v1 = vld [vmem:[#allocation2 + $0x31] sm:$0xff] }
 0x462   :  { %v9637_v61 = vpop.permute.xlu0 %2206 }
 0x463   :  { %14433 = vst [vmem:[#allocation360_spill] sm:$0xff] %v9637_v61 }
 0x464   :  { %2294 = vrot.lane.b32.xlu2 %v698_v0, %s7893_s14 }
 0x466   :  { %2292 = vrot.lane.b32.xlu1 %v697_v62, %s7893_s14  ;;  %v9641_v50 = vpop.permute.xlu2 %2228 }
 0x467   :  { %14434 = vst [vmem:[#allocation361_spill] sm:$0xff] %v9641_v50  ;;  %v703_v50 = vld [vmem:[#allocation2 + $0x39] sm:$0xff] }
 0x468   :  { %2296 = vrot.lane.b32.xlu0 %v699_v45, %s7893_s14  ;;  %v9644_v56 = vpop.permute.xlu1 %2208  ;;  %v704_v45 = vld [vmem:[#allocation2 + $0x49] sm:$0xff] }
 0x469   :  { %14435 = vst [vmem:[#allocation362_spill] sm:$0xff] %v9644_v56  ;;  %v705_v56 = vld [vmem:[#allocation2 + $0x51] sm:$0xff] }
 0x46a   :  { %v9646_v3 = vpop.permute.xlu0 %2212 }
 0x46b   :  { %14436 = vst [vmem:[#allocation363_spill] sm:$0xff] %v9646_v3 }
 0x46c   :  { %2300 = vrot.lane.b32.xlu2 %v701_v42, %s7893_s14 }
 0x46e   :  { %2298 = vrot.lane.b32.xlu1 %v700_v20, %s7893_s14  ;;  %v9650_v61 = vpop.permute.xlu2 %2234 }
 0x46f   :  { %14437 = vst [vmem:[#allocation364_spill] sm:$0xff] %v9650_v61  ;;  %v706_v61 = vld [vmem:[#allocation2 + $0x61] sm:$0xff] }
 0x470   :  { %2430 = vrot.lane.b32.xlu0 %v702_v1, %s7894_s15  ;;  %v9653_v62 = vpop.permute.xlu1 %2214  ;;  %v707_v1 = vld [vmem:[#allocation2 + $0x69] sm:$0xff] }
 0x471   :  { %14438 = vst [vmem:[#allocation365_spill] sm:$0xff] %v9653_v62  ;;  %v708_v62 = vld [vmem:[#allocation2 + $0x79] sm:$0xff] }
 0x472   :  { %v9655_v0 = vpop.permute.xlu0 %2218 }
 0x473   :  { %14439 = vst [vmem:[#allocation366_spill] sm:$0xff] %v9655_v0 }
 0x474   :  { %2434 = vrot.lane.b32.xlu2 %v704_v45, %s7894_s15 }
 0x476   :  { %2432 = vrot.lane.b32.xlu1 %v703_v50, %s7894_s15  ;;  %v9659_v3 = vpop.permute.xlu2 %2240 }
 0x477   :  { %14440 = vst [vmem:[#allocation367_spill] sm:$0xff] %v9659_v3  ;;  %v709_v3 = vld [vmem:[#allocation2 + $0x81] sm:$0xff] }
 0x478   :  { %2436 = vrot.lane.b32.xlu0 %v705_v56, %s7894_s15  ;;  %v9662_v20 = vpop.permute.xlu1 %2220  ;;  %v710_v56 = vld [vmem:[#allocation2 + $0x91] sm:$0xff] }
 0x479   :  { %14441 = vst [vmem:[#allocation368_spill] sm:$0xff] %v9662_v20  ;;  %v711_v20 = vld [vmem:[#allocation2 + $0x99] sm:$0xff] }
 0x47a   :  { %v9664_v42 = vpop.permute.xlu0 %2224 }
 0x47b   :  { %14442 = vst [vmem:[#allocation369_spill] sm:$0xff] %v9664_v42 }
 0x47c   :  { %2440 = vrot.lane.b32.xlu2 %v707_v1, %s7894_s15 }
 0x47e   :  { %2438 = vrot.lane.b32.xlu1 %v706_v61, %s7894_s15  ;;  %v9668_v0 = vpop.permute.xlu2 %2246 }
 0x47f   :  { %14443 = vst [vmem:[#allocation370_spill] sm:$0xff] %v9668_v0  ;;  %v712_v0 = vld [vmem:[#allocation2 + $0xa9] sm:$0xff] }
 0x480   :  { %2442 = vrot.lane.b32.xlu0 %v708_v62, %s7894_s15  ;;  %v9671_v50 = vpop.permute.xlu1 %2226  ;;  %v713_v62 = vld [vmem:[#allocation2 + $0xb1] sm:$0xff] }
 0x481   :  { %14444 = vst [vmem:[#allocation371_spill] sm:$0xff] %v9671_v50  ;;  %v714_v50 = vld [vmem:[#allocation2 + $0xc1] sm:$0xff] }
 0x482   :  { %v9673_v45 = vpop.permute.xlu0 %2230 }
 0x483   :  { %14445 = vst [vmem:[#allocation372_spill] sm:$0xff] %v9673_v45 }
 0x484   :  { %2446 = vrot.lane.b32.xlu2 %v710_v56, %s7894_s15 }
 0x486   :  { %2444 = vrot.lane.b32.xlu1 %v709_v3, %s7894_s15  ;;  %v9677_v42 = vpop.permute.xlu2 %2252 }
 0x487   :  { %14446 = vst [vmem:[#allocation373_spill] sm:$0xff] %v9677_v42  ;;  %v715_v42 = vld [vmem:[#allocation2 + $0xc9] sm:$0xff] }
 0x488   :  { %2448 = vrot.lane.b32.xlu0 %v711_v20, %s7894_s15  ;;  %v9680_v61 = vpop.permute.xlu1 %2232  ;;  %v716_v20 = vld [vmem:[#allocation2 + $0xd9] sm:$0xff] }
 0x489   :  { %14447 = vst [vmem:[#allocation374_spill] sm:$0xff] %v9680_v61  ;;  %v717_v61 = vld [vmem:[#allocation2 + $0xe1] sm:$0xff] }
 0x48a   :  { %v9682_v1 = vpop.permute.xlu0 %2236 }
 0x48b   :  { %14448 = vst [vmem:[#allocation375_spill] sm:$0xff] %v9682_v1 }
 0x48c   :  { %2452 = vrot.lane.b32.xlu2 %v713_v62, %s7894_s15 }
 0x48e   :  { %2450 = vrot.lane.b32.xlu1 %v712_v0, %s7894_s15  ;;  %v9686_v45 = vpop.permute.xlu2 %2258 }
 0x48f   :  { %14449 = vst [vmem:[#allocation376_spill] sm:$0xff] %v9686_v45  ;;  %v718_v45 = vld [vmem:[#allocation2 + $0xf1] sm:$0xff] }
 0x490   :  { %2454 = vrot.lane.b32.xlu0 %v714_v50, %s7894_s15  ;;  %v9689_v3 = vpop.permute.xlu1 %2238  ;;  %v719_v50 = vld [vmem:[#allocation2 + $0xf9] sm:$0xff] }
 0x491   :  { %14450 = vst [vmem:[#allocation377_spill] sm:$0xff] %v9689_v3  ;;  %v720_v3 = vld [vmem:[#allocation2 + $0x109] sm:$0xff] }
 0x492   :  { %v9691_v56 = vpop.permute.xlu0 %2242 }
 0x493   :  { %14451 = vst [vmem:[#allocation378_spill] sm:$0xff] %v9691_v56 }
 0x494   :  { %2458 = vrot.lane.b32.xlu2 %v716_v20, %s7894_s15 }
 0x496   :  { %2456 = vrot.lane.b32.xlu1 %v715_v42, %s7894_s15  ;;  %v9695_v1 = vpop.permute.xlu2 %2264 }
 0x497   :  { %14452 = vst [vmem:[#allocation379_spill] sm:$0xff] %v9695_v1  ;;  %v721_v1 = vld [vmem:[#allocation2 + $0x111] sm:$0xff] }
 0x498   :  { %2460 = vrot.lane.b32.xlu0 %v717_v61, %s7894_s15  ;;  %v9698_v0 = vpop.permute.xlu1 %2244  ;;  %v722_v61 = vld [vmem:[#allocation2 + $0x121] sm:$0xff] }
 0x499   :  { %14453 = vst [vmem:[#allocation380_spill] sm:$0xff] %v9698_v0  ;;  %v723_v0 = vld [vmem:[#allocation2 + $0x129] sm:$0xff] }
 0x49a   :  { %v9700_v62 = vpop.permute.xlu0 %2248 }
 0x49b   :  { %14454 = vst [vmem:[#allocation381_spill] sm:$0xff] %v9700_v62 }
 0x49c   :  { %2464 = vrot.lane.b32.xlu2 %v719_v50, %s7894_s15 }
 0x49e   :  { %2462 = vrot.lane.b32.xlu1 %v718_v45, %s7894_s15  ;;  %v9704_v56 = vpop.permute.xlu2 %2270 }
 0x49f   :  { %14455 = vst [vmem:[#allocation382_spill] sm:$0xff] %v9704_v56  ;;  %v724_v56 = vld [vmem:[#allocation2 + $0x139] sm:$0xff] }
 0x4a0   :  { %2466 = vrot.lane.b32.xlu0 %v720_v3, %s7894_s15  ;;  %v9707_v42 = vpop.permute.xlu1 %2250  ;;  %v725_v3 = vld [vmem:[#allocation2 + $0x141] sm:$0xff] }
 0x4a1   :  { %14456 = vst [vmem:[#allocation383_spill] sm:$0xff] %v9707_v42  ;;  %v726_v42 = vld [vmem:[#allocation2 + $0x151] sm:$0xff] }
 0x4a2   :  { %v9709_v20 = vpop.permute.xlu0 %2254 }
 0x4a3   :  { %14457 = vst [vmem:[#allocation384_spill] sm:$0xff] %v9709_v20 }
 0x4a4   :  { %2470 = vrot.lane.b32.xlu2 %v722_v61, %s7894_s15 }
 0x4a6   :  { %2468 = vrot.lane.b32.xlu1 %v721_v1, %s7894_s15  ;;  %v9713_v62 = vpop.permute.xlu2 %2276 }
 0x4a7   :  { %14458 = vst [vmem:[#allocation385_spill] sm:$0xff] %v9713_v62  ;;  %v727_v62 = vld [vmem:[#allocation2 + $0x159] sm:$0xff] }
 0x4a8   :  { %2472 = vrot.lane.b32.xlu0 %v723_v0, %s7894_s15  ;;  %v9716_v45 = vpop.permute.xlu1 %2256  ;;  %v728_v0 = vld [vmem:[#allocation2 + $0x169] sm:$0xff] }
 0x4a9   :  { %14459 = vst [vmem:[#allocation386_spill] sm:$0xff] %v9716_v45  ;;  %v729_v45 = vld [vmem:[#allocation2 + $0x171] sm:$0xff] }
 0x4aa   :  { %v9718_v50 = vpop.permute.xlu0 %2260 }
 0x4ab   :  { %14460 = vst [vmem:[#allocation387_spill] sm:$0xff] %v9718_v50 }
 0x4ac   :  { %2476 = vrot.lane.b32.xlu2 %v725_v3, %s7894_s15 }
 0x4ae   :  { %2474 = vrot.lane.b32.xlu1 %v724_v56, %s7894_s15  ;;  %v9722_v20 = vpop.permute.xlu2 %2282 }
 0x4af   :  { %14461 = vst [vmem:[#allocation388_spill] sm:$0xff] %v9722_v20  ;;  %v730_v20 = vld [vmem:[#allocation2 + $0x181] sm:$0xff] }
 0x4b0   :  { %2478 = vrot.lane.b32.xlu0 %v726_v42, %s7894_s15  ;;  %v9725_v1 = vpop.permute.xlu1 %2262  ;;  %v731_v42 = vld [vmem:[#allocation2 + $0x189] sm:$0xff] }
 0x4b1   :  { %14462 = vst [vmem:[#allocation389_spill] sm:$0xff] %v9725_v1  ;;  %v732_v1 = vld [vmem:[#allocation2 + $0x199] sm:$0xff] }
 0x4b2   :  { %v9727_v61 = vpop.permute.xlu0 %2266 }
 0x4b3   :  { %14463 = vst [vmem:[#allocation390_spill] sm:$0xff] %v9727_v61 }
 0x4b4   :  { %2482 = vrot.lane.b32.xlu2 %v728_v0, %s7894_s15 }
 0x4b6   :  { %2480 = vrot.lane.b32.xlu1 %v727_v62, %s7894_s15  ;;  %v9731_v50 = vpop.permute.xlu2 %2288 }
 0x4b7   :  { %14464 = vst [vmem:[#allocation391_spill] sm:$0xff] %v9731_v50  ;;  %v733_v50 = vld [vmem:[#allocation2 + $0x1a1] sm:$0xff] }
 0x4b8   :  { %2484 = vrot.lane.b32.xlu0 %v729_v45, %s7894_s15  ;;  %v9734_v56 = vpop.permute.xlu1 %2268  ;;  %v734_v45 = vld [vmem:[#allocation2 + $0x1e1] sm:$0xff] }
 0x4b9   :  { %14465 = vst [vmem:[#allocation392_spill] sm:$0xff] %v9734_v56  ;;  %v735_v56 = vld [vmem:[#allocation2 + $0x1e9] sm:$0xff] }
 0x4ba   :  { %v9736_v3 = vpop.permute.xlu0 %2272 }
 0x4bb   :  { %14466 = vst [vmem:[#allocation393_spill] sm:$0xff] %v9736_v3 }
 0x4bc   :  { %2488 = vrot.lane.b32.xlu2 %v731_v42, %s7894_s15 }
 0x4be   :  { %2486 = vrot.lane.b32.xlu1 %v730_v20, %s7894_s15  ;;  %v9740_v61 = vpop.permute.xlu2 %2294 }
 0x4bf   :  { %14467 = vst [vmem:[#allocation394_spill] sm:$0xff] %v9740_v61  ;;  %v736_v61 = vld [vmem:[#allocation2 + $0x1f9] sm:$0xff] }
 0x4c0   :  { %2490 = vrot.lane.b32.xlu0 %v732_v1, %s7894_s15  ;;  %v9743_v62 = vpop.permute.xlu1 %2274  ;;  %v737_v1 = vld [vmem:[#allocation2 + $0x201] sm:$0xff] }
 0x4c1   :  { %14468 = vst [vmem:[#allocation395_spill] sm:$0xff] %v9743_v62  ;;  %v738_v62 = vld [vmem:[#allocation2 + $0x211] sm:$0xff] }
 0x4c2   :  { %v9745_v0 = vpop.permute.xlu0 %2278 }
 0x4c3   :  { %14469 = vst [vmem:[#allocation396_spill] sm:$0xff] %v9745_v0 }
 0x4c4   :  { %2494 = vrot.lane.b32.xlu2 %v734_v45, %s7894_s15 }
 0x4c6   :  { %2492 = vrot.lane.b32.xlu1 %v733_v50, %s7894_s15  ;;  %v9749_v3 = vpop.permute.xlu2 %2300 }
 0x4c7   :  { %14470 = vst [vmem:[#allocation397_spill] sm:$0xff] %v9749_v3  ;;  %v739_v3 = vld [vmem:[#allocation2 + $0x219] sm:$0xff] }
 0x4c8   :  { %2496 = vrot.lane.b32.xlu0 %v735_v56, %s7894_s15  ;;  %v9752_v20 = vpop.permute.xlu1 %2280  ;;  %v740_v56 = vld [vmem:[#allocation2 + $0x229] sm:$0xff] }
 0x4c9   :  { %14471 = vst [vmem:[#allocation398_spill] sm:$0xff] %v9752_v20  ;;  %v741_v20 = vld [vmem:[#allocation2 + $0x231] sm:$0xff] }
 0x4ca   :  { %v9754_v42 = vpop.permute.xlu0 %2284 }
 0x4cb   :  { %14472 = vst [vmem:[#allocation399_spill] sm:$0xff] %v9754_v42 }
 0x4cc   :  { %2500 = vrot.lane.b32.xlu2 %v737_v1, %s7894_s15 }
 0x4ce   :  { %2498 = vrot.lane.b32.xlu1 %v736_v61, %s7894_s15  ;;  %v9758_v0 = vpop.permute.xlu2 %2434 }
 0x4d0   :  { %2502 = vrot.lane.b32.xlu0 %v738_v62, %s7894_s15  ;;  %v9761_v50 = vpop.permute.xlu1 %2286  ;;  %v743_v62 = vld [vmem:[#allocation2 + $0x249] sm:$0xff] }
 0x4d1   :  { %14473 = vst [vmem:[#allocation400_spill] sm:$0xff] %v9761_v50  ;;  %v744_v50 = vld [vmem:[#allocation2 + $0x259] sm:$0xff] }
 0x4d2   :  { %v9763_v45 = vpop.permute.xlu0 %2290 }
 0x4d3   :  { %14474 = vst [vmem:[#allocation401_spill] sm:$0xff] %v9763_v45 }
 0x4d4   :  { %2506 = vrot.lane.b32.xlu2 %v740_v56, %s7894_s15 }
 0x4d6   :  { %2504 = vrot.lane.b32.xlu1 %v739_v3, %s7894_s15  ;;  %v9767_v42 = vpop.permute.xlu2 %2440 }
 0x4d8   :  { %2508 = vrot.lane.b32.xlu0 %v741_v20, %s7894_s15  ;;  %v9770_v61 = vpop.permute.xlu1 %2292  ;;  %v746_v20 = vld [vmem:[#allocation2 + $0x271] sm:$0xff] }
 0x4d9   :  { %14475 = vst [vmem:[#allocation402_spill] sm:$0xff] %v9770_v61  ;;  %v747_v61 = vld [vmem:[#allocation2 + $0x279] sm:$0xff] }
 0x4da   :  { %v9772_v1 = vpop.permute.xlu0 %2296 }
 0x4db   :  { %14476 = vst [vmem:[#allocation403_spill] sm:$0xff] %v9772_v1 }
 0x4dc   :  { %2512 = vrot.lane.b32.xlu2 %v743_v62, %s7894_s15 }
 0x4de   :  { %2510 = vrot.lane.b32.xlu1 %v742_v6, %s7894_s15  ;;  %v9776_v45 = vpop.permute.xlu2 %2446 }
 0x4df   :  { %14477 = vst [vmem:[#allocation404_spill] sm:$0xff] %v9776_v45  ;;  %v748_v45 = vld [vmem:[#allocation2 + $0x289] sm:$0xff] }
 0x4e0   :  { %2514 = vrot.lane.b32.xlu0 %v744_v50, %s7894_s15  ;;  %v9779_v3 = vpop.permute.xlu1 %2298  ;;  %v749_v50 = vld [vmem:[#allocation2 + $0x291] sm:$0xff] }
 0x4e1   :  { %14478 = vst [vmem:[#allocation405_spill] sm:$0xff] %v9779_v3  ;;  %v750_v3 = vld [vmem:[#allocation2 + $0x2a1] sm:$0xff] }
 0x4e2   :  { %v9781_v56 = vpop.permute.xlu0 %2430 }
 0x4e4   :  { %2518 = vrot.lane.b32.xlu2 %v746_v20, %s7894_s15 }
 0x4e6   :  { %2516 = vrot.lane.b32.xlu1 %v745_v15, %s7894_s15  ;;  %v9785_v1 = vpop.permute.xlu2 %2452 }
 0x4e7   :  { %14479 = vst [vmem:[#allocation406_spill] sm:$0xff] %v9785_v1  ;;  %v751_v1 = vld [vmem:[#allocation2 + $0x2a9] sm:$0xff] }
 0x4e8   :  { %2520 = vrot.lane.b32.xlu0 %v747_v61, %s7894_s15  ;;  %v9788_v6 = vpop.permute.xlu1 %2432  ;;  %v752_v61 = vld [vmem:[#allocation2 + $0x2b9] sm:$0xff] }
 0x4ea   :  { %v9790_v62 = vpop.permute.xlu0 %2436 }
 0x4ec   :  { %2524 = vrot.lane.b32.xlu2 %v749_v50, %s7894_s15 }
 0x4ee   :  { %2522 = vrot.lane.b32.xlu1 %v748_v45, %s7894_s15  ;;  %v9794_v34 = vpop.permute.xlu2 %2458 }
 0x4ef   :  { %14480 = vst [vmem:[#allocation407_spill] sm:$0xff] %v9794_v34  ;;  %v754_v34 = vld [vmem:[#allocation2 + $0x2d1] sm:$0xff] }
 0x4f0   :  { %2526 = vrot.lane.b32.xlu0 %v750_v3, %s7894_s15  ;;  %v9797_v15 = vpop.permute.xlu1 %2438  ;;  %v755_v3 = vld [vmem:[#allocation2 + $0x2d9] sm:$0xff] }
 0x4f2   :  { %v9799_v20 = vpop.permute.xlu0 %2442 }
 0x4f4   :  { %2530 = vrot.lane.b32.xlu2 %v752_v61, %s7894_s15 }
 0x4f6   :  { %2528 = vrot.lane.b32.xlu1 %v751_v1, %s7894_s15  ;;  %v9803_v58 = vpop.permute.xlu2 %2464 }
 0x4f7   :  { %14481 = vst [vmem:[#allocation408_spill] sm:$0xff] %v9803_v58  ;;  %v757_v58 = vld [vmem:[#allocation2 + $0x2f1] sm:$0xff] }
 0x4f8   :  { %2532 = vrot.lane.b32.xlu0 %v753_v13, %s7894_s15  ;;  %v9806_v45 = vpop.permute.xlu1 %2444  ;;  %v758_v13 = vld [vmem:[#allocation2 + $0x301] sm:$0xff] }
 0x4f9   :  { %14482 = vst [vmem:[#allocation409_spill] sm:$0xff] %v9806_v45  ;;  %v759_v45 = vld [vmem:[#allocation2 + $0x309] sm:$0xff] }
 0x4fa   :  { %v9808_v50 = vpop.permute.xlu0 %2448 }
 0x4fb   :  { %14483 = vst [vmem:[#allocation410_spill] sm:$0xff] %v9808_v50 }
 0x4fc   :  { %2536 = vrot.lane.b32.xlu2 %v755_v3, %s7894_s15 }
 0x4fe   :  { %2534 = vrot.lane.b32.xlu1 %v754_v34, %s7894_s15  ;;  %v9812_v8 = vpop.permute.xlu2 %2470 }
 0x4ff   :  { %14484 = vst [vmem:[#allocation411_spill] sm:$0xff] %v9812_v8  ;;  %v760_v8 = vld [vmem:[#allocation2 + $0x319] sm:$0xff] }
 0x500   :  { %2538 = vrot.lane.b32.xlu0 %v756_v41, %s7894_s15  ;;  %v9815_v1 = vpop.permute.xlu1 %2450  ;;  %v761_v41 = vld [vmem:[#allocation2 + $0x321] sm:$0xff] }
 0x501   :  { %14485 = vst [vmem:[#allocation412_spill] sm:$0xff] %v9815_v1  ;;  %v762_v1 = vld [vmem:[#allocation2 + $0x331] sm:$0xff] }
 0x502   :  { %v9817_v61 = vpop.permute.xlu0 %2454 }
 0x503   :  { %14486 = vst [vmem:[#allocation413_spill] sm:$0xff] %v9817_v61 }
 0x504   :  { %2542 = vrot.lane.b32.xlu2 %v758_v13, %s7894_s15 }
 0x506   :  { %2540 = vrot.lane.b32.xlu1 %v757_v58, %s7894_s15  ;;  %v9821_v50 = vpop.permute.xlu2 %2476 }
 0x507   :  { %14487 = vst [vmem:[#allocation414_spill] sm:$0xff] %v9821_v50  ;;  %v763_v50 = vld [vmem:[#allocation2 + $0x339] sm:$0xff] }
 0x508   :  { %2544 = vrot.lane.b32.xlu0 %v759_v45, %s7894_s15  ;;  %v9824_v34 = vpop.permute.xlu1 %2456  ;;  %v764_v45 = vld [vmem:[#allocation2 + $0x349] sm:$0xff] }
 0x509   :  { %14488 = vst [vmem:[#allocation415_spill] sm:$0xff] %v9824_v34  ;;  %v765_v34 = vld [vmem:[#allocation2 + $0x351] sm:$0xff] }
 0x50a   :  { %v9826_v3 = vpop.permute.xlu0 %2460 }
 0x50b   :  { %14489 = vst [vmem:[#allocation416_spill] sm:$0xff] %v9826_v3 }
 0x50c   :  { %2548 = vrot.lane.b32.xlu2 %v761_v41, %s7894_s15 }
 0x50e   :  { %2546 = vrot.lane.b32.xlu1 %v760_v8, %s7894_s15  ;;  %v9830_v61 = vpop.permute.xlu2 %2482 }
 0x50f   :  { %14490 = vst [vmem:[#allocation417_spill] sm:$0xff] %v9830_v61  ;;  %v766_v61 = vld [vmem:[#allocation2 + $0x32] sm:$0xff] }
 0x510   :  { %2550 = vrot.lane.b32.xlu0 %v762_v1, %s7894_s15  ;;  %v9833_v58 = vpop.permute.xlu1 %2462  ;;  %v767_v1 = vld [vmem:[#allocation2 + $0x3a] sm:$0xff] }
 0x511   :  { %14491 = vst [vmem:[#allocation418_spill] sm:$0xff] %v9833_v58  ;;  %v768_v58 = vld [vmem:[#allocation2 + $0x4a] sm:$0xff] }
 0x512   :  { %v9835_v13 = vpop.permute.xlu0 %2466 }
 0x513   :  { %14492 = vst [vmem:[#allocation419_spill] sm:$0xff] %v9835_v13 }
 0x514   :  { %2554 = vrot.lane.b32.xlu2 %v764_v45, %s7894_s15 }
 0x516   :  { %2552 = vrot.lane.b32.xlu1 %v763_v50, %s7894_s15  ;;  %v9839_v3 = vpop.permute.xlu2 %2488 }
 0x517   :  { %14493 = vst [vmem:[#allocation420_spill] sm:$0xff] %v9839_v3  ;;  %v769_v3 = vld [vmem:[#allocation2 + $0x52] sm:$0xff] }
 0x518   :  { %2556 = vrot.lane.b32.xlu0 %v765_v34, %s7894_s15  ;;  %v9842_v8 = vpop.permute.xlu1 %2468  ;;  %v770_v34 = vld [vmem:[#allocation2 + $0x62] sm:$0xff] }
 0x519   :  { %14494 = vst [vmem:[#allocation421_spill] sm:$0xff] %v9842_v8  ;;  %v771_v8 = vld [vmem:[#allocation2 + $0x6a] sm:$0xff] }
 0x51a   :  { %v9844_v41 = vpop.permute.xlu0 %2472 }
 0x51b   :  { %14495 = vst [vmem:[#allocation422_spill] sm:$0xff] %v9844_v41 }
 0x51c   :  { %2688 = vrot.lane.b32.xlu2 %v767_v1, %s7895_s16 }
 0x51e   :  { %2686 = vrot.lane.b32.xlu1 %v766_v61, %s7895_s16  ;;  %v9848_v13 = vpop.permute.xlu2 %2494 }
 0x51f   :  { %14496 = vst [vmem:[#allocation423_spill] sm:$0xff] %v9848_v13  ;;  %v772_v13 = vld [vmem:[#allocation2 + $0x7a] sm:$0xff] }
 0x520   :  { %2690 = vrot.lane.b32.xlu0 %v768_v58, %s7895_s16  ;;  %v9851_v50 = vpop.permute.xlu1 %2474  ;;  %v773_v58 = vld [vmem:[#allocation2 + $0x82] sm:$0xff] }
 0x521   :  { %14497 = vst [vmem:[#allocation424_spill] sm:$0xff] %v9851_v50  ;;  %v774_v50 = vld [vmem:[#allocation2 + $0x92] sm:$0xff] }
 0x522   :  { %v9853_v45 = vpop.permute.xlu0 %2478 }
 0x523   :  { %14498 = vst [vmem:[#allocation425_spill] sm:$0xff] %v9853_v45 }
 0x524   :  { %2694 = vrot.lane.b32.xlu2 %v770_v34, %s7895_s16 }
 0x526   :  { %2692 = vrot.lane.b32.xlu1 %v769_v3, %s7895_s16  ;;  %v9857_v41 = vpop.permute.xlu2 %2500 }
 0x527   :  { %14499 = vst [vmem:[#allocation426_spill] sm:$0xff] %v9857_v41  ;;  %v775_v41 = vld [vmem:[#allocation2 + $0x9a] sm:$0xff] }
 0x528   :  { %2696 = vrot.lane.b32.xlu0 %v771_v8, %s7895_s16  ;;  %v9860_v61 = vpop.permute.xlu1 %2480  ;;  %v776_v8 = vld [vmem:[#allocation2 + $0xaa] sm:$0xff] }
 0x529   :  { %14500 = vst [vmem:[#allocation427_spill] sm:$0xff] %v9860_v61  ;;  %v777_v61 = vld [vmem:[#allocation2 + $0xb2] sm:$0xff] }
 0x52a   :  { %v9862_v1 = vpop.permute.xlu0 %2484 }
 0x52b   :  { %14501 = vst [vmem:[#allocation428_spill] sm:$0xff] %v9862_v1 }
 0x52c   :  { %2700 = vrot.lane.b32.xlu2 %v773_v58, %s7895_s16 }
 0x52e   :  { %2698 = vrot.lane.b32.xlu1 %v772_v13, %s7895_s16  ;;  %v9866_v45 = vpop.permute.xlu2 %2506 }
 0x52f   :  { %14502 = vst [vmem:[#allocation429_spill] sm:$0xff] %v9866_v45  ;;  %v778_v45 = vld [vmem:[#allocation2 + $0xc2] sm:$0xff] }
 0x530   :  { %2702 = vrot.lane.b32.xlu0 %v774_v50, %s7895_s16  ;;  %v9869_v3 = vpop.permute.xlu1 %2486  ;;  %v779_v50 = vld [vmem:[#allocation2 + $0xca] sm:$0xff] }
 0x531   :  { %14503 = vst [vmem:[#allocation430_spill] sm:$0xff] %v9869_v3  ;;  %v780_v3 = vld [vmem:[#allocation2 + $0xda] sm:$0xff] }
 0x532   :  { %v9871_v34 = vpop.permute.xlu0 %2490 }
 0x533   :  { %14504 = vst [vmem:[#allocation431_spill] sm:$0xff] %v9871_v34 }
 0x534   :  { %2706 = vrot.lane.b32.xlu2 %v776_v8, %s7895_s16 }
 0x536   :  { %2704 = vrot.lane.b32.xlu1 %v775_v41, %s7895_s16  ;;  %v9875_v1 = vpop.permute.xlu2 %2512 }
 0x537   :  { %14505 = vst [vmem:[#allocation432_spill] sm:$0xff] %v9875_v1  ;;  %v781_v1 = vld [vmem:[#allocation2 + $0xe2] sm:$0xff] }
 0x538   :  { %2708 = vrot.lane.b32.xlu0 %v777_v61, %s7895_s16  ;;  %v9878_v13 = vpop.permute.xlu1 %2492  ;;  %v782_v61 = vld [vmem:[#allocation2 + $0xf2] sm:$0xff] }
 0x539   :  { %14506 = vst [vmem:[#allocation433_spill] sm:$0xff] %v9878_v13  ;;  %v783_v13 = vld [vmem:[#allocation2 + $0xfa] sm:$0xff] }
 0x53a   :  { %v9880_v58 = vpop.permute.xlu0 %2496 }
 0x53b   :  { %14507 = vst [vmem:[#allocation434_spill] sm:$0xff] %v9880_v58 }
 0x53c   :  { %2712 = vrot.lane.b32.xlu2 %v779_v50, %s7895_s16 }
 0x53e   :  { %2710 = vrot.lane.b32.xlu1 %v778_v45, %s7895_s16  ;;  %v9884_v34 = vpop.permute.xlu2 %2518 }
 0x53f   :  { %14508 = vst [vmem:[#allocation435_spill] sm:$0xff] %v9884_v34  ;;  %v784_v34 = vld [vmem:[#allocation2 + $0x10a] sm:$0xff] }
 0x540   :  { %2714 = vrot.lane.b32.xlu0 %v780_v3, %s7895_s16  ;;  %v9887_v41 = vpop.permute.xlu1 %2498  ;;  %v785_v3 = vld [vmem:[#allocation2 + $0x112] sm:$0xff] }
 0x541   :  { %14509 = vst [vmem:[#allocation436_spill] sm:$0xff] %v9887_v41  ;;  %v786_v41 = vld [vmem:[#allocation2 + $0x122] sm:$0xff] }
 0x542   :  { %v9889_v8 = vpop.permute.xlu0 %2502 }
 0x543   :  { %14510 = vst [vmem:[#allocation437_spill] sm:$0xff] %v9889_v8 }
 0x544   :  { %2718 = vrot.lane.b32.xlu2 %v782_v61, %s7895_s16 }
 0x546   :  { %2716 = vrot.lane.b32.xlu1 %v781_v1, %s7895_s16  ;;  %v9893_v58 = vpop.permute.xlu2 %2524 }
 0x547   :  { %14511 = vst [vmem:[#allocation438_spill] sm:$0xff] %v9893_v58  ;;  %v787_v58 = vld [vmem:[#allocation2 + $0x12a] sm:$0xff] }
 0x548   :  { %2720 = vrot.lane.b32.xlu0 %v783_v13, %s7895_s16  ;;  %v9896_v45 = vpop.permute.xlu1 %2504  ;;  %v788_v13 = vld [vmem:[#allocation2 + $0x13a] sm:$0xff] }
 0x549   :  { %14512 = vst [vmem:[#allocation439_spill] sm:$0xff] %v9896_v45  ;;  %v789_v45 = vld [vmem:[#allocation2 + $0x142] sm:$0xff] }
 0x54a   :  { %v9898_v50 = vpop.permute.xlu0 %2508 }
 0x54b   :  { %14513 = vst [vmem:[#allocation440_spill] sm:$0xff] %v9898_v50  ;;  %v790_v50 = vld [vmem:[#allocation2 + $0x152] sm:$0xff] }
 0x54c   :  { %2724 = vrot.lane.b32.xlu2 %v785_v3, %s7895_s16 }
 0x54e   :  { %2722 = vrot.lane.b32.xlu1 %v784_v34, %s7895_s16  ;;  %v9902_v8 = vpop.permute.xlu2 %2530 }
 0x54f   :  { %14514 = vst [vmem:[#allocation441_spill] sm:$0xff] %v9902_v8 }
 0x550   :  { %2726 = vrot.lane.b32.xlu0 %v786_v41, %s7895_s16  ;;  %v9905_v1 = vpop.permute.xlu1 %2510  ;;  %v791_v41 = vld [vmem:[#allocation2 + $0x15a] sm:$0xff] }
 0x551   :  { %14515 = vst [vmem:[#allocation442_spill] sm:$0xff] %v9905_v1  ;;  %v792_v1 = vld [vmem:[#allocation2 + $0x16a] sm:$0xff] }
 0x552   :  { %v9907_v61 = vpop.permute.xlu0 %2514 }
 0x553   :  { %14516 = vst [vmem:[#allocation443_spill] sm:$0xff] %v9907_v61 }
 0x554   :  { %2730 = vrot.lane.b32.xlu2 %v788_v13, %s7895_s16 }
 0x556   :  { %2728 = vrot.lane.b32.xlu1 %v787_v58, %s7895_s16  ;;  %v9914_v34 = vpop.permute.xlu2 %2536 }
 0x557   :  { %14518 = vst [vmem:[#allocation445_spill] sm:$0xff] %v9914_v34  ;;  %v795_v34 = vld [vmem:[#allocation2 + $0x18a] sm:$0xff] }
 0x558   :  { %2732 = vrot.lane.b32.xlu0 %v789_v45, %s7895_s16  ;;  %v9912_v3 = vpop.permute.xlu1 %2516  ;;  %v794_v45 = vld [vmem:[#allocation2 + $0x182] sm:$0xff] }
 0x559   :  { %14517 = vst [vmem:[#allocation444_spill] sm:$0xff] %v9912_v3  ;;  %v793_v3 = vld [vmem:[#allocation2 + $0x172] sm:$0xff] }
 0x55a   :  { %v9916_v8 = vpop.permute.xlu0 %2520 }
 0x55b   :  { %14519 = vst [vmem:[#allocation446_spill] sm:$0xff] %v9916_v8  ;;  %v802_v8 = vld [vmem:[#allocation2 + $0x212] sm:$0xff] }
 0x55c   :  { %2736 = vrot.lane.b32.xlu2 %v791_v41, %s7895_s16 }
 0x55e   :  { %2734 = vrot.lane.b32.xlu1 %v790_v50, %s7895_s16  ;;  %v9925_v61 = vpop.permute.xlu2 %2542  ;;  %v3401_v50 = vld [vmem:[%s14008_s1 + $0x20] sm:$0xf] }
 0x55f   :  { %14522 = vst [vmem:[#allocation449_spill] sm:$0xff] %v9925_v61  ;;  %7623 = vmatpush.msk.msra.mxu0 %vm3599_vm2, %v3401_v50  ;;  %v3400_v61 = vld [vmem:[%s14008_s1 + $0x18] sm:$0xff]  ;;  %7759 = vmatpush.msk.msra.mxu2 %vm3599_vm2, %v3401_v50  ;;  %v3398_v50 = vld [vmem:[%s14008_s1 + $0x8] sm:$0xff] }
 0x560   :  { %2738 = vrot.lane.b32.xlu0 %v792_v1, %s7895_s16  ;;  %v9921_v13 = vpop.permute.xlu1 %2522 }
 0x561   :  { %14520 = vst [vmem:[#allocation447_spill] sm:$0xff] %v9921_v13  ;;  %3615 = vmatpush.msra.mxu0 %v3400_v61  ;;  %7760 = vmatpush.msra.mxu2 %v3400_v61  ;;  %v3397_v61 = vld [vmem:[%s14008_s1] sm:$0xff] }
 0x562   :  { %v9923_v58 = vpop.permute.xlu0 %2526  ;;  %v801_v13 = vld [vmem:[#allocation2 + $0x202] sm:$0xff] }
 0x563   :  { %14521 = vst [vmem:[#allocation448_spill] sm:$0xff] %v9923_v58 }
 0x564   :  { %2742 = vrot.lane.b32.xlu2 %v794_v45, %s7895_s16  ;;  %v796_v45 = vld [vmem:[#allocation2 + $0x19a] sm:$0xff] }
 0x566   :  { %2740 = vrot.lane.b32.xlu1 %v793_v3, %s7895_s16  ;;  %v797_v3 = vld [vmem:[#allocation2 + $0x1a2] sm:$0xff]  ;;  %v9945_v58 = vpop.permute.xlu2 %2548 }
 0x567   :  { %14525 = vst [vmem:[#allocation452_spill] sm:$0xff] %v9945_v58 }
 0x568   :  { %2744 = vrot.lane.b32.xlu0 %v795_v34, %s7895_s16  ;;  %v9930_v41 = vpop.permute.xlu1 %2528  ;;  %v3399_v34 = vld [vmem:[%s14008_s1 + $0x10] sm:$0xff] }
 0x569   :  { %14523 = vst [vmem:[#allocation450_spill] sm:$0xff] %v9930_v41  ;;  %v798_v41 = vld [vmem:[#allocation2 + $0x1e2] sm:$0xff]  ;;  %3616 = vmatpush.msra.mxu0 %v3399_v34  ;;  %7761 = vmatpush.msra.mxu2 %v3399_v34 }
 0x56a   :  { %v9935_v1 = vpop.permute.xlu0 %2532 }
 0x56b   :  { %14524 = vst [vmem:[#allocation451_spill] sm:$0xff] %v9935_v1  ;;  %3617 = vmatpush.msra.mxu0 %v3398_v50  ;;  %7762 = vmatpush.msra.mxu2 %v3398_v50  ;;  %v803_v50 = vld [vmem:[#allocation2 + $0x21a] sm:$0xff] }
 0x56c   :  { %2748 = vrot.lane.b32.xlu2 %v797_v3, %s7895_s16  ;;  %v800_v3 = vld [vmem:[#allocation2 + $0x1fa] sm:$0xff] }
 0x56d   :  { %3618 = vmatpush.msra.mxu0 %v3397_v61  ;;  %7763 = vmatpush.msra.mxu2 %v3397_v61 }
 0x56e   :  { %2746 = vrot.lane.b32.xlu1 %v796_v45, %s7895_s16  ;;  %v799_v45 = vld [vmem:[#allocation2 + $0x1ea] sm:$0xff] }
 0x570   :  { %2750 = vrot.lane.b32.xlu0 %v798_v41, %s7895_s16  ;;  %v9953_v1 = vpop.permute.xlu1 %2534  ;;  %v9962_v41 = vpop.permute.xlu2 %2554 }
 0x571   :  { %14526 = vst [vmem:[#allocation453_spill] sm:$0xff] %v9953_v1 }
 0x572   :  { %v9958_v58 = vpop.permute.xlu0 %2538  ;;  %14528 = vst [vmem:[#allocation455_spill] sm:$0xff] %v9962_v41  ;;  %v806_v41 = vld [vmem:[#allocation2 + $0x242] sm:$0xff] }
 0x573   :  { %14527 = vst [vmem:[#allocation454_spill] sm:$0xff] %v9958_v58  ;;  %v804_v58 = vld [vmem:[#allocation2 + $0x22a] sm:$0xff] }
 0x574   :  { %2754 = vrot.lane.b32.xlu2 %v800_v3, %s7895_s16 }
 0x576   :  { %2752 = vrot.lane.b32.xlu1 %v799_v45, %s7895_s16 }
 0x578   :  { %2756 = vrot.lane.b32.xlu0 %v801_v13, %s7895_s16  ;;  %v9965_v34 = vpop.permute.xlu1 %2540  ;;  %v2689_v3 = vpop.permute.xlu2 %2688  ;;  %v805_v13 = vld [vmem:[#allocation2 + $0x232] sm:$0xff] }
 0x579   :  { %14529 = vst [vmem:[#allocation456_spill] sm:$0xff] %v9965_v34 }
 0x57a   :  { %v9967_v1 = vpop.permute.xlu0 %2544 }
 0x57b   :  { %14530 = vst [vmem:[#allocation457_spill] sm:$0xff] %v9967_v1  ;;  %v253_v1 = vld [vmem:[#allocation2] sm:$0xff] }
 0x57c   :  { %2760 = vrot.lane.b32.xlu2 %v803_v50, %s7895_s16 }
 0x57e   :  { %2758 = vrot.lane.b32.xlu1 %v802_v8, %s7895_s16 }
 0x580   :  { %2762 = vrot.lane.b32.xlu0 %v804_v58, %s7895_s16  ;;  %v9972_v61 = vpop.permute.xlu1 %2546  ;;  %v2878_v58 = vsel %vm14_vm0, %v253_v1, %v8532_v29  ;;  %v9987_v34 = vpop.permute.xlu2 %2694 }
 0x581   :  { %14531 = vst [vmem:[#allocation458_spill] sm:$0xff] %v9972_v61  ;;  %v2943_v61 = vsel %vm2942_vm4, %v2878_v58, %v8797_v11  ;;  %v254_v11 = vld [vmem:[#allocation2 + $0x8] sm:$0xff]  ;;  %v811_v58 = vld [vmem:[#allocation2 + $0x27a] sm:$0xff] }
 0x582   :  { %v9974_v45 = vpop.permute.xlu0 %2550 }
 0x583   :  { %14532 = vst [vmem:[#allocation459_spill] sm:$0xff] %v9974_v45  ;;  %v809_v45 = vld [vmem:[#allocation2 + $0x262] sm:$0xff] }
 0x584   :  { %2766 = vrot.lane.b32.xlu2 %v806_v41, %s7895_s16  ;;  %v808_v41 = vld [vmem:[#allocation2 + $0x25a] sm:$0xff] }
 0x586   :  { %2764 = vrot.lane.b32.xlu1 %v805_v13, %s7895_s16  ;;  %v3008_v13 = vsel %vm3007_vm3, %v2943_v61, %v8970_v26 }
 0x588   :  { %2768 = vrot.lane.b32.xlu0 %v807_v43, %s7895_s16  ;;  %v9979_v50 = vpop.permute.xlu1 %2552  ;;  %v810_v43 = vld [vmem:[#allocation2 + $0x272] sm:$0xff] }
 0x58a   :  { %v9981_v8 = vpop.permute.xlu0 %2556 }
 0x58b   :  { %14533 = vst [vmem:[#allocation460_spill] sm:$0xff] %v9981_v8  ;;  %v3073_v8 = vsel %vm3072_vm5, %v3008_v13, %v9205_v51  ;;  %v813_v13 = vld [vmem:[#allocation2 + $0x292] sm:$0xff] }
 0x58c   :  { %2772 = vrot.lane.b32.xlu2 %v809_v45, %s7895_s16  ;;  %v3138_v29 = vsel %vm3137_vm7, %v3073_v8, %v9401_v27  ;;  %v2879_v27 = vsel %vm14_vm0, %v254_v11, %v8580_v49  ;;  %v812_v8 = vld [vmem:[#allocation2 + $0x28a] sm:$0xff] }
 0x58d   :  { %v3203_v1 = vsel %vm3202_vm6, %v3138_v29, %v9560_v53  ;;  %v2944_v53 = vsel %vm2942_vm4, %v2879_v27, %v8767_v2 }
 0x58e   :  { %2770 = vrot.lane.b32.xlu1 %v808_v41, %s7895_s16  ;;  %v3268_v26 = vsel %vm3267_vm8, %v3203_v1, %v9781_v56  ;;  %v3009_v41 = vsel %vm3007_vm3, %v2944_v53, %v9002_v39  ;;  %v7780_v1 = vld [vmem:[#allocation2 + $0x18] sm:$0xff] }
 0x58f   :  { %v3074_v56 = vsel %vm3072_vm5, %v3009_v41, %v9212_v31 }
 0x590   :  { %2774 = vrot.lane.b32.xlu0 %v810_v43, %s7895_s16  ;;  %v2687_v51 = vpop.permute.xlu1 %2686  ;;  %v10012_v43 = vpop.permute.xlu2 %2700  ;;  %v3139_v49 = vsel %vm3137_vm7, %v3074_v56, %v9371_v28  ;;  %v815_v28 = vld [vmem:[#allocation2 + $0x2aa] sm:$0xff]  ;;  %v819_v56 = vld [vmem:[#allocation2 + $0x2da] sm:$0xff] }
 0x591   :  { %v3333_v61 = vsel %vm3332_vm10, %v3268_v26, %v2687_v51  ;;  %v3204_v2 = vsel %vm3202_vm6, %v3139_v49, %v9592_v36  ;;  %v2880_v26 = vsel %vm14_vm0, %v7780_v1, %v8573_v17  ;;  %v814_v51 = vld [vmem:[#allocation2 + $0x2a2] sm:$0xff] }
 0x592   :  { %v2691_v45 = vpop.permute.xlu0 %2690  ;;  %7624 = vmatmul.msk.f32.vlgmr.msra.gmra.mxu0 %vm3406_vm9, %v3333_v61  ;;  %v3269_v39 = vsel %vm3267_vm8, %v3204_v2, %v9788_v6  ;;  %v2945_v36 = vsel %vm2942_vm4, %v2880_v26, %v8799_v54  ;;  %v816_v6 = vld [vmem:[#allocation2 + $0x2ba] sm:$0xff]  ;;  %v820_v26 = vld [vmem:[#allocation2 + $0x2ea] sm:$0xff] }
 0x593   :  { %v3334_v31 = vsel %vm3332_vm10, %v3269_v39, %v2689_v3  ;;  %v3010_v61 = vsel %vm3007_vm3, %v2945_v36, %v9009_v38 }
 0x594   :  { %2778 = vrot.lane.b32.xlu2 %v812_v8, %s7895_s16  ;;  %v3075_v3 = vsel %vm3072_vm5, %v3010_v61, %v9182_v5  ;;  %v7783_v61 = vld [vmem:[#allocation2 + $0x38] sm:$0xff] }
 0x595   :  { %v3140_v27 = vsel %vm3137_vm7, %v3075_v3, %v9403_v19 }
 0x596   :  { %2776 = vrot.lane.b32.xlu1 %v811_v58, %s7895_s16  ;;  %v3205_v17 = vsel %vm3202_vm6, %v3140_v27, %v9599_v60  ;;  %v7781_v58 = vld [vmem:[#allocation2 + $0x20] sm:$0xff]  ;;  %v818_v60 = vld [vmem:[#allocation2 + $0x2d2] sm:$0xff] }
 0x597   :  { %v3270_v54 = vsel %vm3267_vm8, %v3205_v17, %v9758_v0  ;;  %v2881_v19 = vsel %vm14_vm0, %v7781_v58, %v8610_v48  ;;  %v825_v17 = vld [vmem:[#allocation2 + $0x322] sm:$0xff] }
 0x598   :  { %2780 = vrot.lane.b32.xlu0 %v813_v13, %s7895_s16  ;;  %v2693_v29 = vpop.permute.xlu1 %2692  ;;  %v10041_v8 = vpop.permute.xlu2 %2706  ;;  %v3335_v5 = vsel %vm3332_vm10, %v3270_v54, %v2691_v45  ;;  %v2946_v41 = vsel %vm2942_vm4, %v2881_v19, %v8806_v46  ;;  %v817_v13 = vld [vmem:[#allocation2 + $0x2c2] sm:$0xff]  ;;  %v827_v19 = vld [vmem:[#allocation2 + $0x33a] sm:$0xff] }
 0x599   :  { %v3011_v0 = vsel %vm3007_vm3, %v2946_v41, %v8979_v57  ;;  %v7784_v58 = vld [vmem:[#allocation2 + $0x48] sm:$0xff] }
 0x59a   :  { %v10024_v11 = vpop.permute.xlu0 %2696  ;;  %7625 = vmatmul.msk.f32.gmra.mxu0 %vm3406_vm9, %v3334_v31  ;;  %v3076_v45 = vsel %vm3072_vm5, %v3011_v0, %v9214_v14  ;;  %v7782_v31 = vld [vmem:[#allocation2 + $0x30] sm:$0xff] }
 0x59b   :  { %v3141_v49 = vsel %vm3137_vm7, %v3076_v45, %v9410_v44  ;;  %v2882_v44 = vsel %vm14_vm0, %v7782_v31, %v8480_v47  ;;  %v828_v41 = vld [vmem:[#allocation2 + $0x34a] sm:$0xff] }
 0x59c   :  { %2784 = vrot.lane.b32.xlu2 %v815_v28, %s7895_s16  ;;  %v3206_v48 = vsel %vm3202_vm6, %v3141_v49, %v9569_v23  ;;  %v821_v23 = vld [vmem:[#allocation2 + $0x2f2] sm:$0xff]  ;;  %v2947_v1 = vsel %vm2942_vm4, %v2882_v44, %v8776_v4  ;;  %v822_v28 = vld [vmem:[#allocation2 + $0x302] sm:$0xff] }
 0x59d   :  { %v3271_v46 = vsel %vm3267_vm8, %v3206_v48, %v9790_v62  ;;  %v3012_v62 = vsel %vm3007_vm3, %v2947_v1, %v9011_v10  ;;  %v7785_v45 = vld [vmem:[#allocation2 + $0x50] sm:$0xff] }
 0x59e   :  { %2782 = vrot.lane.b32.xlu1 %v814_v51, %s7895_s16  ;;  %v3336_v14 = vsel %vm3332_vm10, %v3271_v46, %v2693_v29  ;;  %v3077_v29 = vsel %vm3072_vm5, %v3012_v62, %v9221_v32  ;;  %v829_v49 = vld [vmem:[#allocation2 + $0x352] sm:$0xff] }
 0x59f   :  { %v3142_v36 = vsel %vm3137_vm7, %v3077_v29, %v9380_v12  ;;  %v2883_v12 = vsel %vm14_vm0, %v7783_v61, %v8521_v63  ;;  %v14534_v46 = vld [vmem:[#allocation289_spill] sm:$0xff]  ;;  %v14541_v61 = vld [vmem:[#allocation295_spill] sm:$0xff] }
 0x5a0   :  { %2786 = vrot.lane.b32.xlu0 %v816_v6, %s7895_s16  ;;  %v10046_v38 = vpop.permute.xlu1 %2698  ;;  %v10071_v2 = vpop.permute.xlu2 %2712  ;;  %v3207_v47 = vsel %vm3202_vm6, %v3142_v36, %v9601_v21  ;;  %v824_v6 = vld [vmem:[#allocation2 + $0x31a] sm:$0xff]  ;;  %v2948_v21 = vsel %vm2942_vm4, %v2883_v12, %v8808_v9  ;;  %v14536_v44 = vld [vmem:[#allocation409_spill] sm:$0xff] }
 0x5a1   :  { %v3272_v4 = vsel %vm3267_vm8, %v3207_v47, %v9797_v15  ;;  %v823_v15 = vld [vmem:[#allocation2 + $0x30a] sm:$0xff]  ;;  %v3013_v27 = vsel %vm3007_vm3, %v2948_v21, %v9032_v37  ;;  %v14539_v36 = vld [vmem:[#allocation183_spill] sm:$0xff] }
 0x5a2   :  { %v10049_v53 = vpop.permute.xlu0 %2702  ;;  %7626 = vmatmul.msk.f32.gmra.mxu0 %vm3406_vm9, %v3335_v5  ;;  %v3337_v32 = vsel %vm3332_vm10, %v3272_v4, %v9987_v34  ;;  %v3078_v34 = vsel %vm3072_vm5, %v3013_v27, %v9191_v40  ;;  %v14540_v4 = vld [vmem:[#allocation234_spill] sm:$0xff]  ;;  %v14542_v12 = vld [vmem:[#allocation353_spill] sm:$0xff]  ;;  %v14543_v21 = vld [vmem:[#allocation404_spill] sm:$0xff] }
 0x5a3   :  { %v3143_v63 = vsel %vm3137_vm7, %v3078_v34, %v9412_v16  ;;  %v2884_v16 = vsel %vm14_vm0, %v7784_v58, %v8612_v52  ;;  %v14545_v58 = vld [vmem:[#allocation124_spill] sm:$0xff] }
 0x5a4   :  { %2790 = vrot.lane.b32.xlu2 %v818_v60, %s7895_s16  ;;  %v3208_v9 = vsel %vm3202_vm6, %v3143_v63, %v9608_v24  ;;  %v2949_v24 = vsel %vm2942_vm4, %v2884_v16, %v8815_v7  ;;  %v826_v60 = vld [vmem:[#allocation2 + $0x332] sm:$0xff] }
 0x5a5   :  { %v3273_v54 = vsel %vm3267_vm8, %v3208_v9, %v9767_v42  ;;  %v3014_v42 = vsel %vm3007_vm3, %v2949_v24, %v8988_v18  ;;  %v7787_v9 = vld [vmem:[#allocation2 + $0x68] sm:$0xff] }
 0x5a6   :  { %2788 = vrot.lane.b32.xlu1 %v817_v13, %s7895_s16  ;;  %v3338_v40 = vsel %vm3332_vm10, %v3273_v54, %v10024_v11  ;;  %v3079_v11 = vsel %vm3072_vm5, %v3014_v42, %v9223_v30  ;;  %v14544_v54 = vld [vmem:[#allocation67_spill] sm:$0xff] }
 0x5a7   :  { %v3144_v52 = vsel %vm3137_vm7, %v3079_v11, %v9419_v33  ;;  %v2885_v33 = vsel %vm14_vm0, %v7785_v45, %v8626_v55  ;;  %v14549_v11 = vld [vmem:[#allocation347_spill] sm:$0xff] }
 0x5a8   :  { %2792 = vrot.lane.b32.xlu0 %v819_v56, %s7895_s16  ;;  %v10069_v57 = vpop.permute.xlu1 %2704  ;;  %v10105_v3 = vpop.permute.xlu2 %2718  ;;  %v3209_v7 = vsel %vm3202_vm6, %v3144_v52, %v9578_v22  ;;  %v2950_v22 = vsel %vm2942_vm4, %v2885_v33, %v8785_v59 }
 0x5a9   :  { %v3274_v18 = vsel %vm3267_vm8, %v3209_v7, %v9799_v20  ;;  %v3015_v20 = vsel %vm3007_vm3, %v2950_v22, %v9034_v35  ;;  %v285_v7 = vld [vmem:[#allocation2 + $0x1b0] sm:$0xff] }
 0x5aa   :  { %v10074_v39 = vpop.permute.xlu0 %2708  ;;  %7627 = vmatmul.msk.f32.gmra.mxu0 %vm3406_vm9, %v3336_v14  ;;  %v3339_v30 = vsel %vm3332_vm10, %v3274_v18, %v10046_v38  ;;  %v3080_v48 = vsel %vm3072_vm5, %v3015_v20, %v9230_v25  ;;  %v14535_v14 = vld [vmem:[#allocation351_spill] sm:$0xff]  ;;  %v14550_v18 = vld [vmem:[#allocation410_spill] sm:$0xff]  ;;  %v14551_v20 = vld [vmem:[#allocation69_spill] sm:$0xff] }
 0x5ab   :  { %v3145_v38 = vsel %vm3137_vm7, %v3080_v48, %v14534_v46  ;;  %v7786_v25 = vld [vmem:[#allocation2 + $0x60] sm:$0xff]  ;;  %v14552_v46 = vld [vmem:[#allocation80_spill] sm:$0xff] }
 0x5ac   :  { %2796 = vrot.lane.b32.xlu2 %v821_v23, %s7895_s16  ;;  %v3210_v55 = vsel %vm3202_vm6, %v3145_v38, %v14535_v14  ;;  %v2910_v38 = vsel %vm14_vm0, %v285_v7, %v14552_v46  ;;  %v14553_v14 = vld [vmem:[#allocation119_spill] sm:$0xff]  ;;  %v14567_v7 = vld [vmem:[#allocation125_spill] sm:$0xff]  ;;  %v14571_v46 = vld [vmem:[#allocation236_spill] sm:$0xff] }
 0x5ad   :  { %v3275_v59 = vsel %vm3267_vm8, %v3210_v55, %v14536_v44 }
 0x5ae   :  { %2794 = vrot.lane.b32.xlu1 %v820_v26, %s7895_s16  ;;  %v3340_v35 = vsel %vm3332_vm10, %v3275_v59, %v10012_v43  ;;  %v14537_v26 = vld [vmem:[#allocation56_spill] sm:$0xff]  ;;  %v14554_v59 = vld [vmem:[#allocation146_spill] sm:$0xff] }
 0x5af   :  { %v2886_v62 = vsel %vm14_vm0, %v7786_v25, %v14537_v26  ;;  %v14556_v26 = vld [vmem:[#allocation207_spill] sm:$0xff] }
 0x5b0   :  { %2798 = vrot.lane.b32.xlu0 %v822_v28, %s7895_s16  ;;  %v10094_v10 = vpop.permute.xlu1 %2710  ;;  %v10135_v13 = vpop.permute.xlu2 %2724  ;;  %v14538_v28 = vld [vmem:[#allocation122_spill] sm:$0xff] }
 0x5b1   :  { %v2951_v29 = vsel %vm2942_vm4, %v2886_v62, %v14538_v28  ;;  %v14557_v28 = vld [vmem:[#allocation241_spill] sm:$0xff] }
 0x5b2   :  { %v10098_v51 = vpop.permute.xlu0 %2714  ;;  %7628 = vmatmul.msk.f32.gmra.mxu0 %vm3406_vm9, %v3337_v32  ;;  %v3016_v47 = vsel %vm3007_vm3, %v2951_v29, %v14539_v36  ;;  %v14558_v36 = vld [vmem:[#allocation252_spill] sm:$0xff] }
 0x5b3   :  { %v3081_v32 = vsel %vm3072_vm5, %v3016_v47, %v14540_v4  ;;  %v14559_v4 = vld [vmem:[#allocation292_spill] sm:$0xff] }
 0x5b4   :  { %2802 = vrot.lane.b32.xlu2 %v824_v6, %s7895_s16  ;;  %v3146_v43 = vsel %vm3137_vm7, %v3081_v32, %v14541_v61  ;;  %v14560_v61 = vld [vmem:[#allocation319_spill] sm:$0xff] }
 0x5b5   :  { %v3211_v6 = vsel %vm3202_vm6, %v3146_v43, %v14542_v12  ;;  %v14561_v12 = vld [vmem:[#allocation354_spill] sm:$0xff] }
 0x5b6   :  { %2800 = vrot.lane.b32.xlu1 %v823_v15, %s7895_s16  ;;  %v3276_v15 = vsel %vm3267_vm8, %v3211_v6, %v14543_v21  ;;  %v286_v21 = vld [vmem:[#allocation2 + $0x1b8] sm:$0xff] }
 0x5b7   :  { %v3341_v34 = vsel %vm3332_vm10, %v3276_v15, %v10049_v53  ;;  %v14562_v15 = vld [vmem:[#allocation377_spill] sm:$0xff] }
 0x5b8   :  { %2804 = vrot.lane.b32.xlu0 %v825_v17, %s7895_s16  ;;  %v10120_v37 = vpop.permute.xlu1 %2716  ;;  %v10166_v31 = vpop.permute.xlu2 %2730 }
 0x5ba   :  { %v10124_v5 = vpop.permute.xlu0 %2720  ;;  %7629 = vmatmul.msk.f32.gmra.mxu0 %vm3406_vm9, %v3338_v40  ;;  %v2887_v40 = vsel %vm14_vm0, %v7787_v9, %v14544_v54  ;;  %v14563_v9 = vld [vmem:[#allocation412_spill] sm:$0xff] }
 0x5bb   :  { %v2952_v16 = vsel %vm2942_vm4, %v2887_v40, %v14545_v58  ;;  %v14564_v58 = vld [vmem:[#allocation423_spill] sm:$0xff] }
 0x5bc   :  { %2808 = vrot.lane.b32.xlu2 %v827_v19, %s7895_s16  ;;  %v14546_v19 = vld [vmem:[#allocation176_spill] sm:$0xff] }
 0x5bd   :  { %v3017_v24 = vsel %vm3007_vm3, %v2952_v16, %v14546_v19 }
 0x5be   :  { %2806 = vrot.lane.b32.xlu1 %v826_v60, %s7895_s16  ;;  %v14547_v60 = vld [vmem:[#allocation239_spill] sm:$0xff] }
 0x5bf   :  { %v3082_v42 = vsel %vm3072_vm5, %v3017_v24, %v14547_v60  ;;  %v7789_v60 = vld [vmem:[#allocation2 + $0x80] sm:$0xff] }
 0x5c0   :  { %2810 = vrot.lane.b32.xlu0 %v828_v41, %s7895_s16  ;;  %v10146_v0 = vpop.permute.xlu1 %2722  ;;  %v10193_v17 = vpop.permute.xlu2 %2736  ;;  %v14548_v41 = vld [vmem:[#allocation297_spill] sm:$0xff] }
 0x5c1   :  { %v3147_v53 = vsel %vm3137_vm7, %v3082_v42, %v14548_v41  ;;  %v14565_v42 = vld [vmem:[#allocation60_spill] sm:$0xff] }
 0x5c2   :  { %v10150_v56 = vpop.permute.xlu0 %2726  ;;  %7630 = vmatmul.msk.f32.gmra.mxu0 %vm3406_vm9, %v3339_v30  ;;  %v3212_v52 = vsel %vm3202_vm6, %v3147_v53, %v14549_v11  ;;  %v2889_v41 = vsel %vm14_vm0, %v7789_v60, %v14565_v42  ;;  %v14566_v11 = vld [vmem:[#allocation91_spill] sm:$0xff]  ;;  %v14583_v60 = vld [vmem:[#allocation178_spill] sm:$0xff] }
 0x5c3   :  { %v3277_v30 = vsel %vm3267_vm8, %v3212_v52, %v14550_v18  ;;  %v2911_v52 = vsel %vm14_vm0, %v286_v21, %v14566_v11  ;;  %v2954_v18 = vsel %vm2942_vm4, %v2889_v41, %v14567_v7  ;;  %v14579_v21 = vld [vmem:[#allocation70_spill] sm:$0xff]  ;;  %v14584_v41 = vld [vmem:[#allocation208_spill] sm:$0xff]  ;;  %v14586_v7 = vld [vmem:[#allocation265_spill] sm:$0xff] }
 0x5c4   :  { %v3342_v33 = vsel %vm3332_vm10, %v3277_v30, %v10069_v57  ;;  %v14555_v57 = vld [vmem:[#allocation184_spill] sm:$0xff]  ;;  %v14585_v11 = vld [vmem:[#allocation242_spill] sm:$0xff] }
 0x5c5   :  { %v14568_v30 = vld [vmem:[#allocation148_spill] sm:$0xff] }
 0x5c6   :  { %2812 = vrot.lane.b32.xlu1 %v829_v49, %s7895_s16  ;;  %v7788_v49 = vld [vmem:[#allocation2 + $0x78] sm:$0xff] }
 0x5c7   :  { %v2888_v48 = vsel %vm14_vm0, %v7788_v49, %v14551_v20  ;;  %v14570_v20 = vld [vmem:[#allocation197_spill] sm:$0xff] }
 0x5c8   :  { %v10170_v23 = vpop.permute.xlu1 %2728  ;;  %v2953_v55 = vsel %vm2942_vm4, %v2888_v48, %v14553_v14  ;;  %v10227_v44 = vpop.permute.xlu2 %2742 }
 0x5c9   :  { %v3018_v25 = vsel %vm3007_vm3, %v2953_v55, %v14555_v57  ;;  %v14572_v55 = vld [vmem:[#allocation263_spill] sm:$0xff] }
 0x5ca   :  { %v10174_v1 = vpop.permute.xlu0 %2732  ;;  %7631 = vmatmul.msk.f32.gmra.mxu0 %vm3406_vm9, %v3340_v35  ;;  %v2975_v35 = vsel %vm2942_vm4, %v2910_v38, %v14554_v59  ;;  %v3083_v29 = vsel %vm3072_vm5, %v3018_v25, %v14557_v28  ;;  %v14574_v25 = vld [vmem:[#allocation321_spill] sm:$0xff] }
 0x5cb   :  { %v3040_v62 = vsel %vm3007_vm3, %v2975_v35, %v14556_v26  ;;  %v3148_v32 = vsel %vm3137_vm7, %v3083_v29, %v14559_v4  ;;  %v14573_v35 = vld [vmem:[#allocation298_spill] sm:$0xff]  ;;  %v14576_v29 = vld [vmem:[#allocation367_spill] sm:$0xff] }
 0x5cc   :  { %v3105_v47 = vsel %vm3072_vm5, %v3040_v62, %v14558_v36  ;;  %v3213_v6 = vsel %vm3202_vm6, %v3148_v32, %v14561_v12  ;;  %v14575_v62 = vld [vmem:[#allocation356_spill] sm:$0xff] }
 0x5cd   :  { %v3170_v43 = vsel %vm3137_vm7, %v3105_v47, %v14560_v61  ;;  %v3278_v54 = vsel %vm3267_vm8, %v3213_v6, %v14563_v9  ;;  %v14577_v47 = vld [vmem:[#allocation406_spill] sm:$0xff]  ;;  %v7790_v6 = vld [vmem:[#allocation2 + $0x90] sm:$0xff]  ;;  %v7791_v9 = vld [vmem:[#allocation2 + $0x1c8] sm:$0xff] }
 0x5ce   :  { %v3343_v19 = vsel %vm3332_vm10, %v3278_v54, %v10041_v8  ;;  %v2976_v8 = vsel %vm2942_vm4, %v2911_v52, %v14568_v30  ;;  %v14578_v61 = vld [vmem:[#allocation434_spill] sm:$0xff]  ;;  %v14580_v54 = vld [vmem:[#allocation93_spill] sm:$0xff]  ;;  %v14587_v30 = vld [vmem:[#allocation300_spill] sm:$0xff] }
 0x5cf   :  { %v3041_v48 = vsel %vm3007_vm3, %v2976_v8, %v14570_v20  ;;  %v14589_v20 = vld [vmem:[#allocation349_spill] sm:$0xff] }
 0x5d0   :  { %v10191_v27 = vpop.permute.xlu1 %2734  ;;  %v10272_v14 = vpop.permute.xlu2 %2748  ;;  %v3106_v59 = vsel %vm3072_vm5, %v3041_v48, %v14572_v55 }
 0x5d1   :  { %v3171_v26 = vsel %vm3137_vm7, %v3106_v59, %v14574_v25  ;;  %v14591_v59 = vld [vmem:[#allocation413_spill] sm:$0xff] }
 0x5d2   :  { %v10197_v63 = vpop.permute.xlu0 %2738  ;;  %7632 = vmatmul.msk.f32.gmra.mxu0 %vm3406_vm9, %v3341_v34  ;;  %v3235_v34 = vsel %vm3202_vm6, %v3170_v43, %v14562_v15  ;;  %v3236_v36 = vsel %vm3202_vm6, %v3171_v26, %v14576_v29  ;;  %v2890_v15 = vsel %vm14_vm0, %v7790_v6, %v14579_v21  ;;  %v14597_v6 = vld [vmem:[#allocation187_spill] sm:$0xff] }
 0x5d3   :  { %v3300_v16 = vsel %vm3267_vm8, %v3235_v34, %v14564_v58  ;;  %v3301_v43 = vsel %vm3267_vm8, %v3236_v36, %v14578_v61  ;;  %v2912_v58 = vsel %vm14_vm0, %v7791_v9, %v14580_v54  ;;  %v14595_v61 = vld [vmem:[#allocation120_spill] sm:$0xff] }
 0x5d4   :  { %v14599_v9 = vld [vmem:[#allocation244_spill] sm:$0xff] }
 0x5d8   :  { %v10214_v45 = vpop.permute.xlu1 %2740 }
 0x5da   :  { %v10218_v22 = vpop.permute.xlu0 %2744  ;;  %7633 = vmatmul.msk.f32.gmra.mxu0 %vm3406_vm9, %v3342_v33  ;;  %v14569_v33 = vld [vmem:[#allocation186_spill] sm:$0xff] }
 0x5db   :  { %v3019_v49 = vsel %vm3007_vm3, %v2954_v18, %v14569_v33  ;;  %v14588_v33 = vld [vmem:[#allocation311_spill] sm:$0xff] }
 0x5dc   :  { %v3084_v38 = vsel %vm3072_vm5, %v3019_v49, %v14571_v46  ;;  %v2755_v46 = vpop.permute.xlu2 %2754 }
 0x5dd   :  { %v3149_v57 = vsel %vm3137_vm7, %v3084_v38, %v14573_v35  ;;  %v14590_v38 = vld [vmem:[#allocation378_spill] sm:$0xff] }
 0x5de   :  { %v3214_v28 = vsel %vm3202_vm6, %v3149_v57, %v14575_v62  ;;  %v14592_v57 = vld [vmem:[#allocation436_spill] sm:$0xff]  ;;  %v7792_v62 = vld [vmem:[#allocation2 + $0x98] sm:$0xff] }
 0x5df   :  { %v3279_v4 = vsel %vm3267_vm8, %v3214_v28, %v14577_v47  ;;  %v14593_v28 = vld [vmem:[#allocation72_spill] sm:$0xff]  ;;  %v7793_v47 = vld [vmem:[#allocation2 + $0x1d0] sm:$0xff] }
 0x5e0   :  { %v10249_v40 = vpop.permute.xlu1 %2746  ;;  %v3344_v12 = vsel %vm3332_vm10, %v3279_v4, %v10074_v39  ;;  %v2891_v29 = vsel %vm14_vm0, %v7792_v62, %v14593_v28  ;;  %v14594_v4 = vld [vmem:[#allocation83_spill] sm:$0xff]  ;;  %v14611_v62 = vld [vmem:[#allocation189_spill] sm:$0xff] }
 0x5e2   :  { %v2751_v24 = vpop.permute.xlu0 %2750  ;;  %7634 = vmatmul.msk.f32.gmra.mxu0 %vm3406_vm9, %v3343_v19 }
 0x5e3   :  { %v3365_v53 = vsel %vm3332_vm10, %v3300_v16, %v2751_v24  ;;  %v14581_v16 = vld [vmem:[#allocation127_spill] sm:$0xff]  ;;  %v14582_v24 = vld [vmem:[#allocation138_spill] sm:$0xff] }
 0x5e4   :  { %7656 = vmatmul.msk.f32.vlgmr.msra.gmra.mxu2 %vm3406_vm9, %v3365_v53  ;;  %v2955_v19 = vsel %vm2942_vm4, %v2890_v15, %v14581_v16  ;;  %v2977_v39 = vsel %vm2942_vm4, %v2912_v58, %v14582_v24  ;;  %v14598_v15 = vld [vmem:[#allocation210_spill] sm:$0xff]  ;;  %v14600_v58 = vld [vmem:[#allocation255_spill] sm:$0xff] }
 0x5e5   :  { %v3020_v42 = vsel %vm3007_vm3, %v2955_v19, %v14583_v60  ;;  %v3042_v53 = vsel %vm3007_vm3, %v2977_v39, %v14584_v41  ;;  %v14601_v19 = vld [vmem:[#allocation293_spill] sm:$0xff]  ;;  %v14602_v39 = vld [vmem:[#allocation322_spill] sm:$0xff] }
 0x5e6   :  { %v3085_v52 = vsel %vm3072_vm5, %v3020_v42, %v14585_v11  ;;  %v3107_v18 = vsel %vm3072_vm5, %v3042_v53, %v14586_v7  ;;  %v14603_v42 = vld [vmem:[#allocation357_spill] sm:$0xff]  ;;  %v14604_v11 = vld [vmem:[#allocation380_spill] sm:$0xff]  ;;  %v14605_v7 = vld [vmem:[#allocation415_spill] sm:$0xff] }
 0x5e7   :  { %v3150_v8 = vsel %vm3137_vm7, %v3085_v52, %v14587_v30  ;;  %v3172_v49 = vsel %vm3137_vm7, %v3107_v18, %v14588_v33  ;;  %v14606_v30 = vld [vmem:[#allocation426_spill] sm:$0xff] }
 0x5e8   :  { %v2753_v32 = vpop.permute.xlu1 %2752  ;;  %v3215_v48 = vsel %vm3202_vm6, %v3150_v8, %v14589_v20  ;;  %v3237_v55 = vsel %vm3202_vm6, %v3172_v49, %v14590_v38  ;;  %v7794_v49 = vld [vmem:[#allocation2 + $0xa8] sm:$0xff]  ;;  %v7795_v38 = vld [vmem:[#allocation2 + $0x1e0] sm:$0xff] }
 0x5e9   :  { %v3366_v34 = vsel %vm3332_vm10, %v3301_v43, %v2753_v32  ;;  %v3280_v35 = vsel %vm3267_vm8, %v3215_v48, %v14591_v59  ;;  %v3302_v25 = vsel %vm3267_vm8, %v3237_v55, %v14592_v57  ;;  %v2913_v32 = vsel %vm14_vm0, %v7793_v47, %v14594_v4  ;;  %v14607_v20 = vld [vmem:[#allocation64_spill] sm:$0xff]  ;;  %v14608_v55 = vld [vmem:[#allocation94_spill] sm:$0xff]  ;;  %v14613_v47 = vld [vmem:[#allocation237_spill] sm:$0xff] }
 0x5ea   :  { %7635 = vmatmul.msk.f32.gmra.mxu0 %vm3406_vm9, %v3344_v12  ;;  %v3345_v26 = vsel %vm3332_vm10, %v3280_v35, %v10094_v10  ;;  %v3367_v36 = vsel %vm3332_vm10, %v3302_v25, %v2755_v46  ;;  %v2956_v43 = vsel %vm2942_vm4, %v2891_v29, %v14595_v61  ;;  %v14596_v12 = vld [vmem:[#allocation149_spill] sm:$0xff]  ;;  %v2757_v53 = vpop.permute.xlu0 %2756  ;;  %v2892_v48 = vsel %vm14_vm0, %v7794_v49, %v14607_v20  ;;  %v14609_v35 = vld [vmem:[#allocation128_spill] sm:$0xff] }
 0x5eb   :  { %v2978_v10 = vsel %vm2942_vm4, %v2913_v32, %v14596_v12  ;;  %v3021_v21 = vsel %vm3007_vm3, %v2956_v43, %v14597_v6  ;;  %v2914_v59 = vsel %vm14_vm0, %v7795_v38, %v14608_v55  ;;  %v2957_v57 = vsel %vm2942_vm4, %v2892_v48, %v14609_v35  ;;  %v4004_v25 = vld [vmem:[#allocation2 + $0x1] sm:$0xff]  ;;  %v14614_v32 = vld [vmem:[#allocation266_spill] sm:$0xff]  ;;  %v14615_v43 = vld [vmem:[#allocation301_spill] sm:$0xff] }
 0x5ec   :  { %7657 = vmatmul.msk.f32.gmra.mxu2 %vm3406_vm9, %v3366_v34  ;;  %v3043_v34 = vsel %vm3007_vm3, %v2978_v10, %v14598_v15  ;;  %v3086_v54 = vsel %vm3072_vm5, %v3021_v21, %v14599_v9  ;;  %v3022_v28 = vsel %vm3007_vm3, %v2957_v57, %v14611_v62  ;;  %4580 = vrot.lane.b32.xlu2 %v4004_v25, %s7888_s12  ;;  %v14612_v29 = vld [vmem:[#allocation200_spill] sm:$0xff]  ;;  %v14617_v21 = vld [vmem:[#allocation359_spill] sm:$0xff]  ;;  %v14618_v9 = vld [vmem:[#allocation370_spill] sm:$0xff] }
 0x5ed   :  { %v3108_v16 = vsel %vm3072_vm5, %v3043_v34, %v14600_v58  ;;  %v3151_v24 = vsel %vm3137_vm7, %v3086_v54, %v14601_v19  ;;  %v3087_v4 = vsel %vm3072_vm5, %v3022_v28, %v14613_v47  ;;  %v14616_v10 = vld [vmem:[#allocation324_spill] sm:$0xff]  ;;  %v14619_v58 = vld [vmem:[#allocation407_spill] sm:$0xff]  ;;  %v14620_v19 = vld [vmem:[#allocation437_spill] sm:$0xff] }
 0x5ee   :  { %v3173_v60 = vsel %vm3137_vm7, %v3108_v16, %v14602_v39  ;;  %v3216_v41 = vsel %vm3202_vm6, %v3151_v24, %v14603_v42  ;;  %v3152_v12 = vsel %vm3137_vm7, %v3087_v4, %v14615_v43  ;;  %v14621_v42 = vld [vmem:[#allocation73_spill] sm:$0xff]  ;;  %v14626_v48 = vld [vmem:[#allocation211_spill] sm:$0xff]  ;;  %v14631_v62 = vld [vmem:[#allocation350_spill] sm:$0xff] }
 0x5ef   :  { %v3238_v52 = vsel %vm3202_vm6, %v3173_v60, %v14604_v11  ;;  %v3281_v18 = vsel %vm3267_vm8, %v3216_v41, %v14605_v7  ;;  %v3217_v15 = vsel %vm3202_vm6, %v3152_v12, %v14617_v21  ;;  %v7796_v60 = vld [vmem:[#allocation2 + $0xb0] sm:$0xff]  ;;  %v7797_v11 = vld [vmem:[#allocation2 + $0x1e8] sm:$0xff]  ;;  %v14629_v57 = vld [vmem:[#allocation303_spill] sm:$0xff] }
 0x5f0   :  { %v3303_v8 = vsel %vm3267_vm8, %v3238_v52, %v14606_v30  ;;  %v3346_v33 = vsel %vm3332_vm10, %v3281_v18, %v10071_v2  ;;  %v2759_v34 = vpop.permute.xlu1 %2758  ;;  %v3282_v16 = vsel %vm3267_vm8, %v3217_v15, %v14619_v58  ;;  %v2893_v41 = vsel %vm14_vm0, %v7796_v60, %v14621_v42  ;;  %v14622_v52 = vld [vmem:[#allocation96_spill] sm:$0xff]  ;;  %v14623_v18 = vld [vmem:[#allocation130_spill] sm:$0xff]  ;;  %v14625_v49 = vld [vmem:[#allocation181_spill] sm:$0xff] }
 0x5f1   :  { %v3368_v46 = vsel %vm3332_vm10, %v3303_v8, %v2757_v53  ;;  %v3347_v39 = vsel %vm3332_vm10, %v3282_v16, %v10098_v51  ;;  %v2915_v7 = vsel %vm14_vm0, %v7797_v11, %v14622_v52  ;;  %v2958_v30 = vsel %vm2942_vm4, %v2893_v41, %v14623_v18  ;;  %v4005_v8 = vld [vmem:[#allocation2 + $0x9] sm:$0xff]  ;;  %v10440_v60 = vld [vmem:[%s14009_s2] ss:$0 sm:$0xff]  ;;  %v14642_v52 = vld [vmem:[#allocation258_spill] sm:$0xff] }
 0x5f2   :  { %7636 = vmatmul.msk.f32.gmra.mxu0 %vm3406_vm9, %v3345_v26  ;;  %v14610_v26 = vld [vmem:[#allocation152_spill] sm:$0xff]  ;;  %v3023_v20 = vsel %vm3007_vm3, %v2958_v30, %v14625_v49  ;;  %4582 = vrot.lane.b32.xlu0 %v4005_v8, %s7888_s12  ;;  %v14627_v38 = vld [vmem:[#allocation245_spill] sm:$0xff]  ;;  %v14643_v18 = vld [vmem:[#allocation294_spill] sm:$0xff] }
 0x5f3   :  { %v2979_v2 = vsel %vm2942_vm4, %v2914_v59, %v14610_v26  ;;  %v3088_v55 = vsel %vm3072_vm5, %v3023_v20, %v14627_v38  ;;  %v14628_v59 = vld [vmem:[#allocation268_spill] sm:$0xff]  ;;  %v14630_v26 = vld [vmem:[#allocation314_spill] sm:$0xff]  ;;  %v14637_v58 = vld [vmem:[#allocation121_spill] sm:$0xff]  ;;  %v2763_v20 = vpop.permute.xlu0 %2762 }
 0x5f4   :  { %7658 = vmatmul.msk.f32.gmra.mxu2 %vm3406_vm9, %v3367_v36  ;;  %v3044_v36 = vsel %vm3007_vm3, %v2979_v2, %v14612_v29  ;;  %v3153_v25 = vsel %vm3137_vm7, %v3088_v55, %v14629_v57  ;;  %v2761_v29 = vpop.permute.xlu2 %2760  ;;  %v14633_v4 = vld [vmem:[#allocation416_spill] sm:$0xff]  ;;  %v14640_v42 = vld [vmem:[#allocation213_spill] sm:$0xff]  ;;  %v14647_v55 = vld [vmem:[#allocation418_spill] sm:$0xff] }
 0x5f5   :  { %v3109_v61 = vsel %vm3072_vm5, %v3044_v36, %v14614_v32  ;;  %v3218_v28 = vsel %vm3202_vm6, %v3153_v25, %v14631_v62  ;;  %v14632_v36 = vld [vmem:[#allocation381_spill] sm:$0xff]  ;;  %v14649_v62 = vld [vmem:[#allocation66_spill] sm:$0xff] }
 0x5f6   :  { %v3174_v6 = vsel %vm3137_vm7, %v3109_v61, %v14616_v10  ;;  %v3283_v32 = vsel %vm3267_vm8, %v3218_v28, %v14633_v4  ;;  %v14634_v61 = vld [vmem:[#allocation439_spill] sm:$0xff]  ;;  %v14644_v8 = vld [vmem:[#allocation325_spill] sm:$0xff] }
 0x5f7   :  { %v3239_v54 = vsel %vm3202_vm6, %v3174_v6, %v14618_v9  ;;  %v3348_v12 = vsel %vm3332_vm10, %v3283_v32, %v10120_v37  ;;  %v7798_v10 = vld [vmem:[#allocation2 + $0xc0] sm:$0xff]  ;;  %v14636_v9 = vld [vmem:[#allocation86_spill] sm:$0xff]  ;;  %v14648_v57 = vld [vmem:[#allocation429_spill] sm:$0xff] }
 0x5f8   :  { %v3304_v24 = vsel %vm3267_vm8, %v3239_v54, %v14620_v19  ;;  %v14635_v6 = vld [vmem:[#allocation75_spill] sm:$0xff]  ;;  %v14638_v19 = vld [vmem:[#allocation153_spill] sm:$0xff] }
 0x5f9   :  { %v3369_v53 = vsel %vm3332_vm10, %v3304_v24, %v2759_v34  ;;  %v2894_v21 = vsel %vm14_vm0, %v7798_v10, %v14635_v6  ;;  %v7799_v34 = vld [vmem:[#allocation2 + $0x1f8] sm:$0xff]  ;;  %v14650_v4 = vld [vmem:[#allocation97_spill] sm:$0xff]  ;;  %v14653_v10 = vld [vmem:[#allocation192_spill] sm:$0xff] }
 0x5fa   :  { %7637 = vmatmul.msk.f32.gmra.mxu0 %vm3406_vm9, %v3346_v33  ;;  %v14624_v33 = vld [vmem:[#allocation141_spill] sm:$0xff]  ;;  %v2916_v54 = vsel %vm14_vm0, %v7799_v34, %v14636_v9  ;;  %v2959_v16 = vsel %vm2942_vm4, %v2894_v21, %v14637_v58  ;;  %v14639_v24 = vld [vmem:[#allocation190_spill] sm:$0xff]  ;;  %v14654_v21 = vld [vmem:[#allocation203_spill] sm:$0xff] }
 0x5fb   :  { %v2980_v51 = vsel %vm2942_vm4, %v2915_v7, %v14624_v33  ;;  %v2981_v37 = vsel %vm2942_vm4, %v2916_v54, %v14638_v19  ;;  %v14655_v34 = vld [vmem:[#allocation238_spill] sm:$0xff]  ;;  %v14656_v54 = vld [vmem:[#allocation269_spill] sm:$0xff] }
 0x5fc   :  { %7659 = vmatmul.msk.f32.gmra.mxu2 %vm3406_vm9, %v3368_v46  ;;  %v3045_v46 = vsel %vm3007_vm3, %v2980_v51, %v14626_v48  ;;  %v3046_v41 = vsel %vm3007_vm3, %v2981_v37, %v14640_v42  ;;  %v14645_v51 = vld [vmem:[#allocation360_spill] sm:$0xff]  ;;  %v14658_v37 = vld [vmem:[#allocation327_spill] sm:$0xff] }
 0x5fd   :  { %v3110_v35 = vsel %vm3072_vm5, %v3045_v46, %v14628_v59  ;;  %v3111_v7 = vsel %vm3072_vm5, %v3046_v41, %v14642_v52  ;;  %v14646_v46 = vld [vmem:[#allocation383_spill] sm:$0xff]  ;;  %v2765_v41 = vpop.permute.xlu1 %2764 }
 0x5fe   :  { %v3175_v2 = vsel %vm3137_vm7, %v3110_v35, %v14630_v26  ;;  %v3176_v33 = vsel %vm3137_vm7, %v3111_v7, %v14644_v8  ;;  %v14661_v7 = vld [vmem:[#allocation408_spill] sm:$0xff] }
 0x5ff   :  { %v3240_v47 = vsel %vm3202_vm6, %v3175_v2, %v14632_v36  ;;  %v3241_v38 = vsel %vm3202_vm6, %v3176_v33, %v14646_v46  ;;  %v7800_v2 = vld [vmem:[#allocation2 + $0xc8] sm:$0xff] }
 0x600   :  { %v3305_v43 = vsel %vm3267_vm8, %v3240_v47, %v14634_v61  ;;  %v3306_v25 = vsel %vm3267_vm8, %v3241_v38, %v14648_v57  ;;  %v2895_v28 = vsel %vm14_vm0, %v7800_v2, %v14649_v62  ;;  %v7801_v47 = vld [vmem:[#allocation2 + $0x200] sm:$0xff]  ;;  %v14662_v8 = vld [vmem:[#allocation440_spill] sm:$0xff]  ;;  %v14665_v57 = vld [vmem:[#allocation133_spill] sm:$0xff] }
 0x601   :  { %v3370_v15 = vsel %vm3332_vm10, %v3305_v43, %v2761_v29  ;;  %v3371_v36 = vsel %vm3332_vm10, %v3306_v25, %v2763_v20  ;;  %v2917_v32 = vsel %vm14_vm0, %v7801_v47, %v14650_v4  ;;  %v14651_v61 = vld [vmem:[#allocation131_spill] sm:$0xff]  ;;  %v14663_v20 = vld [vmem:[#allocation76_spill] sm:$0xff]  ;;  %v14667_v62 = vld [vmem:[#allocation182_spill] sm:$0xff] }
 0x602   :  { %7638 = vmatmul.msk.f32.gmra.mxu0 %vm3406_vm9, %v3347_v39  ;;  %v3024_v39 = vsel %vm3007_vm3, %v2959_v16, %v14639_v24  ;;  %v2960_v43 = vsel %vm2942_vm4, %v2895_v28, %v14651_v61  ;;  %v14657_v16 = vld [vmem:[#allocation304_spill] sm:$0xff] }
 0x603   :  { %v3025_v6 = vsel %vm3007_vm3, %v2960_v43, %v14653_v10  ;;  %v14669_v47 = vld [vmem:[#allocation248_spill] sm:$0xff]  ;;  %v14671_v43 = vld [vmem:[#allocation306_spill] sm:$0xff] }
 0x604   :  { %7660 = vmatmul.msk.f32.gmra.mxu2 %vm3406_vm9, %v3369_v53  ;;  %v14641_v53 = vld [vmem:[#allocation247_spill] sm:$0xff]  ;;  %v3090_v9 = vsel %vm3072_vm5, %v3025_v6, %v14655_v34  ;;  %v14673_v6 = vld [vmem:[#allocation352_spill] sm:$0xff] }
 0x605   :  { %v3089_v11 = vsel %vm3072_vm5, %v3024_v39, %v14641_v53  ;;  %v3155_v19 = vsel %vm3137_vm7, %v3090_v9, %v14657_v16  ;;  %v14659_v39 = vld [vmem:[#allocation362_spill] sm:$0xff]  ;;  %v14674_v9 = vld [vmem:[#allocation384_spill] sm:$0xff] }
 0x606   :  { %v3154_v30 = vsel %vm3137_vm7, %v3089_v11, %v14643_v18  ;;  %v3220_v42 = vsel %vm3202_vm6, %v3155_v19, %v14659_v39  ;;  %v14660_v11 = vld [vmem:[#allocation373_spill] sm:$0xff] }
 0x607   :  { %v3219_v49 = vsel %vm3202_vm6, %v3154_v30, %v14645_v51  ;;  %v3285_v18 = vsel %vm3267_vm8, %v3220_v42, %v14661_v7  ;;  %v7804_v42 = vld [vmem:[#allocation2 + $0xe0] sm:$0xff]  ;;  %v7805_v7 = vld [vmem:[#allocation2 + $0x218] sm:$0xff] }
 0x608   :  { %v3284_v59 = vsel %vm3267_vm8, %v3219_v49, %v14647_v55  ;;  %v3350_v51 = vsel %vm3332_vm10, %v3285_v18, %v10124_v5  ;;  %v7802_v49 = vld [vmem:[#allocation2 + $0xd8] sm:$0xff]  ;;  %v7803_v55 = vld [vmem:[#allocation2 + $0x210] sm:$0xff]  ;;  %v14666_v5 = vld [vmem:[#allocation144_spill] sm:$0xff] }
 0x609   :  { %v3349_v26 = vsel %vm3332_vm10, %v3284_v59, %v10105_v3  ;;  %v14664_v59 = vld [vmem:[#allocation99_spill] sm:$0xff]  ;;  %v14678_v18 = vld [vmem:[#allocation89_spill] sm:$0xff] }
 0x60a   :  { %7639 = vmatmul.msk.f32.gmra.mxu0 %vm3406_vm9, %v3348_v12  ;;  %v14652_v12 = vld [vmem:[#allocation156_spill] sm:$0xff] }
 0x60b   :  { %v2982_v3 = vsel %vm2942_vm4, %v2917_v32, %v14652_v12  ;;  %v14670_v32 = vld [vmem:[#allocation271_spill] sm:$0xff] }
 0x60c   :  { %7661 = vmatmul.msk.f32.gmra.mxu2 %vm3406_vm9, %v3370_v15  ;;  %v3047_v15 = vsel %vm3007_vm3, %v2982_v3, %v14654_v21  ;;  %v14672_v3 = vld [vmem:[#allocation317_spill] sm:$0xff] }
 0x60d   :  { %v3112_v58 = vsel %vm3072_vm5, %v3047_v15, %v14656_v54  ;;  %v2767_v15 = vpop.permute.xlu2 %2766 }
 0x60e   :  { %v3177_v24 = vsel %vm3137_vm7, %v3112_v58, %v14658_v37  ;;  %v14675_v58 = vld [vmem:[#allocation419_spill] sm:$0xff]  ;;  %v14676_v37 = vld [vmem:[#allocation442_spill] sm:$0xff] }
 0x60f   :  { %v3620_v48 = vpop.f32.mrf.mxu0  ;;  %v3242_v52 = vsel %vm3202_vm6, %v3177_v24, %v14660_v11 }
 0x610   :  { %v3621_v35 = vadd.f32 %v10440_v60, %v3620_v48  ;;  %v3307_v33 = vsel %vm3267_vm8, %v3242_v52, %v14662_v8  ;;  %v2896_v48 = vsel %vm14_vm0, %v7802_v49, %v14663_v20  ;;  %v14679_v8 = vld [vmem:[#allocation123_spill] sm:$0xff]  ;;  %v14681_v20 = vld [vmem:[#allocation193_spill] sm:$0xff] }
 0x611   :  { %v3372_v38 = vsel %vm3332_vm10, %v3307_v33, %v2765_v41  ;;  %v2961_v25 = vsel %vm2942_vm4, %v2896_v48, %v14665_v57  ;;  %v14677_v41 = vld [vmem:[#allocation78_spill] sm:$0xff] }
 0x612   :  { %v3812_v29 = vmax.f32 %v3621_v35, 0.0  ;;  %7640 = vmatmul.msk.f32.gmra.mxu0 %vm3406_vm9, %v3349_v26  ;;  %v2918_v35 = vsel %vm14_vm0, %v7803_v55, %v14664_v59  ;;  %v3026_v28 = vsel %vm3007_vm3, %v2961_v25, %v14667_v62  ;;  %v14683_v55 = vld [vmem:[#allocation250_spill] sm:$0xff]  ;;  %v14685_v25 = vld [vmem:[#allocation296_spill] sm:$0xff]  ;;  %v14687_v62 = vld [vmem:[#allocation363_spill] sm:$0xff] }
 0x613   :  { %v2983_v2 = vsel %vm2942_vm4, %v2918_v35, %v14666_v5  ;;  %v3091_v4 = vsel %vm3072_vm5, %v3026_v28, %v14669_v47  ;;  %v14684_v35 = vld [vmem:[#allocation261_spill] sm:$0xff]  ;;  %v14686_v5 = vld [vmem:[#allocation328_spill] sm:$0xff]  ;;  %v14688_v47 = vld [vmem:[#allocation386_spill] sm:$0xff] }
 0x614   :  { %7662 = vmatmul.msk.f32.gmra.mxu2 %vm3406_vm9, %v3371_v36  ;;  %3876 = vst.msk [vmem:[#allocation2 + $0x19] sm:$0xff] %vm14_vm0, %v3812_v29  ;;  %v14668_v29 = vld [vmem:[#allocation214_spill] sm:$0xff]  ;;  %v3156_v12 = vsel %vm3137_vm7, %v3091_v4, %v14671_v43 }
 0x615   :  { %v3048_v36 = vsel %vm3007_vm3, %v2983_v2, %v14668_v29  ;;  %v3221_v21 = vsel %vm3202_vm6, %v3156_v12, %v14673_v6  ;;  %v2769_v29 = vpop.permute.xlu0 %2768  ;;  %v14690_v12 = vld [vmem:[#allocation432_spill] sm:$0xff]  ;;  %v7806_v6 = vld [vmem:[#allocation2 + $0xf0] sm:$0xff] }
 0x616   :  { %v3113_v61 = vsel %vm3072_vm5, %v3048_v36, %v14670_v32  ;;  %v3286_v16 = vsel %vm3267_vm8, %v3221_v21, %v14675_v58  ;;  %v14689_v32 = vld [vmem:[#allocation421_spill] sm:$0xff]  ;;  %v14691_v21 = vld [vmem:[#allocation68_spill] sm:$0xff] }
 0x617   :  { %v3623_v53 = vpop.f32.mrf.mxu0  ;;  %v3178_v10 = vsel %vm3137_vm7, %v3113_v61, %v14672_v3  ;;  %v3351_v39 = vsel %vm3332_vm10, %v3286_v16, %v10146_v0  ;;  %v14680_v0 = vld [vmem:[#allocation157_spill] sm:$0xff]  ;;  %v14692_v58 = vld [vmem:[#allocation100_spill] sm:$0xff] }
 0x618   :  { %v3624_v30 = vadd.f32 %v10440_v60, %v3623_v53  ;;  %v3243_v54 = vsel %vm3202_vm6, %v3178_v10, %v14674_v9  ;;  %v2897_v53 = vsel %vm14_vm0, %v7804_v42, %v14677_v41  ;;  %v14695_v42 = vld [vmem:[#allocation195_spill] sm:$0xff] }
 0x619   :  { %v3308_v24 = vsel %vm3267_vm8, %v3243_v54, %v14676_v37  ;;  %v2962_v33 = vsel %vm2942_vm4, %v2897_v53, %v14679_v8  ;;  %v7807_v54 = vld [vmem:[#allocation2 + $0x228] sm:$0xff]  ;;  %v14696_v53 = vld [vmem:[#allocation206_spill] sm:$0xff]  ;;  %v14699_v8 = vld [vmem:[#allocation307_spill] sm:$0xff] }
 0x61a   :  { %v3813_v46 = vmax.f32 %v3624_v30, 0.0  ;;  %7641 = vmatmul.msk.f32.gmra.mxu0 %vm3406_vm9, %v3350_v51  ;;  %v3373_v52 = vsel %vm3332_vm10, %v3308_v24, %v2767_v15  ;;  %v2919_v30 = vsel %vm14_vm0, %v7805_v7, %v14678_v18  ;;  %v3027_v48 = vsel %vm3007_vm3, %v2962_v33, %v14681_v20  ;;  %v14698_v18 = vld [vmem:[#allocation272_spill] sm:$0xff] }
 0x61b   :  { %v4006_v26 = vld [vmem:[#allocation2 + $0x19] sm:$0xff]  ;;  %v2984_v49 = vsel %vm2942_vm4, %v2919_v30, %v14680_v0  ;;  %v3092_v59 = vsel %vm3072_vm5, %v3027_v48, %v14683_v55  ;;  %v2898_v15 = vsel %vm14_vm0, %v7806_v6, %v14691_v21  ;;  %v2920_v16 = vsel %vm14_vm0, %v7807_v54, %v14692_v58  ;;  %v2771_v48 = vpop.permute.xlu1 %2770  ;;  %v14710_v21 = vld [vmem:[#allocation217_spill] sm:$0xff] }
 0x61c   :  { %7663 = vmatmul.msk.f32.gmra.mxu2 %vm3406_vm9, %v3372_v38  ;;  %3877 = vst.msk [vmem:[#allocation2 + $0x21] sm:$0xff] %vm14_vm0, %v3813_v46  ;;  %4584 = vrot.lane.b32.xlu1 %v4006_v26, %s7888_s12  ;;  %v14682_v46 = vld [vmem:[#allocation216_spill] sm:$0xff]  ;;  %v3157_v26 = vsel %vm3137_vm7, %v3092_v59, %v14685_v25  ;;  %v14703_v59 = vld [vmem:[#allocation411_spill] sm:$0xff]  ;;  %v14712_v54 = vld [vmem:[#allocation274_spill] sm:$0xff] }
 0x61d   :  { %v3049_v38 = vsel %vm3007_vm3, %v2984_v49, %v14682_v46  ;;  %v3222_v28 = vsel %vm3202_vm6, %v3157_v26, %v14687_v62  ;;  %v14701_v49 = vld [vmem:[#allocation365_spill] sm:$0xff]  ;;  %v14704_v25 = vld [vmem:[#allocation443_spill] sm:$0xff] }
 0x61e   :  { %v3114_v57 = vsel %vm3072_vm5, %v3049_v38, %v14684_v35  ;;  %v3287_v61 = vsel %vm3267_vm8, %v3222_v28, %v14689_v32  ;;  %v14702_v38 = vld [vmem:[#allocation376_spill] sm:$0xff]  ;;  %v14705_v62 = vld [vmem:[#allocation79_spill] sm:$0xff] }
 0x61f   :  { %v3626_v34 = vpop.f32.mrf.mxu0  ;;  %v3179_v2 = vsel %vm3137_vm7, %v3114_v57, %v14686_v5  ;;  %v3352_v10 = vsel %vm3332_vm10, %v3287_v61, %v10135_v13  ;;  %v14694_v13 = vld [vmem:[#allocation159_spill] sm:$0xff]  ;;  %v14707_v61 = vld [vmem:[#allocation136_spill] sm:$0xff] }
 0x620   :  { %v3627_v19 = vadd.f32 %v10440_v60, %v3626_v34  ;;  %v3244_v4 = vsel %vm3202_vm6, %v3179_v2, %v14688_v47  ;;  %v7808_v2 = vld [vmem:[#allocation2 + $0xf8] sm:$0xff]  ;;  %v7809_v47 = vld [vmem:[#allocation2 + $0x230] sm:$0xff] }
 0x621   :  { %v3309_v3 = vsel %vm3267_vm8, %v3244_v4, %v14690_v12  ;;  %v2899_v28 = vsel %vm14_vm0, %v7808_v2, %v14705_v62  ;;  %v14706_v4 = vld [vmem:[#allocation102_spill] sm:$0xff]  ;;  %v14724_v2 = vld [vmem:[#allocation219_spill] sm:$0xff] }
 0x622   :  { %v3814_v11 = vmax.f32 %v3627_v19, 0.0  ;;  %7642 = vmatmul.msk.f32.gmra.mxu0 %vm3406_vm9, %v3351_v39  ;;  %v3374_v9 = vsel %vm3332_vm10, %v3309_v3, %v2769_v29  ;;  %v14693_v19 = vld [vmem:[#allocation134_spill] sm:$0xff]  ;;  %v2985_v39 = vsel %vm2942_vm4, %v2920_v16, %v14694_v13  ;;  %v2921_v32 = vsel %vm14_vm0, %v7809_v47, %v14706_v4  ;;  %v14713_v16 = vld [vmem:[#allocation309_spill] sm:$0xff]  ;;  %v14715_v13 = vld [vmem:[#allocation355_spill] sm:$0xff] }
 0x623   :  { %v4007_v51 = vld [vmem:[#allocation2 + $0x21] sm:$0xff]  ;;  %v2963_v37 = vsel %vm2942_vm4, %v2898_v15, %v14693_v19 }
 0x624   :  { %7664 = vmatmul.msk.f32.gmra.mxu2 %vm3406_vm9, %v3373_v52  ;;  %3878 = vst.msk [vmem:[#allocation2 + $0x31] sm:$0xff] %vm14_vm0, %v3814_v11  ;;  %4586 = vrot.lane.b32.xlu2 %v4007_v51, %s7888_s12  ;;  %v3028_v41 = vsel %vm3007_vm3, %v2963_v37, %v14695_v42  ;;  %v3050_v11 = vsel %vm3007_vm3, %v2985_v39, %v14696_v53  ;;  %v14697_v52 = vld [vmem:[#allocation240_spill] sm:$0xff]  ;;  %v14700_v51 = vld [vmem:[#allocation330_spill] sm:$0xff]  ;;  %v2773_v42 = vpop.permute.xlu2 %2772  ;;  %v14716_v53 = vld [vmem:[#allocation387_spill] sm:$0xff] }
 0x625   :  { %v3093_v7 = vsel %vm3072_vm5, %v3028_v41, %v14697_v52  ;;  %v3115_v30 = vsel %vm3072_vm5, %v3050_v11, %v14698_v18  ;;  %v14714_v37 = vld [vmem:[#allocation320_spill] sm:$0xff]  ;;  %v14717_v52 = vld [vmem:[#allocation422_spill] sm:$0xff]  ;;  %v14727_v4 = vld [vmem:[#allocation299_spill] sm:$0xff] }
 0x626   :  { %v3158_v33 = vsel %vm3137_vm7, %v3093_v7, %v14699_v8  ;;  %v3180_v0 = vsel %vm3137_vm7, %v3115_v30, %v14700_v51  ;;  %v14718_v30 = vld [vmem:[#allocation444_spill] sm:$0xff] }
 0x627   :  { %v3629_v36 = vpop.f32.mrf.mxu0  ;;  %v3223_v20 = vsel %vm3202_vm6, %v3158_v33, %v14701_v49  ;;  %v3245_v55 = vsel %vm3202_vm6, %v3180_v0, %v14702_v38  ;;  %v7810_v51 = vld [vmem:[#allocation2 + $0x108] sm:$0xff]  ;;  %v14719_v0 = vld [vmem:[#allocation81_spill] sm:$0xff] }
 0x628   :  { %v3630_v43 = vadd.f32 %v10440_v60, %v3629_v36  ;;  %v3288_v35 = vsel %vm3267_vm8, %v3223_v20, %v14703_v59  ;;  %v3310_v26 = vsel %vm3267_vm8, %v3245_v55, %v14704_v25  ;;  %v2900_v49 = vsel %vm14_vm0, %v7810_v51, %v14719_v0  ;;  %v14720_v38 = vld [vmem:[#allocation92_spill] sm:$0xff]  ;;  %v14721_v59 = vld [vmem:[#allocation126_spill] sm:$0xff]  ;;  %v14739_v0 = vld [vmem:[#allocation243_spill] sm:$0xff] }
 0x629   :  { %v3353_v5 = vsel %vm3332_vm10, %v3288_v35, %v10150_v56  ;;  %v3375_v36 = vsel %vm3332_vm10, %v3310_v26, %v2771_v48  ;;  %v14708_v56 = vld [vmem:[#allocation147_spill] sm:$0xff]  ;;  %v2965_v35 = vsel %vm2942_vm4, %v2900_v49, %v14721_v59  ;;  %v14723_v26 = vld [vmem:[#allocation196_spill] sm:$0xff] }
 0x62a   :  { %v3815_v34 = vmax.f32 %v3630_v43, 0.0  ;;  %7643 = vmatmul.msk.f32.gmra.mxu0 %vm3406_vm9, %v3352_v10  ;;  %v2964_v43 = vsel %vm2942_vm4, %v2899_v28, %v14707_v61  ;;  %v2986_v3 = vsel %vm2942_vm4, %v2921_v32, %v14708_v56  ;;  %v14709_v10 = vld [vmem:[#allocation185_spill] sm:$0xff]  ;;  %v14728_v61 = vld [vmem:[#allocation331_spill] sm:$0xff] }
 0x62b   :  { %v4008_v24 = vld [vmem:[#allocation2 + $0x31] sm:$0xff]  ;;  %v3029_v6 = vsel %vm3007_vm3, %v2964_v43, %v14709_v10  ;;  %v3051_v15 = vsel %vm3007_vm3, %v2986_v3, %v14710_v21  ;;  %v2775_v3 = vpop.permute.xlu0 %2774 }
 0x62c   :  { %7665 = vmatmul.msk.f32.gmra.mxu2 %vm3406_vm9, %v3374_v9  ;;  %3879 = vst.msk [vmem:[#allocation2 + $0x39] sm:$0xff] %vm14_vm0, %v3815_v34  ;;  %4588 = vrot.lane.b32.xlu0 %v4008_v24, %s7888_s12  ;;  %v14711_v34 = vld [vmem:[#allocation251_spill] sm:$0xff]  ;;  %v3116_v58 = vsel %vm3072_vm5, %v3051_v15, %v14712_v54  ;;  %v14725_v28 = vld [vmem:[#allocation253_spill] sm:$0xff]  ;;  %v14731_v15 = vld [vmem:[#allocation424_spill] sm:$0xff] }
 0x62d   :  { %v3094_v9 = vsel %vm3072_vm5, %v3029_v6, %v14711_v34  ;;  %v3181_v24 = vsel %vm3137_vm7, %v3116_v58, %v14714_v37  ;;  %v14730_v6 = vld [vmem:[#allocation389_spill] sm:$0xff]  ;;  %v14732_v54 = vld [vmem:[#allocation435_spill] sm:$0xff] }
 0x62e   :  { %v3159_v19 = vsel %vm3137_vm7, %v3094_v9, %v14713_v16  ;;  %v3246_v11 = vsel %vm3202_vm6, %v3181_v24, %v14716_v53  ;;  %v14733_v37 = vld [vmem:[#allocation71_spill] sm:$0xff] }
 0x62f   :  { %v3632_v46 = vpop.f32.mrf.mxu0  ;;  %v3224_v39 = vsel %vm3202_vm6, %v3159_v19, %v14715_v13  ;;  %v3311_v8 = vsel %vm3267_vm8, %v3246_v11, %v14718_v30  ;;  %v7812_v19 = vld [vmem:[#allocation2 + $0x110] sm:$0xff]  ;;  %v14737_v30 = vld [vmem:[#allocation198_spill] sm:$0xff] }
 0x630   :  { %v3633_v57 = vadd.f32 %v10440_v60, %v3632_v46  ;;  %v3289_v7 = vsel %vm3267_vm8, %v3224_v39, %v14717_v52  ;;  %v3376_v48 = vsel %vm3332_vm10, %v3311_v8, %v2773_v42  ;;  %v7811_v46 = vld [vmem:[#allocation2 + $0x240] sm:$0xff]  ;;  %v2901_v24 = vsel %vm14_vm0, %v7812_v19, %v14733_v37  ;;  %v7813_v42 = vld [vmem:[#allocation2 + $0x248] sm:$0xff]  ;;  %v14735_v11 = vld [vmem:[#allocation137_spill] sm:$0xff] }
 0x631   :  { %v3354_v33 = vsel %vm3332_vm10, %v3289_v7, %v10170_v23  ;;  %v2922_v55 = vsel %vm14_vm0, %v7811_v46, %v14720_v38  ;;  %v14722_v23 = vld [vmem:[#allocation160_spill] sm:$0xff]  ;;  %v2966_v52 = vsel %vm2942_vm4, %v2901_v24, %v14735_v11  ;;  %v14741_v46 = vld [vmem:[#allocation310_spill] sm:$0xff]  ;;  %v14754_v24 = vld [vmem:[#allocation277_spill] sm:$0xff] }
 0x632   :  { %v3816_v29 = vmax.f32 %v3633_v57, 0.0  ;;  %7644 = vmatmul.msk.f32.gmra.mxu0 %vm3406_vm9, %v3353_v5  ;;  %v2987_v25 = vsel %vm2942_vm4, %v2922_v55, %v14722_v23  ;;  %v3030_v5 = vsel %vm3007_vm3, %v2965_v35, %v14723_v26  ;;  %v3031_v8 = vsel %vm3007_vm3, %v2966_v52, %v14737_v30  ;;  %v14742_v55 = vld [vmem:[#allocation333_spill] sm:$0xff]  ;;  %v14743_v35 = vld [vmem:[#allocation368_spill] sm:$0xff]  ;;  %v2777_v23 = vpop.permute.xlu1 %2776  ;;  %v14744_v26 = vld [vmem:[#allocation379_spill] sm:$0xff] }
 0x633   :  { %v4009_v12 = vld [vmem:[#allocation2 + $0x39] sm:$0xff]  ;;  %v3052_v62 = vsel %vm3007_vm3, %v2987_v25, %v14724_v2  ;;  %v3096_v49 = vsel %vm3072_vm5, %v3031_v8, %v14739_v0  ;;  %v14759_v8 = vld [vmem:[#allocation425_spill] sm:$0xff] }
 0x634   :  { %7666 = vmatmul.msk.f32.gmra.mxu2 %vm3406_vm9, %v3375_v36  ;;  %3880 = vst.msk [vmem:[#allocation2 + $0x49] sm:$0xff] %vm14_vm0, %v3816_v29  ;;  %4590 = vrot.lane.b32.xlu1 %v4009_v12, %s7888_s12  ;;  %v3095_v29 = vsel %vm3072_vm5, %v3030_v5, %v14725_v28  ;;  %v14726_v36 = vld [vmem:[#allocation264_spill] sm:$0xff]  ;;  %v14729_v12 = vld [vmem:[#allocation366_spill] sm:$0xff]  ;;  %v3161_v38 = vsel %vm3137_vm7, %v3096_v49, %v14741_v46  ;;  %v14760_v0 = vld [vmem:[#allocation447_spill] sm:$0xff] }
 0x635   :  { %v3117_v47 = vsel %vm3072_vm5, %v3052_v62, %v14726_v36  ;;  %v3160_v32 = vsel %vm3137_vm7, %v3095_v29, %v14727_v4  ;;  %v14745_v2 = vld [vmem:[#allocation414_spill] sm:$0xff]  ;;  %v7814_v4 = vld [vmem:[#allocation2 + $0x120] sm:$0xff]  ;;  %v14761_v46 = vld [vmem:[#allocation84_spill] sm:$0xff] }
 0x636   :  { %v3182_v43 = vsel %vm3137_vm7, %v3117_v47, %v14728_v61  ;;  %v3225_v56 = vsel %vm3202_vm6, %v3160_v32, %v14729_v12  ;;  %v14746_v29 = vld [vmem:[#allocation446_spill] sm:$0xff] }
 0x637   :  { %v3635_v41 = vpop.f32.mrf.mxu0  ;;  %v3247_v21 = vsel %vm3202_vm6, %v3182_v43, %v14730_v6  ;;  %v3290_v34 = vsel %vm3267_vm8, %v3225_v56, %v14731_v15  ;;  %v14747_v32 = vld [vmem:[#allocation82_spill] sm:$0xff]  ;;  %v14749_v6 = vld [vmem:[#allocation139_spill] sm:$0xff] }
 0x638   :  { %v3636_v18 = vadd.f32 %v10440_v60, %v3635_v41  ;;  %v3312_v58 = vsel %vm3267_vm8, %v3247_v21, %v14732_v54  ;;  %v3355_v16 = vsel %vm3332_vm10, %v3290_v34, %v10166_v31  ;;  %v14734_v41 = vld [vmem:[#allocation103_spill] sm:$0xff]  ;;  %v14736_v31 = vld [vmem:[#allocation162_spill] sm:$0xff]  ;;  %v2902_v61 = vsel %vm14_vm0, %v7814_v4, %v14747_v32 }
 0x639   :  { %v3377_v39 = vsel %vm3332_vm10, %v3312_v58, %v2775_v3  ;;  %v2923_v53 = vsel %vm14_vm0, %v7813_v42, %v14734_v41  ;;  %v7815_v56 = vld [vmem:[#allocation2 + $0x258] sm:$0xff]  ;;  %v14748_v3 = vld [vmem:[#allocation105_spill] sm:$0xff]  ;;  %v2967_v21 = vsel %vm2942_vm4, %v2902_v61, %v14749_v6  ;;  %v14752_v58 = vld [vmem:[#allocation220_spill] sm:$0xff] }
 0x63a   :  { %v3817_v20 = vmax.f32 %v3636_v18, 0.0  ;;  %7645 = vmatmul.msk.f32.gmra.mxu0 %vm3406_vm9, %v3354_v33  ;;  %v2988_v18 = vsel %vm2942_vm4, %v2923_v53, %v14736_v31  ;;  %v14738_v33 = vld [vmem:[#allocation209_spill] sm:$0xff]  ;;  %v14753_v19 = vld [vmem:[#allocation254_spill] sm:$0xff]  ;;  %v14756_v41 = vld [vmem:[#allocation323_spill] sm:$0xff] }
 0x63b   :  { %v4010_v57 = vld [vmem:[#allocation2 + $0x49] sm:$0xff]  ;;  %v3053_v51 = vsel %vm3007_vm3, %v2988_v18, %v14738_v33  ;;  %v14757_v11 = vld [vmem:[#allocation358_spill] sm:$0xff]  ;;  %v14768_v32 = vld [vmem:[#allocation267_spill] sm:$0xff] }
 0x63c   :  { %7667 = vmatmul.msk.f32.gmra.mxu2 %vm3406_vm9, %v3376_v48  ;;  %3881 = vst.msk [vmem:[#allocation2 + $0x51] sm:$0xff] %vm14_vm0, %v3817_v20  ;;  %4592 = vrot.lane.b32.xlu2 %v4010_v57, %s7888_s12  ;;  %v14740_v20 = vld [vmem:[#allocation275_spill] sm:$0xff]  ;;  %v3226_v57 = vsel %vm3202_vm6, %v3161_v38, %v14743_v35  ;;  %v14758_v18 = vld [vmem:[#allocation390_spill] sm:$0xff] }
 0x63d   :  { %v3118_v48 = vsel %vm3072_vm5, %v3053_v51, %v14740_v20  ;;  %v3291_v62 = vsel %vm3267_vm8, %v3226_v57, %v14745_v2  ;;  %v7817_v35 = vld [vmem:[#allocation2 + $0x260] sm:$0xff] }
 0x63e   :  { %v3183_v59 = vsel %vm3137_vm7, %v3118_v48, %v14742_v55  ;;  %v3356_v47 = vsel %vm3332_vm10, %v3291_v62, %v10174_v1  ;;  %v14750_v1 = vld [vmem:[#allocation151_spill] sm:$0xff]  ;;  %v7816_v48 = vld [vmem:[#allocation2 + $0x128] sm:$0xff] }
 0x63f   :  { %v3638_v10 = vpop.f32.mrf.mxu0  ;;  %v3248_v5 = vsel %vm3202_vm6, %v3183_v59, %v14744_v26  ;;  %v2903_v38 = vsel %vm14_vm0, %v7816_v48, %v14761_v46  ;;  %v14762_v57 = vld [vmem:[#allocation95_spill] sm:$0xff]  ;;  %v14782_v48 = vld [vmem:[#allocation278_spill] sm:$0xff] }
 0x640   :  { %v3639_v9 = vadd.f32 %v10440_v60, %v3638_v10  ;;  %v3313_v36 = vsel %vm3267_vm8, %v3248_v5, %v14746_v29  ;;  %v2924_v10 = vsel %vm14_vm0, %v7815_v56, %v14748_v3  ;;  %v14765_v62 = vld [vmem:[#allocation199_spill] sm:$0xff]  ;;  %v14766_v29 = vld [vmem:[#allocation222_spill] sm:$0xff] }
 0x641   :  { %v3378_v12 = vsel %vm3332_vm10, %v3313_v36, %v2777_v23  ;;  %v2989_v34 = vsel %vm2942_vm4, %v2924_v10, %v14750_v1  ;;  %v2925_v23 = vsel %vm14_vm0, %v7817_v35, %v14762_v57  ;;  %v14770_v56 = vld [vmem:[#allocation334_spill] sm:$0xff]  ;;  %v14771_v10 = vld [vmem:[#allocation369_spill] sm:$0xff]  ;;  %v14772_v1 = vld [vmem:[#allocation392_spill] sm:$0xff] }
 0x642   :  { %v3818_v13 = vmax.f32 %v3639_v9, 0.0  ;;  %7646 = vmatmul.msk.f32.gmra.mxu0 %vm3406_vm9, %v3355_v16  ;;  %v14751_v9 = vld [vmem:[#allocation188_spill] sm:$0xff]  ;;  %v3054_v16 = vsel %vm3007_vm3, %v2989_v34, %v14752_v58  ;;  %v14785_v57 = vld [vmem:[#allocation371_spill] sm:$0xff] }
 0x643   :  { %v4011_v7 = vld [vmem:[#allocation2 + $0x51] sm:$0xff]  ;;  %v3032_v54 = vsel %vm3007_vm3, %v2967_v21, %v14751_v9  ;;  %v2781_v21 = vpop.permute.xlu0 %2780  ;;  %v14773_v9 = vld [vmem:[#allocation427_spill] sm:$0xff] }
 0x644   :  { %7668 = vmatmul.msk.f32.gmra.mxu2 %vm3406_vm9, %v3377_v39  ;;  %3882 = vst.msk [vmem:[#allocation2 + $0x61] sm:$0xff] %vm14_vm0, %v3818_v13  ;;  %4594 = vrot.lane.b32.xlu0 %v4011_v7, %s7888_s12  ;;  %v3097_v37 = vsel %vm3072_vm5, %v3032_v54, %v14753_v19  ;;  %v3119_v13 = vsel %vm3072_vm5, %v3054_v16, %v14754_v24  ;;  %v14755_v39 = vld [vmem:[#allocation312_spill] sm:$0xff]  ;;  %v2779_v7 = vpop.permute.xlu2 %2778  ;;  %v14774_v16 = vld [vmem:[#allocation438_spill] sm:$0xff] }
 0x645   :  { %v3162_v42 = vsel %vm3137_vm7, %v3097_v37, %v14755_v39  ;;  %v3184_v53 = vsel %vm3137_vm7, %v3119_v13, %v14756_v41  ;;  %v7818_v24 = vld [vmem:[#allocation2 + $0x138] sm:$0xff] }
 0x646   :  { %v3227_v52 = vsel %vm3202_vm6, %v3162_v42, %v14757_v11  ;;  %v3249_v30 = vsel %vm3202_vm6, %v3184_v53, %v14758_v18  ;;  %v14775_v13 = vld [vmem:[#allocation74_spill] sm:$0xff]  ;;  %v7819_v53 = vld [vmem:[#allocation2 + $0x270] sm:$0xff] }
 0x647   :  { %v3641_v25 = vpop.f32.mrf.mxu0  ;;  %v3292_v33 = vsel %vm3267_vm8, %v3227_v52, %v14759_v8  ;;  %v3314_v49 = vsel %vm3267_vm8, %v3249_v30, %v14760_v0  ;;  %v2904_v39 = vsel %vm14_vm0, %v7818_v24, %v14775_v13  ;;  %v14776_v11 = vld [vmem:[#allocation106_spill] sm:$0xff]  ;;  %v14779_v8 = vld [vmem:[#allocation201_spill] sm:$0xff]  ;;  %v14797_v13 = vld [vmem:[#allocation315_spill] sm:$0xff] }
 0x648   :  { %v3642_v28 = vadd.f32 %v10440_v60, %v3641_v25  ;;  %v3357_v20 = vsel %vm3332_vm10, %v3292_v33, %v10191_v27  ;;  %v3379_v59 = vsel %vm3332_vm10, %v3314_v49, %v2779_v7  ;;  %v14763_v25 = vld [vmem:[#allocation129_spill] sm:$0xff]  ;;  %v14764_v27 = vld [vmem:[#allocation163_spill] sm:$0xff]  ;;  %v2926_v52 = vsel %vm14_vm0, %v7819_v53, %v14776_v11  ;;  %v14777_v7 = vld [vmem:[#allocation140_spill] sm:$0xff] }
 0x649   :  { %v2968_v26 = vsel %vm2942_vm4, %v2903_v38, %v14763_v25  ;;  %v2990_v2 = vsel %vm2942_vm4, %v2925_v23, %v14764_v27  ;;  %v14781_v49 = vld [vmem:[#allocation246_spill] sm:$0xff]  ;;  %v14783_v38 = vld [vmem:[#allocation313_spill] sm:$0xff]  ;;  %v2783_v25 = vpop.permute.xlu1 %2782 }
 0x64a   :  { %v3819_v43 = vmax.f32 %v3642_v28, 0.0  ;;  %7647 = vmatmul.msk.f32.gmra.mxu0 %vm3406_vm9, %v3356_v47  ;;  %v3033_v28 = vsel %vm3007_vm3, %v2968_v26, %v14765_v62  ;;  %v3055_v36 = vsel %vm3007_vm3, %v2990_v2, %v14766_v29  ;;  %v14767_v47 = vld [vmem:[#allocation256_spill] sm:$0xff]  ;;  %v14787_v2 = vld [vmem:[#allocation417_spill] sm:$0xff] }
 0x64b   :  { %v4012_v15 = vld [vmem:[#allocation2 + $0x61] sm:$0xff]  ;;  %v3098_v4 = vsel %vm3072_vm5, %v3033_v28, %v14767_v47  ;;  %v3120_v61 = vsel %vm3072_vm5, %v3055_v36, %v14768_v32  ;;  %v14789_v32 = vld [vmem:[#allocation85_spill] sm:$0xff] }
 0x64c   :  { %7669 = vmatmul.msk.f32.gmra.mxu2 %vm3406_vm9, %v3378_v12  ;;  %3883 = vst.msk [vmem:[#allocation2 + $0x69] sm:$0xff] %vm14_vm0, %v3819_v43  ;;  %4596 = vrot.lane.b32.xlu1 %v4012_v15, %s7888_s12  ;;  %v14769_v43 = vld [vmem:[#allocation302_spill] sm:$0xff]  ;;  %v3185_v3 = vsel %vm3137_vm7, %v3120_v61, %v14770_v56  ;;  %v14788_v29 = vld [vmem:[#allocation448_spill] sm:$0xff]  ;;  %v14799_v11 = vld [vmem:[#allocation361_spill] sm:$0xff] }
 0x64d   :  { %v3163_v12 = vsel %vm3137_vm7, %v3098_v4, %v14769_v43  ;;  %v3250_v34 = vsel %vm3202_vm6, %v3185_v3, %v14772_v1  ;;  %v7820_v4 = vld [vmem:[#allocation2 + $0x140] sm:$0xff]  ;;  %v7821_v56 = vld [vmem:[#allocation2 + $0x278] sm:$0xff]  ;;  %v14790_v3 = vld [vmem:[#allocation108_spill] sm:$0xff] }
 0x64e   :  { %v3228_v6 = vsel %vm3202_vm6, %v3163_v12, %v14771_v10  ;;  %v3315_v19 = vsel %vm3267_vm8, %v3250_v34, %v14774_v16  ;;  %v2905_v61 = vsel %vm14_vm0, %v7820_v4, %v14789_v32  ;;  %v2927_v10 = vsel %vm14_vm0, %v7821_v56, %v14790_v3  ;;  %v14793_v34 = vld [vmem:[#allocation191_spill] sm:$0xff]  ;;  %v14795_v16 = vld [vmem:[#allocation257_spill] sm:$0xff]  ;;  %v14810_v32 = vld [vmem:[#allocation270_spill] sm:$0xff] }
 0x64f   :  { %v3644_v31 = vpop.f32.mrf.mxu0  ;;  %v3293_v54 = vsel %vm3267_vm8, %v3228_v6, %v14773_v9  ;;  %v3380_v41 = vsel %vm3332_vm10, %v3315_v19, %v2781_v21  ;;  %v14791_v6 = vld [vmem:[#allocation142_spill] sm:$0xff]  ;;  %v14812_v3 = vld [vmem:[#allocation337_spill] sm:$0xff] }
 0x650   :  { %v3645_v51 = vadd.f32 %v10440_v60, %v3644_v31  ;;  %v3358_v37 = vsel %vm3332_vm10, %v3293_v54, %v10193_v17  ;;  %v2969_v31 = vsel %vm2942_vm4, %v2904_v39, %v14777_v7  ;;  %v14778_v17 = vld [vmem:[#allocation165_spill] sm:$0xff]  ;;  %v2970_v21 = vsel %vm2942_vm4, %v2905_v61, %v14791_v6  ;;  %v14794_v54 = vld [vmem:[#allocation223_spill] sm:$0xff]  ;;  %v2785_v7 = vpop.permute.xlu2 %2784  ;;  %v14813_v6 = vld [vmem:[#allocation372_spill] sm:$0xff] }
 0x651   :  { %v2991_v30 = vsel %vm2942_vm4, %v2926_v52, %v14778_v17  ;;  %v3034_v33 = vsel %vm3007_vm3, %v2969_v31, %v14779_v8  ;;  %v3035_v9 = vsel %vm3007_vm3, %v2970_v21, %v14793_v34  ;;  %v14800_v17 = vld [vmem:[#allocation393_spill] sm:$0xff]  ;;  %v14801_v8 = vld [vmem:[#allocation428_spill] sm:$0xff]  ;;  %v14814_v34 = vld [vmem:[#allocation395_spill] sm:$0xff] }
 0x652   :  { %v3820_v55 = vmax.f32 %v3645_v51, 0.0  ;;  %7648 = vmatmul.msk.f32.gmra.mxu0 %vm3406_vm9, %v3357_v20  ;;  %v14780_v51 = vld [vmem:[#allocation212_spill] sm:$0xff]  ;;  %v3099_v20 = vsel %vm3072_vm5, %v3034_v33, %v14781_v49  ;;  %v3100_v19 = vsel %vm3072_vm5, %v3035_v9, %v14795_v16 }
 0x653   :  { %v4013_v5 = vld [vmem:[#allocation2 + $0x69] sm:$0xff]  ;;  %v3056_v0 = vsel %vm3007_vm3, %v2991_v30, %v14780_v51  ;;  %v3165_v39 = vsel %vm3137_vm7, %v3100_v19, %v14797_v13 }
 0x654   :  { %7670 = vmatmul.msk.f32.gmra.mxu2 %vm3406_vm9, %v3379_v59  ;;  %3884 = vst.msk [vmem:[#allocation2 + $0x79] sm:$0xff] %vm14_vm0, %v3820_v55  ;;  %4598 = vrot.lane.b32.xlu2 %v4013_v5, %s7888_s12  ;;  %v3121_v46 = vsel %vm3072_vm5, %v3056_v0, %v14782_v48  ;;  %v3164_v55 = vsel %vm3137_vm7, %v3099_v20, %v14783_v38  ;;  %v14784_v59 = vld [vmem:[#allocation336_spill] sm:$0xff]  ;;  %v14786_v5 = vld [vmem:[#allocation382_spill] sm:$0xff]  ;;  %v14803_v38 = vld [vmem:[#allocation87_spill] sm:$0xff] }
 0x655   :  { %v3186_v35 = vsel %vm3137_vm7, %v3121_v46, %v14784_v59  ;;  %v3229_v23 = vsel %vm3202_vm6, %v3164_v55, %v14785_v57  ;;  %v3230_v52 = vsel %vm3202_vm6, %v3165_v39, %v14799_v11  ;;  %v14802_v0 = vld [vmem:[#allocation450_spill] sm:$0xff]  ;;  %v7822_v46 = vld [vmem:[#allocation2 + $0x150] sm:$0xff]  ;;  %v7823_v57 = vld [vmem:[#allocation2 + $0x288] sm:$0xff] }
 0x656   :  { %v3251_v27 = vsel %vm3202_vm6, %v3186_v35, %v14786_v5  ;;  %v3294_v62 = vsel %vm3267_vm8, %v3229_v23, %v14787_v2  ;;  %v3295_v33 = vsel %vm3267_vm8, %v3230_v52, %v14801_v8  ;;  %v2906_v55 = vsel %vm14_vm0, %v7822_v46, %v14803_v38  ;;  %v14804_v23 = vld [vmem:[#allocation98_spill] sm:$0xff]  ;;  %v14816_v19 = vld [vmem:[#allocation441_spill] sm:$0xff] }
 0x657   :  { %v3647_v15 = vpop.f32.mrf.mxu0  ;;  %v3316_v36 = vsel %vm3267_vm8, %v3251_v27, %v14788_v29  ;;  %v3359_v47 = vsel %vm3332_vm10, %v3294_v62, %v10197_v63  ;;  %v14792_v63 = vld [vmem:[#allocation155_spill] sm:$0xff]  ;;  %v3360_v20 = vsel %vm3332_vm10, %v3295_v33, %v10214_v45  ;;  %v14806_v27 = vld [vmem:[#allocation166_spill] sm:$0xff]  ;;  %v14808_v29 = vld [vmem:[#allocation225_spill] sm:$0xff] }
 0x658   :  { %v3648_v58 = vadd.f32 %v10440_v60, %v3647_v15  ;;  %v3381_v12 = vsel %vm3332_vm10, %v3316_v36, %v2783_v25  ;;  %v2992_v1 = vsel %vm2942_vm4, %v2927_v10, %v14792_v63  ;;  %v2928_v25 = vsel %vm14_vm0, %v7823_v57, %v14804_v23  ;;  %v14807_v62 = vld [vmem:[#allocation202_spill] sm:$0xff]  ;;  %v7825_v52 = vld [vmem:[#allocation2 + $0x290] sm:$0xff]  ;;  %v14821_v33 = vld [vmem:[#allocation204_spill] sm:$0xff] }
 0x659   :  { %v2993_v2 = vsel %vm2942_vm4, %v2928_v25, %v14806_v27  ;;  %v7824_v39 = vld [vmem:[#allocation2 + $0x158] sm:$0xff]  ;;  %v14824_v46 = vld [vmem:[#allocation281_spill] sm:$0xff]  ;;  %v14826_v57 = vld [vmem:[#allocation339_spill] sm:$0xff] }
 0x65a   :  { %v3821_v42 = vmax.f32 %v3648_v58, 0.0  ;;  %7649 = vmatmul.msk.f32.gmra.mxu0 %vm3406_vm9, %v3358_v37  ;;  %v3057_v58 = vsel %vm3007_vm3, %v2992_v1, %v14794_v54  ;;  %v14796_v37 = vld [vmem:[#allocation280_spill] sm:$0xff]  ;;  %v3058_v36 = vsel %vm3007_vm3, %v2993_v2, %v14808_v29  ;;  %v14815_v54 = vld [vmem:[#allocation430_spill] sm:$0xff]  ;;  %v14828_v2 = vld [vmem:[#allocation385_spill] sm:$0xff] }
 0x65b   :  { %v4014_v18 = vld [vmem:[#allocation2 + $0x79] sm:$0xff]  ;;  %v3122_v24 = vsel %vm3072_vm5, %v3057_v58, %v14796_v37  ;;  %v3123_v61 = vsel %vm3072_vm5, %v3058_v36, %v14810_v32 }
 0x65c   :  { %7671 = vmatmul.msk.f32.gmra.mxu2 %vm3406_vm9, %v3380_v41  ;;  %3885 = vst.msk [vmem:[#allocation2 + $0x81] sm:$0xff] %vm14_vm0, %v3821_v42  ;;  %4600 = vrot.lane.b32.xlu0 %v4014_v18, %s7888_s12  ;;  %v14798_v41 = vld [vmem:[#allocation326_spill] sm:$0xff]  ;;  %v3188_v10 = vsel %vm3137_vm7, %v3123_v61, %v14812_v3 }
 0x65d   :  { %v3187_v53 = vsel %vm3137_vm7, %v3122_v24, %v14798_v41  ;;  %v3253_v9 = vsel %vm3202_vm6, %v3188_v10, %v14814_v34  ;;  %v14827_v25 = vld [vmem:[#allocation374_spill] sm:$0xff] }
 0x65e   :  { %v3252_v30 = vsel %vm3202_vm6, %v3187_v53, %v14800_v17  ;;  %v3318_v37 = vsel %vm3267_vm8, %v3253_v9, %v14816_v19  ;;  %v14834_v34 = vld [vmem:[#allocation158_spill] sm:$0xff] }
 0x65f   :  { %v3650_v26 = vpop.f32.mrf.mxu0  ;;  %v3317_v49 = vsel %vm3267_vm8, %v3252_v30, %v14802_v0  ;;  %v14820_v30 = vld [vmem:[#allocation168_spill] sm:$0xff]  ;;  %v14822_v0 = vld [vmem:[#allocation215_spill] sm:$0xff] }
 0x660   :  { %v3651_v28 = vadd.f32 %v10440_v60, %v3650_v26  ;;  %v3382_v35 = vsel %vm3332_vm10, %v3317_v49, %v2785_v7  ;;  %v14805_v26 = vld [vmem:[#allocation132_spill] sm:$0xff]  ;;  %v14818_v7 = vld [vmem:[#allocation109_spill] sm:$0xff] }
 0x661   :  { %v2971_v5 = vsel %vm2942_vm4, %v2906_v55, %v14805_v26  ;;  %v14825_v55 = vld [vmem:[#allocation316_spill] sm:$0xff] }
 0x662   :  { %v3822_v43 = vmax.f32 %v3651_v28, 0.0  ;;  %7650 = vmatmul.msk.f32.gmra.mxu0 %vm3406_vm9, %v3359_v47  ;;  %v3036_v28 = vsel %vm3007_vm3, %v2971_v5, %v14807_v62  ;;  %v14809_v47 = vld [vmem:[#allocation259_spill] sm:$0xff]  ;;  %v2789_v5 = vpop.permute.xlu1 %2788 }
 0x663   :  { %v4015_v15 = vld [vmem:[#allocation2 + $0x81] sm:$0xff]  ;;  %v3101_v4 = vsel %vm3072_vm5, %v3036_v28, %v14809_v47 }
 0x664   :  { %7672 = vmatmul.msk.f32.gmra.mxu2 %vm3406_vm9, %v3381_v12  ;;  %3886 = vst.msk [vmem:[#allocation2 + $0x91] sm:$0xff] %vm14_vm0, %v3822_v43  ;;  %4602 = vrot.lane.b32.xlu1 %v4015_v15, %s7888_s12  ;;  %v14811_v43 = vld [vmem:[#allocation305_spill] sm:$0xff]  ;;  %v2787_v15 = vpop.permute.xlu0 %2786  ;;  %v14829_v28 = vld [vmem:[#allocation420_spill] sm:$0xff]  ;;  %v14830_v47 = vld [vmem:[#allocation451_spill] sm:$0xff] }
 0x665   :  { %v3166_v12 = vsel %vm3137_vm7, %v3101_v4, %v14811_v43  ;;  %v3383_v11 = vsel %vm3332_vm10, %v3318_v37, %v2787_v15  ;;  %v7826_v43 = vld [vmem:[#allocation2 + $0x168] sm:$0xff] }
 0x666   :  { %v3231_v21 = vsel %vm3202_vm6, %v3166_v12, %v14813_v6  ;;  %v14831_v12 = vld [vmem:[#allocation88_spill] sm:$0xff]  ;;  %v7827_v6 = vld [vmem:[#allocation2 + $0x2a0] sm:$0xff] }
 0x667   :  { %v3716_v42 = vpop.f32.mrf.mxu2  ;;  %v3653_v31 = vpop.f32.mrf.mxu0  ;;  %v3296_v58 = vsel %vm3267_vm8, %v3231_v21, %v14815_v54  ;;  %v14832_v21 = vld [vmem:[#allocation111_spill] sm:$0xff]  ;;  %v14835_v54 = vld [vmem:[#allocation194_spill] sm:$0xff]  ;;  %v14837_v37 = vld [vmem:[#allocation260_spill] sm:$0xff] }
 0x668   :  { %v3717_v18 = vadd.f32 %v10440_v60, %v3716_v42  ;;  %v3654_v51 = vadd.f32 %v10440_v60, %v3653_v31  ;;  %v3361_v24 = vsel %vm3332_vm10, %v3296_v58, %v10227_v44  ;;  %v14817_v42 = vld [vmem:[#allocation77_spill] sm:$0xff]  ;;  %v2929_v31 = vsel %vm14_vm0, %v7825_v52, %v14818_v7  ;;  %v14841_v7 = vld [vmem:[#allocation364_spill] sm:$0xff] }
 0x669   :  { %v2907_v41 = vsel %vm14_vm0, %v7824_v39, %v14817_v42  ;;  %v2994_v8 = vsel %vm2942_vm4, %v2929_v31, %v14820_v30  ;;  %v2930_v15 = vsel %vm14_vm0, %v7827_v6, %v14832_v21  ;;  %v14839_v42 = vld [vmem:[#allocation318_spill] sm:$0xff]  ;;  %v14842_v30 = vld [vmem:[#allocation396_spill] sm:$0xff]  ;;  %v14855_v6 = vld [vmem:[#allocation375_spill] sm:$0xff] }
 0x66a   :  { %v3844_v48 = vmax.f32 %v3717_v18, 0.0  ;;  %v3823_v59 = vmax.f32 %v3654_v51, 0.0  ;;  %7651 = vmatmul.msk.f32.gmra.mxu0 %vm3406_vm9, %v3360_v20  ;;  %v14819_v18 = vld [vmem:[#allocation143_spill] sm:$0xff]  ;;  %v3059_v49 = vsel %vm3007_vm3, %v2994_v8, %v14822_v0  ;;  %v14823_v20 = vld [vmem:[#allocation249_spill] sm:$0xff]  ;;  %v2995_v9 = vsel %vm2942_vm4, %v2930_v15, %v14834_v34 }
 0x66b   :  { %v4016_v45 = vld [vmem:[#allocation2 + $0x91] sm:$0xff]  ;;  %v2972_v17 = vsel %vm2942_vm4, %v2907_v41, %v14819_v18  ;;  %v3124_v38 = vsel %vm3072_vm5, %v3059_v49, %v14824_v46  ;;  %v2791_v18 = vpop.permute.xlu2 %2790 }
 0x66c   :  { %3908 = vst.msk [vmem:[#allocation2 + $0x1c9] sm:$0xff] %vm14_vm0, %v3844_v48  ;;  %7673 = vmatmul.msk.f32.gmra.mxu2 %vm3406_vm9, %v3382_v35  ;;  %4604 = vrot.lane.b32.xlu2 %v4016_v45, %s7888_s12  ;;  %v3037_v51 = vsel %vm3007_vm3, %v2972_v17, %v14821_v33  ;;  %v3189_v23 = vsel %vm3137_vm7, %v3124_v38, %v14826_v57  ;;  %v14843_v33 = vld [vmem:[#allocation431_spill] sm:$0xff]  ;;  %v14844_v49 = vld [vmem:[#allocation453_spill] sm:$0xff]  ;;  %v2793_v15 = vpop.permute.xlu0 %2792 }
 0x66d   :  { %3887 = vst.msk [vmem:[#allocation2 + $0x99] sm:$0xff] %vm14_vm0, %v3823_v59  ;;  %v3102_v48 = vsel %vm3072_vm5, %v3037_v51, %v14823_v20  ;;  %v3254_v62 = vsel %vm3202_vm6, %v3189_v23, %v14828_v2  ;;  %v7828_v38 = vld [vmem:[#allocation2 + $0x170] sm:$0xff]  ;;  %v7829_v23 = vld [vmem:[#allocation2 + $0x2a8] sm:$0xff] }
 0x66e   :  { %v3167_v59 = vsel %vm3137_vm7, %v3102_v48, %v14825_v55  ;;  %v3319_v4 = vsel %vm3267_vm8, %v3254_v62, %v14830_v47  ;;  %v14845_v55 = vld [vmem:[#allocation90_spill] sm:$0xff]  ;;  %v14849_v62 = vld [vmem:[#allocation205_spill] sm:$0xff] }
 0x66f   :  { %v3719_v56 = vpop.f32.mrf.mxu2  ;;  %v3656_v63 = vpop.f32.mrf.mxu0  ;;  %v3232_v26 = vsel %vm3202_vm6, %v3167_v59, %v14827_v25  ;;  %v3384_v10 = vsel %vm3332_vm10, %v3319_v4, %v2789_v5  ;;  %v2909_v59 = vsel %vm14_vm0, %v7828_v38, %v14845_v55  ;;  %v14846_v25 = vld [vmem:[#allocation101_spill] sm:$0xff]  ;;  %v14847_v5 = vld [vmem:[#allocation135_spill] sm:$0xff]  ;;  %v14851_v47 = vld [vmem:[#allocation262_spill] sm:$0xff] }
 0x670   :  { %v3720_v1 = vadd.f32 %v10440_v60, %v3719_v56  ;;  %v3657_v16 = vadd.f32 %v10440_v60, %v3656_v63  ;;  %v3297_v29 = vsel %vm3267_vm8, %v3232_v26, %v14829_v28  ;;  %v2908_v56 = vsel %vm14_vm0, %v7826_v43, %v14831_v12  ;;  %v14833_v63 = vld [vmem:[#allocation145_spill] sm:$0xff]  ;;  %v14853_v43 = vld [vmem:[#allocation308_spill] sm:$0xff] }
 0x671   :  { %v3362_v32 = vsel %vm3332_vm10, %v3297_v29, %v10218_v22  ;;  %v2931_v26 = vsel %vm14_vm0, %v7829_v23, %v14846_v25  ;;  %v14850_v29 = vld [vmem:[#allocation228_spill] sm:$0xff]  ;;  %v14866_v23 = vld [vmem:[#allocation113_spill] sm:$0xff] }
 0x672   :  { %v3845_v13 = vmax.f32 %v3720_v1, 0.0  ;;  %v3824_v53 = vmax.f32 %v3657_v16, 0.0  ;;  %7652 = vmatmul.msk.f32.gmra.mxu0 %vm3406_vm9, %v3361_v24  ;;  %v2973_v1 = vsel %vm2942_vm4, %v2908_v56, %v14833_v63  ;;  %v14836_v16 = vld [vmem:[#allocation226_spill] sm:$0xff] }
 0x673   :  { %v3038_v58 = vsel %vm3007_vm3, %v2973_v1, %v14835_v54  ;;  %v3060_v19 = vsel %vm3007_vm3, %v2995_v9, %v14836_v16  ;;  %v14857_v9 = vld [vmem:[#allocation433_spill] sm:$0xff] }
 0x674   :  { %3909 = vst.msk [vmem:[#allocation2 + $0x1d1] sm:$0xff] %vm14_vm0, %v3845_v13  ;;  %v4017_v44 = vld [vmem:[#allocation2 + $0x99] sm:$0xff]  ;;  %7674 = vmatmul.msk.f32.gmra.mxu2 %vm3406_vm9, %v3383_v11  ;;  %v3103_v24 = vsel %vm3072_vm5, %v3038_v58, %v14837_v37  ;;  %v14840_v11 = vld [vmem:[#allocation329_spill] sm:$0xff] }
 0x675   :  { %3888 = vst.msk [vmem:[#allocation2 + $0xa9] sm:$0xff] %vm14_vm0, %v3824_v53  ;;  %4606 = vrot.lane.b32.xlu0 %v4017_v44, %s7888_s12  ;;  %v14838_v13 = vld [vmem:[#allocation283_spill] sm:$0xff]  ;;  %v3168_v41 = vsel %vm3137_vm7, %v3103_v24, %v14839_v42  ;;  %v14858_v16 = vld [vmem:[#allocation445_spill] sm:$0xff]  ;;  %v7830_v42 = vld [vmem:[#allocation2 + $0x2b8] sm:$0xff] }
 0x676   :  { %v3125_v39 = vsel %vm3072_vm5, %v3060_v19, %v14838_v13  ;;  %v3233_v31 = vsel %vm3202_vm6, %v3168_v41, %v14841_v7  ;;  %v14859_v41 = vld [vmem:[#allocation112_spill] sm:$0xff] }
 0x677   :  { %v3722_v35 = vpop.f32.mrf.mxu2  ;;  %v3659_v45 = vpop.f32.mrf.mxu0  ;;  %v3190_v52 = vsel %vm3137_vm7, %v3125_v39, %v14840_v11  ;;  %v3298_v51 = vsel %vm3267_vm8, %v3233_v31, %v14843_v33 }
 0x678   :  { %v3723_v27 = vadd.f32 %v10440_v60, %v3722_v35  ;;  %v3660_v36 = vadd.f32 %v10440_v60, %v3659_v45  ;;  %v3255_v8 = vsel %vm3202_vm6, %v3190_v52, %v14842_v30  ;;  %v3363_v48 = vsel %vm3332_vm10, %v3298_v51, %v10249_v40  ;;  %v14860_v52 = vld [vmem:[#allocation170_spill] sm:$0xff]  ;;  %v14863_v30 = vld [vmem:[#allocation341_spill] sm:$0xff]  ;;  %v2795_v33 = vpop.permute.xlu1 %2794 }
 0x679   :  { %v3320_v20 = vsel %vm3267_vm8, %v3255_v8, %v14844_v49  ;;  %v2974_v45 = vsel %vm2942_vm4, %v2909_v59, %v14847_v5  ;;  %v14864_v49 = vld [vmem:[#allocation388_spill] sm:$0xff]  ;;  %v14867_v5 = vld [vmem:[#allocation161_spill] sm:$0xff] }
 0x67a   :  { %v3846_v61 = vmax.f32 %v3723_v27, 0.0  ;;  %v3825_v3 = vmax.f32 %v3660_v36, 0.0  ;;  %7653 = vmatmul.msk.f32.gmra.mxu0 %vm3406_vm9, %v3362_v32  ;;  %v3385_v57 = vsel %vm3332_vm10, %v3320_v20, %v2791_v18  ;;  %v14848_v27 = vld [vmem:[#allocation169_spill] sm:$0xff]  ;;  %v3039_v28 = vsel %vm3007_vm3, %v2974_v45, %v14849_v62  ;;  %v14862_v18 = vld [vmem:[#allocation284_spill] sm:$0xff] }
 0x67b   :  { %v2996_v2 = vsel %vm2942_vm4, %v2931_v26, %v14848_v27  ;;  %v3104_v4 = vsel %vm3072_vm5, %v3039_v28, %v14851_v47  ;;  %v14852_v32 = vld [vmem:[#allocation273_spill] sm:$0xff]  ;;  %v2797_v47 = vpop.permute.xlu2 %2796 }
 0x67c   :  { %3910 = vst.msk [vmem:[#allocation2 + $0x1e1] sm:$0xff] %vm14_vm0, %v3846_v61  ;;  %v4018_v22 = vld [vmem:[#allocation2 + $0xa9] sm:$0xff]  ;;  %7675 = vmatmul.msk.f32.gmra.mxu2 %vm3406_vm9, %v3384_v10  ;;  %v3061_v36 = vsel %vm3007_vm3, %v2996_v2, %v14850_v29  ;;  %v3169_v12 = vsel %vm3137_vm7, %v3104_v4, %v14853_v43 }
 0x67d   :  { %3889 = vst.msk [vmem:[#allocation2 + $0xb1] sm:$0xff] %vm14_vm0, %v3825_v3  ;;  %4608 = vrot.lane.b32.xlu1 %v4018_v22, %s7888_s12  ;;  %v3126_v61 = vsel %vm3072_vm5, %v3061_v36, %v14852_v32  ;;  %v14854_v3 = vld [vmem:[#allocation340_spill] sm:$0xff]  ;;  %v3234_v21 = vsel %vm3202_vm6, %v3169_v12, %v14855_v6  ;;  %v14856_v22 = vld [vmem:[#allocation398_spill] sm:$0xff]  ;;  %v14869_v2 = vld [vmem:[#allocation285_spill] sm:$0xff] }
 0x67e   :  { %v3191_v10 = vsel %vm3137_vm7, %v3126_v61, %v14854_v3  ;;  %v3299_v54 = vsel %vm3267_vm8, %v3234_v21, %v14857_v9  ;;  %v14870_v29 = vld [vmem:[#allocation332_spill] sm:$0xff]  ;;  %v14871_v61 = vld [vmem:[#allocation399_spill] sm:$0xff] }
 0x67f   :  { %v3725_v53 = vpop.f32.mrf.mxu2  ;;  %v3662_v17 = vpop.f32.mrf.mxu0  ;;  %v3256_v34 = vsel %vm3202_vm6, %v3191_v10, %v14856_v22  ;;  %v3364_v37 = vsel %vm3332_vm10, %v3299_v54, %v10272_v14  ;;  %v14861_v14 = vld [vmem:[#allocation218_spill] sm:$0xff] }
 0x680   :  { %v3726_v44 = vadd.f32 %v10440_v60, %v3725_v53  ;;  %v3663_v0 = vadd.f32 %v10440_v60, %v3662_v17  ;;  %v3321_v19 = vsel %vm3267_vm8, %v3256_v34, %v14858_v16  ;;  %v2932_v53 = vsel %vm14_vm0, %v7830_v42, %v14859_v41  ;;  %v14874_v34 = vld [vmem:[#allocation171_spill] sm:$0xff]  ;;  %v14875_v54 = vld [vmem:[#allocation230_spill] sm:$0xff]  ;;  %v14876_v16 = vld [vmem:[#allocation276_spill] sm:$0xff] }
 0x681   :  { %v3386_v39 = vsel %vm3332_vm10, %v3321_v19, %v2793_v15  ;;  %v2997_v7 = vsel %vm2942_vm4, %v2932_v53, %v14860_v52  ;;  %v7832_v15 = vld [vmem:[#allocation2 + $0x2d0] sm:$0xff]  ;;  %v14878_v53 = vld [vmem:[#allocation400_spill] sm:$0xff] }
 0x682   :  { %v3847_v46 = vmax.f32 %v3726_v44, 0.0  ;;  %v3826_v35 = vmax.f32 %v3663_v0, 0.0  ;;  %7654 = vmatmul.msk.f32.gmra.mxu0 %vm3406_vm9, %v3363_v48  ;;  %v3062_v31 = vsel %vm3007_vm3, %v2997_v7, %v14861_v14  ;;  %v14879_v7 = vld [vmem:[#allocation449_spill] sm:$0xff] }
 0x683   :  { %v3127_v17 = vsel %vm3072_vm5, %v3062_v31, %v14862_v18 }
 0x684   :  { %3911 = vst.msk [vmem:[#allocation2 + $0x1e9] sm:$0xff] %vm14_vm0, %v3847_v46  ;;  %v4019_v40 = vld [vmem:[#allocation2 + $0xb1] sm:$0xff]  ;;  %7676 = vmatmul.msk.f32.gmra.mxu2 %vm3406_vm9, %v3385_v57  ;;  %v3192_v8 = vsel %vm3137_vm7, %v3127_v17, %v14863_v30  ;;  %v7831_v57 = vld [vmem:[#allocation2 + $0x2c0] sm:$0xff] }
 0x685   :  { %3890 = vst.msk [vmem:[#allocation2 + $0xc1] sm:$0xff] %vm14_vm0, %v3826_v35  ;;  %4610 = vrot.lane.b32.xlu2 %v4019_v40, %s7888_s12  ;;  %v3257_v20 = vsel %vm3202_vm6, %v3192_v8, %v14864_v49  ;;  %v14865_v46 = vld [vmem:[#allocation454_spill] sm:$0xff]  ;;  %v2933_v25 = vsel %vm14_vm0, %v7831_v57, %v14866_v23  ;;  %v14868_v40 = vld [vmem:[#allocation229_spill] sm:$0xff] }
 0x686   :  { %v3322_v38 = vsel %vm3267_vm8, %v3257_v20, %v14865_v46  ;;  %v2998_v45 = vsel %vm2942_vm4, %v2933_v25, %v14867_v5  ;;  %v14880_v30 = vld [vmem:[#allocation114_spill] sm:$0xff]  ;;  %v14882_v49 = vld [vmem:[#allocation221_spill] sm:$0xff]  ;;  %v14885_v25 = vld [vmem:[#allocation391_spill] sm:$0xff] }
 0x687   :  { %v3728_v56 = vpop.f32.mrf.mxu2  ;;  %v3665_v63 = vpop.f32.mrf.mxu0  ;;  %v3387_v35 = vsel %vm3332_vm10, %v3322_v38, %v2795_v33  ;;  %v3063_v27 = vsel %vm3007_vm3, %v2998_v45, %v14868_v40  ;;  %v14886_v45 = vld [vmem:[#allocation457_spill] sm:$0xff] }
 0x688   :  { %v3729_v1 = vadd.f32 %v10440_v60, %v3728_v56  ;;  %v3666_v58 = vadd.f32 %v10440_v60, %v3665_v63  ;;  %v3128_v62 = vsel %vm3072_vm5, %v3063_v27, %v14869_v2  ;;  %v14872_v56 = vld [vmem:[#allocation456_spill] sm:$0xff] }
 0x689   :  { %v3193_v36 = vsel %vm3137_vm7, %v3128_v62, %v14870_v29  ;;  %v14873_v63 = vld [vmem:[#allocation104_spill] sm:$0xff]  ;;  %v14887_v29 = vld [vmem:[#allocation115_spill] sm:$0xff] }
 0x68a   :  { %v3848_v24 = vmax.f32 %v3729_v1, 0.0  ;;  %v3827_v13 = vmax.f32 %v3666_v58, 0.0  ;;  %7655 = vmatmul.msk.f32.gmra.mxu0 %vm3406_vm9, %v3364_v37  ;;  %v3258_v43 = vsel %vm3202_vm6, %v3193_v36, %v14871_v61  ;;  %v2934_v1 = vsel %vm14_vm0, %v7832_v15, %v14873_v63  ;;  %v14889_v61 = vld [vmem:[#allocation231_spill] sm:$0xff] }
 0x68b   :  { %v3323_v3 = vsel %vm3267_vm8, %v3258_v43, %v14872_v56  ;;  %v2999_v9 = vsel %vm2942_vm4, %v2934_v1, %v14874_v34  ;;  %v14892_v1 = vld [vmem:[#allocation401_spill] sm:$0xff] }
 0x68c   :  { %3912 = vst.msk [vmem:[#allocation2 + $0x1f9] sm:$0xff] %vm14_vm0, %v3848_v24  ;;  %v4020_v11 = vld [vmem:[#allocation2 + $0xc1] sm:$0xff]  ;;  %7677 = vmatmul.msk.f32.gmra.mxu2 %vm3406_vm9, %v3386_v39  ;;  %v3388_v21 = vsel %vm3332_vm10, %v3323_v3, %v2797_v47  ;;  %v3064_v58 = vsel %vm3007_vm3, %v2999_v9, %v14875_v54  ;;  %v14877_v24 = vld [vmem:[#allocation342_spill] sm:$0xff]  ;;  %v2799_v39 = vpop.permute.xlu0 %2798 }
 0x68d   :  { %3891 = vst.msk [vmem:[#allocation2 + $0xc9] sm:$0xff] %vm14_vm0, %v3827_v13  ;;  %4612 = vrot.lane.b32.xlu0 %v4020_v11, %s7888_s12  ;;  %v3129_v19 = vsel %vm3072_vm5, %v3064_v58, %v14876_v16  ;;  %v14893_v9 = vld [vmem:[#allocation458_spill] sm:$0xff] }
 0x68e   :  { %v3194_v13 = vsel %vm3137_vm7, %v3129_v19, %v14877_v24  ;;  %v14894_v24 = vld [vmem:[#allocation107_spill] sm:$0xff] }
 0x68f   :  { %v3731_v44 = vpop.f32.mrf.mxu2  ;;  %v3668_v51 = vpop.f32.mrf.mxu0  ;;  %v3259_v11 = vsel %vm3202_vm6, %v3194_v13, %v14878_v53 }
 0x690   :  { %v3732_v0 = vadd.f32 %v10440_v60, %v3731_v44  ;;  %v3669_v48 = vadd.f32 %v10440_v60, %v3668_v51  ;;  %v3324_v14 = vsel %vm3267_vm8, %v3259_v11, %v14879_v7  ;;  %v7833_v44 = vld [vmem:[#allocation2 + $0x2d8] sm:$0xff]  ;;  %v14881_v51 = vld [vmem:[#allocation172_spill] sm:$0xff]  ;;  %v14897_v11 = vld [vmem:[#allocation279_spill] sm:$0xff] }
 0x691   :  { %v3389_v18 = vsel %vm3332_vm10, %v3324_v14, %v2799_v39  ;;  %v2935_v8 = vsel %vm14_vm0, %v7833_v44, %v14880_v30  ;;  %v14898_v14 = vld [vmem:[#allocation344_spill] sm:$0xff]  ;;  %v11135_v44 = vld [vmem:[%s14009_s2] ss:$0 sm:$0xff] }
 0x692   :  { %v3849_v55 = vmax.f32 %v3732_v0, 0.0  ;;  %v3828_v59 = vmax.f32 %v3669_v48, 0.0  ;;  %v3000_v0 = vsel %vm2942_vm4, %v2935_v8, %v14881_v51  ;;  %v14883_v48 = vld [vmem:[#allocation286_spill] sm:$0xff] }
 0x693   :  { %v3065_v20 = vsel %vm3007_vm3, %v3000_v0, %v14882_v49  ;;  %v14899_v8 = vld [vmem:[#allocation402_spill] sm:$0xff]  ;;  %v14900_v0 = vld [vmem:[#allocation452_spill] sm:$0xff] }
 0x694   :  { %3913 = vst.msk [vmem:[#allocation2 + $0x201] sm:$0xff] %vm14_vm0, %v3849_v55  ;;  %v4021_v26 = vld [vmem:[#allocation2 + $0xc9] sm:$0xff]  ;;  %7678 = vmatmul.msk.f32.gmra.mxu2 %vm3406_vm9, %v3387_v35  ;;  %v3130_v46 = vsel %vm3072_vm5, %v3065_v20, %v14883_v48  ;;  %v14884_v55 = vld [vmem:[#allocation343_spill] sm:$0xff]  ;;  %v2801_v35 = vpop.permute.xlu1 %2800 }
 0x695   :  { %3892 = vst.msk [vmem:[#allocation2 + $0xd9] sm:$0xff] %vm14_vm0, %v3828_v59  ;;  %4614 = vrot.lane.b32.xlu1 %v4021_v26, %s7888_s12  ;;  %v3195_v59 = vsel %vm3137_vm7, %v3130_v46, %v14884_v55  ;;  %v14901_v55 = vld [vmem:[#allocation116_spill] sm:$0xff] }
 0x696   :  { %v3260_v26 = vsel %vm3202_vm6, %v3195_v59, %v14885_v25  ;;  %v14903_v25 = vld [vmem:[#allocation224_spill] sm:$0xff] }
 0x697   :  { %v3734_v28 = vpop.f32.mrf.mxu2  ;;  %v3671_v4 = vpop.f32.mrf.mxu0  ;;  %v3325_v40 = vsel %vm3267_vm8, %v3260_v26, %v14886_v45 }
 0x698   :  { %v3735_v32 = vadd.f32 %v10440_v60, %v3734_v28  ;;  %v3672_v12 = vadd.f32 %v10440_v60, %v3671_v4  ;;  %v3390_v2 = vsel %vm3332_vm10, %v3325_v40, %v2801_v35  ;;  %v7834_v28 = vld [vmem:[#allocation2 + $0x2e8] sm:$0xff] }
 0x699   :  { %v2936_v36 = vsel %vm14_vm0, %v7834_v28, %v14887_v29  ;;  %v14888_v4 = vld [vmem:[#allocation164_spill] sm:$0xff] }
 0x69a   :  { %v3850_v10 = vmax.f32 %v3735_v32, 0.0  ;;  %v3829_v6 = vmax.f32 %v3672_v12, 0.0  ;;  %v3001_v32 = vsel %vm2942_vm4, %v2936_v36, %v14888_v4  ;;  %v14890_v12 = vld [vmem:[#allocation287_spill] sm:$0xff]  ;;  %v14906_v36 = vld [vmem:[#allocation394_spill] sm:$0xff] }
 0x69b   :  { %v3066_v43 = vsel %vm3007_vm3, %v3001_v32, %v14889_v61  ;;  %v14907_v32 = vld [vmem:[#allocation459_spill] sm:$0xff] }
 0x69c   :  { %3914 = vst.msk [vmem:[#allocation2 + $0x211] sm:$0xff] %vm14_vm0, %v3850_v10  ;;  %v4022_v22 = vld [vmem:[#allocation2 + $0xd9] sm:$0xff]  ;;  %7679 = vmatmul.msk.f32.gmra.mxu2 %vm3406_vm9, %v3388_v21  ;;  %v3131_v56 = vsel %vm3072_vm5, %v3066_v43, %v14890_v12  ;;  %v2803_v21 = vpop.permute.xlu2 %2802 }
 0x69d   :  { %3893 = vst.msk [vmem:[#allocation2 + $0xe1] sm:$0xff] %vm14_vm0, %v3829_v6  ;;  %4616 = vrot.lane.b32.xlu2 %v4022_v22, %s7888_s12  ;;  %v14891_v10 = vld [vmem:[#allocation335_spill] sm:$0xff] }
 0x69e   :  { %v3196_v6 = vsel %vm3137_vm7, %v3131_v56, %v14891_v10  ;;  %v14908_v10 = vld [vmem:[#allocation117_spill] sm:$0xff] }
 0x69f   :  { %v3737_v37 = vpop.f32.mrf.mxu2  ;;  %v3674_v42 = vpop.f32.mrf.mxu0  ;;  %v3261_v22 = vsel %vm3202_vm6, %v3196_v6, %v14892_v1  ;;  %v14910_v1 = vld [vmem:[#allocation233_spill] sm:$0xff] }
 0x6a0   :  { %v3738_v41 = vadd.f32 %v10440_v60, %v3737_v37  ;;  %v3675_v52 = vadd.f32 %v10440_v60, %v3674_v42  ;;  %v3326_v54 = vsel %vm3267_vm8, %v3261_v22, %v14893_v9  ;;  %v7835_v37 = vld [vmem:[#allocation2 + $0x2f0] sm:$0xff] }
 0x6a1   :  { %v3391_v16 = vsel %vm3332_vm10, %v3326_v54, %v2803_v21  ;;  %v2937_v13 = vsel %vm14_vm0, %v7835_v37, %v14894_v24  ;;  %v14895_v42 = vld [vmem:[#allocation173_spill] sm:$0xff] }
 0x6a2   :  { %v3851_v31 = vmax.f32 %v3738_v41, 0.0  ;;  %v3830_v17 = vmax.f32 %v3675_v52, 0.0  ;;  %v3002_v41 = vsel %vm2942_vm4, %v2937_v13, %v14895_v42  ;;  %v14913_v13 = vld [vmem:[#allocation403_spill] sm:$0xff] }
 0x6a4   :  { %3915 = vst.msk [vmem:[#allocation2 + $0x219] sm:$0xff] %vm14_vm0, %v3851_v31  ;;  %v4023_v33 = vld [vmem:[#allocation2 + $0xe1] sm:$0xff]  ;;  %7680 = vmatmul.msk.f32.gmra.mxu2 %vm3406_vm9, %v3389_v18  ;;  %v2805_v18 = vpop.permute.xlu0 %2804 }
 0x6a5   :  { %3894 = vst.msk [vmem:[#allocation2 + $0xf1] sm:$0xff] %vm14_vm0, %v3830_v17  ;;  %4618 = vrot.lane.b32.xlu0 %v4023_v33, %s7888_s12 }
 0x6a7   :  { %v3740_v38 = vpop.f32.mrf.mxu2  ;;  %v3677_v57 = vpop.f32.mrf.mxu0 }
 0x6a8   :  { %v3741_v23 = vadd.f32 %v10440_v60, %v3740_v38  ;;  %v3678_v5 = vadd.f32 %v10440_v60, %v3677_v57  ;;  %v7837_v38 = vld [vmem:[#allocation2 + $0x300] sm:$0xff]  ;;  %v14902_v57 = vld [vmem:[#allocation174_spill] sm:$0xff] }
 0x6a9   :  { %v2938_v59 = vsel %vm14_vm0, %v7837_v38, %v14901_v55  ;;  %v14919_v38 = vld [vmem:[#allocation405_spill] sm:$0xff] }
 0x6aa   :  { %v3852_v27 = vmax.f32 %v3741_v23, 0.0  ;;  %v3831_v62 = vmax.f32 %v3678_v5, 0.0  ;;  %v3003_v23 = vsel %vm2942_vm4, %v2938_v59, %v14902_v57  ;;  %v14904_v5 = vld [vmem:[#allocation288_spill] sm:$0xff] }
 0x6ab   :  { %v3068_v26 = vsel %vm3007_vm3, %v3003_v23, %v14903_v25 }
 0x6ac   :  { %3916 = vst.msk [vmem:[#allocation2 + $0x229] sm:$0xff] %vm14_vm0, %v3852_v27  ;;  %v4024_v47 = vld [vmem:[#allocation2 + $0xf1] sm:$0xff]  ;;  %7681 = vmatmul.msk.f32.gmra.mxu2 %vm3406_vm9, %v3390_v2  ;;  %v3133_v45 = vsel %vm3072_vm5, %v3068_v26, %v14904_v5  ;;  %v7840_v5 = vld [vmem:[#allocation2 + $0x320] sm:$0xff] }
 0x6ad   :  { %3895 = vst.msk [vmem:[#allocation2 + $0xf9] sm:$0xff] %vm14_vm0, %v3831_v62  ;;  %4620 = vrot.lane.b32.xlu1 %v4024_v47, %s7888_s12  ;;  %v14905_v27 = vld [vmem:[#allocation345_spill] sm:$0xff]  ;;  %v2807_v62 = vpop.permute.xlu1 %2806 }
 0x6ae   :  { %v3198_v2 = vsel %vm3137_vm7, %v3133_v45, %v14905_v27  ;;  %v14921_v45 = vld [vmem:[#allocation118_spill] sm:$0xff] }
 0x6af   :  { %v3743_v3 = vpop.f32.mrf.mxu2  ;;  %v3680_v15 = vpop.f32.mrf.mxu0  ;;  %v3263_v47 = vsel %vm3202_vm6, %v3198_v2, %v14906_v36  ;;  %v14922_v2 = vld [vmem:[#allocation177_spill] sm:$0xff]  ;;  %v14924_v36 = vld [vmem:[#allocation291_spill] sm:$0xff] }
 0x6b0   :  { %v3744_v63 = vadd.f32 %v10440_v60, %v3743_v3  ;;  %v3681_v34 = vadd.f32 %v10440_v60, %v3680_v15  ;;  %v14896_v60 = vld [vmem:[#allocation232_spill] sm:$0xff]  ;;  %v3328_v61 = vsel %vm3267_vm8, %v3263_v47, %v14907_v32  ;;  %v14909_v15 = vld [vmem:[#allocation167_spill] sm:$0xff] }
 0x6b1   :  { %v3067_v53 = vsel %vm3007_vm3, %v3002_v41, %v14896_v60  ;;  %v3393_v12 = vsel %vm3332_vm10, %v3328_v61, %v2807_v62  ;;  %v7838_v3 = vld [vmem:[#allocation2 + $0x308] sm:$0xff] }
 0x6b2   :  { %v3853_v58 = vmax.f32 %v3744_v63, 0.0  ;;  %v3832_v19 = vmax.f32 %v3681_v34, 0.0  ;;  %v3132_v52 = vsel %vm3072_vm5, %v3067_v53, %v14897_v11  ;;  %v2939_v6 = vsel %vm14_vm0, %v7838_v3, %v14908_v10  ;;  %v14911_v34 = vld [vmem:[#allocation290_spill] sm:$0xff]  ;;  %v14925_v32 = vld [vmem:[#allocation348_spill] sm:$0xff]  ;;  %v14926_v3 = vld [vmem:[#allocation397_spill] sm:$0xff] }
 0x6b3   :  { %v3197_v31 = vsel %vm3137_vm7, %v3132_v52, %v14898_v14  ;;  %v3004_v63 = vsel %vm2942_vm4, %v2939_v6, %v14909_v15  ;;  %v7839_v52 = vld [vmem:[#allocation2 + $0x318] sm:$0xff] }
 0x6b4   :  { %3917 = vst.msk [vmem:[#allocation2 + $0x231] sm:$0xff] %vm14_vm0, %v3853_v58  ;;  %v4025_v39 = vld [vmem:[#allocation2 + $0xf9] sm:$0xff]  ;;  %7682 = vmatmul.msk.f32.gmra.mxu2 %vm3406_vm9, %v3391_v16  ;;  %v3262_v33 = vsel %vm3202_vm6, %v3197_v31, %v14899_v8  ;;  %v3069_v22 = vsel %vm3007_vm3, %v3004_v63, %v14910_v1 }
 0x6b5   :  { %3896 = vst.msk [vmem:[#allocation2 + $0x109] sm:$0xff] %vm14_vm0, %v3832_v19  ;;  %4622 = vrot.lane.b32.xlu2 %v4025_v39, %s7888_s12  ;;  %v3327_v49 = vsel %vm3267_vm8, %v3262_v33, %v14900_v0  ;;  %v3134_v9 = vsel %vm3072_vm5, %v3069_v22, %v14911_v34  ;;  %v14912_v58 = vld [vmem:[#allocation338_spill] sm:$0xff]  ;;  %v2809_v19 = vpop.permute.xlu2 %2808 }
 0x6b6   :  { %v3392_v48 = vsel %vm3332_vm10, %v3327_v49, %v2805_v18  ;;  %v3199_v16 = vsel %vm3137_vm7, %v3134_v9, %v14912_v58  ;;  %v14915_v18 = vld [vmem:[#allocation175_spill] sm:$0xff]  ;;  %v14917_v8 = vld [vmem:[#allocation282_spill] sm:$0xff] }
 0x6b7   :  { %v3746_v7 = vpop.f32.mrf.mxu2  ;;  %v3683_v17 = vpop.f32.mrf.mxu0  ;;  %v3264_v39 = vsel %vm3202_vm6, %v3199_v16, %v14913_v13  ;;  %v14918_v0 = vld [vmem:[#allocation346_spill] sm:$0xff] }
 0x6b8   :  { %v3747_v30 = vadd.f32 %v11135_v44, %v3746_v7  ;;  %v3684_v51 = vadd.f32 %v11135_v44, %v3683_v17  ;;  %v3329_v41 = vsel %vm3267_vm8, %v3264_v39, %v9979_v50  ;;  %v14914_v7 = vld [vmem:[#allocation110_spill] sm:$0xff]  ;;  %v14916_v50 = vld [vmem:[#allocation235_spill] sm:$0xff] }
 0x6b9   :  { %v3394_v53 = vsel %vm3332_vm10, %v3329_v41, %v2809_v19  ;;  %v2940_v14 = vsel %vm14_vm0, %v7839_v52, %v14914_v7 }
 0x6ba   :  { %v3854_v20 = vmax.f32 %v3747_v30, 0.0  ;;  %v3833_v46 = vmax.f32 %v3684_v51, 0.0  ;;  %v3005_v17 = vsel %vm2942_vm4, %v2940_v14, %v14915_v18 }
 0x6bb   :  { %v3070_v30 = vsel %vm3007_vm3, %v3005_v17, %v14916_v50 }
 0x6bc   :  { %3918 = vst.msk [vmem:[#allocation2 + $0x241] sm:$0xff] %vm14_vm0, %v3854_v20  ;;  %v4026_v35 = vld [vmem:[#allocation2 + $0x109] sm:$0xff]  ;;  %7683 = vmatmul.msk.f32.gmra.mxu2 %vm3406_vm9, %v3392_v48  ;;  %v3135_v33 = vsel %vm3072_vm5, %v3070_v30, %v14917_v8  ;;  %v2811_v20 = vpop.permute.xlu0 %2810 }
 0x6bd   :  { %3897 = vst.msk [vmem:[#allocation2 + $0x111] sm:$0xff] %vm14_vm0, %v3833_v46  ;;  %4624 = vrot.lane.b32.xlu0 %v4026_v35, %s7888_s12  ;;  %v3200_v49 = vsel %vm3137_vm7, %v3135_v33, %v14918_v0  ;;  %v14920_v35 = vld [vmem:[#allocation455_spill] sm:$0xff] }
 0x6be   :  { %v3265_v55 = vsel %vm3202_vm6, %v3200_v49, %v14919_v38  ;;  %v4036_v49 = vld [vmem:[#allocation2 + $0x1b1] sm:$0xff] }
 0x6bf   :  { %v3749_v40 = vpop.f32.mrf.mxu2  ;;  %v3686_v28 = vpop.f32.mrf.mxu0  ;;  %v3330_v57 = vsel %vm3267_vm8, %v3265_v55, %v14920_v35 }
 0x6c0   :  { %v3750_v29 = vadd.f32 %v11135_v44, %v3749_v40  ;;  %v3687_v4 = vadd.f32 %v11135_v44, %v3686_v28  ;;  %v3395_v25 = vsel %vm3332_vm10, %v3330_v57, %v2811_v20  ;;  %v2941_v40 = vsel %vm14_vm0, %v7840_v5, %v14921_v45  ;;  %v14923_v28 = vld [vmem:[#allocation227_spill] sm:$0xff]  ;;  %v11256_v5 = vpop.permute.xlu2 %4580 }
 0x6c1   :  { %v3006_v62 = vsel %vm2942_vm4, %v2941_v40, %v14922_v2  ;;  %v4037_v57 = vld [vmem:[#allocation2 + $0x1b9] sm:$0xff] }
 0x6c2   :  { %v3855_v43 = vmax.f32 %v3750_v29, 0.0  ;;  %v3834_v56 = vmax.f32 %v3687_v4, 0.0  ;;  %v3071_v29 = vsel %vm3007_vm3, %v3006_v62, %v14923_v28 }
 0x6c3   :  { %v3136_v47 = vsel %vm3072_vm5, %v3071_v29, %v14924_v36  ;;  %v4040_v29 = vld [vmem:[#allocation2 + $0x1e1] sm:$0xff]  ;;  %v4042_v36 = vld [vmem:[#allocation2 + $0x1f9] sm:$0xff] }
 0x6c4   :  { %3919 = vst.msk [vmem:[#allocation2 + $0x249] sm:$0xff] %vm14_vm0, %v3855_v43  ;;  %v4027_v21 = vld [vmem:[#allocation2 + $0x111] sm:$0xff]  ;;  %7684 = vmatmul.msk.f32.gmra.mxu2 %vm3406_vm9, %v3393_v12  ;;  %v3201_v61 = vsel %vm3137_vm7, %v3136_v47, %v14925_v32  ;;  %v2813_v43 = vpop.permute.xlu1 %2812  ;;  %v4038_v47 = vld [vmem:[#allocation2 + $0x1c9] sm:$0xff] }
 0x6c5   :  { %3898 = vst.msk [vmem:[#allocation2 + $0x121] sm:$0xff] %vm14_vm0, %v3834_v56  ;;  %4626 = vrot.lane.b32.xlu1 %v4027_v21, %s7888_s12  ;;  %v3266_v10 = vsel %vm3202_vm6, %v3201_v61, %v14926_v3  ;;  %v14927_v21 = vld [vmem:[#allocation460_spill] sm:$0xff] }
 0x6c6   :  { %v3331_v15 = vsel %vm3267_vm8, %v3266_v10, %v14927_v21  ;;  %v4041_v3 = vld [vmem:[#allocation2 + $0x1e9] sm:$0xff] }
 0x6c7   :  { %v3752_v54 = vpop.f32.mrf.mxu2  ;;  %v3689_v37 = vpop.f32.mrf.mxu0  ;;  %v3396_v1 = vsel %vm3332_vm10, %v3331_v15, %v2813_v43 }
 0x6c8   :  { %v3753_v24 = vadd.f32 %v11135_v44, %v3752_v54  ;;  %v3690_v42 = vadd.f32 %v11135_v44, %v3689_v37 }
 0x6ca   :  { %v3856_v60 = vmax.f32 %v3753_v24, 0.0  ;;  %v3835_v11 = vmax.f32 %v3690_v42, 0.0 }
 0x6cc   :  { %3920 = vst.msk [vmem:[#allocation2 + $0x259] sm:$0xff] %vm14_vm0, %v3856_v60  ;;  %v4028_v31 = vld [vmem:[#allocation2 + $0x121] sm:$0xff]  ;;  %7685 = vmatmul.msk.f32.gmra.mxu2 %vm3406_vm9, %v3394_v53 }
 0x6cd   :  { %3899 = vst.msk [vmem:[#allocation2 + $0x129] sm:$0xff] %vm14_vm0, %v3835_v11  ;;  %4628 = vrot.lane.b32.xlu2 %v4028_v31, %s7888_s12 }
 0x6cf   :  { %v3755_v51 = vpop.f32.mrf.mxu2  ;;  %v3692_v48 = vpop.f32.mrf.mxu0 }
 0x6d0   :  { %v3756_v46 = vadd.f32 %v11135_v44, %v3755_v51  ;;  %v3693_v59 = vadd.f32 %v11135_v44, %v3692_v48 }
 0x6d2   :  { %v3857_v23 = vmax.f32 %v3756_v46, 0.0  ;;  %v3836_v26 = vmax.f32 %v3693_v59, 0.0 }
 0x6d4   :  { %3921 = vst.msk [vmem:[#allocation2 + $0x261] sm:$0xff] %vm14_vm0, %v3857_v23  ;;  %v4029_v27 = vld [vmem:[#allocation2 + $0x129] sm:$0xff]  ;;  %7686 = vmatmul.msk.f32.gmra.mxu2 %vm3406_vm9, %v3395_v25  ;;  %v4039_v25 = vld [vmem:[#allocation2 + $0x1d1] sm:$0xff] }
 0x6d5   :  { %3900 = vst.msk [vmem:[#allocation2 + $0x139] sm:$0xff] %vm14_vm0, %v3836_v26  ;;  %4630 = vrot.lane.b32.xlu0 %v4029_v27, %s7888_s12 }
 0x6d7   :  { %v3758_v4 = vpop.f32.mrf.mxu2  ;;  %v3695_v12 = vpop.f32.mrf.mxu0 }
 0x6d8   :  { %v3759_v56 = vadd.f32 %v11135_v44, %v3758_v4  ;;  %v3696_v6 = vadd.f32 %v11135_v44, %v3695_v12  ;;  %v11269_v4 = vpop.permute.xlu2 %4586  ;;  %v4043_v12 = vld [vmem:[#allocation2 + $0x201] sm:$0xff] }
 0x6d9   :  { %14928 = vst [vmem:[#allocation289_spill] sm:$0xff] %v11269_v4  ;;  %v4366_v4 = vld [vmem:[#allocation2 + $0x258] sm:$0xff] }
 0x6da   :  { %v3858_v63 = vmax.f32 %v3759_v56, 0.0  ;;  %v3837_v22 = vmax.f32 %v3696_v6, 0.0  ;;  %v4045_v56 = vld [vmem:[#allocation2 + $0x219] sm:$0xff] }
 0x6dc   :  { %3922 = vst.msk [vmem:[#allocation2 + $0x271] sm:$0xff] %vm14_vm0, %v3858_v63  ;;  %v4030_v34 = vld [vmem:[#allocation2 + $0x139] sm:$0xff]  ;;  %7687 = vmatmul.msk.f32.gmra.mxu2 %vm3406_vm9, %v3396_v1  ;;  %v4046_v63 = vld [vmem:[#allocation2 + $0x229] sm:$0xff]  ;;  %v4048_v1 = vld [vmem:[#allocation2 + $0x241] sm:$0xff] }
 0x6dd   :  { %3901 = vst.msk [vmem:[#allocation2 + $0x141] sm:$0xff] %vm14_vm0, %v3837_v22  ;;  %4632 = vrot.lane.b32.xlu1 %v4030_v34, %s7888_s12  ;;  %v4044_v22 = vld [vmem:[#allocation2 + $0x211] sm:$0xff]  ;;  %v11282_v34 = vpop.permute.xlu1 %4584 }
 0x6df   :  { %v3761_v9 = vpop.f32.mrf.mxu2  ;;  %v3698_v54 = vpop.f32.mrf.mxu0 }
 0x6e0   :  { %v3762_v58 = vadd.f32 %v11135_v44, %v3761_v9  ;;  %v3699_v16 = vadd.f32 %v11135_v44, %v3698_v54  ;;  %v11276_v10 = vpop.permute.xlu2 %4592 }
 0x6e1   :  { %14929 = vst [vmem:[#allocation351_spill] sm:$0xff] %v11276_v10  ;;  %v4282_v10 = vld [vmem:[#allocation2 + $0x122] sm:$0xff] }
 0x6e2   :  { %v3859_v19 = vmax.f32 %v3762_v58, 0.0  ;;  %v3838_v37 = vmax.f32 %v3699_v16, 0.0 }
 0x6e4   :  { %3923 = vst.msk [vmem:[#allocation2 + $0x279] sm:$0xff] %vm14_vm0, %v3859_v19  ;;  %v4031_v24 = vld [vmem:[#allocation2 + $0x141] sm:$0xff]  ;;  %v4049_v19 = vld [vmem:[#allocation2 + $0x249] sm:$0xff] }
 0x6e5   :  { %3902 = vst.msk [vmem:[#allocation2 + $0x151] sm:$0xff] %vm14_vm0, %v3838_v37  ;;  %4634 = vrot.lane.b32.xlu2 %v4031_v24, %s7888_s12  ;;  %v4051_v37 = vld [vmem:[#allocation2 + $0x261] sm:$0xff]  ;;  %v4047_v24 = vld [vmem:[#allocation2 + $0x231] sm:$0xff] }
 0x6e7   :  { %v3764_v13 = vpop.f32.mrf.mxu2  ;;  %v3701_v39 = vpop.f32.mrf.mxu0 }
 0x6e8   :  { %v3765_v42 = vadd.f32 %v11135_v44, %v3764_v13  ;;  %v3702_v41 = vadd.f32 %v11135_v44, %v3701_v39  ;;  %v11285_v9 = vpop.permute.xlu2 %4598  ;;  %v11291_v13 = vpop.permute.xlu0 %4582 }
 0x6e9   :  { %14930 = vst [vmem:[#allocation409_spill] sm:$0xff] %v11285_v9  ;;  %v11293_v39 = vpop.permute.xlu1 %4590  ;;  %v4219_v9 = vld [vmem:[#allocation2 + $0x129] sm:$0xff] }
 0x6ea   :  { %v3860_v60 = vmax.f32 %v3765_v42, 0.0  ;;  %v3839_v53 = vmax.f32 %v3702_v41, 0.0  ;;  %14931 = vst [vmem:[#allocation56_spill] sm:$0xff] %v11293_v39  ;;  %v12115_v39 = vld [vmem:[#allocation2 + $0x25a] sm:$0xff] }
 0x6ec   :  { %3924 = vst.msk [vmem:[#allocation2 + $0x289] sm:$0xff] %vm14_vm0, %v3860_v60  ;;  %v4032_v11 = vld [vmem:[#allocation2 + $0x151] sm:$0xff] }
 0x6ed   :  { %3903 = vst.msk [vmem:[#allocation2 + $0x159] sm:$0xff] %vm14_vm0, %v3839_v53  ;;  %4636 = vrot.lane.b32.xlu0 %v4032_v11, %s7888_s12  ;;  %v4052_v11 = vld [vmem:[#allocation2 + $0x271] sm:$0xff] }
 0x6ef   :  { %v3767_v52 = vpop.f32.mrf.mxu2  ;;  %v3704_v7 = vpop.f32.mrf.mxu0 }
 0x6f0   :  { %v3768_v14 = vadd.f32 %v11135_v44, %v3767_v52  ;;  %v3705_v31 = vadd.f32 %v11135_v44, %v3704_v7  ;;  %v11296_v42 = vpop.permute.xlu2 %4604  ;;  %v4050_v7 = vld [vmem:[#allocation2 + $0x259] sm:$0xff] }
 0x6f1   :  { %14932 = vst [vmem:[#allocation122_spill] sm:$0xff] %v11296_v42 }
 0x6f2   :  { %v3861_v18 = vmax.f32 %v3768_v14, 0.0  ;;  %v3840_v17 = vmax.f32 %v3705_v31, 0.0  ;;  %v11302_v14 = vpop.permute.xlu1 %4596 }
 0x6f3   :  { %v4054_v52 = vld [vmem:[#allocation2 + $0x289] sm:$0xff]  ;;  %14933 = vst [vmem:[#allocation183_spill] sm:$0xff] %v11302_v14  ;;  %v4240_v14 = vld [vmem:[#allocation2 + $0x259] sm:$0xff] }
 0x6f4   :  { %3925 = vst.msk [vmem:[#allocation2 + $0x291] sm:$0xff] %vm14_vm0, %v3861_v18  ;;  %v4033_v50 = vld [vmem:[#allocation2 + $0x159] sm:$0xff] }
 0x6f5   :  { %3904 = vst.msk [vmem:[#allocation2 + $0x169] sm:$0xff] %vm14_vm0, %v3840_v17  ;;  %4638 = vrot.lane.b32.xlu1 %v4033_v50, %s7888_s12  ;;  %v11307_v17 = vpop.permute.xlu0 %4588 }
 0x6f6   :  { %14935 = vst [vmem:[#allocation295_spill] sm:$0xff] %v11307_v17 }
 0x6f7   :  { %v3770_v30 = vpop.f32.mrf.mxu2  ;;  %v3707_v8 = vpop.f32.mrf.mxu0 }
 0x6f8   :  { %v3771_v33 = vadd.f32 %v11135_v44, %v3770_v30  ;;  %v3708_v51 = vadd.f32 %v11135_v44, %v3707_v8  ;;  %v11305_v31 = vpop.permute.xlu2 %4610 }
 0x6f9   :  { %14934 = vst [vmem:[#allocation234_spill] sm:$0xff] %v11305_v31  ;;  %v3962_v31 = vld [vmem:[#allocation2 + $0x108] sm:$0xff] }
 0x6fa   :  { %v3862_v0 = vmax.f32 %v3771_v33, 0.0  ;;  %v3841_v20 = vmax.f32 %v3708_v51, 0.0  ;;  %v4053_v51 = vld [vmem:[#allocation2 + $0x279] sm:$0xff] }
 0x6fb   :  { %v4055_v8 = vld [vmem:[#allocation2 + $0x291] sm:$0xff] }
 0x6fc   :  { %3926 = vst.msk [vmem:[#allocation2 + $0x2a1] sm:$0xff] %vm14_vm0, %v3862_v0  ;;  %v4034_v48 = vld [vmem:[#allocation2 + $0x169] sm:$0xff]  ;;  %v11313_v0 = vpop.permute.xlu1 %4602 }
 0x6fd   :  { %3905 = vst.msk [vmem:[#allocation2 + $0x171] sm:$0xff] %vm14_vm0, %v3841_v20  ;;  %4640 = vrot.lane.b32.xlu2 %v4034_v48, %s7888_s12  ;;  %4644 = vrot.lane.b32.xlu1 %v4036_v49, %s7888_s12  ;;  %v11318_v48 = vpop.permute.xlu0 %4594  ;;  %v3991_v42 = vld [vmem:[#allocation2 + $0x290] sm:$0xff] }
 0x6fe   :  { %14936 = vst [vmem:[#allocation353_spill] sm:$0xff] %v11313_v0 }
 0x6ff   :  { %v3773_v46 = vpop.f32.mrf.mxu2  ;;  %v3710_v38 = vpop.f32.mrf.mxu0  ;;  %14938 = vst [vmem:[#allocation67_spill] sm:$0xff] %v11318_v48  ;;  %v4271_v48 = vld [vmem:[#allocation2 + $0x9a] sm:$0xff] }
 0x700   :  { %v3774_v55 = vadd.f32 %v11135_v44, %v3773_v46  ;;  %v3711_v59 = vadd.f32 %v11135_v44, %v3710_v38  ;;  %v11316_v49 = vpop.permute.xlu2 %4616 }
 0x701   :  { %14937 = vst [vmem:[#allocation404_spill] sm:$0xff] %v11316_v49 }
 0x702   :  { %v3863_v35 = vmax.f32 %v3774_v55, 0.0  ;;  %v3842_v23 = vmax.f32 %v3711_v59, 0.0 }
 0x704   :  { %3927 = vst.msk [vmem:[#allocation2 + $0x2a9] sm:$0xff] %vm14_vm0, %v3863_v35  ;;  %v4035_v26 = vld [vmem:[#allocation2 + $0x171] sm:$0xff]  ;;  %v4056_v35 = vld [vmem:[#allocation2 + $0x2a1] sm:$0xff] }
 0x705   :  { %3906 = vst.msk [vmem:[#allocation2 + $0x181] sm:$0xff] %vm14_vm0, %v3842_v23  ;;  %4646 = vrot.lane.b32.xlu2 %v4037_v57, %s7888_s12  ;;  %4650 = vrot.lane.b32.xlu1 %v4039_v25, %s7888_s12  ;;  %v11324_v57 = vpop.permute.xlu1 %4608 }
 0x706   :  { %4642 = vrot.lane.b32.xlu0 %v4035_v26, %s7888_s12  ;;  %14939 = vst [vmem:[#allocation124_spill] sm:$0xff] %v11324_v57  ;;  %v11329_v26 = vpop.permute.xlu0 %4600  ;;  %v3969_v57 = vld [vmem:[#allocation2 + $0x158] sm:$0xff] }
 0x707   :  { %v3776_v45 = vpop.f32.mrf.mxu2  ;;  %v3713_v40 = vpop.f32.mrf.mxu0  ;;  %14941 = vst [vmem:[#allocation239_spill] sm:$0xff] %v11329_v26  ;;  %v4212_v26 = vld [vmem:[#allocation2 + $0xd9] sm:$0xff] }
 0x708   :  { %v3777_v27 = vadd.f32 %v11135_v44, %v3776_v45  ;;  %v3714_v2 = vadd.f32 %v11135_v44, %v3713_v40 }
 0x70a   :  { %v3864_v62 = vmax.f32 %v3777_v27, 0.0  ;;  %v3843_v28 = vmax.f32 %v3714_v2, 0.0 }
 0x70b   :  { %v4057_v33 = vld [vmem:[#allocation2 + $0x2a9] sm:$0xff] }
 0x70c   :  { %3928 = vst.msk [vmem:[#allocation2 + $0x2b9] sm:$0xff] %vm14_vm0, %v3864_v62 }
 0x70d   :  { %3907 = vst.msk [vmem:[#allocation2 + $0x189] sm:$0xff] %vm14_vm0, %v3843_v28  ;;  %4652 = vrot.lane.b32.xlu2 %v4040_v29, %s7888_s12  ;;  %4656 = vrot.lane.b32.xlu1 %v4042_v36, %s7888_s12  ;;  %v11335_v28 = vpop.permute.xlu1 %4614 }
 0x70e   :  { %4648 = vrot.lane.b32.xlu0 %v4038_v47, %s7888_s12  ;;  %14942 = vst [vmem:[#allocation297_spill] sm:$0xff] %v11335_v28  ;;  %v11340_v47 = vpop.permute.xlu0 %4606  ;;  %v4144_v28 = vld [vmem:[#allocation2 + $0xa8] sm:$0xff] }
 0x70f   :  { %v3779_v32 = vpop.f32.mrf.mxu2  ;;  %v11327_v23 = vpop.permute.xlu2 %4622  ;;  %14944 = vst [vmem:[#allocation410_spill] sm:$0xff] %v11340_v47  ;;  %v3987_v47 = vld [vmem:[#allocation2 + $0x260] sm:$0xff] }
 0x710   :  { %v3780_v61 = vadd.f32 %v11135_v44, %v3779_v32  ;;  %14940 = vst [vmem:[#allocation176_spill] sm:$0xff] %v11327_v23 }
 0x712   :  { %v3865_v43 = vmax.f32 %v3780_v61, 0.0 }
 0x713   :  { %v4058_v55 = vld [vmem:[#allocation2 + $0x2b9] sm:$0xff] }
 0x714   :  { %3929 = vst.msk [vmem:[#allocation2 + $0x2c1] sm:$0xff] %vm14_vm0, %v3865_v43 }
 0x715   :  { %4658 = vrot.lane.b32.xlu2 %v4043_v12, %s7888_s12  ;;  %4662 = vrot.lane.b32.xlu1 %v4045_v56, %s7888_s12 }
 0x716   :  { %4654 = vrot.lane.b32.xlu0 %v4041_v3, %s7888_s12 }
 0x717   :  { %v3782_v6 = vpop.f32.mrf.mxu2 }
 0x718   :  { %v3783_v21 = vadd.f32 %v11135_v44, %v3782_v6 }
 0x71a   :  { %v3866_v15 = vmax.f32 %v3783_v21, 0.0  ;;  %v11350_v21 = vpop.permute.xlu0 %4612 }
 0x71b   :  { %v4059_v62 = vld [vmem:[#allocation2 + $0x2c1] sm:$0xff]  ;;  %14947 = vst [vmem:[#allocation119_spill] sm:$0xff] %v11350_v21  ;;  %v3961_v21 = vld [vmem:[#allocation2 + $0xf8] sm:$0xff] }
 0x71c   :  { %3930 = vst.msk [vmem:[#allocation2 + $0x2d1] sm:$0xff] %vm14_vm0, %v3866_v15 }
 0x71d   :  { %4664 = vrot.lane.b32.xlu2 %v4046_v63, %s7888_s12  ;;  %4668 = vrot.lane.b32.xlu1 %v4048_v1, %s7888_s12 }
 0x71e   :  { %4660 = vrot.lane.b32.xlu0 %v4044_v22, %s7888_s12 }
 0x71f   :  { %v3785_v54 = vpop.f32.mrf.mxu2  ;;  %v11345_v56 = vpop.permute.xlu1 %4620 }
 0x720   :  { %v3786_v58 = vadd.f32 %v11135_v44, %v3785_v54  ;;  %14945 = vst [vmem:[#allocation69_spill] sm:$0xff] %v11345_v56 }
 0x722   :  { %v3867_v16 = vmax.f32 %v3786_v58, 0.0 }
 0x723   :  { %v4060_v59 = vld [vmem:[#allocation2 + $0x2d1] sm:$0xff] }
 0x724   :  { %3931 = vst.msk [vmem:[#allocation2 + $0x2d9] sm:$0xff] %vm14_vm0, %v3867_v16  ;;  %v3996_v0 = vld [vmem:[#allocation2 + $0x2d0] sm:$0xff] }
 0x725   :  { %4670 = vrot.lane.b32.xlu2 %v4049_v19, %s7888_s12  ;;  %4674 = vrot.lane.b32.xlu1 %v4051_v37, %s7888_s12  ;;  %v11360_v19 = vpop.permute.xlu0 %4618 }
 0x726   :  { %4666 = vrot.lane.b32.xlu0 %v4047_v24, %s7888_s12  ;;  %14950 = vst [vmem:[#allocation207_spill] sm:$0xff] %v11360_v19  ;;  %v4069_v24 = vld [vmem:[#allocation2 + $0xa] sm:$0xff] }
 0x727   :  { %v3788_v41 = vpop.f32.mrf.mxu2  ;;  %v11338_v29 = vpop.permute.xlu2 %4628 }
 0x728   :  { %v3789_v60 = vadd.f32 %v11135_v44, %v3788_v41  ;;  %14943 = vst [vmem:[#allocation347_spill] sm:$0xff] %v11338_v29  ;;  %v4118_v29 = vld [vmem:[#allocation2 + $0x28a] sm:$0xff] }
 0x72a   :  { %v3868_v53 = vmax.f32 %v3789_v60, 0.0  ;;  %v4068_v60 = vld [vmem:[#allocation2 + $0x2] sm:$0xff] }
 0x72b   :  { %v4061_v27 = vld [vmem:[#allocation2 + $0x2d9] sm:$0xff] }
 0x72c   :  { %3932 = vst.msk [vmem:[#allocation2 + $0x2e9] sm:$0xff] %vm14_vm0, %v3868_v53  ;;  %v4124_v23 = vld [vmem:[#allocation2 + $0x2d2] sm:$0xff]  ;;  %v4125_v56 = vld [vmem:[#allocation2 + $0x2da] sm:$0xff] }
 0x72d   :  { %4676 = vrot.lane.b32.xlu2 %v4052_v11, %s7888_s12  ;;  %4680 = vrot.lane.b32.xlu1 %v4054_v52, %s7888_s12  ;;  %v4315_v17 = vld [vmem:[#allocation2 + $0x2da] sm:$0xff] }
 0x72e   :  { %4672 = vrot.lane.b32.xlu0 %v4050_v7, %s7888_s12 }
 0x72f   :  { %v3791_v18 = vpop.f32.mrf.mxu2  ;;  %v11371_v7 = vpop.permute.xlu0 %4624 }
 0x730   :  { %v3792_v50 = vadd.f32 %v11135_v44, %v3791_v18  ;;  %14952 = vst [vmem:[#allocation252_spill] sm:$0xff] %v11371_v7  ;;  %v4123_v7 = vld [vmem:[#allocation2 + $0x2c2] sm:$0xff] }
 0x732   :  { %v3869_v30 = vmax.f32 %v3792_v50, 0.0 }
 0x733   :  { %v4062_v12 = vld [vmem:[#allocation2 + $0x2e9] sm:$0xff] }
 0x734   :  { %3933 = vst.msk [vmem:[#allocation2 + $0x2f1] sm:$0xff] %vm14_vm0, %v3869_v30 }
 0x735   :  { %4682 = vrot.lane.b32.xlu2 %v4055_v8, %s7888_s12  ;;  %4686 = vrot.lane.b32.xlu1 %v4057_v33, %s7888_s12  ;;  %v4070_v8 = vld [vmem:[#allocation2 + $0x1a] sm:$0xff]  ;;  %v4072_v33 = vld [vmem:[#allocation2 + $0x32] sm:$0xff] }
 0x736   :  { %4678 = vrot.lane.b32.xlu0 %v4053_v51, %s7888_s12  ;;  %v4071_v51 = vld [vmem:[#allocation2 + $0x22] sm:$0xff] }
 0x737   :  { %v3794_v20 = vpop.f32.mrf.mxu2  ;;  %v11355_v54 = vpop.permute.xlu1 %4626 }
 0x738   :  { %v3795_v46 = vadd.f32 %v11135_v44, %v3794_v20  ;;  %14948 = vst [vmem:[#allocation146_spill] sm:$0xff] %v11355_v54  ;;  %v4119_v54 = vld [vmem:[#allocation2 + $0x292] sm:$0xff] }
 0x73a   :  { %v3870_v38 = vmax.f32 %v3795_v46, 0.0 }
 0x73b   :  { %v4063_v2 = vld [vmem:[#allocation2 + $0x2f1] sm:$0xff] }
 0x73c   :  { %3934 = vst.msk [vmem:[#allocation2 + $0x301] sm:$0xff] %vm14_vm0, %v3870_v38 }
 0x73d   :  { %4688 = vrot.lane.b32.xlu2 %v4058_v55, %s7888_s12  ;;  %4692 = vrot.lane.b32.xlu1 %v4060_v59, %s7888_s12  ;;  %v4073_v55 = vld [vmem:[#allocation2 + $0x3a] sm:$0xff]  ;;  %v4074_v59 = vld [vmem:[#allocation2 + $0x4a] sm:$0xff] }
 0x73e   :  { %4684 = vrot.lane.b32.xlu0 %v4056_v35, %s7888_s12 }
 0x73f   :  { %v3797_v25 = vpop.f32.mrf.mxu2  ;;  %v11348_v3 = vpop.permute.xlu2 %4634 }
 0x740   :  { %v3798_v45 = vadd.f32 %v11135_v44, %v3797_v25  ;;  %14946 = vst [vmem:[#allocation80_spill] sm:$0xff] %v11348_v3  ;;  %v4111_v3 = vld [vmem:[#allocation2 + $0x232] sm:$0xff] }
 0x742   :  { %v3871_v40 = vmax.f32 %v3798_v45, 0.0 }
 0x743   :  { %v4064_v43 = vld [vmem:[#allocation2 + $0x301] sm:$0xff] }
 0x744   :  { %3935 = vst.msk [vmem:[#allocation2 + $0x309] sm:$0xff] %vm14_vm0, %v3871_v40  ;;  %v4076_v40 = vld [vmem:[#allocation2 + $0x62] sm:$0xff] }
 0x745   :  { %4694 = vrot.lane.b32.xlu2 %v4061_v27, %s7888_s12  ;;  %4698 = vrot.lane.b32.xlu1 %v4063_v2, %s7888_s12  ;;  %v4078_v27 = vld [vmem:[#allocation2 + $0x7a] sm:$0xff]  ;;  %v4077_v2 = vld [vmem:[#allocation2 + $0x6a] sm:$0xff] }
 0x746   :  { %4690 = vrot.lane.b32.xlu0 %v4059_v62, %s7888_s12 }
 0x747   :  { %v3800_v36 = vpop.f32.mrf.mxu2  ;;  %v11382_v38 = vpop.permute.xlu0 %4630 }
 0x748   :  { %v3801_v32 = vadd.f32 %v11135_v44, %v3800_v36  ;;  %14955 = vst [vmem:[#allocation354_spill] sm:$0xff] %v11382_v38  ;;  %v4117_v38 = vld [vmem:[#allocation2 + $0x27a] sm:$0xff] }
 0x74a   :  { %v3872_v61 = vmax.f32 %v3801_v32, 0.0 }
 0x74b   :  { %v4065_v22 = vld [vmem:[#allocation2 + $0x309] sm:$0xff] }
 0x74c   :  { %3936 = vst.msk [vmem:[#allocation2 + $0x319] sm:$0xff] %vm14_vm0, %v3872_v61  ;;  %v4079_v61 = vld [vmem:[#allocation2 + $0x82] sm:$0xff] }
 0x74d   :  { %4700 = vrot.lane.b32.xlu2 %v4064_v43, %s7888_s12  ;;  %v4081_v43 = vld [vmem:[#allocation2 + $0x9a] sm:$0xff]  ;;  %v4128_v19 = vld [vmem:[#allocation2 + $0x302] sm:$0xff] }
 0x74e   :  { %4696 = vrot.lane.b32.xlu0 %v4062_v12, %s7888_s12  ;;  %v4080_v12 = vld [vmem:[#allocation2 + $0x92] sm:$0xff] }
 0x74f   :  { %v3803_v6 = vpop.f32.mrf.mxu2  ;;  %v11367_v11 = vpop.permute.xlu1 %4632 }
 0x750   :  { %v3804_v15 = vadd.f32 %v11135_v44, %v3803_v6  ;;  %14951 = vst [vmem:[#allocation241_spill] sm:$0xff] %v11367_v11  ;;  %v4112_v11 = vld [vmem:[#allocation2 + $0x242] sm:$0xff] }
 0x752   :  { %v3873_v63 = vmax.f32 %v3804_v15, 0.0 }
 0x753   :  { %v4066_v1 = vld [vmem:[#allocation2 + $0x319] sm:$0xff] }
 0x754   :  { %3937 = vst.msk [vmem:[#allocation2 + $0x321] sm:$0xff] %vm14_vm0, %v3873_v63  ;;  %4704 = vrot.lane.b32.xlu1 %v4066_v1, %s7888_s12  ;;  %v4082_v1 = vld [vmem:[#allocation2 + $0xaa] sm:$0xff] }
 0x756   :  { %4702 = vrot.lane.b32.xlu0 %v4065_v22, %s7888_s12  ;;  %v4084_v22 = vld [vmem:[#allocation2 + $0xc2] sm:$0xff] }
 0x757   :  { %v11358_v58 = vpop.permute.xlu2 %4640  ;;  %v3806_v16 = vpop.f32.mrf.mxu2 }
 0x758   :  { %14949 = vst [vmem:[#allocation184_spill] sm:$0xff] %v11358_v58  ;;  %v3807_v37 = vadd.f32 %v11135_v44, %v3806_v16  ;;  %v4083_v16 = vld [vmem:[#allocation2 + $0xb2] sm:$0xff]  ;;  %v4105_v58 = vld [vmem:[#allocation2 + $0x1ea] sm:$0xff] }
 0x75a   :  { %v3874_v41 = vmax.f32 %v3807_v37, 0.0 }
 0x75b   :  { %v4067_v53 = vld [vmem:[#allocation2 + $0x321] sm:$0xff] }
 0x75c   :  { %3938 = vst.msk [vmem:[#allocation2 + $0x331] sm:$0xff] %vm14_vm0, %v3874_v41  ;;  %4706 = vrot.lane.b32.xlu2 %v4067_v53, %s7888_s12  ;;  %4838 = vrot.lane.b32.xlu1 %v4069_v24, %s7889_s29  ;;  %v4087_v53 = vld [vmem:[#allocation2 + $0xe2] sm:$0xff] }
 0x75d   :  { %v4131_v49 = vld [vmem:[#allocation2 + $0x322] sm:$0xff] }
 0x75e   :  { %4836 = vrot.lane.b32.xlu0 %v4068_v60, %s7889_s29  ;;  %v4085_v60 = vld [vmem:[#allocation2 + $0xca] sm:$0xff] }
 0x75f   :  { %v11369_v52 = vpop.permute.xlu2 %4646  ;;  %v3809_v18 = vpop.f32.mrf.mxu2 }
 0x760   :  { %v3810_v50 = vadd.f32 %v11135_v44, %v3809_v18  ;;  %v4075_v44 = vld [vmem:[#allocation2 + $0x52] sm:$0xff]  ;;  %v11391_v45 = vpop.permute.xlu0 %4636  ;;  %v4086_v18 = vld [vmem:[#allocation2 + $0xda] sm:$0xff] }
 0x761   :  { %14957 = vst [vmem:[#allocation412_spill] sm:$0xff] %v11391_v45  ;;  %v4108_v45 = vld [vmem:[#allocation2 + $0x212] sm:$0xff] }
 0x762   :  { %v3875_v30 = vmax.f32 %v3810_v50, 0.0 }
 0x764   :  { %4840 = vrot.lane.b32.xlu2 %v4070_v8, %s7889_s29  ;;  %4844 = vrot.lane.b32.xlu1 %v4072_v33, %s7889_s29  ;;  %3939 = vst.msk [vmem:[#allocation2 + $0x339] sm:$0xff] %vm14_vm0, %v3875_v30  ;;  %v4088_v33 = vld [vmem:[#allocation2 + $0xf2] sm:$0xff] }
 0x766   :  { %4842 = vrot.lane.b32.xlu0 %v4071_v51, %s7889_s29  ;;  %v4090_v51 = vld [vmem:[#allocation2 + $0x10a] sm:$0xff] }
 0x767   :  { %v11378_v20 = vpop.permute.xlu2 %4652  ;;  %v11380_v46 = vpop.permute.xlu1 %4638 }
 0x768   :  { %14953 = vst [vmem:[#allocation292_spill] sm:$0xff] %v11378_v20 }
 0x769   :  { %14954 = vst [vmem:[#allocation319_spill] sm:$0xff] %v11380_v46 }
 0x76c   :  { %4846 = vrot.lane.b32.xlu2 %v4073_v55, %s7889_s29  ;;  %4850 = vrot.lane.b32.xlu1 %v4075_v44, %s7889_s29  ;;  %v4089_v55 = vld [vmem:[#allocation2 + $0xfa] sm:$0xff] }
 0x76e   :  { %4848 = vrot.lane.b32.xlu0 %v4074_v59, %s7889_s29 }
 0x76f   :  { %v11387_v35 = vpop.permute.xlu2 %4658  ;;  %v11389_v25 = vpop.permute.xlu1 %4644 }
 0x770   :  { %14956 = vst [vmem:[#allocation377_spill] sm:$0xff] %v11387_v35 }
 0x774   :  { %4852 = vrot.lane.b32.xlu2 %v4076_v40, %s7889_s29  ;;  %4856 = vrot.lane.b32.xlu1 %v4078_v27, %s7889_s29  ;;  %v4091_v27 = vld [vmem:[#allocation2 + $0x112] sm:$0xff] }
 0x776   :  { %4854 = vrot.lane.b32.xlu0 %v4077_v2, %s7889_s29  ;;  %v4093_v2 = vld [vmem:[#allocation2 + $0x12a] sm:$0xff] }
 0x777   :  { %v11396_v62 = vpop.permute.xlu2 %4664  ;;  %v11398_v36 = vpop.permute.xlu1 %4650 }
 0x778   :  { %14958 = vst [vmem:[#allocation423_spill] sm:$0xff] %v11396_v62  ;;  %v11400_v32 = vpop.permute.xlu0 %4642  ;;  %v4213_v62 = vld [vmem:[#allocation2 + $0xe1] sm:$0xff] }
 0x779   :  { %14959 = vst [vmem:[#allocation60_spill] sm:$0xff] %v11400_v32  ;;  %v4103_v32 = vld [vmem:[#allocation2 + $0x1d2] sm:$0xff] }
 0x77c   :  { %4858 = vrot.lane.b32.xlu2 %v4079_v61, %s7889_s29  ;;  %4862 = vrot.lane.b32.xlu1 %v4081_v43, %s7889_s29  ;;  %v4092_v61 = vld [vmem:[#allocation2 + $0x122] sm:$0xff] }
 0x77e   :  { %4860 = vrot.lane.b32.xlu0 %v4080_v12, %s7889_s29 }
 0x77f   :  { %v11405_v6 = vpop.permute.xlu2 %4670  ;;  %v11407_v15 = vpop.permute.xlu1 %4656 }
 0x780   :  { %14960 = vst [vmem:[#allocation91_spill] sm:$0xff] %v11405_v6  ;;  %v11409_v63 = vpop.permute.xlu0 %4648  ;;  %v3984_v6 = vld [vmem:[#allocation2 + $0x240] sm:$0xff] }
 0x781   :  { %14961 = vst [vmem:[#allocation125_spill] sm:$0xff] %v11407_v15  ;;  %v12117_v15 = vld [vmem:[#allocation2 + $0x272] sm:$0xff] }
 0x784   :  { %4864 = vrot.lane.b32.xlu2 %v4082_v1, %s7889_s29  ;;  %4868 = vrot.lane.b32.xlu1 %v4084_v22, %s7889_s29  ;;  %v4094_v1 = vld [vmem:[#allocation2 + $0x13a] sm:$0xff]  ;;  %v4096_v22 = vld [vmem:[#allocation2 + $0x152] sm:$0xff] }
 0x786   :  { %4866 = vrot.lane.b32.xlu0 %v4083_v16, %s7889_s29 }
 0x787   :  { %v11414_v37 = vpop.permute.xlu2 %4676  ;;  %v11416_v24 = vpop.permute.xlu1 %4662 }
 0x788   :  { %14962 = vst [vmem:[#allocation148_spill] sm:$0xff] %v11414_v37  ;;  %v11418_v41 = vpop.permute.xlu0 %4654  ;;  %v3959_v37 = vld [vmem:[#allocation2 + $0xe0] sm:$0xff] }
 0x789   :  { %14963 = vst [vmem:[#allocation186_spill] sm:$0xff] %v11416_v24  ;;  %v4243_v24 = vld [vmem:[#allocation2 + $0x279] sm:$0xff] }
 0x78a   :  { %14964 = vst [vmem:[#allocation197_spill] sm:$0xff] %v11418_v41  ;;  %v12133_v41 = vld [vmem:[#allocation2 + $0x27a] sm:$0xff] }
 0x78b   :  { %15161 = vst [vmem:[#allocation256_spill] sm:$0xff] %v12133_v41 }
 0x78c   :  { %4870 = vrot.lane.b32.xlu2 %v4085_v60, %s7889_s29  ;;  %4874 = vrot.lane.b32.xlu1 %v4087_v53, %s7889_s29  ;;  %v4095_v60 = vld [vmem:[#allocation2 + $0x142] sm:$0xff] }
 0x78e   :  { %4872 = vrot.lane.b32.xlu0 %v4086_v18, %s7889_s29 }
 0x78f   :  { %v11423_v50 = vpop.permute.xlu1 %4668  ;;  %v11425_v30 = vpop.permute.xlu2 %4682 }
 0x790   :  { %14965 = vst [vmem:[#allocation236_spill] sm:$0xff] %v11423_v50  ;;  %v11427_v8 = vpop.permute.xlu0 %4660  ;;  %v3995_v50 = vld [vmem:[#allocation2 + $0x2c0] sm:$0xff] }
 0x791   :  { %14966 = vst [vmem:[#allocation263_spill] sm:$0xff] %v11425_v30  ;;  %v4132_v30 = vld [vmem:[#allocation2 + $0x18] sm:$0xff] }
 0x792   :  { %14967 = vst [vmem:[#allocation298_spill] sm:$0xff] %v11427_v8  ;;  %v4248_v8 = vld [vmem:[#allocation2 + $0x2b9] sm:$0xff] }
 0x794   :  { %4876 = vrot.lane.b32.xlu2 %v4088_v33, %s7889_s29  ;;  %4880 = vrot.lane.b32.xlu1 %v4090_v51, %s7889_s29  ;;  %v4097_v33 = vld [vmem:[#allocation2 + $0x15a] sm:$0xff]  ;;  %v4099_v51 = vld [vmem:[#allocation2 + $0x172] sm:$0xff] }
 0x796   :  { %4878 = vrot.lane.b32.xlu0 %v4089_v55, %s7889_s29  ;;  %v4098_v55 = vld [vmem:[#allocation2 + $0x16a] sm:$0xff] }
 0x797   :  { %v11432_v44 = vpop.permute.xlu1 %4674  ;;  %v11436_v40 = vpop.permute.xlu2 %4688 }
 0x798   :  { %14968 = vst [vmem:[#allocation321_spill] sm:$0xff] %v11432_v44  ;;  %v11434_v59 = vpop.permute.xlu0 %4666  ;;  %v3965_v44 = vld [vmem:[#allocation2 + $0x128] sm:$0xff] }
 0x799   :  { %14969 = vst [vmem:[#allocation356_spill] sm:$0xff] %v11434_v59  ;;  %v3998_v59 = vld [vmem:[#allocation2 + $0x2e8] sm:$0xff] }
 0x79a   :  { %14970 = vst [vmem:[#allocation367_spill] sm:$0xff] %v11436_v40  ;;  %v4122_v40 = vld [vmem:[#allocation2 + $0x2ba] sm:$0xff] }
 0x79c   :  { %4882 = vrot.lane.b32.xlu2 %v4091_v27, %s7889_s29  ;;  %4886 = vrot.lane.b32.xlu1 %v4093_v2, %s7889_s29 }
 0x79e   :  { %4884 = vrot.lane.b32.xlu0 %v4092_v61, %s7889_s29  ;;  %v4100_v61 = vld [vmem:[#allocation2 + $0x1b2] sm:$0xff] }
 0x79f   :  { %v11441_v43 = vpop.permute.xlu1 %4680  ;;  %v11445_v16 = vpop.permute.xlu2 %4694 }
 0x7a0   :  { %14971 = vst [vmem:[#allocation406_spill] sm:$0xff] %v11441_v43  ;;  %v11443_v12 = vpop.permute.xlu0 %4672  ;;  %v4141_v43 = vld [vmem:[#allocation2 + $0x80] sm:$0xff] }
 0x7a1   :  { %14972 = vst [vmem:[#allocation434_spill] sm:$0xff] %v11443_v12  ;;  %v3968_v12 = vld [vmem:[#allocation2 + $0x150] sm:$0xff] }
 0x7a2   :  { %14973 = vst [vmem:[#allocation70_spill] sm:$0xff] %v11445_v16  ;;  %v4116_v16 = vld [vmem:[#allocation2 + $0x272] sm:$0xff] }
 0x7a4   :  { %4888 = vrot.lane.b32.xlu2 %v4094_v1, %s7889_s29  ;;  %4892 = vrot.lane.b32.xlu1 %v4096_v22, %s7889_s29  ;;  %v4101_v1 = vld [vmem:[#allocation2 + $0x1ba] sm:$0xff]  ;;  %v4102_v22 = vld [vmem:[#allocation2 + $0x1ca] sm:$0xff] }
 0x7a6   :  { %4890 = vrot.lane.b32.xlu0 %v4095_v60, %s7889_s29 }
 0x7a7   :  { %v11452_v18 = vpop.permute.xlu1 %4686  ;;  %v11456_v27 = vpop.permute.xlu2 %4700 }
 0x7a8   :  { %v11450_v53 = vpop.permute.xlu0 %4678  ;;  %14975 = vst [vmem:[#allocation127_spill] sm:$0xff] %v11452_v18  ;;  %v4126_v18 = vld [vmem:[#allocation2 + $0x2ea] sm:$0xff] }
 0x7a9   :  { %14974 = vst [vmem:[#allocation93_spill] sm:$0xff] %v11450_v53  ;;  %v4145_v53 = vld [vmem:[#allocation2 + $0xb0] sm:$0xff] }
 0x7aa   :  { %14976 = vst [vmem:[#allocation138_spill] sm:$0xff] %v11456_v27 }
 0x7ac   :  { %4894 = vrot.lane.b32.xlu2 %v4097_v33, %s7889_s29  ;;  %4898 = vrot.lane.b32.xlu1 %v4099_v51, %s7889_s29 }
 0x7ae   :  { %4896 = vrot.lane.b32.xlu0 %v4098_v55, %s7889_s29  ;;  %v4104_v55 = vld [vmem:[#allocation2 + $0x1e2] sm:$0xff] }
 0x7af   :  { %v11461_v60 = vpop.permute.xlu1 %4692 }
 0x7b0   :  { %v11459_v2 = vpop.permute.xlu0 %4684  ;;  %14978 = vst [vmem:[#allocation208_spill] sm:$0xff] %v11461_v60  ;;  %v4120_v60 = vld [vmem:[#allocation2 + $0x2a2] sm:$0xff] }
 0x7b1   :  { %14977 = vst [vmem:[#allocation178_spill] sm:$0xff] %v11459_v2  ;;  %v4129_v2 = vld [vmem:[#allocation2 + $0x30a] sm:$0xff] }
 0x7b4   :  { %4900 = vrot.lane.b32.xlu2 %v4100_v61, %s7889_s29  ;;  %4904 = vrot.lane.b32.xlu1 %v4102_v22, %s7889_s29 }
 0x7b6   :  { %4902 = vrot.lane.b32.xlu0 %v4101_v1, %s7889_s29  ;;  %v11466_v33 = vpop.permute.xlu2 %4706  ;;  %v4106_v1 = vld [vmem:[#allocation2 + $0x1fa] sm:$0xff] }
 0x7b7   :  { %14979 = vst [vmem:[#allocation242_spill] sm:$0xff] %v11466_v33  ;;  %v11472_v46 = vpop.permute.xlu1 %4698  ;;  %v4107_v33 = vld [vmem:[#allocation2 + $0x202] sm:$0xff] }
 0x7b8   :  { %v11468_v51 = vpop.permute.xlu0 %4690  ;;  %14981 = vst [vmem:[#allocation300_spill] sm:$0xff] %v11472_v46  ;;  %v4110_v46 = vld [vmem:[#allocation2 + $0x22a] sm:$0xff] }
 0x7b9   :  { %14980 = vst [vmem:[#allocation265_spill] sm:$0xff] %v11468_v51  ;;  %v4121_v51 = vld [vmem:[#allocation2 + $0x2aa] sm:$0xff] }
 0x7bc   :  { %4906 = vrot.lane.b32.xlu2 %v4103_v32, %s7889_s29  ;;  %4910 = vrot.lane.b32.xlu1 %v4105_v58, %s7889_s29 }
 0x7be   :  { %4908 = vrot.lane.b32.xlu0 %v4104_v55, %s7889_s29  ;;  %v11475_v61 = vpop.permute.xlu2 %4840  ;;  %v4109_v55 = vld [vmem:[#allocation2 + $0x21a] sm:$0xff] }
 0x7c0   :  { %v11477_v22 = vpop.permute.xlu0 %4696 }
 0x7c1   :  { %14982 = vst [vmem:[#allocation311_spill] sm:$0xff] %v11477_v22  ;;  %v4114_v22 = vld [vmem:[#allocation2 + $0x25a] sm:$0xff] }
 0x7c4   :  { %4912 = vrot.lane.b32.xlu2 %v4106_v1, %s7889_s29  ;;  %4916 = vrot.lane.b32.xlu1 %v4108_v45, %s7889_s29 }
 0x7c6   :  { %4914 = vrot.lane.b32.xlu0 %v4107_v33, %s7889_s29  ;;  %v11482_v32 = vpop.permute.xlu2 %4846  ;;  %v11484_v58 = vpop.permute.xlu1 %4704 }
 0x7c7   :  { %14983 = vst [vmem:[#allocation349_spill] sm:$0xff] %v11482_v32  ;;  %v12099_v32 = vld [vmem:[#allocation2 + $0x24a] sm:$0xff] }
 0x7c8   :  { %14984 = vst [vmem:[#allocation378_spill] sm:$0xff] %v11484_v58  ;;  %v11486_v27 = vpop.permute.xlu0 %4702  ;;  %v4113_v58 = vld [vmem:[#allocation2 + $0x24a] sm:$0xff] }
 0x7c9   :  { %14985 = vst [vmem:[#allocation413_spill] sm:$0xff] %v11486_v27  ;;  %v4115_v27 = vld [vmem:[#allocation2 + $0x262] sm:$0xff] }
 0x7cc   :  { %4918 = vrot.lane.b32.xlu2 %v4109_v55, %s7889_s29  ;;  %4922 = vrot.lane.b32.xlu1 %v4111_v3, %s7889_s29 }
 0x7ce   :  { %4920 = vrot.lane.b32.xlu0 %v4110_v46, %s7889_s29  ;;  %v11491_v1 = vpop.permute.xlu2 %4852  ;;  %v11493_v45 = vpop.permute.xlu1 %4838 }
 0x7cf   :  { %14986 = vst [vmem:[#allocation436_spill] sm:$0xff] %v11491_v1  ;;  %v4222_v1 = vld [vmem:[#allocation2 + $0x151] sm:$0xff] }
 0x7d0   :  { %v11495_v33 = vpop.permute.xlu0 %4836 }
 0x7d4   :  { %4924 = vrot.lane.b32.xlu2 %v4112_v11, %s7889_s29  ;;  %4928 = vrot.lane.b32.xlu1 %v4114_v22, %s7889_s29 }
 0x7d6   :  { %4926 = vrot.lane.b32.xlu0 %v4113_v58, %s7889_s29  ;;  %v11500_v55 = vpop.permute.xlu2 %4858  ;;  %v11502_v3 = vpop.permute.xlu1 %4844 }
 0x7d7   :  { %14987 = vst [vmem:[#allocation72_spill] sm:$0xff] %v11500_v55  ;;  %v3993_v55 = vld [vmem:[#allocation2 + $0x2a8] sm:$0xff] }
 0x7d8   :  { %14988 = vst [vmem:[#allocation83_spill] sm:$0xff] %v11502_v3  ;;  %v11504_v46 = vpop.permute.xlu0 %4842  ;;  %v4311_v3 = vld [vmem:[#allocation2 + $0x2aa] sm:$0xff] }
 0x7d9   :  { %14989 = vst [vmem:[#allocation120_spill] sm:$0xff] %v11504_v46  ;;  %v4345_v46 = vld [vmem:[#allocation2 + $0x128] sm:$0xff] }
 0x7dc   :  { %4930 = vrot.lane.b32.xlu2 %v4115_v27, %s7889_s29  ;;  %4934 = vrot.lane.b32.xlu1 %v4117_v38, %s7889_s29 }
 0x7de   :  { %4932 = vrot.lane.b32.xlu0 %v4116_v16, %s7889_s29  ;;  %v11509_v11 = vpop.permute.xlu2 %4864  ;;  %v11511_v22 = vpop.permute.xlu1 %4850 }
 0x7df   :  { %14990 = vst [vmem:[#allocation149_spill] sm:$0xff] %v11509_v11  ;;  %v3966_v11 = vld [vmem:[#allocation2 + $0x138] sm:$0xff] }
 0x7e0   :  { %14991 = vst [vmem:[#allocation187_spill] sm:$0xff] %v11511_v22  ;;  %v11513_v58 = vpop.permute.xlu0 %4848  ;;  %v4270_v22 = vld [vmem:[#allocation2 + $0x92] sm:$0xff] }
 0x7e1   :  { %14992 = vst [vmem:[#allocation210_spill] sm:$0xff] %v11513_v58  ;;  %v4278_v58 = vld [vmem:[#allocation2 + $0xf2] sm:$0xff] }
 0x7e4   :  { %4936 = vrot.lane.b32.xlu2 %v4118_v29, %s7889_s29  ;;  %4940 = vrot.lane.b32.xlu1 %v4120_v60, %s7889_s29 }
 0x7e6   :  { %4938 = vrot.lane.b32.xlu0 %v4119_v54, %s7889_s29  ;;  %v11518_v27 = vpop.permute.xlu2 %4870  ;;  %v11520_v38 = vpop.permute.xlu1 %4856 }
 0x7e7   :  { %14993 = vst [vmem:[#allocation244_spill] sm:$0xff] %v11518_v27  ;;  %v4135_v27 = vld [vmem:[#allocation2 + $0x38] sm:$0xff] }
 0x7e8   :  { %14994 = vst [vmem:[#allocation255_spill] sm:$0xff] %v11520_v38  ;;  %v11522_v16 = vpop.permute.xlu0 %4854  ;;  %v4210_v38 = vld [vmem:[#allocation2 + $0xc1] sm:$0xff] }
 0x7e9   :  { %14995 = vst [vmem:[#allocation293_spill] sm:$0xff] %v11522_v16  ;;  %v4215_v16 = vld [vmem:[#allocation2 + $0xf9] sm:$0xff] }
 0x7ec   :  { %4942 = vrot.lane.b32.xlu2 %v4121_v51, %s7889_s29  ;;  %4946 = vrot.lane.b32.xlu1 %v4123_v7, %s7889_s29 }
 0x7ee   :  { %4944 = vrot.lane.b32.xlu0 %v4122_v40, %s7889_s29  ;;  %v11527_v29 = vpop.permute.xlu2 %4876  ;;  %v11529_v60 = vpop.permute.xlu1 %4862 }
 0x7ef   :  { %14996 = vst [vmem:[#allocation322_spill] sm:$0xff] %v11527_v29  ;;  %v4127_v29 = vld [vmem:[#allocation2 + $0x2f2] sm:$0xff] }
 0x7f0   :  { %14997 = vst [vmem:[#allocation357_spill] sm:$0xff] %v11529_v60  ;;  %v11531_v54 = vpop.permute.xlu0 %4860  ;;  %v4162_v60 = vld [vmem:[#allocation2 + $0x180] sm:$0xff] }
 0x7f1   :  { %14998 = vst [vmem:[#allocation380_spill] sm:$0xff] %v11531_v54  ;;  %v3990_v54 = vld [vmem:[#allocation2 + $0x288] sm:$0xff] }
 0x7f4   :  { %4948 = vrot.lane.b32.xlu2 %v4124_v23, %s7889_s29  ;;  %4952 = vrot.lane.b32.xlu1 %v4126_v18, %s7889_s29 }
 0x7f6   :  { %4950 = vrot.lane.b32.xlu0 %v4125_v56, %s7889_s29  ;;  %v11536_v51 = vpop.permute.xlu2 %4882  ;;  %v11538_v7 = vpop.permute.xlu1 %4868 }
 0x7f7   :  { %14999 = vst [vmem:[#allocation415_spill] sm:$0xff] %v11536_v51  ;;  %v4130_v51 = vld [vmem:[#allocation2 + $0x31a] sm:$0xff] }
 0x7f8   :  { %15000 = vst [vmem:[#allocation426_spill] sm:$0xff] %v11538_v7  ;;  %v11540_v40 = vpop.permute.xlu0 %4866  ;;  %v4148_v7 = vld [vmem:[#allocation2 + $0xd8] sm:$0xff] }
 0x7f9   :  { %15001 = vst [vmem:[#allocation64_spill] sm:$0xff] %v11540_v40  ;;  %v3963_v40 = vld [vmem:[#allocation2 + $0x110] sm:$0xff] }
 0x7fc   :  { %4954 = vrot.lane.b32.xlu2 %v4127_v29, %s7889_s29  ;;  %4958 = vrot.lane.b32.xlu1 %v4129_v2, %s7889_s29 }
 0x7fe   :  { %4956 = vrot.lane.b32.xlu0 %v4128_v19, %s7889_s29  ;;  %v11545_v23 = vpop.permute.xlu2 %4888  ;;  %v11547_v18 = vpop.permute.xlu1 %4874 }
 0x7ff   :  { %15002 = vst [vmem:[#allocation94_spill] sm:$0xff] %v11545_v23  ;;  %v4133_v23 = vld [vmem:[#allocation2 + $0x20] sm:$0xff] }
 0x800   :  { %15003 = vst [vmem:[#allocation128_spill] sm:$0xff] %v11547_v18  ;;  %v11549_v56 = vpop.permute.xlu0 %4872  ;;  %v4134_v18 = vld [vmem:[#allocation2 + $0x30] sm:$0xff] }
 0x801   :  { %15004 = vst [vmem:[#allocation152_spill] sm:$0xff] %v11549_v56  ;;  %v4138_v56 = vld [vmem:[#allocation2 + $0x60] sm:$0xff] }
 0x804   :  { %4960 = vrot.lane.b32.xlu2 %v4130_v51, %s7889_s29  ;;  %5092 = vrot.lane.b32.xlu1 %v4132_v30, %s7890_s30 }
 0x806   :  { %4962 = vrot.lane.b32.xlu0 %v4131_v49, %s7889_s29  ;;  %v11554_v29 = vpop.permute.xlu2 %4894  ;;  %v11556_v2 = vpop.permute.xlu1 %4880 }
 0x807   :  { %15005 = vst [vmem:[#allocation189_spill] sm:$0xff] %v11554_v29  ;;  %v4136_v29 = vld [vmem:[#allocation2 + $0x48] sm:$0xff] }
 0x808   :  { %15006 = vst [vmem:[#allocation200_spill] sm:$0xff] %v11556_v2  ;;  %v11558_v19 = vpop.permute.xlu0 %4878  ;;  %v4137_v2 = vld [vmem:[#allocation2 + $0x50] sm:$0xff] }
 0x809   :  { %15007 = vst [vmem:[#allocation237_spill] sm:$0xff] %v11558_v19  ;;  %v4139_v19 = vld [vmem:[#allocation2 + $0x68] sm:$0xff] }
 0x80c   :  { %5094 = vrot.lane.b32.xlu2 %v4133_v23, %s7890_s30  ;;  %5098 = vrot.lane.b32.xlu1 %v4135_v27, %s7890_s30 }
 0x80e   :  { %5096 = vrot.lane.b32.xlu0 %v4134_v18, %s7890_s30  ;;  %v11563_v51 = vpop.permute.xlu2 %4900  ;;  %v11565_v30 = vpop.permute.xlu1 %4886 }
 0x80f   :  { %15008 = vst [vmem:[#allocation266_spill] sm:$0xff] %v11565_v30  ;;  %v4140_v30 = vld [vmem:[#allocation2 + $0x78] sm:$0xff] }
 0x810   :  { %v11567_v49 = vpop.permute.xlu0 %4884 }
 0x811   :  { %15009 = vst [vmem:[#allocation301_spill] sm:$0xff] %v11567_v49  ;;  %v4142_v49 = vld [vmem:[#allocation2 + $0x90] sm:$0xff] }
 0x814   :  { %5100 = vrot.lane.b32.xlu2 %v4136_v29, %s7890_s30  ;;  %5104 = vrot.lane.b32.xlu1 %v4138_v56, %s7890_s30 }
 0x816   :  { %5102 = vrot.lane.b32.xlu0 %v4137_v2, %s7890_s30  ;;  %v11572_v23 = vpop.permute.xlu2 %4906  ;;  %v11574_v27 = vpop.permute.xlu1 %4892 }
 0x817   :  { %15010 = vst [vmem:[#allocation324_spill] sm:$0xff] %v11574_v27  ;;  %v4143_v27 = vld [vmem:[#allocation2 + $0x98] sm:$0xff] }
 0x818   :  { %v11576_v18 = vpop.permute.xlu0 %4890 }
 0x819   :  { %15011 = vst [vmem:[#allocation359_spill] sm:$0xff] %v11576_v18  ;;  %v3957_v18 = vld [vmem:[#allocation2 + $0xc8] sm:$0xff] }
 0x81c   :  { %5106 = vrot.lane.b32.xlu2 %v4139_v19, %s7890_s30  ;;  %5110 = vrot.lane.b32.xlu1 %v4141_v43, %s7890_s30 }
 0x81e   :  { %5108 = vrot.lane.b32.xlu0 %v4140_v30, %s7890_s30  ;;  %v11581_v29 = vpop.permute.xlu2 %4912  ;;  %v11583_v56 = vpop.permute.xlu1 %4898 }
 0x81f   :  { %15012 = vst [vmem:[#allocation370_spill] sm:$0xff] %v11581_v29  ;;  %v12105_v29 = vld [vmem:[#allocation2 + $0x242] sm:$0xff] }
 0x820   :  { %15013 = vst [vmem:[#allocation407_spill] sm:$0xff] %v11583_v56  ;;  %v11585_v2 = vpop.permute.xlu0 %4896  ;;  %v3956_v56 = vld [vmem:[#allocation2 + $0xc0] sm:$0xff] }
 0x821   :  { %15014 = vst [vmem:[#allocation437_spill] sm:$0xff] %v11585_v2  ;;  %v3960_v2 = vld [vmem:[#allocation2 + $0xf0] sm:$0xff] }
 0x824   :  { %5112 = vrot.lane.b32.xlu2 %v4142_v49, %s7890_s30  ;;  %5116 = vrot.lane.b32.xlu1 %v4144_v28, %s7890_s30 }
 0x826   :  { %5114 = vrot.lane.b32.xlu0 %v4143_v27, %s7890_s30  ;;  %v11590_v19 = vpop.permute.xlu2 %4918  ;;  %v11592_v43 = vpop.permute.xlu1 %4904 }
 0x827   :  { %15015 = vst [vmem:[#allocation73_spill] sm:$0xff] %v11590_v19  ;;  %v4237_v19 = vld [vmem:[#allocation2 + $0x231] sm:$0xff] }
 0x828   :  { %v11594_v30 = vpop.permute.xlu0 %4902 }
 0x82c   :  { %5118 = vrot.lane.b32.xlu2 %v4145_v53, %s7890_s30  ;;  %5122 = vrot.lane.b32.xlu1 %v3957_v18, %s7890_s30 }
 0x82e   :  { %5120 = vrot.lane.b32.xlu0 %v3956_v56, %s7890_s30  ;;  %v11599_v49 = vpop.permute.xlu2 %4924  ;;  %v11601_v28 = vpop.permute.xlu1 %4910 }
 0x82f   :  { %15016 = vst [vmem:[#allocation96_spill] sm:$0xff] %v11599_v49  ;;  %v3992_v49 = vld [vmem:[#allocation2 + $0x2a0] sm:$0xff] }
 0x830   :  { %15017 = vst [vmem:[#allocation130_spill] sm:$0xff] %v11601_v28  ;;  %v11603_v27 = vpop.permute.xlu0 %4908 }
 0x831   :  { %15018 = vst [vmem:[#allocation141_spill] sm:$0xff] %v11603_v27  ;;  %v4312_v27 = vld [vmem:[#allocation2 + $0x2ba] sm:$0xff] }
 0x834   :  { %5124 = vrot.lane.b32.xlu2 %v4148_v7, %s7890_s30  ;;  %5128 = vrot.lane.b32.xlu1 %v3960_v2, %s7890_s30 }
 0x836   :  { %5126 = vrot.lane.b32.xlu0 %v3959_v37, %s7890_s30  ;;  %v11608_v53 = vpop.permute.xlu2 %4930  ;;  %v11610_v18 = vpop.permute.xlu1 %4916 }
 0x837   :  { %15019 = vst [vmem:[#allocation181_spill] sm:$0xff] %v11608_v53  ;;  %v3964_v53 = vld [vmem:[#allocation2 + $0x120] sm:$0xff] }
 0x838   :  { %15020 = vst [vmem:[#allocation211_spill] sm:$0xff] %v11610_v18  ;;  %v11612_v56 = vpop.permute.xlu0 %4914  ;;  %v4249_v18 = vld [vmem:[#allocation2 + $0x2c1] sm:$0xff] }
 0x839   :  { %15021 = vst [vmem:[#allocation245_spill] sm:$0xff] %v11612_v56 }
 0x83c   :  { %5130 = vrot.lane.b32.xlu2 %v3961_v21, %s7890_s30  ;;  %5134 = vrot.lane.b32.xlu1 %v3963_v40, %s7890_s30 }
 0x83e   :  { %5132 = vrot.lane.b32.xlu0 %v3962_v31, %s7890_s30  ;;  %v11617_v7 = vpop.permute.xlu2 %4936  ;;  %v11619_v2 = vpop.permute.xlu1 %4922 }
 0x83f   :  { %15022 = vst [vmem:[#allocation268_spill] sm:$0xff] %v11617_v7  ;;  %v3967_v7 = vld [vmem:[#allocation2 + $0x140] sm:$0xff] }
 0x840   :  { %15023 = vst [vmem:[#allocation303_spill] sm:$0xff] %v11619_v2  ;;  %v11621_v37 = vpop.permute.xlu0 %4920  ;;  %v3999_v2 = vld [vmem:[#allocation2 + $0x2f0] sm:$0xff] }
 0x841   :  { %15024 = vst [vmem:[#allocation314_spill] sm:$0xff] %v11621_v37  ;;  %v4207_v37 = vld [vmem:[#allocation2 + $0x99] sm:$0xff] }
 0x844   :  { %5136 = vrot.lane.b32.xlu2 %v3964_v53, %s7890_s30  ;;  %5140 = vrot.lane.b32.xlu1 %v3966_v11, %s7890_s30 }
 0x846   :  { %5138 = vrot.lane.b32.xlu0 %v3965_v44, %s7890_s30  ;;  %v11626_v21 = vpop.permute.xlu2 %4942  ;;  %v11628_v40 = vpop.permute.xlu1 %4928 }
 0x847   :  { %15025 = vst [vmem:[#allocation350_spill] sm:$0xff] %v11626_v21  ;;  %v3970_v21 = vld [vmem:[#allocation2 + $0x168] sm:$0xff] }
 0x848   :  { %15026 = vst [vmem:[#allocation381_spill] sm:$0xff] %v11628_v40  ;;  %v11630_v31 = vpop.permute.xlu0 %4926  ;;  %v3971_v40 = vld [vmem:[#allocation2 + $0x170] sm:$0xff] }
 0x849   :  { %15027 = vst [vmem:[#allocation416_spill] sm:$0xff] %v11630_v31  ;;  %v4163_v31 = vld [vmem:[#allocation2 + $0x188] sm:$0xff] }
 0x84c   :  { %5142 = vrot.lane.b32.xlu2 %v3967_v7, %s7890_s30  ;;  %5146 = vrot.lane.b32.xlu1 %v3969_v57, %s7890_s30 }
 0x84e   :  { %5144 = vrot.lane.b32.xlu0 %v3968_v12, %s7890_s30  ;;  %v11635_v53 = vpop.permute.xlu2 %4948  ;;  %v11637_v11 = vpop.permute.xlu1 %4934 }
 0x84f   :  { %15028 = vst [vmem:[#allocation439_spill] sm:$0xff] %v11635_v53  ;;  %v3975_v53 = vld [vmem:[#allocation2 + $0x1d0] sm:$0xff] }
 0x850   :  { %15029 = vst [vmem:[#allocation75_spill] sm:$0xff] %v11637_v11  ;;  %v11639_v44 = vpop.permute.xlu0 %4932  ;;  %v3974_v11 = vld [vmem:[#allocation2 + $0x1c8] sm:$0xff] }
 0x851   :  { %15030 = vst [vmem:[#allocation86_spill] sm:$0xff] %v11639_v44  ;;  %v3978_v44 = vld [vmem:[#allocation2 + $0x1f8] sm:$0xff] }
 0x854   :  { %5148 = vrot.lane.b32.xlu2 %v3970_v21, %s7890_s30  ;;  %5152 = vrot.lane.b32.xlu1 %v4162_v60, %s7890_s30 }
 0x856   :  { %5150 = vrot.lane.b32.xlu0 %v3971_v40, %s7890_s30  ;;  %v11644_v7 = vpop.permute.xlu2 %4954  ;;  %v11646_v57 = vpop.permute.xlu1 %4940 }
 0x857   :  { %15031 = vst [vmem:[#allocation121_spill] sm:$0xff] %v11644_v7  ;;  %v3976_v7 = vld [vmem:[#allocation2 + $0x1e0] sm:$0xff] }
 0x858   :  { %15032 = vst [vmem:[#allocation153_spill] sm:$0xff] %v11646_v57  ;;  %v11648_v12 = vpop.permute.xlu0 %4938  ;;  %v3977_v57 = vld [vmem:[#allocation2 + $0x1e8] sm:$0xff] }
 0x859   :  { %15033 = vst [vmem:[#allocation190_spill] sm:$0xff] %v11648_v12  ;;  %v3981_v12 = vld [vmem:[#allocation2 + $0x218] sm:$0xff] }
 0x85c   :  { %5154 = vrot.lane.b32.xlu2 %v4163_v31, %s7890_s30  ;;  %5158 = vrot.lane.b32.xlu1 %v3975_v53, %s7890_s30 }
 0x85e   :  { %5156 = vrot.lane.b32.xlu0 %v3974_v11, %s7890_s30  ;;  %v11653_v21 = vpop.permute.xlu2 %4960  ;;  %v11655_v60 = vpop.permute.xlu1 %4946 }
 0x85f   :  { %15034 = vst [vmem:[#allocation213_spill] sm:$0xff] %v11653_v21  ;;  %v3979_v21 = vld [vmem:[#allocation2 + $0x200] sm:$0xff] }
 0x860   :  { %15035 = vst [vmem:[#allocation247_spill] sm:$0xff] %v11655_v60  ;;  %v11657_v40 = vpop.permute.xlu0 %4944  ;;  %v3980_v60 = vld [vmem:[#allocation2 + $0x210] sm:$0xff] }
 0x861   :  { %15036 = vst [vmem:[#allocation258_spill] sm:$0xff] %v11657_v40  ;;  %v3982_v40 = vld [vmem:[#allocation2 + $0x228] sm:$0xff] }
 0x864   :  { %5160 = vrot.lane.b32.xlu2 %v3976_v7, %s7890_s30  ;;  %5164 = vrot.lane.b32.xlu1 %v3978_v44, %s7890_s30 }
 0x866   :  { %5162 = vrot.lane.b32.xlu0 %v3977_v57, %s7890_s30  ;;  %v11662_v31 = vpop.permute.xlu2 %5094  ;;  %v11664_v53 = vpop.permute.xlu1 %4952 }
 0x867   :  { %15037 = vst [vmem:[#allocation294_spill] sm:$0xff] %v11664_v53  ;;  %v3983_v53 = vld [vmem:[#allocation2 + $0x230] sm:$0xff] }
 0x868   :  { %v11666_v11 = vpop.permute.xlu0 %4950 }
 0x869   :  { %15038 = vst [vmem:[#allocation325_spill] sm:$0xff] %v11666_v11  ;;  %v3985_v11 = vld [vmem:[#allocation2 + $0x248] sm:$0xff] }
 0x86c   :  { %5166 = vrot.lane.b32.xlu2 %v3979_v21, %s7890_s30  ;;  %5170 = vrot.lane.b32.xlu1 %v3981_v12, %s7890_s30 }
 0x86e   :  { %5168 = vrot.lane.b32.xlu0 %v3980_v60, %s7890_s30  ;;  %v11671_v7 = vpop.permute.xlu2 %5100  ;;  %v11673_v44 = vpop.permute.xlu1 %4958 }
 0x86f   :  { %15039 = vst [vmem:[#allocation360_spill] sm:$0xff] %v11671_v7 }
 0x870   :  { %15040 = vst [vmem:[#allocation383_spill] sm:$0xff] %v11673_v44  ;;  %v11675_v57 = vpop.permute.xlu0 %4956  ;;  %v3986_v44 = vld [vmem:[#allocation2 + $0x258] sm:$0xff] }
 0x871   :  { %15041 = vst [vmem:[#allocation418_spill] sm:$0xff] %v11675_v57  ;;  %v3988_v57 = vld [vmem:[#allocation2 + $0x270] sm:$0xff] }
 0x874   :  { %5172 = vrot.lane.b32.xlu2 %v3982_v40, %s7890_s30  ;;  %5176 = vrot.lane.b32.xlu1 %v3984_v6, %s7890_s30 }
 0x876   :  { %5174 = vrot.lane.b32.xlu0 %v3983_v53, %s7890_s30  ;;  %v11680_v21 = vpop.permute.xlu2 %5106  ;;  %v11682_v12 = vpop.permute.xlu1 %5092 }
 0x877   :  { %15042 = vst [vmem:[#allocation429_spill] sm:$0xff] %v11680_v21 }
 0x878   :  { %v11684_v60 = vpop.permute.xlu0 %4962 }
 0x879   :  { %15043 = vst [vmem:[#allocation66_spill] sm:$0xff] %v11684_v60  ;;  %v3989_v60 = vld [vmem:[#allocation2 + $0x278] sm:$0xff] }
 0x87c   :  { %5178 = vrot.lane.b32.xlu2 %v3985_v11, %s7890_s30  ;;  %5182 = vrot.lane.b32.xlu1 %v3987_v47, %s7890_s30 }
 0x87e   :  { %5180 = vrot.lane.b32.xlu0 %v3986_v44, %s7890_s30  ;;  %v11689_v40 = vpop.permute.xlu2 %5112  ;;  %v11691_v6 = vpop.permute.xlu1 %5098 }
 0x87f   :  { %15044 = vst [vmem:[#allocation97_spill] sm:$0xff] %v11689_v40  ;;  %v4002_v40 = vld [vmem:[#allocation2 + $0x318] sm:$0xff] }
 0x880   :  { %15045 = vst [vmem:[#allocation131_spill] sm:$0xff] %v11691_v6  ;;  %v11693_v53 = vpop.permute.xlu0 %5096  ;;  %v4341_v6 = vld [vmem:[#allocation2 + $0xf8] sm:$0xff] }
 0x884   :  { %5184 = vrot.lane.b32.xlu2 %v3988_v57, %s7890_s30  ;;  %5188 = vrot.lane.b32.xlu1 %v3990_v54, %s7890_s30 }
 0x886   :  { %5186 = vrot.lane.b32.xlu0 %v3989_v60, %s7890_s30  ;;  %v11698_v11 = vpop.permute.xlu2 %5118  ;;  %v11700_v47 = vpop.permute.xlu1 %5104 }
 0x887   :  { %15046 = vst [vmem:[#allocation156_spill] sm:$0xff] %v11698_v11  ;;  %v3994_v11 = vld [vmem:[#allocation2 + $0x2b8] sm:$0xff] }
 0x888   :  { %15047 = vst [vmem:[#allocation192_spill] sm:$0xff] %v11700_v47  ;;  %v11702_v44 = vpop.permute.xlu0 %5102  ;;  %v4279_v47 = vld [vmem:[#allocation2 + $0xfa] sm:$0xff] }
 0x889   :  { %15048 = vst [vmem:[#allocation203_spill] sm:$0xff] %v11702_v44 }
 0x88c   :  { %5190 = vrot.lane.b32.xlu2 %v3991_v42, %s7890_s30  ;;  %5194 = vrot.lane.b32.xlu1 %v3993_v55, %s7890_s30 }
 0x88e   :  { %5192 = vrot.lane.b32.xlu0 %v3992_v49, %s7890_s30  ;;  %v11707_v57 = vpop.permute.xlu2 %5124  ;;  %v11709_v54 = vpop.permute.xlu1 %5110 }
 0x88f   :  { %15049 = vst [vmem:[#allocation238_spill] sm:$0xff] %v11707_v57  ;;  %v3997_v57 = vld [vmem:[#allocation2 + $0x2d8] sm:$0xff] }
 0x890   :  { %15050 = vst [vmem:[#allocation269_spill] sm:$0xff] %v11709_v54  ;;  %v11711_v60 = vpop.permute.xlu0 %5108  ;;  %v4216_v54 = vld [vmem:[#allocation2 + $0x109] sm:$0xff] }
 0x891   :  { %15051 = vst [vmem:[#allocation304_spill] sm:$0xff] %v11711_v60  ;;  %v4218_v60 = vld [vmem:[#allocation2 + $0x121] sm:$0xff] }
 0x894   :  { %5196 = vrot.lane.b32.xlu2 %v3994_v11, %s7890_s30  ;;  %5200 = vrot.lane.b32.xlu1 %v3996_v0, %s7890_s30 }
 0x896   :  { %5198 = vrot.lane.b32.xlu0 %v3995_v50, %s7890_s30  ;;  %v11716_v42 = vpop.permute.xlu2 %5130  ;;  %v11718_v55 = vpop.permute.xlu1 %5116 }
 0x897   :  { %15052 = vst [vmem:[#allocation327_spill] sm:$0xff] %v11716_v42  ;;  %v4000_v42 = vld [vmem:[#allocation2 + $0x300] sm:$0xff] }
 0x898   :  { %15053 = vst [vmem:[#allocation362_spill] sm:$0xff] %v11718_v55  ;;  %v11720_v49 = vpop.permute.xlu0 %5114  ;;  %v4001_v55 = vld [vmem:[#allocation2 + $0x308] sm:$0xff] }
 0x899   :  { %15054 = vst [vmem:[#allocation373_spill] sm:$0xff] %v11720_v49  ;;  %v4195_v49 = vld [vmem:[#allocation2 + $0x338] sm:$0xff] }
 0x89c   :  { %5202 = vrot.lane.b32.xlu2 %v3997_v57, %s7890_s30  ;;  %5206 = vrot.lane.b32.xlu1 %v3999_v2, %s7890_s30 }
 0x89e   :  { %5204 = vrot.lane.b32.xlu0 %v3998_v59, %s7890_s30  ;;  %v11725_v11 = vpop.permute.xlu2 %5136  ;;  %v11727_v0 = vpop.permute.xlu1 %5122 }
 0x89f   :  { %15055 = vst [vmem:[#allocation408_spill] sm:$0xff] %v11725_v11  ;;  %v4003_v11 = vld [vmem:[#allocation2 + $0x320] sm:$0xff] }
 0x8a0   :  { %15056 = vst [vmem:[#allocation440_spill] sm:$0xff] %v11727_v0  ;;  %v11729_v50 = vpop.permute.xlu0 %5120  ;;  %v4194_v0 = vld [vmem:[#allocation2 + $0x330] sm:$0xff] }
 0x8a1   :  { %15057 = vst [vmem:[#allocation76_spill] sm:$0xff] %v11729_v50  ;;  %v4198_v50 = vld [vmem:[#allocation2 + $0x31] sm:$0xff] }
 0x8a4   :  { %5208 = vrot.lane.b32.xlu2 %v4000_v42, %s7890_s30  ;;  %5212 = vrot.lane.b32.xlu1 %v4002_v40, %s7890_s30 }
 0x8a6   :  { %5210 = vrot.lane.b32.xlu0 %v4001_v55, %s7890_s30  ;;  %v11734_v57 = vpop.permute.xlu2 %5142  ;;  %v11736_v2 = vpop.permute.xlu1 %5128 }
 0x8a7   :  { %15058 = vst [vmem:[#allocation99_spill] sm:$0xff] %v11734_v57  ;;  %v4196_v57 = vld [vmem:[#allocation2 + $0x19] sm:$0xff] }
 0x8a8   :  { %15059 = vst [vmem:[#allocation133_spill] sm:$0xff] %v11736_v2  ;;  %v11738_v59 = vpop.permute.xlu0 %5126  ;;  %v4197_v2 = vld [vmem:[#allocation2 + $0x21] sm:$0xff] }
 0x8a9   :  { %15060 = vst [vmem:[#allocation144_spill] sm:$0xff] %v11738_v59  ;;  %v4201_v59 = vld [vmem:[#allocation2 + $0x51] sm:$0xff] }
 0x8ac   :  { %5214 = vrot.lane.b32.xlu2 %v4003_v11, %s7890_s30  ;;  %5218 = vrot.lane.b32.xlu1 %v4195_v49, %s7890_s30 }
 0x8ae   :  { %5216 = vrot.lane.b32.xlu0 %v4194_v0, %s7890_s30  ;;  %v11743_v42 = vpop.permute.xlu2 %5148  ;;  %v11745_v40 = vpop.permute.xlu1 %5134 }
 0x8af   :  { %15061 = vst [vmem:[#allocation182_spill] sm:$0xff] %v11743_v42  ;;  %v4199_v42 = vld [vmem:[#allocation2 + $0x39] sm:$0xff] }
 0x8b0   :  { %15062 = vst [vmem:[#allocation214_spill] sm:$0xff] %v11745_v40  ;;  %v11747_v55 = vpop.permute.xlu0 %5132  ;;  %v4200_v40 = vld [vmem:[#allocation2 + $0x49] sm:$0xff] }
 0x8b1   :  { %15063 = vst [vmem:[#allocation248_spill] sm:$0xff] %v11747_v55  ;;  %v4204_v55 = vld [vmem:[#allocation2 + $0x79] sm:$0xff] }
 0x8b4   :  { %5348 = vrot.lane.b32.xlu2 %v4196_v57, %s7891_s0  ;;  %5352 = vrot.lane.b32.xlu1 %v4198_v50, %s7891_s0 }
 0x8b6   :  { %5350 = vrot.lane.b32.xlu0 %v4197_v2, %s7891_s0  ;;  %v11752_v11 = vpop.permute.xlu2 %5154  ;;  %v11754_v49 = vpop.permute.xlu1 %5140 }
 0x8b7   :  { %15064 = vst [vmem:[#allocation271_spill] sm:$0xff] %v11752_v11  ;;  %v4202_v11 = vld [vmem:[#allocation2 + $0x61] sm:$0xff] }
 0x8b8   :  { %15065 = vst [vmem:[#allocation306_spill] sm:$0xff] %v11754_v49  ;;  %v11756_v0 = vpop.permute.xlu0 %5138  ;;  %v4203_v49 = vld [vmem:[#allocation2 + $0x69] sm:$0xff] }
 0x8b9   :  { %15066 = vst [vmem:[#allocation317_spill] sm:$0xff] %v11756_v0  ;;  %v4205_v0 = vld [vmem:[#allocation2 + $0x81] sm:$0xff] }
 0x8bc   :  { %5354 = vrot.lane.b32.xlu2 %v4199_v42, %s7891_s0  ;;  %5358 = vrot.lane.b32.xlu1 %v4201_v59, %s7891_s0 }
 0x8be   :  { %5356 = vrot.lane.b32.xlu0 %v4200_v40, %s7891_s0  ;;  %v11761_v57 = vpop.permute.xlu2 %5160  ;;  %v11763_v50 = vpop.permute.xlu1 %5146 }
 0x8bf   :  { %15067 = vst [vmem:[#allocation352_spill] sm:$0xff] %v11763_v50  ;;  %v4206_v50 = vld [vmem:[#allocation2 + $0x91] sm:$0xff] }
 0x8c0   :  { %v11765_v2 = vpop.permute.xlu0 %5144 }
 0x8c1   :  { %15068 = vst [vmem:[#allocation384_spill] sm:$0xff] %v11765_v2  ;;  %v4208_v2 = vld [vmem:[#allocation2 + $0xa9] sm:$0xff] }
 0x8c4   :  { %5360 = vrot.lane.b32.xlu2 %v4202_v11, %s7891_s0  ;;  %5364 = vrot.lane.b32.xlu1 %v4204_v55, %s7891_s0 }
 0x8c6   :  { %5362 = vrot.lane.b32.xlu0 %v4203_v49, %s7891_s0  ;;  %v11770_v42 = vpop.permute.xlu2 %5166  ;;  %v11772_v59 = vpop.permute.xlu1 %5152 }
 0x8c7   :  { %15069 = vst [vmem:[#allocation419_spill] sm:$0xff] %v11770_v42 }
 0x8c8   :  { %15070 = vst [vmem:[#allocation442_spill] sm:$0xff] %v11772_v59  ;;  %v11774_v40 = vpop.permute.xlu0 %5150  ;;  %v4209_v59 = vld [vmem:[#allocation2 + $0xb1] sm:$0xff] }
 0x8c9   :  { %15071 = vst [vmem:[#allocation78_spill] sm:$0xff] %v11774_v40  ;;  %v4211_v40 = vld [vmem:[#allocation2 + $0xc9] sm:$0xff] }
 0x8cc   :  { %5366 = vrot.lane.b32.xlu2 %v4205_v0, %s7891_s0  ;;  %5370 = vrot.lane.b32.xlu1 %v4207_v37, %s7891_s0 }
 0x8ce   :  { %5368 = vrot.lane.b32.xlu0 %v4206_v50, %s7891_s0  ;;  %v11779_v11 = vpop.permute.xlu2 %5172  ;;  %v11781_v55 = vpop.permute.xlu1 %5158 }
 0x8cf   :  { %15072 = vst [vmem:[#allocation89_spill] sm:$0xff] %v11779_v11  ;;  %v4245_v11 = vld [vmem:[#allocation2 + $0x291] sm:$0xff] }
 0x8d0   :  { %v11783_v49 = vpop.permute.xlu0 %5156 }
 0x8d4   :  { %5372 = vrot.lane.b32.xlu2 %v4208_v2, %s7891_s0  ;;  %5376 = vrot.lane.b32.xlu1 %v4210_v38, %s7891_s0 }
 0x8d6   :  { %5374 = vrot.lane.b32.xlu0 %v4209_v59, %s7891_s0  ;;  %v11788_v0 = vpop.permute.xlu2 %5178  ;;  %v11790_v37 = vpop.permute.xlu1 %5164 }
 0x8d7   :  { %15073 = vst [vmem:[#allocation123_spill] sm:$0xff] %v11788_v0  ;;  %v4214_v0 = vld [vmem:[#allocation2 + $0xf1] sm:$0xff] }
 0x8d8   :  { %15074 = vst [vmem:[#allocation157_spill] sm:$0xff] %v11790_v37  ;;  %v11792_v50 = vpop.permute.xlu0 %5162 }
 0x8dc   :  { %5378 = vrot.lane.b32.xlu2 %v4211_v40, %s7891_s0  ;;  %5382 = vrot.lane.b32.xlu1 %v4213_v62, %s7891_s0 }
 0x8de   :  { %5380 = vrot.lane.b32.xlu0 %v4212_v26, %s7891_s0  ;;  %v11797_v2 = vpop.permute.xlu2 %5184  ;;  %v11799_v38 = vpop.permute.xlu1 %5170 }
 0x8df   :  { %15075 = vst [vmem:[#allocation193_spill] sm:$0xff] %v11797_v2  ;;  %v4217_v2 = vld [vmem:[#allocation2 + $0x111] sm:$0xff] }
 0x8e0   :  { %15076 = vst [vmem:[#allocation216_spill] sm:$0xff] %v11799_v38  ;;  %v11801_v59 = vpop.permute.xlu0 %5168  ;;  %v4252_v38 = vld [vmem:[#allocation2 + $0x2e9] sm:$0xff] }
 0x8e1   :  { %15077 = vst [vmem:[#allocation250_spill] sm:$0xff] %v11801_v59  ;;  %v12097_v59 = vld [vmem:[#allocation2 + $0x232] sm:$0xff] }
 0x8e4   :  { %5384 = vrot.lane.b32.xlu2 %v4214_v0, %s7891_s0  ;;  %5388 = vrot.lane.b32.xlu1 %v4216_v54, %s7891_s0 }
 0x8e6   :  { %5386 = vrot.lane.b32.xlu0 %v4215_v16, %s7891_s0  ;;  %v11806_v40 = vpop.permute.xlu2 %5190  ;;  %v11808_v62 = vpop.permute.xlu1 %5176 }
 0x8e7   :  { %15078 = vst [vmem:[#allocation261_spill] sm:$0xff] %v11806_v40  ;;  %v4220_v40 = vld [vmem:[#allocation2 + $0x139] sm:$0xff] }
 0x8e8   :  { %15079 = vst [vmem:[#allocation296_spill] sm:$0xff] %v11808_v62  ;;  %v11810_v26 = vpop.permute.xlu0 %5174  ;;  %v4221_v62 = vld [vmem:[#allocation2 + $0x141] sm:$0xff] }
 0x8e9   :  { %15080 = vst [vmem:[#allocation328_spill] sm:$0xff] %v11810_v26  ;;  %v4225_v26 = vld [vmem:[#allocation2 + $0x171] sm:$0xff] }
 0x8ec   :  { %5390 = vrot.lane.b32.xlu2 %v4217_v2, %s7891_s0  ;;  %5394 = vrot.lane.b32.xlu1 %v4219_v9, %s7891_s0 }
 0x8ee   :  { %5392 = vrot.lane.b32.xlu0 %v4218_v60, %s7891_s0  ;;  %v11815_v0 = vpop.permute.xlu2 %5196  ;;  %v11817_v54 = vpop.permute.xlu1 %5182 }
 0x8ef   :  { %15081 = vst [vmem:[#allocation363_spill] sm:$0xff] %v11815_v0  ;;  %v4223_v0 = vld [vmem:[#allocation2 + $0x159] sm:$0xff] }
 0x8f0   :  { %15082 = vst [vmem:[#allocation386_spill] sm:$0xff] %v11817_v54  ;;  %v11819_v16 = vpop.permute.xlu0 %5180  ;;  %v4224_v54 = vld [vmem:[#allocation2 + $0x169] sm:$0xff] }
 0x8f1   :  { %15083 = vst [vmem:[#allocation421_spill] sm:$0xff] %v11819_v16  ;;  %v4228_v16 = vld [vmem:[#allocation2 + $0x1c9] sm:$0xff] }
 0x8f4   :  { %5396 = vrot.lane.b32.xlu2 %v4220_v40, %s7891_s0  ;;  %5400 = vrot.lane.b32.xlu1 %v4222_v1, %s7891_s0 }
 0x8f6   :  { %5398 = vrot.lane.b32.xlu0 %v4221_v62, %s7891_s0  ;;  %v11824_v2 = vpop.permute.xlu2 %5202  ;;  %v11826_v9 = vpop.permute.xlu1 %5188 }
 0x8f7   :  { %15084 = vst [vmem:[#allocation432_spill] sm:$0xff] %v11824_v2  ;;  %v4226_v2 = vld [vmem:[#allocation2 + $0x181] sm:$0xff] }
 0x8f8   :  { %15085 = vst [vmem:[#allocation68_spill] sm:$0xff] %v11826_v9  ;;  %v11828_v60 = vpop.permute.xlu0 %5186  ;;  %v4227_v9 = vld [vmem:[#allocation2 + $0x189] sm:$0xff] }
 0x8f9   :  { %15086 = vst [vmem:[#allocation100_spill] sm:$0xff] %v11828_v60  ;;  %v4231_v60 = vld [vmem:[#allocation2 + $0x1e9] sm:$0xff] }
 0x8fc   :  { %5402 = vrot.lane.b32.xlu2 %v4223_v0, %s7891_s0  ;;  %5406 = vrot.lane.b32.xlu1 %v4225_v26, %s7891_s0 }
 0x8fe   :  { %5404 = vrot.lane.b32.xlu0 %v4224_v54, %s7891_s0  ;;  %v11833_v40 = vpop.permute.xlu2 %5208  ;;  %v11835_v1 = vpop.permute.xlu1 %5194 }
 0x8ff   :  { %15087 = vst [vmem:[#allocation134_spill] sm:$0xff] %v11833_v40  ;;  %v4229_v40 = vld [vmem:[#allocation2 + $0x1d1] sm:$0xff] }
 0x900   :  { %15088 = vst [vmem:[#allocation159_spill] sm:$0xff] %v11835_v1  ;;  %v11837_v62 = vpop.permute.xlu0 %5192  ;;  %v4230_v1 = vld [vmem:[#allocation2 + $0x1e1] sm:$0xff] }
 0x901   :  { %15089 = vst [vmem:[#allocation195_spill] sm:$0xff] %v11837_v62  ;;  %v4234_v62 = vld [vmem:[#allocation2 + $0x211] sm:$0xff] }
 0x904   :  { %5408 = vrot.lane.b32.xlu2 %v4226_v2, %s7891_s0  ;;  %5412 = vrot.lane.b32.xlu1 %v4228_v16, %s7891_s0 }
 0x906   :  { %5410 = vrot.lane.b32.xlu0 %v4227_v9, %s7891_s0  ;;  %v11842_v0 = vpop.permute.xlu2 %5214  ;;  %v11844_v26 = vpop.permute.xlu1 %5200 }
 0x907   :  { %15090 = vst [vmem:[#allocation206_spill] sm:$0xff] %v11842_v0  ;;  %v4232_v0 = vld [vmem:[#allocation2 + $0x1f9] sm:$0xff] }
 0x908   :  { %15091 = vst [vmem:[#allocation240_spill] sm:$0xff] %v11844_v26  ;;  %v11846_v54 = vpop.permute.xlu0 %5198  ;;  %v4233_v26 = vld [vmem:[#allocation2 + $0x201] sm:$0xff] }
 0x909   :  { %15092 = vst [vmem:[#allocation272_spill] sm:$0xff] %v11846_v54  ;;  %v4235_v54 = vld [vmem:[#allocation2 + $0x219] sm:$0xff] }
 0x90c   :  { %5414 = vrot.lane.b32.xlu2 %v4229_v40, %s7891_s0  ;;  %5418 = vrot.lane.b32.xlu1 %v4231_v60, %s7891_s0 }
 0x90e   :  { %5416 = vrot.lane.b32.xlu0 %v4230_v1, %s7891_s0  ;;  %v11851_v2 = vpop.permute.xlu2 %5348  ;;  %v11853_v16 = vpop.permute.xlu1 %5206 }
 0x90f   :  { %15093 = vst [vmem:[#allocation307_spill] sm:$0xff] %v11853_v16  ;;  %v4236_v16 = vld [vmem:[#allocation2 + $0x229] sm:$0xff] }
 0x910   :  { %v11855_v9 = vpop.permute.xlu0 %5204 }
 0x911   :  { %15094 = vst [vmem:[#allocation330_spill] sm:$0xff] %v11855_v9  ;;  %v4238_v9 = vld [vmem:[#allocation2 + $0x241] sm:$0xff] }
 0x914   :  { %5420 = vrot.lane.b32.xlu2 %v4232_v0, %s7891_s0  ;;  %5424 = vrot.lane.b32.xlu1 %v4234_v62, %s7891_s0 }
 0x916   :  { %5422 = vrot.lane.b32.xlu0 %v4233_v26, %s7891_s0  ;;  %v11860_v40 = vpop.permute.xlu2 %5354  ;;  %v11862_v60 = vpop.permute.xlu1 %5212 }
 0x917   :  { %15095 = vst [vmem:[#allocation365_spill] sm:$0xff] %v11860_v40  ;;  %v4336_v40 = vld [vmem:[#allocation2 + $0xc0] sm:$0xff] }
 0x918   :  { %15096 = vst [vmem:[#allocation376_spill] sm:$0xff] %v11862_v60  ;;  %v11864_v1 = vpop.permute.xlu0 %5210  ;;  %v4239_v60 = vld [vmem:[#allocation2 + $0x249] sm:$0xff] }
 0x919   :  { %15097 = vst [vmem:[#allocation411_spill] sm:$0xff] %v11864_v1  ;;  %v4241_v1 = vld [vmem:[#allocation2 + $0x261] sm:$0xff] }
 0x91c   :  { %5426 = vrot.lane.b32.xlu2 %v4235_v54, %s7891_s0  ;;  %5430 = vrot.lane.b32.xlu1 %v4237_v19, %s7891_s0 }
 0x91e   :  { %5428 = vrot.lane.b32.xlu0 %v4236_v16, %s7891_s0  ;;  %v11869_v0 = vpop.permute.xlu2 %5360  ;;  %v11871_v62 = vpop.permute.xlu1 %5218 }
 0x91f   :  { %15098 = vst [vmem:[#allocation443_spill] sm:$0xff] %v11869_v0  ;;  %v4273_v0 = vld [vmem:[#allocation2 + $0xb2] sm:$0xff] }
 0x920   :  { %15099 = vst [vmem:[#allocation79_spill] sm:$0xff] %v11871_v62  ;;  %v11873_v26 = vpop.permute.xlu0 %5216  ;;  %v4242_v62 = vld [vmem:[#allocation2 + $0x271] sm:$0xff] }
 0x921   :  { %15100 = vst [vmem:[#allocation102_spill] sm:$0xff] %v11873_v26  ;;  %v4244_v26 = vld [vmem:[#allocation2 + $0x289] sm:$0xff] }
 0x924   :  { %5432 = vrot.lane.b32.xlu2 %v4238_v9, %s7891_s0  ;;  %5436 = vrot.lane.b32.xlu1 %v4240_v14, %s7891_s0 }
 0x926   :  { %5434 = vrot.lane.b32.xlu0 %v4239_v60, %s7891_s0  ;;  %v11878_v54 = vpop.permute.xlu2 %5366  ;;  %v11880_v19 = vpop.permute.xlu1 %5352 }
 0x927   :  { %15101 = vst [vmem:[#allocation136_spill] sm:$0xff] %v11878_v54  ;;  %v4246_v54 = vld [vmem:[#allocation2 + $0x2a1] sm:$0xff] }
 0x928   :  { %v11882_v16 = vpop.permute.xlu0 %5350 }
 0x92c   :  { %5438 = vrot.lane.b32.xlu2 %v4241_v1, %s7891_s0  ;;  %5442 = vrot.lane.b32.xlu1 %v4243_v24, %s7891_s0 }
 0x92e   :  { %5440 = vrot.lane.b32.xlu0 %v4242_v62, %s7891_s0  ;;  %v11887_v9 = vpop.permute.xlu2 %5372  ;;  %v11889_v14 = vpop.permute.xlu1 %5358 }
 0x92f   :  { %15102 = vst [vmem:[#allocation147_spill] sm:$0xff] %v11887_v9  ;;  %v4247_v9 = vld [vmem:[#allocation2 + $0x2a9] sm:$0xff] }
 0x930   :  { %15103 = vst [vmem:[#allocation185_spill] sm:$0xff] %v11889_v14  ;;  %v11891_v60 = vpop.permute.xlu0 %5356  ;;  %v4281_v14 = vld [vmem:[#allocation2 + $0x112] sm:$0xff] }
 0x931   :  { %15104 = vst [vmem:[#allocation217_spill] sm:$0xff] %v11891_v60  ;;  %v4308_v60 = vld [vmem:[#allocation2 + $0x28a] sm:$0xff] }
 0x934   :  { %5444 = vrot.lane.b32.xlu2 %v4244_v26, %s7891_s0  ;;  %5448 = vrot.lane.b32.xlu1 %v4246_v54, %s7891_s0 }
 0x936   :  { %5446 = vrot.lane.b32.xlu0 %v4245_v11, %s7891_s0  ;;  %v11896_v1 = vpop.permute.xlu2 %5378  ;;  %v11898_v24 = vpop.permute.xlu1 %5364 }
 0x937   :  { %15105 = vst [vmem:[#allocation251_spill] sm:$0xff] %v11896_v1  ;;  %v4250_v1 = vld [vmem:[#allocation2 + $0x2d1] sm:$0xff] }
 0x938   :  { %15106 = vst [vmem:[#allocation274_spill] sm:$0xff] %v11898_v24  ;;  %v11900_v62 = vpop.permute.xlu0 %5362  ;;  %v4251_v24 = vld [vmem:[#allocation2 + $0x2d9] sm:$0xff] }
 0x939   :  { %15107 = vst [vmem:[#allocation309_spill] sm:$0xff] %v11900_v62  ;;  %v4255_v62 = vld [vmem:[#allocation2 + $0x309] sm:$0xff] }
 0x93c   :  { %5450 = vrot.lane.b32.xlu2 %v4247_v9, %s7891_s0  ;;  %5454 = vrot.lane.b32.xlu1 %v4249_v18, %s7891_s0 }
 0x93e   :  { %5452 = vrot.lane.b32.xlu0 %v4248_v8, %s7891_s0  ;;  %v11905_v26 = vpop.permute.xlu2 %5384  ;;  %v11907_v54 = vpop.permute.xlu1 %5370 }
 0x93f   :  { %15108 = vst [vmem:[#allocation320_spill] sm:$0xff] %v11905_v26  ;;  %v4253_v26 = vld [vmem:[#allocation2 + $0x2f1] sm:$0xff] }
 0x940   :  { %15109 = vst [vmem:[#allocation355_spill] sm:$0xff] %v11907_v54  ;;  %v11909_v11 = vpop.permute.xlu0 %5368  ;;  %v4254_v54 = vld [vmem:[#allocation2 + $0x301] sm:$0xff] }
 0x941   :  { %15110 = vst [vmem:[#allocation387_spill] sm:$0xff] %v11909_v11  ;;  %v4258_v11 = vld [vmem:[#allocation2 + $0x331] sm:$0xff] }
 0x944   :  { %5456 = vrot.lane.b32.xlu2 %v4250_v1, %s7891_s0  ;;  %5460 = vrot.lane.b32.xlu1 %v4252_v38, %s7891_s0 }
 0x946   :  { %5458 = vrot.lane.b32.xlu0 %v4251_v24, %s7891_s0  ;;  %v11914_v9 = vpop.permute.xlu2 %5390  ;;  %v11916_v18 = vpop.permute.xlu1 %5376 }
 0x947   :  { %15111 = vst [vmem:[#allocation422_spill] sm:$0xff] %v11914_v9  ;;  %v4256_v9 = vld [vmem:[#allocation2 + $0x319] sm:$0xff] }
 0x948   :  { %15112 = vst [vmem:[#allocation444_spill] sm:$0xff] %v11916_v18  ;;  %v11918_v8 = vpop.permute.xlu0 %5374  ;;  %v4257_v18 = vld [vmem:[#allocation2 + $0x321] sm:$0xff] }
 0x949   :  { %15113 = vst [vmem:[#allocation81_spill] sm:$0xff] %v11918_v8  ;;  %v4261_v8 = vld [vmem:[#allocation2 + $0x22] sm:$0xff] }
 0x94c   :  { %5462 = vrot.lane.b32.xlu2 %v4253_v26, %s7891_s0  ;;  %5466 = vrot.lane.b32.xlu1 %v4255_v62, %s7891_s0 }
 0x94e   :  { %5464 = vrot.lane.b32.xlu0 %v4254_v54, %s7891_s0  ;;  %v11923_v1 = vpop.permute.xlu2 %5396  ;;  %v11925_v38 = vpop.permute.xlu1 %5382 }
 0x94f   :  { %15114 = vst [vmem:[#allocation92_spill] sm:$0xff] %v11923_v1  ;;  %v4259_v1 = vld [vmem:[#allocation2 + $0x339] sm:$0xff] }
 0x950   :  { %15115 = vst [vmem:[#allocation126_spill] sm:$0xff] %v11925_v38  ;;  %v11927_v24 = vpop.permute.xlu0 %5380  ;;  %v4260_v38 = vld [vmem:[#allocation2 + $0x1a] sm:$0xff] }
 0x951   :  { %15116 = vst [vmem:[#allocation160_spill] sm:$0xff] %v11927_v24 }
 0x954   :  { %5468 = vrot.lane.b32.xlu2 %v4256_v9, %s7891_s0  ;;  %5472 = vrot.lane.b32.xlu1 %v4258_v11, %s7891_s0 }
 0x956   :  { %5470 = vrot.lane.b32.xlu0 %v4257_v18, %s7891_s0  ;;  %v11932_v26 = vpop.permute.xlu2 %5402  ;;  %v11934_v62 = vpop.permute.xlu1 %5388 }
 0x957   :  { %15117 = vst [vmem:[#allocation196_spill] sm:$0xff] %v11932_v26  ;;  %v11947_v26 = vld [vmem:[#allocation2 + $0x32] sm:$0xff] }
 0x958   :  { %15118 = vst [vmem:[#allocation219_spill] sm:$0xff] %v11934_v62  ;;  %v11936_v54 = vpop.permute.xlu0 %5386  ;;  %v11949_v62 = vld [vmem:[#allocation2 + $0x4a] sm:$0xff] }
 0x959   :  { %15119 = vst [vmem:[#allocation253_spill] sm:$0xff] %v11936_v54  ;;  %v4266_v54 = vld [vmem:[#allocation2 + $0x62] sm:$0xff] }
 0x95c   :  { %5474 = vrot.lane.b32.xlu2 %v4259_v1, %s7891_s0  ;;  %5606 = vrot.lane.b32.xlu1 %v4261_v8, %s7892_s13  ;;  %v11955_v8 = vld [vmem:[#allocation2 + $0x3a] sm:$0xff] }
 0x95e   :  { %5604 = vrot.lane.b32.xlu0 %v4260_v38, %s7892_s13  ;;  %v11941_v9 = vpop.permute.xlu2 %5408  ;;  %v11943_v11 = vpop.permute.xlu1 %5394 }
 0x95f   :  { %15120 = vst [vmem:[#allocation264_spill] sm:$0xff] %v11941_v9 }
 0x960   :  { %15121 = vst [vmem:[#allocation299_spill] sm:$0xff] %v11943_v11  ;;  %v11945_v18 = vpop.permute.xlu0 %5392  ;;  %v11965_v11 = vld [vmem:[#allocation2 + $0x52] sm:$0xff] }
 0x961   :  { %15122 = vst [vmem:[#allocation331_spill] sm:$0xff] %v11945_v18  ;;  %v4267_v18 = vld [vmem:[#allocation2 + $0x6a] sm:$0xff] }
 0x964   :  { %5608 = vrot.lane.b32.xlu2 %v11947_v26, %s7892_s13  ;;  %5612 = vrot.lane.b32.xlu1 %v11949_v62, %s7892_s13 }
 0x966   :  { %5610 = vrot.lane.b32.xlu0 %v11955_v8, %s7892_s13  ;;  %v11959_v1 = vpop.permute.xlu2 %5414  ;;  %v11961_v38 = vpop.permute.xlu1 %5400 }
 0x967   :  { %15123 = vst [vmem:[#allocation366_spill] sm:$0xff] %v11961_v38  ;;  %v4268_v38 = vld [vmem:[#allocation2 + $0x7a] sm:$0xff] }
 0x968   :  { %v11963_v9 = vpop.permute.xlu0 %5398 }
 0x969   :  { %15124 = vst [vmem:[#allocation389_spill] sm:$0xff] %v11963_v9  ;;  %v4269_v9 = vld [vmem:[#allocation2 + $0x82] sm:$0xff] }
 0x96c   :  { %5614 = vrot.lane.b32.xlu2 %v11965_v11, %s7892_s13  ;;  %5618 = vrot.lane.b32.xlu1 %v4267_v18, %s7892_s13 }
 0x96e   :  { %5616 = vrot.lane.b32.xlu0 %v4266_v54, %s7892_s13  ;;  %v11971_v24 = vpop.permute.xlu2 %5420  ;;  %v11973_v21 = vpop.permute.xlu1 %5406 }
 0x96f   :  { %15125 = vst [vmem:[#allocation424_spill] sm:$0xff] %v11971_v24  ;;  %v4309_v24 = vld [vmem:[#allocation2 + $0x292] sm:$0xff] }
 0x970   :  { %15126 = vst [vmem:[#allocation435_spill] sm:$0xff] %v11973_v21  ;;  %v11975_v56 = vpop.permute.xlu0 %5404  ;;  %v4272_v21 = vld [vmem:[#allocation2 + $0xaa] sm:$0xff] }
 0x971   :  { %15127 = vst [vmem:[#allocation71_spill] sm:$0xff] %v11975_v56  ;;  %v4274_v56 = vld [vmem:[#allocation2 + $0xc2] sm:$0xff] }
 0x974   :  { %5620 = vrot.lane.b32.xlu2 %v4268_v38, %s7892_s13  ;;  %5624 = vrot.lane.b32.xlu1 %v4270_v22, %s7892_s13 }
 0x976   :  { %5622 = vrot.lane.b32.xlu0 %v4269_v9, %s7892_s13  ;;  %v11980_v35 = vpop.permute.xlu2 %5426  ;;  %v11982_v18 = vpop.permute.xlu1 %5412 }
 0x977   :  { %15128 = vst [vmem:[#allocation103_spill] sm:$0xff] %v11980_v35  ;;  %v4276_v35 = vld [vmem:[#allocation2 + $0xda] sm:$0xff] }
 0x978   :  { %v11984_v54 = vpop.permute.xlu0 %5410 }
 0x979   :  { %15129 = vst [vmem:[#allocation137_spill] sm:$0xff] %v11984_v54  ;;  %v4275_v54 = vld [vmem:[#allocation2 + $0xca] sm:$0xff] }
 0x97c   :  { %5626 = vrot.lane.b32.xlu2 %v4271_v48, %s7892_s13  ;;  %5630 = vrot.lane.b32.xlu1 %v4273_v0, %s7892_s13 }
 0x97e   :  { %5628 = vrot.lane.b32.xlu0 %v4272_v21, %s7892_s13  ;;  %v11989_v38 = vpop.permute.xlu2 %5432  ;;  %v11991_v22 = vpop.permute.xlu1 %5418 }
 0x97f   :  { %15130 = vst [vmem:[#allocation162_spill] sm:$0xff] %v11989_v38  ;;  %v4277_v38 = vld [vmem:[#allocation2 + $0xe2] sm:$0xff] }
 0x980   :  { %v11993_v9 = vpop.permute.xlu0 %5416 }
 0x984   :  { %5632 = vrot.lane.b32.xlu2 %v4274_v56, %s7892_s13  ;;  %5636 = vrot.lane.b32.xlu1 %v4276_v35, %s7892_s13 }
 0x986   :  { %5634 = vrot.lane.b32.xlu0 %v4275_v54, %s7892_s13  ;;  %v11998_v48 = vpop.permute.xlu2 %5438  ;;  %v12000_v0 = vpop.permute.xlu1 %5424 }
 0x987   :  { %15131 = vst [vmem:[#allocation198_spill] sm:$0xff] %v11998_v48  ;;  %v4280_v48 = vld [vmem:[#allocation2 + $0x10a] sm:$0xff] }
 0x988   :  { %15132 = vst [vmem:[#allocation209_spill] sm:$0xff] %v12000_v0  ;;  %v12002_v21 = vpop.permute.xlu0 %5422  ;;  %v4285_v0 = vld [vmem:[#allocation2 + $0x142] sm:$0xff] }
 0x989   :  { %15133 = vst [vmem:[#allocation243_spill] sm:$0xff] %v12002_v21  ;;  %v12123_v21 = vld [vmem:[#allocation2 + $0x262] sm:$0xff] }
 0x98c   :  { %5638 = vrot.lane.b32.xlu2 %v4277_v38, %s7892_s13  ;;  %5642 = vrot.lane.b32.xlu1 %v4279_v47, %s7892_s13 }
 0x98e   :  { %5640 = vrot.lane.b32.xlu0 %v4278_v58, %s7892_s13  ;;  %v12007_v56 = vpop.permute.xlu2 %5444  ;;  %v12009_v35 = vpop.permute.xlu1 %5430 }
 0x98f   :  { %15134 = vst [vmem:[#allocation275_spill] sm:$0xff] %v12007_v56  ;;  %v4283_v56 = vld [vmem:[#allocation2 + $0x12a] sm:$0xff] }
 0x990   :  { %15135 = vst [vmem:[#allocation310_spill] sm:$0xff] %v12009_v35  ;;  %v12011_v54 = vpop.permute.xlu0 %5428  ;;  %v4284_v35 = vld [vmem:[#allocation2 + $0x13a] sm:$0xff] }
 0x991   :  { %15136 = vst [vmem:[#allocation333_spill] sm:$0xff] %v12011_v54  ;;  %v4288_v54 = vld [vmem:[#allocation2 + $0x16a] sm:$0xff] }
 0x994   :  { %5644 = vrot.lane.b32.xlu2 %v4280_v48, %s7892_s13  ;;  %5648 = vrot.lane.b32.xlu1 %v4282_v10, %s7892_s13 }
 0x996   :  { %5646 = vrot.lane.b32.xlu0 %v4281_v14, %s7892_s13  ;;  %v12016_v38 = vpop.permute.xlu2 %5450  ;;  %v12018_v47 = vpop.permute.xlu1 %5436 }
 0x997   :  { %15137 = vst [vmem:[#allocation368_spill] sm:$0xff] %v12016_v38  ;;  %v4286_v38 = vld [vmem:[#allocation2 + $0x152] sm:$0xff] }
 0x998   :  { %15138 = vst [vmem:[#allocation379_spill] sm:$0xff] %v12018_v47  ;;  %v12020_v58 = vpop.permute.xlu0 %5434  ;;  %v4287_v47 = vld [vmem:[#allocation2 + $0x15a] sm:$0xff] }
 0x999   :  { %15139 = vst [vmem:[#allocation414_spill] sm:$0xff] %v12020_v58  ;;  %v4291_v58 = vld [vmem:[#allocation2 + $0x18a] sm:$0xff] }
 0x99c   :  { %5650 = vrot.lane.b32.xlu2 %v4283_v56, %s7892_s13  ;;  %5654 = vrot.lane.b32.xlu1 %v4285_v0, %s7892_s13 }
 0x99e   :  { %5652 = vrot.lane.b32.xlu0 %v4284_v35, %s7892_s13  ;;  %v12025_v48 = vpop.permute.xlu2 %5456  ;;  %v12027_v10 = vpop.permute.xlu1 %5442 }
 0x99f   :  { %15140 = vst [vmem:[#allocation446_spill] sm:$0xff] %v12025_v48  ;;  %v4289_v48 = vld [vmem:[#allocation2 + $0x172] sm:$0xff] }
 0x9a0   :  { %15141 = vst [vmem:[#allocation82_spill] sm:$0xff] %v12027_v10  ;;  %v12029_v14 = vpop.permute.xlu0 %5440  ;;  %v4290_v10 = vld [vmem:[#allocation2 + $0x182] sm:$0xff] }
 0x9a1   :  { %15142 = vst [vmem:[#allocation105_spill] sm:$0xff] %v12029_v14  ;;  %v12049_v14 = vld [vmem:[#allocation2 + $0x1e2] sm:$0xff] }
 0x9a4   :  { %5656 = vrot.lane.b32.xlu2 %v4286_v38, %s7892_s13  ;;  %5660 = vrot.lane.b32.xlu1 %v4288_v54, %s7892_s13 }
 0x9a6   :  { %5658 = vrot.lane.b32.xlu0 %v4287_v47, %s7892_s13  ;;  %v12034_v56 = vpop.permute.xlu2 %5462  ;;  %v12036_v0 = vpop.permute.xlu1 %5448 }
 0x9a7   :  { %15143 = vst [vmem:[#allocation139_spill] sm:$0xff] %v12034_v56  ;;  %v4292_v56 = vld [vmem:[#allocation2 + $0x1ca] sm:$0xff] }
 0x9a8   :  { %15144 = vst [vmem:[#allocation151_spill] sm:$0xff] %v12036_v0  ;;  %v12038_v35 = vpop.permute.xlu0 %5446  ;;  %v12081_v0 = vld [vmem:[#allocation2 + $0x22a] sm:$0xff] }
 0x9a9   :  { %15145 = vst [vmem:[#allocation188_spill] sm:$0xff] %v12038_v35  ;;  %v12087_v35 = vld [vmem:[#allocation2 + $0x21a] sm:$0xff] }
 0x9ac   :  { %5662 = vrot.lane.b32.xlu2 %v4289_v48, %s7892_s13  ;;  %5666 = vrot.lane.b32.xlu1 %v4291_v58, %s7892_s13  ;;  %v4293_v48 = vld [vmem:[#allocation2 + $0x1d2] sm:$0xff] }
 0x9ae   :  { %5664 = vrot.lane.b32.xlu0 %v4290_v10, %s7892_s13  ;;  %v12043_v38 = vpop.permute.xlu2 %5468  ;;  %v12045_v54 = vpop.permute.xlu1 %5454 }
 0x9af   :  { %15146 = vst [vmem:[#allocation220_spill] sm:$0xff] %v12043_v38 }
 0x9b0   :  { %15147 = vst [vmem:[#allocation254_spill] sm:$0xff] %v12045_v54  ;;  %v12047_v47 = vpop.permute.xlu0 %5452  ;;  %v12061_v54 = vld [vmem:[#allocation2 + $0x1ea] sm:$0xff] }
 0x9b1   :  { %15148 = vst [vmem:[#allocation277_spill] sm:$0xff] %v12047_v47  ;;  %v12063_v47 = vld [vmem:[#allocation2 + $0x202] sm:$0xff] }
 0x9b4   :  { %5668 = vrot.lane.b32.xlu2 %v4292_v56, %s7892_s13  ;;  %5672 = vrot.lane.b32.xlu1 %v12049_v14, %s7892_s13  ;;  %v12069_v56 = vld [vmem:[#allocation2 + $0x1fa] sm:$0xff] }
 0x9b6   :  { %5670 = vrot.lane.b32.xlu0 %v4293_v48, %s7892_s13  ;;  %v12055_v58 = vpop.permute.xlu2 %5474  ;;  %v12057_v10 = vpop.permute.xlu1 %5460 }
 0x9b7   :  { %15149 = vst [vmem:[#allocation312_spill] sm:$0xff] %v12055_v58 }
 0x9b8   :  { %15150 = vst [vmem:[#allocation323_spill] sm:$0xff] %v12057_v10  ;;  %v12059_v38 = vpop.permute.xlu0 %5458 }
 0x9b9   :  { %15151 = vst [vmem:[#allocation358_spill] sm:$0xff] %v12059_v38  ;;  %v12079_v38 = vld [vmem:[#allocation2 + $0x212] sm:$0xff] }
 0x9bc   :  { %5674 = vrot.lane.b32.xlu2 %v12061_v54, %s7892_s13  ;;  %5678 = vrot.lane.b32.xlu1 %v12063_v47, %s7892_s13 }
 0x9be   :  { %5676 = vrot.lane.b32.xlu0 %v12069_v56, %s7892_s13  ;;  %v12073_v48 = vpop.permute.xlu2 %5608  ;;  %v12075_v58 = vpop.permute.xlu1 %5466 }
 0x9bf   :  { %15152 = vst [vmem:[#allocation390_spill] sm:$0xff] %v12075_v58 }
 0x9c0   :  { %v12077_v10 = vpop.permute.xlu0 %5464 }
 0x9c1   :  { %15153 = vst [vmem:[#allocation425_spill] sm:$0xff] %v12077_v10 }
 0x9c4   :  { %5680 = vrot.lane.b32.xlu2 %v12079_v38, %s7892_s13  ;;  %5684 = vrot.lane.b32.xlu1 %v12081_v0, %s7892_s13 }
 0x9c6   :  { %5682 = vrot.lane.b32.xlu0 %v12087_v35, %s7892_s13  ;;  %v12091_v44 = vpop.permute.xlu2 %5614  ;;  %v12093_v58 = vpop.permute.xlu1 %5472 }
 0x9c7   :  { %15154 = vst [vmem:[#allocation447_spill] sm:$0xff] %v12091_v44 }
 0x9c8   :  { %15155 = vst [vmem:[#allocation84_spill] sm:$0xff] %v12093_v58  ;;  %v12095_v10 = vpop.permute.xlu0 %5470 }
 0x9c9   :  { %15156 = vst [vmem:[#allocation95_spill] sm:$0xff] %v12095_v10 }
 0x9cc   :  { %5686 = vrot.lane.b32.xlu2 %v12097_v59, %s7892_s13  ;;  %5690 = vrot.lane.b32.xlu1 %v12099_v32, %s7892_s13 }
 0x9ce   :  { %5688 = vrot.lane.b32.xlu0 %v12105_v29, %s7892_s13  ;;  %v12109_v44 = vpop.permute.xlu2 %5620  ;;  %v12111_v58 = vpop.permute.xlu1 %5606 }
 0x9cf   :  { %15157 = vst [vmem:[#allocation129_spill] sm:$0xff] %v12109_v44 }
 0x9d0   :  { %v12113_v10 = vpop.permute.xlu0 %5604 }
 0x9d4   :  { %5692 = vrot.lane.b32.xlu2 %v12115_v39, %s7892_s13  ;;  %5696 = vrot.lane.b32.xlu1 %v12117_v15, %s7892_s13 }
 0x9d6   :  { %5694 = vrot.lane.b32.xlu0 %v12123_v21, %s7892_s13  ;;  %v12127_v44 = vpop.permute.xlu2 %5626  ;;  %v12129_v42 = vpop.permute.xlu1 %5612 }
 0x9d7   :  { %15158 = vst [vmem:[#allocation163_spill] sm:$0xff] %v12127_v44 }
 0x9d8   :  { %15159 = vst [vmem:[#allocation199_spill] sm:$0xff] %v12129_v42  ;;  %v12131_v28 = vpop.permute.xlu0 %5610  ;;  %v4310_v42 = vld [vmem:[#allocation2 + $0x2a2] sm:$0xff] }
 0x9d9   :  { %15160 = vst [vmem:[#allocation222_spill] sm:$0xff] %v12131_v28  ;;  %v4333_v28 = vld [vmem:[#allocation2 + $0x98] sm:$0xff] }
 0x9dc   :  { %5698 = vrot.lane.b32.xlu2 %v12133_v41, %s7892_s13  ;;  %5702 = vrot.lane.b32.xlu1 %v4309_v24, %s7892_s13  ;;  %v4420_v41 = vld [vmem:[#allocation2 + $0x1e1] sm:$0xff] }
 0x9de   :  { %5700 = vrot.lane.b32.xlu0 %v4308_v60, %s7892_s13  ;;  %v12139_v37 = vpop.permute.xlu2 %5632  ;;  %v12141_v7 = vpop.permute.xlu1 %5618 }
 0x9df   :  { %15162 = vst [vmem:[#allocation267_spill] sm:$0xff] %v12139_v37  ;;  %v4313_v37 = vld [vmem:[#allocation2 + $0x2c2] sm:$0xff] }
 0x9e0   :  { %15163 = vst [vmem:[#allocation302_spill] sm:$0xff] %v12141_v7  ;;  %v12143_v44 = vpop.permute.xlu0 %5616  ;;  %v4314_v7 = vld [vmem:[#allocation2 + $0x2d2] sm:$0xff] }
 0x9e1   :  { %15164 = vst [vmem:[#allocation334_spill] sm:$0xff] %v12143_v44  ;;  %v4318_v44 = vld [vmem:[#allocation2 + $0x302] sm:$0xff] }
 0x9e4   :  { %5704 = vrot.lane.b32.xlu2 %v4310_v42, %s7892_s13  ;;  %5708 = vrot.lane.b32.xlu1 %v4312_v27, %s7892_s13 }
 0x9e6   :  { %5706 = vrot.lane.b32.xlu0 %v4311_v3, %s7892_s13  ;;  %v12148_v20 = vpop.permute.xlu2 %5638  ;;  %v12150_v24 = vpop.permute.xlu1 %5624 }
 0x9e7   :  { %15165 = vst [vmem:[#allocation369_spill] sm:$0xff] %v12148_v20  ;;  %v4316_v20 = vld [vmem:[#allocation2 + $0x2ea] sm:$0xff] }
 0x9e8   :  { %15166 = vst [vmem:[#allocation392_spill] sm:$0xff] %v12150_v24  ;;  %v12152_v60 = vpop.permute.xlu0 %5622  ;;  %v4317_v24 = vld [vmem:[#allocation2 + $0x2f2] sm:$0xff] }
 0x9e9   :  { %15167 = vst [vmem:[#allocation427_spill] sm:$0xff] %v12152_v60  ;;  %v4321_v60 = vld [vmem:[#allocation2 + $0x322] sm:$0xff] }
 0x9ec   :  { %5710 = vrot.lane.b32.xlu2 %v4313_v37, %s7892_s13  ;;  %5714 = vrot.lane.b32.xlu1 %v4315_v17, %s7892_s13 }
 0x9ee   :  { %5712 = vrot.lane.b32.xlu0 %v4314_v7, %s7892_s13  ;;  %v12157_v42 = vpop.permute.xlu2 %5644  ;;  %v12159_v27 = vpop.permute.xlu1 %5630 }
 0x9ef   :  { %15168 = vst [vmem:[#allocation438_spill] sm:$0xff] %v12157_v42  ;;  %v4319_v42 = vld [vmem:[#allocation2 + $0x30a] sm:$0xff] }
 0x9f0   :  { %15169 = vst [vmem:[#allocation74_spill] sm:$0xff] %v12159_v27  ;;  %v12161_v3 = vpop.permute.xlu0 %5628  ;;  %v4320_v27 = vld [vmem:[#allocation2 + $0x31a] sm:$0xff] }
 0x9f1   :  { %15170 = vst [vmem:[#allocation106_spill] sm:$0xff] %v12161_v3  ;;  %v4324_v3 = vld [vmem:[#allocation2 + $0x30] sm:$0xff] }
 0x9f4   :  { %5716 = vrot.lane.b32.xlu2 %v4316_v20, %s7892_s13  ;;  %5720 = vrot.lane.b32.xlu1 %v4318_v44, %s7892_s13 }
 0x9f6   :  { %5718 = vrot.lane.b32.xlu0 %v4317_v24, %s7892_s13  ;;  %v12166_v37 = vpop.permute.xlu2 %5650  ;;  %v12168_v17 = vpop.permute.xlu1 %5636 }
 0x9f7   :  { %15171 = vst [vmem:[#allocation140_spill] sm:$0xff] %v12166_v37  ;;  %v4322_v37 = vld [vmem:[#allocation2 + $0x332] sm:$0xff] }
 0x9f8   :  { %15172 = vst [vmem:[#allocation165_spill] sm:$0xff] %v12168_v17  ;;  %v12170_v7 = vpop.permute.xlu0 %5634  ;;  %v4323_v17 = vld [vmem:[#allocation2 + $0x33a] sm:$0xff] }
 0x9f9   :  { %15173 = vst [vmem:[#allocation201_spill] sm:$0xff] %v12170_v7  ;;  %v4327_v7 = vld [vmem:[#allocation2 + $0x50] sm:$0xff] }
 0x9fc   :  { %5722 = vrot.lane.b32.xlu2 %v4319_v42, %s7892_s13  ;;  %5726 = vrot.lane.b32.xlu1 %v4321_v60, %s7892_s13 }
 0x9fe   :  { %5724 = vrot.lane.b32.xlu0 %v4320_v27, %s7892_s13  ;;  %v12175_v20 = vpop.permute.xlu2 %5656  ;;  %v12177_v44 = vpop.permute.xlu1 %5642 }
 0x9ff   :  { %15174 = vst [vmem:[#allocation212_spill] sm:$0xff] %v12175_v20  ;;  %v4325_v20 = vld [vmem:[#allocation2 + $0x38] sm:$0xff] }
 0xa00   :  { %15175 = vst [vmem:[#allocation246_spill] sm:$0xff] %v12177_v44  ;;  %v12179_v24 = vpop.permute.xlu0 %5640  ;;  %v4326_v44 = vld [vmem:[#allocation2 + $0x48] sm:$0xff] }
 0xa01   :  { %15176 = vst [vmem:[#allocation278_spill] sm:$0xff] %v12179_v24  ;;  %v4330_v24 = vld [vmem:[#allocation2 + $0x78] sm:$0xff] }
 0xa04   :  { %5728 = vrot.lane.b32.xlu2 %v4322_v37, %s7892_s13  ;;  %5860 = vrot.lane.b32.xlu1 %v4324_v3, %s7893_s14 }
 0xa06   :  { %5730 = vrot.lane.b32.xlu0 %v4323_v17, %s7892_s13  ;;  %v12184_v42 = vpop.permute.xlu2 %5662  ;;  %v12186_v60 = vpop.permute.xlu1 %5648 }
 0xa07   :  { %15177 = vst [vmem:[#allocation313_spill] sm:$0xff] %v12184_v42  ;;  %v4328_v42 = vld [vmem:[#allocation2 + $0x60] sm:$0xff] }
 0xa08   :  { %15178 = vst [vmem:[#allocation336_spill] sm:$0xff] %v12186_v60  ;;  %v12188_v27 = vpop.permute.xlu0 %5646  ;;  %v4329_v60 = vld [vmem:[#allocation2 + $0x68] sm:$0xff] }
 0xa09   :  { %15179 = vst [vmem:[#allocation371_spill] sm:$0xff] %v12188_v27  ;;  %v4331_v27 = vld [vmem:[#allocation2 + $0x80] sm:$0xff] }
 0xa0c   :  { %5862 = vrot.lane.b32.xlu2 %v4325_v20, %s7893_s14  ;;  %5866 = vrot.lane.b32.xlu1 %v4327_v7, %s7893_s14 }
 0xa0e   :  { %5864 = vrot.lane.b32.xlu0 %v4326_v44, %s7893_s14  ;;  %v12193_v37 = vpop.permute.xlu2 %5668  ;;  %v12195_v3 = vpop.permute.xlu1 %5654 }
 0xa0f   :  { %15180 = vst [vmem:[#allocation382_spill] sm:$0xff] %v12195_v3  ;;  %v4332_v3 = vld [vmem:[#allocation2 + $0x90] sm:$0xff] }
 0xa10   :  { %v12197_v17 = vpop.permute.xlu0 %5652 }
 0xa11   :  { %15181 = vst [vmem:[#allocation417_spill] sm:$0xff] %v12197_v17  ;;  %v4334_v17 = vld [vmem:[#allocation2 + $0xa8] sm:$0xff] }
 0xa14   :  { %5868 = vrot.lane.b32.xlu2 %v4328_v42, %s7893_s14  ;;  %5872 = vrot.lane.b32.xlu1 %v4330_v24, %s7893_s14 }
 0xa16   :  { %5870 = vrot.lane.b32.xlu0 %v4329_v60, %s7893_s14  ;;  %v12202_v20 = vpop.permute.xlu2 %5674  ;;  %v12204_v7 = vpop.permute.xlu1 %5660 }
 0xa17   :  { %15182 = vst [vmem:[#allocation448_spill] sm:$0xff] %v12204_v7  ;;  %v4335_v7 = vld [vmem:[#allocation2 + $0xb0] sm:$0xff] }
 0xa18   :  { %v12206_v44 = vpop.permute.xlu0 %5658 }
 0xa19   :  { %15183 = vst [vmem:[#allocation85_spill] sm:$0xff] %v12206_v44  ;;  %v4337_v44 = vld [vmem:[#allocation2 + $0xc8] sm:$0xff] }
 0xa1c   :  { %5874 = vrot.lane.b32.xlu2 %v4331_v27, %s7893_s14  ;;  %5878 = vrot.lane.b32.xlu1 %v4333_v28, %s7893_s14 }
 0xa1e   :  { %5876 = vrot.lane.b32.xlu0 %v4332_v3, %s7893_s14  ;;  %v12211_v42 = vpop.permute.xlu2 %5680  ;;  %v12213_v24 = vpop.permute.xlu1 %5666 }
 0xa1f   :  { %15184 = vst [vmem:[#allocation108_spill] sm:$0xff] %v12211_v42  ;;  %v4339_v42 = vld [vmem:[#allocation2 + $0xe0] sm:$0xff] }
 0xa20   :  { %15185 = vst [vmem:[#allocation142_spill] sm:$0xff] %v12213_v24  ;;  %v12215_v60 = vpop.permute.xlu0 %5664  ;;  %v4338_v24 = vld [vmem:[#allocation2 + $0xd8] sm:$0xff] }
 0xa21   :  { %15186 = vst [vmem:[#allocation155_spill] sm:$0xff] %v12215_v60  ;;  %v4340_v60 = vld [vmem:[#allocation2 + $0xf0] sm:$0xff] }
 0xa24   :  { %5880 = vrot.lane.b32.xlu2 %v4334_v17, %s7893_s14  ;;  %5884 = vrot.lane.b32.xlu1 %v4336_v40, %s7893_s14 }
 0xa26   :  { %5882 = vrot.lane.b32.xlu0 %v4335_v7, %s7893_s14  ;;  %v12220_v27 = vpop.permute.xlu2 %5686  ;;  %v12222_v28 = vpop.permute.xlu1 %5672 }
 0xa27   :  { %15187 = vst [vmem:[#allocation191_spill] sm:$0xff] %v12220_v27  ;;  %v4342_v27 = vld [vmem:[#allocation2 + $0x108] sm:$0xff] }
 0xa28   :  { %v12224_v3 = vpop.permute.xlu0 %5670 }
 0xa2c   :  { %5886 = vrot.lane.b32.xlu2 %v4337_v44, %s7893_s14  ;;  %5890 = vrot.lane.b32.xlu1 %v4339_v42, %s7893_s14 }
 0xa2e   :  { %5888 = vrot.lane.b32.xlu0 %v4338_v24, %s7893_s14  ;;  %v12229_v17 = vpop.permute.xlu2 %5692  ;;  %v12231_v40 = vpop.permute.xlu1 %5678 }
 0xa2f   :  { %15188 = vst [vmem:[#allocation223_spill] sm:$0xff] %v12229_v17  ;;  %v4343_v17 = vld [vmem:[#allocation2 + $0x110] sm:$0xff] }
 0xa30   :  { %15189 = vst [vmem:[#allocation257_spill] sm:$0xff] %v12231_v40  ;;  %v12233_v7 = vpop.permute.xlu0 %5676  ;;  %v4344_v40 = vld [vmem:[#allocation2 + $0x120] sm:$0xff] }
 0xa31   :  { %15190 = vst [vmem:[#allocation280_spill] sm:$0xff] %v12233_v7  ;;  %v4348_v7 = vld [vmem:[#allocation2 + $0x150] sm:$0xff] }
 0xa34   :  { %5892 = vrot.lane.b32.xlu2 %v4340_v60, %s7893_s14  ;;  %5896 = vrot.lane.b32.xlu1 %v4342_v27, %s7893_s14 }
 0xa36   :  { %5894 = vrot.lane.b32.xlu0 %v4341_v6, %s7893_s14  ;;  %v12238_v44 = vpop.permute.xlu2 %5698  ;;  %v12240_v42 = vpop.permute.xlu1 %5684 }
 0xa37   :  { %15191 = vst [vmem:[#allocation315_spill] sm:$0xff] %v12238_v44  ;;  %v4346_v44 = vld [vmem:[#allocation2 + $0x138] sm:$0xff] }
 0xa38   :  { %15192 = vst [vmem:[#allocation326_spill] sm:$0xff] %v12240_v42  ;;  %v12242_v24 = vpop.permute.xlu0 %5682  ;;  %v4347_v42 = vld [vmem:[#allocation2 + $0x140] sm:$0xff] }
 0xa39   :  { %15193 = vst [vmem:[#allocation361_spill] sm:$0xff] %v12242_v24  ;;  %v4351_v24 = vld [vmem:[#allocation2 + $0x170] sm:$0xff] }
 0xa3c   :  { %5898 = vrot.lane.b32.xlu2 %v4343_v17, %s7893_s14  ;;  %5902 = vrot.lane.b32.xlu1 %v4345_v46, %s7893_s14 }
 0xa3e   :  { %5900 = vrot.lane.b32.xlu0 %v4344_v40, %s7893_s14  ;;  %v12247_v60 = vpop.permute.xlu2 %5704  ;;  %v12249_v27 = vpop.permute.xlu1 %5690 }
 0xa3f   :  { %15194 = vst [vmem:[#allocation393_spill] sm:$0xff] %v12247_v60  ;;  %v4349_v60 = vld [vmem:[#allocation2 + $0x158] sm:$0xff] }
 0xa40   :  { %15195 = vst [vmem:[#allocation428_spill] sm:$0xff] %v12249_v27  ;;  %v12251_v6 = vpop.permute.xlu0 %5688  ;;  %v4350_v27 = vld [vmem:[#allocation2 + $0x168] sm:$0xff] }
 0xa41   :  { %15196 = vst [vmem:[#allocation450_spill] sm:$0xff] %v12251_v6  ;;  %v4352_v6 = vld [vmem:[#allocation2 + $0x180] sm:$0xff] }
 0xa44   :  { %5904 = vrot.lane.b32.xlu2 %v4346_v44, %s7893_s14  ;;  %5908 = vrot.lane.b32.xlu1 %v4348_v7, %s7893_s14 }
 0xa46   :  { %5906 = vrot.lane.b32.xlu0 %v4347_v42, %s7893_s14  ;;  %v12256_v17 = vpop.permute.xlu2 %5710  ;;  %v12258_v46 = vpop.permute.xlu1 %5696 }
 0xa47   :  { %15197 = vst [vmem:[#allocation87_spill] sm:$0xff] %v12256_v17  ;;  %v4354_v17 = vld [vmem:[#allocation2 + $0x198] sm:$0xff] }
 0xa48   :  { %15198 = vst [vmem:[#allocation98_spill] sm:$0xff] %v12258_v46  ;;  %v12260_v40 = vpop.permute.xlu0 %5694  ;;  %v4353_v46 = vld [vmem:[#allocation2 + $0x188] sm:$0xff] }
 0xa49   :  { %15199 = vst [vmem:[#allocation132_spill] sm:$0xff] %v12260_v40  ;;  %v4357_v40 = vld [vmem:[#allocation2 + $0x1e8] sm:$0xff] }
 0xa4c   :  { %5910 = vrot.lane.b32.xlu2 %v4349_v60, %s7893_s14  ;;  %5914 = vrot.lane.b32.xlu1 %v4351_v24, %s7893_s14 }
 0xa4e   :  { %5912 = vrot.lane.b32.xlu0 %v4350_v27, %s7893_s14  ;;  %v12265_v44 = vpop.permute.xlu2 %5716  ;;  %v12267_v7 = vpop.permute.xlu1 %5702 }
 0xa4f   :  { %15200 = vst [vmem:[#allocation166_spill] sm:$0xff] %v12265_v44  ;;  %v4355_v44 = vld [vmem:[#allocation2 + $0x1a0] sm:$0xff] }
 0xa50   :  { %15201 = vst [vmem:[#allocation202_spill] sm:$0xff] %v12267_v7  ;;  %v12269_v42 = vpop.permute.xlu0 %5700  ;;  %v4356_v7 = vld [vmem:[#allocation2 + $0x1e0] sm:$0xff] }
 0xa51   :  { %15202 = vst [vmem:[#allocation225_spill] sm:$0xff] %v12269_v42  ;;  %v4360_v42 = vld [vmem:[#allocation2 + $0x210] sm:$0xff] }
 0xa54   :  { %5916 = vrot.lane.b32.xlu2 %v4352_v6, %s7893_s14  ;;  %5920 = vrot.lane.b32.xlu1 %v4354_v17, %s7893_s14 }
 0xa56   :  { %5918 = vrot.lane.b32.xlu0 %v4353_v46, %s7893_s14  ;;  %v12274_v60 = vpop.permute.xlu2 %5722  ;;  %v12276_v24 = vpop.permute.xlu1 %5708 }
 0xa57   :  { %15203 = vst [vmem:[#allocation259_spill] sm:$0xff] %v12274_v60  ;;  %v4358_v60 = vld [vmem:[#allocation2 + $0x1f8] sm:$0xff] }
 0xa58   :  { %15204 = vst [vmem:[#allocation270_spill] sm:$0xff] %v12276_v24  ;;  %v12278_v27 = vpop.permute.xlu0 %5706  ;;  %v4359_v24 = vld [vmem:[#allocation2 + $0x200] sm:$0xff] }
 0xa59   :  { %15205 = vst [vmem:[#allocation305_spill] sm:$0xff] %v12278_v27  ;;  %v4363_v27 = vld [vmem:[#allocation2 + $0x230] sm:$0xff] }
 0xa5c   :  { %5922 = vrot.lane.b32.xlu2 %v4355_v44, %s7893_s14  ;;  %5926 = vrot.lane.b32.xlu1 %v4357_v40, %s7893_s14 }
 0xa5e   :  { %5924 = vrot.lane.b32.xlu0 %v4356_v7, %s7893_s14  ;;  %v12283_v6 = vpop.permute.xlu2 %5728  ;;  %v12285_v17 = vpop.permute.xlu1 %5714 }
 0xa5f   :  { %15206 = vst [vmem:[#allocation337_spill] sm:$0xff] %v12283_v6  ;;  %v4361_v6 = vld [vmem:[#allocation2 + $0x218] sm:$0xff] }
 0xa60   :  { %15207 = vst [vmem:[#allocation372_spill] sm:$0xff] %v12285_v17  ;;  %v12287_v46 = vpop.permute.xlu0 %5712  ;;  %v4362_v17 = vld [vmem:[#allocation2 + $0x228] sm:$0xff] }
 0xa61   :  { %15208 = vst [vmem:[#allocation395_spill] sm:$0xff] %v12287_v46  ;;  %v4364_v46 = vld [vmem:[#allocation2 + $0x240] sm:$0xff] }
 0xa64   :  { %5928 = vrot.lane.b32.xlu2 %v4358_v60, %s7893_s14  ;;  %5932 = vrot.lane.b32.xlu1 %v4360_v42, %s7893_s14 }
 0xa66   :  { %5930 = vrot.lane.b32.xlu0 %v4359_v24, %s7893_s14  ;;  %v12292_v44 = vpop.permute.xlu2 %5862  ;;  %v12294_v40 = vpop.permute.xlu1 %5720 }
 0xa67   :  { %15209 = vst [vmem:[#allocation430_spill] sm:$0xff] %v12294_v40  ;;  %v4365_v40 = vld [vmem:[#allocation2 + $0x248] sm:$0xff] }
 0xa68   :  { %v12296_v7 = vpop.permute.xlu0 %5718 }
 0xa69   :  { %15210 = vst [vmem:[#allocation441_spill] sm:$0xff] %v12296_v7  ;;  %v4367_v7 = vld [vmem:[#allocation2 + $0x260] sm:$0xff] }
 0xa6c   :  { %5934 = vrot.lane.b32.xlu2 %v4361_v6, %s7893_s14  ;;  %5938 = vrot.lane.b32.xlu1 %v4363_v27, %s7893_s14 }
 0xa6e   :  { %5936 = vrot.lane.b32.xlu0 %v4362_v17, %s7893_s14  ;;  %v12301_v60 = vpop.permute.xlu2 %5868  ;;  %v12303_v42 = vpop.permute.xlu1 %5726 }
 0xa6f   :  { %15211 = vst [vmem:[#allocation77_spill] sm:$0xff] %v12301_v60  ;;  %v4369_v60 = vld [vmem:[#allocation2 + $0x278] sm:$0xff] }
 0xa70   :  { %15212 = vst [vmem:[#allocation109_spill] sm:$0xff] %v12303_v42  ;;  %v12305_v24 = vpop.permute.xlu0 %5724  ;;  %v4368_v42 = vld [vmem:[#allocation2 + $0x270] sm:$0xff] }
 0xa71   :  { %15213 = vst [vmem:[#allocation143_spill] sm:$0xff] %v12305_v24  ;;  %v4370_v24 = vld [vmem:[#allocation2 + $0x288] sm:$0xff] }
 0xa74   :  { %5940 = vrot.lane.b32.xlu2 %v4364_v46, %s7893_s14  ;;  %5944 = vrot.lane.b32.xlu1 %v4366_v4, %s7893_s14 }
 0xa76   :  { %5942 = vrot.lane.b32.xlu0 %v4365_v40, %s7893_s14  ;;  %v12310_v6 = vpop.permute.xlu2 %5874  ;;  %v12312_v27 = vpop.permute.xlu1 %5860 }
 0xa77   :  { %15214 = vst [vmem:[#allocation168_spill] sm:$0xff] %v12310_v6  ;;  %v4372_v6 = vld [vmem:[#allocation2 + $0x2a0] sm:$0xff] }
 0xa78   :  { %v12314_v17 = vpop.permute.xlu0 %5730 }
 0xa79   :  { %15215 = vst [vmem:[#allocation204_spill] sm:$0xff] %v12314_v17  ;;  %v4371_v17 = vld [vmem:[#allocation2 + $0x290] sm:$0xff] }
 0xa7c   :  { %5946 = vrot.lane.b32.xlu2 %v4367_v7, %s7893_s14  ;;  %5950 = vrot.lane.b32.xlu1 %v4369_v60, %s7893_s14 }
 0xa7e   :  { %5948 = vrot.lane.b32.xlu0 %v4368_v42, %s7893_s14  ;;  %v12319_v46 = vpop.permute.xlu2 %5880  ;;  %v12321_v4 = vpop.permute.xlu1 %5866 }
 0xa7f   :  { %15216 = vst [vmem:[#allocation215_spill] sm:$0xff] %v12319_v46  ;;  %v4373_v46 = vld [vmem:[#allocation2 + $0x2a8] sm:$0xff] }
 0xa80   :  { %15217 = vst [vmem:[#allocation249_spill] sm:$0xff] %v12321_v4  ;;  %v12323_v40 = vpop.permute.xlu0 %5864  ;;  %v4374_v4 = vld [vmem:[#allocation2 + $0x2b8] sm:$0xff] }
 0xa84   :  { %5952 = vrot.lane.b32.xlu2 %v4370_v24, %s7893_s14  ;;  %5956 = vrot.lane.b32.xlu1 %v4372_v6, %s7893_s14 }
 0xa86   :  { %5954 = vrot.lane.b32.xlu0 %v4371_v17, %s7893_s14  ;;  %v12328_v7 = vpop.permute.xlu2 %5886  ;;  %v12330_v60 = vpop.permute.xlu1 %5872 }
 0xa87   :  { %15218 = vst [vmem:[#allocation281_spill] sm:$0xff] %v12328_v7  ;;  %v4388_v7 = vld [vmem:[#allocation2 + $0x31] sm:$0xff] }
 0xa88   :  { %15219 = vst [vmem:[#allocation316_spill] sm:$0xff] %v12330_v60  ;;  %v12332_v42 = vpop.permute.xlu0 %5870  ;;  %v4389_v60 = vld [vmem:[#allocation2 + $0x39] sm:$0xff] }
 0xa8c   :  { %5958 = vrot.lane.b32.xlu2 %v4373_v46, %s7893_s14  ;;  %6180 = vrot.lane.b32.xlu1 %v4420_v41, %s7894_s15 }
 0xa8e   :  { %5960 = vrot.lane.b32.xlu0 %v4374_v4, %s7893_s14  ;;  %v12337_v24 = vpop.permute.xlu2 %5892  ;;  %v12339_v6 = vpop.permute.xlu1 %5878 }
 0xa8f   :  { %15220 = vst [vmem:[#allocation339_spill] sm:$0xff] %v12337_v24  ;;  %v4421_v24 = vld [vmem:[#allocation2 + $0x1e9] sm:$0xff] }
 0xa90   :  { %15221 = vst [vmem:[#allocation374_spill] sm:$0xff] %v12339_v6  ;;  %v12341_v17 = vpop.permute.xlu0 %5876 }
 0xa91   :  { %15222 = vst [vmem:[#allocation385_spill] sm:$0xff] %v12341_v17 }
 0xa94   :  { %6436 = vrot.lane.b32.xlu2 %v12049_v14, %s7895_s16  ;;  %6372 = vrot.lane.b32.xlu1 %v11947_v26, %s7895_s16 }
 0xa96   :  { %6116 = vrot.lane.b32.xlu0 %v4388_v7, %s7894_s15  ;;  %v12348_v46 = vpop.permute.xlu2 %5898  ;;  %v12350_v41 = vpop.permute.xlu1 %5884 }
 0xa97   :  { %15223 = vst [vmem:[#allocation420_spill] sm:$0xff] %v12348_v46  ;;  %v4422_v46 = vld [vmem:[#allocation2 + $0x1f9] sm:$0xff] }
 0xa98   :  { %15224 = vst [vmem:[#allocation451_spill] sm:$0xff] %v12350_v41  ;;  %v12352_v4 = vpop.permute.xlu0 %5882  ;;  %v4423_v41 = vld [vmem:[#allocation2 + $0x201] sm:$0xff] }
 0xa99   :  { %15225 = vst [vmem:[#allocation88_spill] sm:$0xff] %v12352_v4  ;;  %v4429_v4 = vld [vmem:[#allocation2 + $0x249] sm:$0xff] }
 0xa9c   :  { %6182 = vrot.lane.b32.xlu2 %v4421_v24, %s7894_s15  ;;  %6118 = vrot.lane.b32.xlu1 %v4389_v60, %s7894_s15 }
 0xa9e   :  { %6438 = vrot.lane.b32.xlu0 %v12061_v54, %s7895_s16  ;;  %v12358_v14 = vpop.permute.xlu2 %5904  ;;  %v12360_v26 = vpop.permute.xlu1 %5890 }
 0xa9f   :  { %15226 = vst [vmem:[#allocation111_spill] sm:$0xff] %v12358_v14  ;;  %v4390_v14 = vld [vmem:[#allocation2 + $0x49] sm:$0xff] }
 0xaa0   :  { %15227 = vst [vmem:[#allocation145_spill] sm:$0xff] %v12360_v26  ;;  %v12362_v7 = vpop.permute.xlu0 %5888  ;;  %v4428_v26 = vld [vmem:[#allocation2 + $0x241] sm:$0xff] }
 0xaa1   :  { %15228 = vst [vmem:[#allocation158_spill] sm:$0xff] %v12362_v7 }
 0xaa4   :  { %6374 = vrot.lane.b32.xlu2 %v11955_v8, %s7895_s16  ;;  %6440 = vrot.lane.b32.xlu1 %v12069_v56, %s7895_s16 }
 0xaa6   :  { %6184 = vrot.lane.b32.xlu0 %v4422_v46, %s7894_s15  ;;  %v12369_v24 = vpop.permute.xlu2 %5910  ;;  %v12371_v60 = vpop.permute.xlu1 %5896 }
 0xaa7   :  { %15229 = vst [vmem:[#allocation194_spill] sm:$0xff] %v12369_v24  ;;  %v4391_v24 = vld [vmem:[#allocation2 + $0x51] sm:$0xff] }
 0xaa8   :  { %15230 = vst [vmem:[#allocation226_spill] sm:$0xff] %v12371_v60  ;;  %v12373_v54 = vpop.permute.xlu0 %5894  ;;  %v4392_v60 = vld [vmem:[#allocation2 + $0x61] sm:$0xff] }
 0xaa9   :  { %15231 = vst [vmem:[#allocation260_spill] sm:$0xff] %v12373_v54 }
 0xaac   :  { %6120 = vrot.lane.b32.xlu2 %v4390_v14, %s7894_s15  ;;  %6186 = vrot.lane.b32.xlu1 %v4423_v41, %s7894_s15 }
 0xaae   :  { %6376 = vrot.lane.b32.xlu0 %v11949_v62, %s7895_s16  ;;  %v12379_v8 = vpop.permute.xlu2 %5916  ;;  %v12381_v56 = vpop.permute.xlu1 %5902 }
 0xaaf   :  { %15232 = vst [vmem:[#allocation283_spill] sm:$0xff] %v12379_v8  ;;  %v4424_v8 = vld [vmem:[#allocation2 + $0x211] sm:$0xff] }
 0xab0   :  { %15233 = vst [vmem:[#allocation318_spill] sm:$0xff] %v12381_v56  ;;  %v12383_v46 = vpop.permute.xlu0 %5900  ;;  %v4426_v56 = vld [vmem:[#allocation2 + $0x229] sm:$0xff] }
 0xab1   :  { %15234 = vst [vmem:[#allocation329_spill] sm:$0xff] %v12383_v46  ;;  %v4395_v46 = vld [vmem:[#allocation2 + $0x81] sm:$0xff] }
 0xab4   :  { %6442 = vrot.lane.b32.xlu2 %v12063_v47, %s7895_s16  ;;  %6378 = vrot.lane.b32.xlu1 %v11965_v11, %s7895_s16 }
 0xab6   :  { %6122 = vrot.lane.b32.xlu0 %v4391_v24, %s7894_s15  ;;  %v12390_v14 = vpop.permute.xlu2 %5922  ;;  %v12392_v41 = vpop.permute.xlu1 %5908 }
 0xab7   :  { %15235 = vst [vmem:[#allocation364_spill] sm:$0xff] %v12390_v14  ;;  %v4456_v14 = vld [vmem:[#allocation2 + $0x62] sm:$0xff] }
 0xab8   :  { %15236 = vst [vmem:[#allocation396_spill] sm:$0xff] %v12392_v41  ;;  %v12394_v62 = vpop.permute.xlu0 %5906  ;;  %v4425_v41 = vld [vmem:[#allocation2 + $0x219] sm:$0xff] }
 0xab9   :  { %15237 = vst [vmem:[#allocation431_spill] sm:$0xff] %v12394_v62  ;;  %v4393_v62 = vld [vmem:[#allocation2 + $0x69] sm:$0xff] }
 0xabc   :  { %6188 = vrot.lane.b32.xlu2 %v4424_v8, %s7894_s15  ;;  %6124 = vrot.lane.b32.xlu1 %v4392_v60, %s7894_s15 }
 0xabe   :  { %6444 = vrot.lane.b32.xlu0 %v12079_v38, %s7895_s16  ;;  %v12400_v47 = vpop.permute.xlu2 %5928  ;;  %v12402_v11 = vpop.permute.xlu1 %5914 }
 0xabf   :  { %15238 = vst [vmem:[#allocation453_spill] sm:$0xff] %v12402_v11  ;;  %v4457_v11 = vld [vmem:[#allocation2 + $0x6a] sm:$0xff] }
 0xac0   :  { %v12404_v24 = vpop.permute.xlu0 %5912 }
 0xac1   :  { %15239 = vst [vmem:[#allocation90_spill] sm:$0xff] %v12404_v24  ;;  %v4458_v24 = vld [vmem:[#allocation2 + $0x7a] sm:$0xff] }
 0xac4   :  { %6380 = vrot.lane.b32.xlu2 %v4456_v14, %s7895_s16  ;;  %6446 = vrot.lane.b32.xlu1 %v12087_v35, %s7895_s16 }
 0xac6   :  { %6190 = vrot.lane.b32.xlu0 %v4425_v41, %s7894_s15  ;;  %v12410_v8 = vpop.permute.xlu2 %5934  ;;  %v12412_v60 = vpop.permute.xlu1 %5920 }
 0xac7   :  { %15240 = vst [vmem:[#allocation101_spill] sm:$0xff] %v12412_v60  ;;  %v4394_v60 = vld [vmem:[#allocation2 + $0x79] sm:$0xff] }
 0xac8   :  { %v12414_v38 = vpop.permute.xlu0 %5918 }
 0xac9   :  { %15241 = vst [vmem:[#allocation135_spill] sm:$0xff] %v12414_v38  ;;  %v4427_v38 = vld [vmem:[#allocation2 + $0x231] sm:$0xff] }
 0xacc   :  { %6126 = vrot.lane.b32.xlu2 %v4393_v62, %s7894_s15  ;;  %6192 = vrot.lane.b32.xlu1 %v4426_v56, %s7894_s15 }
 0xace   :  { %6382 = vrot.lane.b32.xlu0 %v4457_v11, %s7895_s16  ;;  %v12419_v14 = vpop.permute.xlu2 %5940  ;;  %v12421_v35 = vpop.permute.xlu1 %5926 }
 0xad0   :  { %v12423_v41 = vpop.permute.xlu0 %5924 }
 0xad4   :  { %6448 = vrot.lane.b32.xlu2 %v12081_v0, %s7895_s16  ;;  %6384 = vrot.lane.b32.xlu1 %v4458_v24, %s7895_s16 }
 0xad6   :  { %6128 = vrot.lane.b32.xlu0 %v4394_v60, %s7894_s15  ;;  %v12429_v62 = vpop.permute.xlu2 %5946  ;;  %v12431_v56 = vpop.permute.xlu1 %5932  ;;  %v7692_v60 = vld [vmem:[%s14008_s1 + $0x48] sm:$0xf] }
 0xad7   :  { %15242 = vst [vmem:[#allocation169_spill] sm:$0xff] %v12429_v62  ;;  %7764 = vmatpush.msk.msra.mxu3 %vm3599_vm2, %v7692_v60  ;;  %7694 = vmatpush.msk.msra.mxu1 %vm3599_vm2, %v7692_v60  ;;  %v7689_v60 = vld [vmem:[%s14008_s1 + $0x30] sm:$0xff] }
 0xad8   :  { %v12433_v11 = vpop.permute.xlu0 %5930 }
 0xadc   :  { %6194 = vrot.lane.b32.xlu2 %v4427_v38, %s7894_s15  ;;  %6130 = vrot.lane.b32.xlu1 %v4395_v46, %s7894_s15  ;;  %v7691_v46 = vld [vmem:[%s14008_s1 + $0x40] sm:$0xff] }
 0xadd   :  { %7765 = vmatpush.msra.mxu3 %v7691_v46  ;;  %7294 = vmatpush.msra.mxu1 %v7691_v46  ;;  %v4459_v38 = vld [vmem:[#allocation2 + $0x82] sm:$0xff] }
 0xade   :  { %6450 = vrot.lane.b32.xlu0 %v12097_v59, %s7895_s16  ;;  %v12439_v0 = vpop.permute.xlu2 %5952  ;;  %v12441_v24 = vpop.permute.xlu1 %5938  ;;  %v7690_v59 = vld [vmem:[%s14008_s1 + $0x38] sm:$0xff]  ;;  %v7688_v46 = vld [vmem:[%s14008_s1 + $0x28] sm:$0xff] }
 0xadf   :  { %15243 = vst [vmem:[#allocation205_spill] sm:$0xff] %v12439_v0  ;;  %7766 = vmatpush.msra.mxu3 %v7690_v59  ;;  %7295 = vmatpush.msra.mxu1 %v7690_v59 }
 0xae0   :  { %v12448_v54 = vpop.permute.xlu0 %5936 }
 0xae1   :  { %7767 = vmatpush.msra.mxu3 %v7689_v60  ;;  %7296 = vmatpush.msra.mxu1 %v7689_v60  ;;  %v4397_v60 = vld [vmem:[#allocation2 + $0x99] sm:$0xff] }
 0xae3   :  { %7768 = vmatpush.msra.mxu3 %v7688_v46  ;;  %7297 = vmatpush.msra.mxu1 %v7688_v46  ;;  %v3972_v46 = vld [vmem:[#allocation2 + $0x1b0] sm:$0xff] }
 0xae4   :  { %6386 = vrot.lane.b32.xlu2 %v4459_v38, %s7895_s16  ;;  %6452 = vrot.lane.b32.xlu1 %v12105_v29, %s7895_s16  ;;  %v4396_v38 = vld [vmem:[#allocation2 + $0x91] sm:$0xff] }
 0xae6   :  { %6196 = vrot.lane.b32.xlu0 %v4428_v26, %s7894_s15  ;;  %v12463_v7 = vpop.permute.xlu2 %5958  ;;  %v12465_v0 = vpop.permute.xlu1 %5944  ;;  %v4460_v26 = vld [vmem:[#allocation2 + $0x92] sm:$0xff] }
 0xae7   :  { %15244 = vst [vmem:[#allocation228_spill] sm:$0xff] %v12463_v7 }
 0xae8   :  { %15245 = vst [vmem:[#allocation262_spill] sm:$0xff] %v12465_v0  ;;  %v12470_v29 = vpop.permute.xlu0 %5942  ;;  %v4461_v0 = vld [vmem:[#allocation2 + $0x9a] sm:$0xff] }
 0xaec   :  { %6132 = vrot.lane.b32.xlu2 %v4396_v38, %s7894_s15  ;;  %6198 = vrot.lane.b32.xlu1 %v4429_v4, %s7894_s15 }
 0xaee   :  { %6388 = vrot.lane.b32.xlu0 %v4460_v26, %s7895_s16  ;;  %v6437_v59 = vpop.permute.xlu2 %6436  ;;  %v12475_v7 = vpop.permute.xlu1 %5950  ;;  %v6596_v26 = vsel %vm14_vm0, %v3972_v46, %v11389_v25  ;;  %v3940_v46 = vld [vmem:[#allocation2] sm:$0xff] }
 0xaef   :  { %15246 = vst [vmem:[#allocation273_spill] sm:$0xff] %v12475_v7  ;;  %v6660_v7 = vsel %vm2942_vm4, %v6596_v26, %v11563_v51 }
 0xaf0   :  { %v12477_v62 = vpop.permute.xlu0 %5948 }
 0xaf1   :  { %15247 = vst [vmem:[#allocation308_spill] sm:$0xff] %v12477_v62  ;;  %v4430_v62 = vld [vmem:[#allocation2 + $0x259] sm:$0xff] }
 0xaf4   :  { %6454 = vrot.lane.b32.xlu2 %v12099_v32, %s7895_s16  ;;  %6390 = vrot.lane.b32.xlu1 %v4461_v0, %s7895_s16  ;;  %v6724_v32 = vsel %vm3007_vm3, %v6660_v7, %v11783_v49  ;;  %v4398_v0 = vld [vmem:[#allocation2 + $0xa9] sm:$0xff] }
 0xaf5   :  { %v6788_v17 = vsel %vm3072_vm5, %v6724_v32, %v11982_v18  ;;  %v3941_v32 = vld [vmem:[#allocation2 + $0x8] sm:$0xff] }
 0xaf6   :  { %6134 = vrot.lane.b32.xlu0 %v4397_v60, %s7894_s15  ;;  %v6183_v38 = vpop.permute.xlu2 %6182  ;;  %v12483_v4 = vpop.permute.xlu1 %5956  ;;  %v6852_v60 = vsel %vm3137_vm7, %v6788_v17, %v12193_v37  ;;  %v6564_v37 = vsel %vm14_vm0, %v3940_v46, %v11256_v5  ;;  %v4462_v17 = vld [vmem:[#allocation2 + $0xaa] sm:$0xff] }
 0xaf7   :  { %v6916_v25 = vsel %vm3202_vm6, %v6852_v60, %v12423_v41  ;;  %v6628_v41 = vsel %vm2942_vm4, %v6564_v37, %v11495_v33  ;;  %v3973_v60 = vld [vmem:[#allocation2 + $0x1b8] sm:$0xff] }
 0xaf8   :  { %v12485_v6 = vpop.permute.xlu0 %5954 }
 0xafc   :  { %6200 = vrot.lane.b32.xlu2 %v4430_v62, %s7894_s15  ;;  %6136 = vrot.lane.b32.xlu1 %v4398_v0, %s7894_s15  ;;  %v4431_v62 = vld [vmem:[#allocation2 + $0x261] sm:$0xff] }
 0xafe   :  { %6456 = vrot.lane.b32.xlu0 %v12115_v39, %s7895_s16  ;;  %v6375_v51 = vpop.permute.xlu2 %6374  ;;  %v6181_v49 = vpop.permute.xlu1 %6180  ;;  %v6692_v39 = vsel %vm3007_vm3, %v6628_v41, %v11682_v12  ;;  %v6565_v12 = vsel %vm14_vm0, %v3941_v32, %v11291_v13  ;;  %v4432_v13 = vld [vmem:[#allocation2 + $0x271] sm:$0xff] }
 0xaff   :  { %v6980_v7 = vsel %vm3267_vm8, %v6916_v25, %v6181_v49 }
 0xb00   :  { %v12504_v26 = vpop.permute.xlu0 %5960  ;;  %v7044_v18 = vsel %vm3332_vm10, %v6980_v7, %v6437_v59  ;;  %v6756_v59 = vsel %vm3072_vm5, %v6692_v39, %v11851_v2  ;;  %v6597_v2 = vsel %vm14_vm0, %v3973_v60, %v11369_v52  ;;  %v6629_v7 = vsel %vm2942_vm4, %v6565_v12, %v11493_v45  ;;  %v7842_v12 = vld [vmem:[#allocation2 + $0x1d0] sm:$0xff] }
 0xb01   :  { %7727 = vmatmul.msk.f32.vlgmr.msra.gmra.mxu3 %vm3406_vm9, %v7044_v18  ;;  %v6820_v33 = vsel %vm3137_vm7, %v6756_v59, %v12113_v10  ;;  %v6661_v10 = vsel %vm2942_vm4, %v6597_v2, %v11594_v30  ;;  %v4399_v18 = vld [vmem:[#allocation2 + $0xb1] sm:$0xff] }
 0xb02   :  { %v6725_v37 = vsel %vm3007_vm3, %v6661_v10, %v11781_v55 }
 0xb03   :  { %v6789_v45 = vsel %vm3072_vm5, %v6725_v37, %v11959_v1 }
 0xb04   :  { %6392 = vrot.lane.b32.xlu2 %v4462_v17, %s7895_s16  ;;  %6458 = vrot.lane.b32.xlu1 %v12123_v21, %s7895_s16  ;;  %v6884_v21 = vsel %vm3202_vm6, %v6820_v33, %v12312_v27  ;;  %v6693_v27 = vsel %vm3007_vm3, %v6629_v7, %v11662_v31  ;;  %v4463_v31 = vld [vmem:[#allocation2 + $0xb2] sm:$0xff]  ;;  %v6853_v17 = vsel %vm3137_vm7, %v6789_v45, %v12224_v3  ;;  %v7841_v3 = vld [vmem:[#allocation2 + $0x1c8] sm:$0xff]  ;;  %v3943_v45 = vld [vmem:[#allocation2 + $0x20] sm:$0xff] }
 0xb05   :  { %v6757_v52 = vsel %vm3072_vm5, %v6693_v27, %v11882_v16  ;;  %v6917_v39 = vsel %vm3202_vm6, %v6853_v17, %v12421_v35  ;;  %v15250_v17 = vld [vmem:[#allocation120_spill] sm:$0xff] }
 0xb06   :  { %6202 = vrot.lane.b32.xlu0 %v4431_v62, %s7894_s15  ;;  %v12520_v5 = vpop.permute.xlu2 %6120  ;;  %v6373_v0 = vpop.permute.xlu1 %6372  ;;  %v6821_v30 = vsel %vm3137_vm7, %v6757_v52, %v12111_v58  ;;  %v6981_v1 = vsel %vm3267_vm8, %v6917_v39, %v6183_v38  ;;  %v15252_v39 = vld [vmem:[#allocation365_spill] sm:$0xff] }
 0xb07   :  { %v6885_v55 = vsel %vm3202_vm6, %v6821_v30, %v12292_v44  ;;  %v6598_v44 = vsel %vm14_vm0, %v7841_v3, %v11409_v63  ;;  %v3944_v3 = vld [vmem:[#allocation2 + $0x30] sm:$0xff] }
 0xb08   :  { %v6117_v25 = vpop.permute.xlu0 %6116  ;;  %v6662_v35 = vsel %vm2942_vm4, %v6598_v44, %v11592_v43  ;;  %v15254_v44 = vld [vmem:[#allocation249_spill] sm:$0xff] }
 0xb09   :  { %v6948_v49 = vsel %vm3267_vm8, %v6884_v21, %v6117_v25  ;;  %v6726_v38 = vsel %vm3007_vm3, %v6662_v35, %v11761_v57  ;;  %v3942_v25 = vld [vmem:[#allocation2 + $0x18] sm:$0xff]  ;;  %v6599_v57 = vsel %vm14_vm0, %v7842_v12, %v11398_v36  ;;  %v4401_v36 = vld [vmem:[#allocation2 + $0xc9] sm:$0xff] }
 0xb0a   :  { %v7012_v46 = vsel %vm3332_vm10, %v6948_v49, %v6373_v0  ;;  %v4464_v0 = vld [vmem:[#allocation2 + $0xc2] sm:$0xff]  ;;  %v6790_v60 = vsel %vm3072_vm5, %v6726_v38, %v11993_v9  ;;  %v6566_v9 = vsel %vm14_vm0, %v3942_v25, %v11282_v34  ;;  %v6663_v2 = vsel %vm2942_vm4, %v6599_v57, %v11572_v23  ;;  %v15258_v57 = vld [vmem:[#allocation141_spill] sm:$0xff] }
 0xb0b   :  { %7695 = vmatmul.msk.f32.vlgmr.msra.gmra.mxu1 %vm3406_vm9, %v7012_v46  ;;  %v6854_v43 = vsel %vm3137_vm7, %v6790_v60, %v12222_v28  ;;  %v6630_v28 = vsel %vm2942_vm4, %v6566_v9, %v11475_v61  ;;  %v4433_v46 = vld [vmem:[#allocation2 + $0x279] sm:$0xff]  ;;  %v15259_v9 = vld [vmem:[#allocation360_spill] sm:$0xff] }
 0xb0c   :  { %6138 = vrot.lane.b32.xlu2 %v4399_v18, %s7894_s15  ;;  %6204 = vrot.lane.b32.xlu1 %v4432_v13, %s7894_s15  ;;  %v6694_v10 = vsel %vm3007_vm3, %v6630_v28, %v11693_v53  ;;  %v15248_v53 = vld [vmem:[#allocation256_spill] sm:$0xff]  ;;  %v15255_v38 = vld [vmem:[#allocation295_spill] sm:$0xff]  ;;  %v4435_v28 = vld [vmem:[#allocation2 + $0x291] sm:$0xff] }
 0xb0d   :  { %v6758_v61 = vsel %vm3072_vm5, %v6694_v10, %v11880_v19 }
 0xb0e   :  { %6394 = vrot.lane.b32.xlu0 %v4463_v31, %s7895_s16  ;;  %v6443_v16 = vpop.permute.xlu2 %6442  ;;  %v6119_v41 = vpop.permute.xlu1 %6118  ;;  %v4465_v31 = vld [vmem:[#allocation2 + $0xca] sm:$0xff] }
 0xb0f   :  { %v6949_v62 = vsel %vm3267_vm8, %v6885_v55, %v6119_v41  ;;  %v4434_v41 = vld [vmem:[#allocation2 + $0x289] sm:$0xff] }
 0xb10   :  { %v6439_v32 = vpop.permute.xlu0 %6438  ;;  %v7013_v58 = vsel %vm3332_vm10, %v6949_v62, %v6375_v51  ;;  %v4400_v51 = vld [vmem:[#allocation2 + $0xc1] sm:$0xff] }
 0xb11   :  { %v7045_v59 = vsel %vm3332_vm10, %v6981_v1, %v6439_v32 }
 0xb12   :  { %7728 = vmatmul.msk.f32.gmra.mxu3 %vm3406_vm9, %v7045_v59 }
 0xb13   :  { %7696 = vmatmul.msk.f32.gmra.mxu1 %vm3406_vm9, %v7013_v58  ;;  %v15253_v58 = vld [vmem:[#allocation222_spill] sm:$0xff] }
 0xb14   :  { %6460 = vrot.lane.b32.xlu2 %v12117_v15, %s7895_s16  ;;  %6396 = vrot.lane.b32.xlu1 %v4464_v0, %s7895_s16  ;;  %v6918_v15 = vsel %vm3202_vm6, %v6854_v43, %v12400_v47  ;;  %v6727_v47 = vsel %vm3007_vm3, %v6663_v2, %v11792_v50  ;;  %v6822_v50 = vsel %vm3137_vm7, %v6758_v61, %v12073_v48  ;;  %v15256_v43 = vld [vmem:[#allocation292_spill] sm:$0xff] }
 0xb15   :  { %v6791_v34 = vsel %vm3072_vm5, %v6727_v47, %v11991_v22  ;;  %v6886_v13 = vsel %vm3202_vm6, %v6822_v50, %v12323_v40  ;;  %v4498_v40 = vld [vmem:[#allocation2 + $0x28a] sm:$0xff] }
 0xb16   :  { %6140 = vrot.lane.b32.xlu0 %v4400_v51, %s7894_s15  ;;  %v12574_v63 = vpop.permute.xlu2 %6188  ;;  %v6441_v33 = vpop.permute.xlu1 %6440  ;;  %v6855_v23 = vsel %vm3137_vm7, %v6791_v34, %v12202_v20  ;;  %v6950_v19 = vsel %vm3267_vm8, %v6886_v13, %v12520_v5  ;;  %v15251_v5 = vld [vmem:[#allocation131_spill] sm:$0xff]  ;;  %v6568_v51 = vsel %vm14_vm0, %v3944_v3, %v15255_v38  ;;  %v15260_v47 = vld [vmem:[#allocation157_spill] sm:$0xff]  ;;  %v15262_v34 = vld [vmem:[#allocation424_spill] sm:$0xff] }
 0xb17   :  { %v6919_v27 = vsel %vm3202_vm6, %v6855_v23, %v12433_v11  ;;  %v15249_v11 = vld [vmem:[#allocation289_spill] sm:$0xff]  ;;  %v15263_v23 = vld [vmem:[#allocation199_spill] sm:$0xff]  ;;  %v3945_v38 = vld [vmem:[#allocation2 + $0x38] sm:$0xff] }
 0xb18   :  { %v6185_v21 = vpop.permute.xlu0 %6184  ;;  %v6567_v30 = vsel %vm14_vm0, %v3943_v45, %v15249_v11  ;;  %v15265_v13 = vld [vmem:[#allocation77_spill] sm:$0xff] }
 0xb19   :  { %v6982_v49 = vsel %vm3267_vm8, %v6918_v15, %v6185_v21  ;;  %v6631_v55 = vsel %vm2942_vm4, %v6567_v30, %v15250_v17  ;;  %v15257_v21 = vld [vmem:[#allocation83_spill] sm:$0xff]  ;;  %v15266_v17 = vld [vmem:[#allocation197_spill] sm:$0xff] }
 0xb1a   :  { %v7046_v7 = vsel %vm3332_vm10, %v6982_v49, %v6441_v33  ;;  %v7843_v33 = vld [vmem:[#allocation2 + $0x1e0] sm:$0xff]  ;;  %v6632_v25 = vsel %vm2942_vm4, %v6568_v51, %v15257_v21  ;;  %v15270_v3 = vld [vmem:[#allocation257_spill] sm:$0xff]  ;;  %v7845_v51 = vld [vmem:[#allocation2 + $0x1f8] sm:$0xff] }
 0xb1b   :  { %7729 = vmatmul.msk.f32.gmra.mxu3 %vm3406_vm9, %v7046_v7  ;;  %v6600_v15 = vsel %vm14_vm0, %v7843_v33, %v15256_v43  ;;  %v6696_v2 = vsel %vm3007_vm3, %v6632_v25, %v15259_v9  ;;  %v4402_v7 = vld [vmem:[#allocation2 + $0xd9] sm:$0xff] }
 0xb1c   :  { %6206 = vrot.lane.b32.xlu2 %v4433_v46, %s7894_s15  ;;  %6142 = vrot.lane.b32.xlu1 %v4401_v36, %s7894_s15  ;;  %v6664_v49 = vsel %vm2942_vm4, %v6600_v15, %v15258_v57  ;;  %v15261_v36 = vld [vmem:[#allocation217_spill] sm:$0xff]  ;;  %v15272_v15 = vld [vmem:[#allocation56_spill] sm:$0xff]  ;;  %v15273_v25 = vld [vmem:[#allocation370_spill] sm:$0xff] }
 0xb1d   :  { %v6728_v46 = vsel %vm3007_vm3, %v6664_v49, %v15260_v47  ;;  %v6760_v10 = vsel %vm3072_vm5, %v6696_v2, %v15261_v36  ;;  %v6569_v21 = vsel %vm14_vm0, %v3945_v38, %v15272_v15  ;;  %v15274_v49 = vld [vmem:[#allocation349_spill] sm:$0xff]  ;;  %v15276_v47 = vld [vmem:[#allocation203_spill] sm:$0xff] }
 0xb1e   :  { %6462 = vrot.lane.b32.xlu0 %v15248_v53, %s7895_s16  ;;  %v6381_v22 = vpop.permute.xlu2 %6380  ;;  %v6187_v18 = vpop.permute.xlu1 %6186  ;;  %v6792_v61 = vsel %vm3072_vm5, %v6728_v46, %v15262_v34  ;;  %v6824_v50 = vsel %vm3137_vm7, %v6760_v10, %v15263_v23  ;;  %v15264_v53 = vld [vmem:[#allocation280_spill] sm:$0xff]  ;;  %v6633_v9 = vsel %vm2942_vm4, %v6569_v21, %v15274_v49  ;;  %v15277_v36 = vld [vmem:[#allocation209_spill] sm:$0xff]  ;;  %v15289_v15 = vld [vmem:[#allocation187_spill] sm:$0xff] }
 0xb1f   :  { %v6983_v37 = vsel %vm3267_vm8, %v6919_v27, %v6187_v18  ;;  %v4466_v27 = vld [vmem:[#allocation2 + $0xda] sm:$0xff]  ;;  %v6856_v18 = vsel %vm3137_vm7, %v6792_v61, %v15264_v53  ;;  %v6697_v46 = vsel %vm3007_vm3, %v6633_v9, %v15276_v47  ;;  %v15278_v34 = vld [vmem:[#allocation185_spill] sm:$0xff]  ;;  %v15279_v23 = vld [vmem:[#allocation108_spill] sm:$0xff] }
 0xb20   :  { %v6377_v20 = vpop.permute.xlu0 %6376  ;;  %v7047_v52 = vsel %vm3332_vm10, %v6983_v37, %v6443_v16  ;;  %v6695_v16 = vsel %vm3007_vm3, %v6631_v55, %v15251_v5  ;;  %v6888_v37 = vsel %vm3202_vm6, %v6824_v50, %v15265_v13  ;;  %v4499_v5 = vld [vmem:[#allocation2 + $0x292] sm:$0xff]  ;;  %v6761_v61 = vsel %vm3072_vm5, %v6697_v46, %v15278_v34  ;;  %v15280_v53 = vld [vmem:[#allocation447_spill] sm:$0xff] }
 0xb21   :  { %v7014_v48 = vsel %vm3332_vm10, %v6950_v19, %v6377_v20  ;;  %v6759_v62 = vsel %vm3072_vm5, %v6695_v16, %v15252_v39  ;;  %v15267_v16 = vld [vmem:[#allocation130_spill] sm:$0xff]  ;;  %v4403_v39 = vld [vmem:[#allocation2 + $0xe1] sm:$0xff]  ;;  %v15291_v49 = vld [vmem:[#allocation429_spill] sm:$0xff] }
 0xb22   :  { %7697 = vmatmul.msk.f32.gmra.mxu1 %vm3406_vm9, %v7014_v48  ;;  %v6823_v59 = vsel %vm3137_vm7, %v6759_v62, %v15253_v58  ;;  %v15269_v62 = vld [vmem:[#allocation243_spill] sm:$0xff]  ;;  %v15293_v47 = vld [vmem:[#allocation309_spill] sm:$0xff]  ;;  %v15295_v34 = vld [vmem:[#allocation302_spill] sm:$0xff] }
 0xb23   :  { %7730 = vmatmul.msk.f32.gmra.mxu3 %vm3406_vm9, %v7047_v52  ;;  %v6887_v0 = vsel %vm3202_vm6, %v6823_v59, %v15254_v44  ;;  %v6920_v52 = vsel %vm3202_vm6, %v6856_v18, %v12431_v56  ;;  %v4467_v56 = vld [vmem:[#allocation2 + $0xe2] sm:$0xff]  ;;  %v6825_v18 = vsel %vm3137_vm7, %v6761_v61, %v15280_v53 }
 0xb24   :  { %6398 = vrot.lane.b32.xlu2 %v4465_v31, %s7895_s16  ;;  %6464 = vrot.lane.b32.xlu1 %v4498_v40, %s7895_s16  ;;  %v6984_v45 = vsel %vm3267_vm8, %v6920_v52, %v12574_v63  ;;  %v7844_v40 = vld [vmem:[#allocation2 + $0x1e8] sm:$0xff]  ;;  %v15268_v63 = vld [vmem:[#allocation419_spill] sm:$0xff]  ;;  %v6889_v52 = vsel %vm3202_vm6, %v6825_v18, %v12332_v42 }
 0xb25   :  { %v6601_v55 = vsel %vm14_vm0, %v7844_v40, %v15266_v17  ;;  %v3946_v40 = vld [vmem:[#allocation2 + $0x48] sm:$0xff] }
 0xb26   :  { %6208 = vrot.lane.b32.xlu0 %v4434_v41, %s7894_s15  ;;  %v12629_v1 = vpop.permute.xlu2 %6126  ;;  %v6379_v32 = vpop.permute.xlu1 %6378  ;;  %v6665_v41 = vsel %vm2942_vm4, %v6601_v55, %v15267_v16  ;;  %v4468_v55 = vld [vmem:[#allocation2 + $0xf2] sm:$0xff]  ;;  %v4501_v42 = vld [vmem:[#allocation2 + $0x2aa] sm:$0xff] }
 0xb27   :  { %v4437_v16 = vld [vmem:[#allocation2 + $0x2a9] sm:$0xff] }
 0xb28   :  { %v6123_v35 = vpop.permute.xlu0 %6122  ;;  %v15297_v53 = vld [vmem:[#allocation168_spill] sm:$0xff] }
 0xb29   :  { %v6951_v60 = vsel %vm3267_vm8, %v6887_v0, %v6123_v35 }
 0xb2a   :  { %v7015_v12 = vsel %vm3332_vm10, %v6951_v60, %v6379_v32  ;;  %v15271_v60 = vld [vmem:[#allocation125_spill] sm:$0xff] }
 0xb2b   :  { %7698 = vmatmul.msk.f32.gmra.mxu1 %vm3406_vm9, %v7015_v12  ;;  %v6602_v33 = vsel %vm14_vm0, %v7845_v51, %v15271_v60  ;;  %v7846_v60 = vld [vmem:[#allocation2 + $0x200] sm:$0xff] }
 0xb2c   :  { %6144 = vrot.lane.b32.xlu2 %v4402_v7, %s7894_s15  ;;  %6210 = vrot.lane.b32.xlu1 %v4435_v28, %s7894_s15  ;;  %v6666_v12 = vsel %vm2942_vm4, %v6602_v33, %v15273_v25  ;;  %v4436_v7 = vld [vmem:[#allocation2 + $0x2a1] sm:$0xff]  ;;  %v4404_v28 = vld [vmem:[#allocation2 + $0xf1] sm:$0xff] }
 0xb2d   :  { %v15288_v33 = vld [vmem:[#allocation377_spill] sm:$0xff] }
 0xb2e   :  { %6400 = vrot.lane.b32.xlu0 %v4466_v27, %s7895_s16  ;;  %v6449_v19 = vpop.permute.xlu2 %6448  ;;  %v6125_v20 = vpop.permute.xlu1 %6124  ;;  %v4500_v27 = vld [vmem:[#allocation2 + $0x2a2] sm:$0xff] }
 0xb2f   :  { %v6952_v48 = vsel %vm3267_vm8, %v6888_v37, %v6125_v20 }
 0xb30   :  { %v6445_v11 = vpop.permute.xlu0 %6444  ;;  %v7016_v30 = vsel %vm3332_vm10, %v6952_v48, %v6381_v22  ;;  %v6729_v22 = vsel %vm3007_vm3, %v6665_v41, %v15268_v63  ;;  %v15284_v41 = vld [vmem:[#allocation443_spill] sm:$0xff] }
 0xb31   :  { %v7048_v31 = vsel %vm3332_vm10, %v6984_v45, %v6445_v11  ;;  %v6793_v32 = vsel %vm3072_vm5, %v6729_v22, %v15269_v62  ;;  %v6953_v45 = vsel %vm3267_vm8, %v6889_v52, %v12629_v1  ;;  %v15283_v1 = vld [vmem:[#allocation192_spill] sm:$0xff]  ;;  %v15285_v62 = vld [vmem:[#allocation334_spill] sm:$0xff] }
 0xb32   :  { %7731 = vmatmul.msk.f32.gmra.mxu3 %vm3406_vm9, %v7048_v31  ;;  %v6857_v44 = vsel %vm3137_vm7, %v6793_v32, %v15270_v3  ;;  %v15286_v3 = vld [vmem:[#allocation316_spill] sm:$0xff] }
 0xb33   :  { %7699 = vmatmul.msk.f32.gmra.mxu1 %vm3406_vm9, %v7016_v30  ;;  %v6921_v0 = vsel %vm3202_vm6, %v6857_v44, %v12410_v8  ;;  %v15275_v8 = vld [vmem:[#allocation250_spill] sm:$0xff] }
 0xb34   :  { %6466 = vrot.lane.b32.xlu2 %v4499_v5, %s7895_s16  ;;  %6402 = vrot.lane.b32.xlu1 %v4467_v56, %s7895_s16  ;;  %v6730_v2 = vsel %vm3007_vm3, %v6666_v12, %v15275_v8  ;;  %v15282_v5 = vld [vmem:[#allocation210_spill] sm:$0xff]  ;;  %v15290_v12 = vld [vmem:[#allocation245_spill] sm:$0xff] }
 0xb35   :  { %v6794_v10 = vsel %vm3072_vm5, %v6730_v2, %v15277_v36  ;;  %v4405_v8 = vld [vmem:[#allocation2 + $0xf9] sm:$0xff] }
 0xb36   :  { %6146 = vrot.lane.b32.xlu0 %v4403_v39, %s7894_s15  ;;  %v12683_v58 = vpop.permute.xlu2 %6194  ;;  %v6447_v59 = vpop.permute.xlu1 %6446  ;;  %v6858_v50 = vsel %vm3137_vm7, %v6794_v10, %v15279_v23  ;;  %v4438_v2 = vld [vmem:[#allocation2 + $0x2b9] sm:$0xff] }
 0xb37   :  { %v6922_v13 = vsel %vm3202_vm6, %v6858_v50, %v12448_v54  ;;  %v15281_v54 = vld [vmem:[#allocation351_spill] sm:$0xff]  ;;  %v15296_v50 = vld [vmem:[#allocation361_spill] sm:$0xff] }
 0xb38   :  { %v6191_v35 = vpop.permute.xlu0 %6190  ;;  %v6570_v17 = vsel %vm14_vm0, %v3946_v40, %v15281_v54  ;;  %v15294_v36 = vld [vmem:[#allocation103_spill] sm:$0xff]  ;;  %v7847_v40 = vld [vmem:[#allocation2 + $0x210] sm:$0xff]  ;;  %v15298_v54 = vld [vmem:[#allocation298_spill] sm:$0xff] }
 0xb39   :  { %v6985_v43 = vsel %vm3267_vm8, %v6921_v0, %v6191_v35  ;;  %v6634_v56 = vsel %vm2942_vm4, %v6570_v17, %v15282_v5  ;;  %v15287_v35 = vld [vmem:[#allocation67_spill] sm:$0xff]  ;;  %v6604_v17 = vsel %vm14_vm0, %v7847_v40, %v15298_v54  ;;  %v4471_v40 = vld [vmem:[#allocation2 + $0x112] sm:$0xff] }
 0xb3a   :  { %v7049_v57 = vsel %vm3332_vm10, %v6985_v43, %v6447_v59  ;;  %v3947_v59 = vld [vmem:[#allocation2 + $0x50] sm:$0xff]  ;;  %v6603_v43 = vsel %vm14_vm0, %v7846_v60, %v15288_v33  ;;  %v4469_v23 = vld [vmem:[#allocation2 + $0xfa] sm:$0xff] }
 0xb3b   :  { %7732 = vmatmul.msk.f32.gmra.mxu3 %vm3406_vm9, %v7049_v57  ;;  %v6571_v38 = vsel %vm14_vm0, %v3947_v59, %v15287_v35  ;;  %v6667_v57 = vsel %vm2942_vm4, %v6603_v43, %v15290_v12  ;;  %v3948_v59 = vld [vmem:[#allocation2 + $0x60] sm:$0xff]  ;;  %v15305_v60 = vld [vmem:[#allocation73_spill] sm:$0xff] }
 0xb3c   :  { %6212 = vrot.lane.b32.xlu2 %v4436_v7, %s7894_s15  ;;  %6148 = vrot.lane.b32.xlu1 %v4404_v28, %s7894_s15  ;;  %v6635_v21 = vsel %vm2942_vm4, %v6571_v38, %v15289_v15  ;;  %v15292_v7 = vld [vmem:[#allocation216_spill] sm:$0xff]  ;;  %v15304_v38 = vld [vmem:[#allocation183_spill] sm:$0xff]  ;;  %v15315_v54 = vld [vmem:[#allocation293_spill] sm:$0xff] }
 0xb3d   :  { %v6699_v9 = vsel %vm3007_vm3, %v6635_v21, %v15291_v49  ;;  %v6731_v28 = vsel %vm3007_vm3, %v6667_v57, %v15292_v7  ;;  %v15306_v15 = vld [vmem:[#allocation436_spill] sm:$0xff]  ;;  %v15310_v7 = vld [vmem:[#allocation274_spill] sm:$0xff] }
 0xb3e   :  { %6468 = vrot.lane.b32.xlu0 %v4500_v27, %s7895_s16  ;;  %v6387_v37 = vpop.permute.xlu2 %6386  ;;  %v6193_v20 = vpop.permute.xlu1 %6192  ;;  %v6763_v46 = vsel %vm3072_vm5, %v6699_v9, %v15293_v47  ;;  %v6795_v10 = vsel %vm3072_vm5, %v6731_v28, %v15294_v36  ;;  %v4470_v12 = vld [vmem:[#allocation2 + $0x10a] sm:$0xff]  ;;  %v4503_v57 = vld [vmem:[#allocation2 + $0x2c2] sm:$0xff] }
 0xb3f   :  { %v6986_v48 = vsel %vm3267_vm8, %v6922_v13, %v6193_v20  ;;  %v6827_v61 = vsel %vm3137_vm7, %v6763_v46, %v15295_v34  ;;  %v6859_v27 = vsel %vm3137_vm7, %v6795_v10, %v15296_v50  ;;  %v15308_v49 = vld [vmem:[#allocation304_spill] sm:$0xff]  ;;  %v15311_v47 = vld [vmem:[#allocation191_spill] sm:$0xff]  ;;  %v15312_v10 = vld [vmem:[#allocation129_spill] sm:$0xff] }
 0xb40   :  { %v6383_v11 = vpop.permute.xlu0 %6382  ;;  %v7050_v30 = vsel %vm3332_vm10, %v6986_v48, %v6449_v19  ;;  %v6698_v19 = vsel %vm3007_vm3, %v6634_v56, %v15283_v1  ;;  %v6891_v18 = vsel %vm3202_vm6, %v6827_v61, %v15297_v53  ;;  %v6923_v52 = vsel %vm3202_vm6, %v6859_v27, %v12441_v24  ;;  %v4375_v24 = vld [vmem:[#allocation2 + $0x2c0] sm:$0xff]  ;;  %v4406_v56 = vld [vmem:[#allocation2 + $0x109] sm:$0xff] }
 0xb41   :  { %v7017_v31 = vsel %vm3332_vm10, %v6953_v45, %v6383_v11  ;;  %v6762_v63 = vsel %vm3072_vm5, %v6698_v19, %v15284_v41  ;;  %v6987_v45 = vsel %vm3267_vm8, %v6923_v52, %v12683_v58  ;;  %v15300_v58 = vld [vmem:[#allocation89_spill] sm:$0xff]  ;;  %v4439_v36 = vld [vmem:[#allocation2 + $0x2c1] sm:$0xff] }
 0xb42   :  { %7700 = vmatmul.msk.f32.gmra.mxu1 %vm3406_vm9, %v7017_v31  ;;  %v6826_v32 = vsel %vm3137_vm7, %v6762_v63, %v15285_v62  ;;  %v15301_v1 = vld [vmem:[#allocation333_spill] sm:$0xff]  ;;  %v15302_v63 = vld [vmem:[#allocation326_spill] sm:$0xff] }
 0xb43   :  { %7733 = vmatmul.msk.f32.gmra.mxu3 %vm3406_vm9, %v7050_v30  ;;  %v6890_v44 = vsel %vm3202_vm6, %v6826_v32, %v15286_v3  ;;  %v7848_v3 = vld [vmem:[#allocation2 + $0x218] sm:$0xff]  ;;  %v15313_v27 = vld [vmem:[#allocation385_spill] sm:$0xff] }
 0xb44   :  { %6404 = vrot.lane.b32.xlu2 %v4468_v55, %s7895_s16  ;;  %6470 = vrot.lane.b32.xlu1 %v4501_v42, %s7895_s16  ;;  %v4502_v55 = vld [vmem:[#allocation2 + $0x2ba] sm:$0xff] }
 0xb45   :  { %v15299_v42 = vld [vmem:[#allocation211_spill] sm:$0xff] }
 0xb46   :  { %6214 = vrot.lane.b32.xlu0 %v4437_v16, %s7894_s15  ;;  %v12737_v22 = vpop.permute.xlu2 %6132  ;;  %v6385_v39 = vpop.permute.xlu1 %6384  ;;  %v6668_v5 = vsel %vm2942_vm4, %v6604_v17, %v15299_v42 }
 0xb48   :  { %v6129_v0 = vpop.permute.xlu0 %6128 }
 0xb49   :  { %v6954_v51 = vsel %vm3267_vm8, %v6890_v44, %v6129_v0  ;;  %v15303_v44 = vld [vmem:[#allocation186_spill] sm:$0xff] }
 0xb4a   :  { %v7018_v25 = vsel %vm3332_vm10, %v6954_v51, %v6385_v39  ;;  %v6605_v0 = vsel %vm14_vm0, %v7848_v3, %v15303_v44  ;;  %v6572_v51 = vsel %vm14_vm0, %v3948_v59, %v15304_v38  ;;  %v7849_v59 = vld [vmem:[#allocation2 + $0x228] sm:$0xff]  ;;  %v15321_v3 = vld [vmem:[#allocation423_spill] sm:$0xff] }
 0xb4b   :  { %7701 = vmatmul.msk.f32.gmra.mxu1 %vm3406_vm9, %v7018_v25  ;;  %v6669_v33 = vsel %vm2942_vm4, %v6605_v0, %v15305_v60  ;;  %v6636_v21 = vsel %vm2942_vm4, %v6572_v51, %v15306_v15  ;;  %v6606_v44 = vsel %vm14_vm0, %v7849_v59, %v15321_v3  ;;  %v15322_v0 = vld [vmem:[#allocation255_spill] sm:$0xff]  ;;  %v15323_v51 = vld [vmem:[#allocation314_spill] sm:$0xff]  ;;  %v15340_v59 = vld [vmem:[#allocation96_spill] sm:$0xff] }
 0xb4c   :  { %6150 = vrot.lane.b32.xlu2 %v4405_v8, %s7894_s15  ;;  %6216 = vrot.lane.b32.xlu1 %v4438_v2, %s7894_s15  ;;  %v6700_v9 = vsel %vm3007_vm3, %v6636_v21, %v15308_v49  ;;  %v15309_v8 = vld [vmem:[#allocation310_spill] sm:$0xff]  ;;  %v6670_v60 = vsel %vm2942_vm4, %v6606_v44, %v15323_v51  ;;  %v4408_v21 = vld [vmem:[#allocation2 + $0x121] sm:$0xff] }
 0xb4d   :  { %v6764_v28 = vsel %vm3072_vm5, %v6700_v9, %v15310_v7  ;;  %v4440_v15 = vld [vmem:[#allocation2 + $0x2d1] sm:$0xff] }
 0xb4e   :  { %6406 = vrot.lane.b32.xlu0 %v4469_v23, %s7895_s16  ;;  %v6455_v13 = vpop.permute.xlu2 %6454  ;;  %v6131_v20 = vpop.permute.xlu1 %6130  ;;  %v6828_v34 = vsel %vm3137_vm7, %v6764_v28, %v15312_v10  ;;  %v15327_v49 = vld [vmem:[#allocation162_spill] sm:$0xff] }
 0xb4f   :  { %v6955_v48 = vsel %vm3267_vm8, %v6891_v18, %v6131_v20  ;;  %v6892_v53 = vsel %vm3202_vm6, %v6828_v34, %v15313_v27  ;;  %v4504_v7 = vld [vmem:[#allocation2 + $0x2d2] sm:$0xff] }
 0xb50   :  { %v6451_v11 = vpop.permute.xlu0 %6450  ;;  %v7019_v30 = vsel %vm3332_vm10, %v6955_v48, %v6387_v37  ;;  %v6732_v37 = vsel %vm3007_vm3, %v6668_v5, %v15300_v58  ;;  %v6956_v20 = vsel %vm3267_vm8, %v6892_v53, %v12737_v22  ;;  %v15316_v22 = vld [vmem:[#allocation269_spill] sm:$0xff]  ;;  %v15329_v28 = vld [vmem:[#allocation450_spill] sm:$0xff] }
 0xb51   :  { %v7051_v31 = vsel %vm3332_vm10, %v6987_v45, %v6451_v11  ;;  %v6796_v19 = vsel %vm3072_vm5, %v6732_v37, %v15301_v1  ;;  %v3949_v11 = vld [vmem:[#allocation2 + $0x68] sm:$0xff]  ;;  %v15318_v37 = vld [vmem:[#allocation427_spill] sm:$0xff]  ;;  %v3950_v1 = vld [vmem:[#allocation2 + $0x78] sm:$0xff] }
 0xb52   :  { %7734 = vmatmul.msk.f32.gmra.mxu3 %vm3406_vm9, %v7051_v31  ;;  %v6860_v39 = vsel %vm3137_vm7, %v6796_v19, %v15302_v63  ;;  %v4407_v31 = vld [vmem:[#allocation2 + $0x111] sm:$0xff] }
 0xb53   :  { %7702 = vmatmul.msk.f32.gmra.mxu1 %vm3406_vm9, %v7019_v30  ;;  %v6924_v62 = vsel %vm3202_vm6, %v6860_v39, %v12419_v14  ;;  %v15307_v14 = vld [vmem:[#allocation328_spill] sm:$0xff]  ;;  %v15319_v19 = vld [vmem:[#allocation374_spill] sm:$0xff]  ;;  %v15320_v39 = vld [vmem:[#allocation239_spill] sm:$0xff] }
 0xb54   :  { %6472 = vrot.lane.b32.xlu2 %v4502_v55, %s7895_s16  ;;  %5962 = vrot.lane.b32.xlu1 %v4375_v24, %s7893_s14  ;;  %v6733_v25 = vsel %vm3007_vm3, %v6669_v33, %v15307_v14  ;;  %v4376_v55 = vld [vmem:[#allocation2 + $0x2d0] sm:$0xff]  ;;  %v15317_v24 = vld [vmem:[#allocation136_spill] sm:$0xff] }
 0xb55   :  { %v6797_v2 = vsel %vm3072_vm5, %v6733_v25, %v15309_v8  ;;  %v15324_v33 = vld [vmem:[#allocation97_spill] sm:$0xff]  ;;  %v15325_v14 = vld [vmem:[#allocation296_spill] sm:$0xff] }
 0xb56   :  { %6152 = vrot.lane.b32.xlu0 %v4406_v56, %s7894_s15  ;;  %v12791_v16 = vpop.permute.xlu2 %6200  ;;  %v6453_v41 = vpop.permute.xlu1 %6452  ;;  %v6861_v46 = vsel %vm3137_vm7, %v6797_v2, %v15311_v47  ;;  %v6734_v25 = vsel %vm3007_vm3, %v6670_v60, %v15325_v14  ;;  %v15328_v8 = vld [vmem:[#allocation392_spill] sm:$0xff]  ;;  %v4505_v60 = vld [vmem:[#allocation2 + $0x2da] sm:$0xff] }
 0xb57   :  { %v6925_v61 = vsel %vm3202_vm6, %v6861_v46, %v12470_v29  ;;  %v15314_v29 = vld [vmem:[#allocation409_spill] sm:$0xff]  ;;  %v6798_v9 = vsel %vm3072_vm5, %v6734_v25, %v15327_v49  ;;  %v15330_v46 = vld [vmem:[#allocation215_spill] sm:$0xff] }
 0xb58   :  { %v6197_v32 = vpop.permute.xlu0 %6196  ;;  %v6573_v30 = vsel %vm14_vm0, %v3949_v11, %v15314_v29  ;;  %v6862_v47 = vsel %vm3137_vm7, %v6798_v9, %v15329_v28  ;;  %v4377_v29 = vld [vmem:[#allocation2 + $0x2d8] sm:$0xff]  ;;  %v15345_v25 = vld [vmem:[#allocation355_spill] sm:$0xff]  ;;  %v4409_v9 = vld [vmem:[#allocation2 + $0x129] sm:$0xff] }
 0xb59   :  { %v6988_v35 = vsel %vm3267_vm8, %v6924_v62, %v6197_v32  ;;  %v6637_v17 = vsel %vm2942_vm4, %v6573_v30, %v15315_v54  ;;  %v6574_v62 = vsel %vm14_vm0, %v3950_v1, %v15320_v39  ;;  %v4441_v30 = vld [vmem:[#allocation2 + $0x2d9] sm:$0xff]  ;;  %v4472_v54 = vld [vmem:[#allocation2 + $0x122] sm:$0xff] }
 0xb5a   :  { %v7052_v43 = vsel %vm3332_vm10, %v6988_v35, %v6453_v41  ;;  %v6638_v35 = vsel %vm2942_vm4, %v6574_v62, %v15322_v0  ;;  %v3951_v1 = vld [vmem:[#allocation2 + $0x80] sm:$0xff]  ;;  %v15339_v62 = vld [vmem:[#allocation353_spill] sm:$0xff]  ;;  %v15341_v0 = vld [vmem:[#allocation72_spill] sm:$0xff] }
 0xb5b   :  { %7735 = vmatmul.msk.f32.gmra.mxu3 %vm3406_vm9, %v7052_v43  ;;  %v6702_v43 = vsel %vm3007_vm3, %v6638_v35, %v15324_v33  ;;  %v4378_v33 = vld [vmem:[#allocation2 + $0x2e8] sm:$0xff] }
 0xb5c   :  { %6408 = vrot.lane.b32.xlu2 %v4470_v12, %s7895_s16  ;;  %6474 = vrot.lane.b32.xlu1 %v4503_v57, %s7895_s16  ;;  %v15326_v12 = vld [vmem:[#allocation387_spill] sm:$0xff] }
 0xb5d   :  { %v6766_v57 = vsel %vm3072_vm5, %v6702_v43, %v15326_v12  ;;  %v15343_v43 = vld [vmem:[#allocation373_spill] sm:$0xff] }
 0xb5e   :  { %6218 = vrot.lane.b32.xlu0 %v4439_v36, %s7894_s15  ;;  %v6393_v23 = vpop.permute.xlu2 %6392  ;;  %v6199_v50 = vpop.permute.xlu1 %6198  ;;  %v6830_v2 = vsel %vm3137_vm7, %v6766_v57, %v15328_v8  ;;  %v15346_v57 = vld [vmem:[#allocation223_spill] sm:$0xff] }
 0xb5f   :  { %v6989_v18 = vsel %vm3267_vm8, %v6925_v61, %v6199_v50  ;;  %v6894_v36 = vsel %vm3202_vm6, %v6830_v2, %v15330_v46  ;;  %v15331_v61 = vld [vmem:[#allocation262_spill] sm:$0xff]  ;;  %v15347_v8 = vld [vmem:[#allocation163_spill] sm:$0xff] }
 0xb60   :  { %v6389_v52 = vpop.permute.xlu0 %6388  ;;  %v7053_v48 = vsel %vm3332_vm10, %v6989_v18, %v6455_v13  ;;  %v6701_v13 = vsel %vm3007_vm3, %v6637_v17, %v15316_v22  ;;  %v6926_v50 = vsel %vm3202_vm6, %v6862_v47, %v15331_v61  ;;  %v15335_v17 = vld [vmem:[#allocation414_spill] sm:$0xff] }
 0xb61   :  { %v7020_v45 = vsel %vm3332_vm10, %v6956_v20, %v6389_v52  ;;  %v6765_v42 = vsel %vm3072_vm5, %v6701_v13, %v15317_v24  ;;  %v6990_v53 = vsel %vm3267_vm8, %v6926_v50, %v12791_v16  ;;  %v15334_v16 = vld [vmem:[#allocation123_spill] sm:$0xff]  ;;  %v15336_v24 = vld [vmem:[#allocation428_spill] sm:$0xff] }
 0xb62   :  { %7703 = vmatmul.msk.f32.gmra.mxu1 %vm3406_vm9, %v7020_v45  ;;  %v6829_v56 = vsel %vm3137_vm7, %v6765_v42, %v15318_v37  ;;  %v15332_v45 = vld [vmem:[#allocation356_spill] sm:$0xff] }
 0xb63   :  { %7736 = vmatmul.msk.f32.gmra.mxu3 %vm3406_vm9, %v7053_v48  ;;  %v6893_v41 = vsel %vm3202_vm6, %v6829_v56, %v15319_v19  ;;  %v7850_v48 = vld [vmem:[#allocation2 + $0x230] sm:$0xff]  ;;  %v7851_v19 = vld [vmem:[#allocation2 + $0x240] sm:$0xff] }
 0xb64   :  { %6154 = vrot.lane.b32.xlu2 %v4407_v31, %s7894_s15  ;;  %6410 = vrot.lane.b32.xlu1 %v4471_v40, %s7895_s16  ;;  %v6607_v11 = vsel %vm14_vm0, %v7850_v48, %v15332_v45  ;;  %v15333_v31 = vld [vmem:[#allocation303_spill] sm:$0xff]  ;;  %v15350_v48 = vld [vmem:[#allocation122_spill] sm:$0xff] }
 0xb65   :  { %v6671_v40 = vsel %vm2942_vm4, %v6607_v11, %v15333_v31  ;;  %v4473_v11 = vld [vmem:[#allocation2 + $0x12a] sm:$0xff]  ;;  %v15352_v31 = vld [vmem:[#allocation362_spill] sm:$0xff] }
 0xb66   :  { %5964 = vrot.lane.b32.xlu0 %v4376_v55, %s7893_s14  ;;  %v12845_v5 = vpop.permute.xlu2 %6138  ;;  %v6391_v58 = vpop.permute.xlu1 %6390 }
 0xb68   :  { %v6135_v63 = vpop.permute.xlu0 %6134 }
 0xb69   :  { %v6957_v32 = vsel %vm3267_vm8, %v6893_v41, %v6135_v63  ;;  %v15338_v41 = vld [vmem:[#allocation236_spill] sm:$0xff] }
 0xb6a   :  { %v7021_v38 = vsel %vm3332_vm10, %v6957_v32, %v6391_v58  ;;  %v15337_v58 = vld [vmem:[#allocation169_spill] sm:$0xff]  ;;  %v6608_v63 = vsel %vm14_vm0, %v7851_v19, %v15338_v41  ;;  %v6575_v32 = vsel %vm14_vm0, %v3951_v1, %v15339_v62  ;;  %v15356_v1 = vld [vmem:[#allocation451_spill] sm:$0xff] }
 0xb6b   :  { %7704 = vmatmul.msk.f32.gmra.mxu1 %vm3406_vm9, %v7021_v38  ;;  %v6672_v3 = vsel %vm2942_vm4, %v6608_v63, %v15340_v59  ;;  %v6639_v35 = vsel %vm2942_vm4, %v6575_v32, %v15341_v0  ;;  %v15342_v38 = vld [vmem:[#allocation421_spill] sm:$0xff] }
 0xb6c   :  { %6220 = vrot.lane.b32.xlu2 %v4440_v15, %s7894_s15  ;;  %6156 = vrot.lane.b32.xlu1 %v4408_v21, %s7894_s15  ;;  %v6736_v51 = vsel %vm3007_vm3, %v6672_v3, %v15342_v38  ;;  %v6703_v15 = vsel %vm3007_vm3, %v6639_v35, %v15343_v43  ;;  %v15344_v21 = vld [vmem:[#allocation379_spill] sm:$0xff]  ;;  %v7852_v3 = vld [vmem:[#allocation2 + $0x248] sm:$0xff]  ;;  %v15359_v35 = vld [vmem:[#allocation357_spill] sm:$0xff] }
 0xb6d   :  { %v6800_v14 = vsel %vm3072_vm5, %v6736_v51, %v15344_v21  ;;  %v6767_v12 = vsel %vm3072_vm5, %v6703_v15, %v15345_v25  ;;  %v15361_v43 = vld [vmem:[#allocation156_spill] sm:$0xff]  ;;  %v4410_v25 = vld [vmem:[#allocation2 + $0x139] sm:$0xff] }
 0xb6e   :  { %6476 = vrot.lane.b32.xlu0 %v4504_v7, %s7895_s16  ;;  %v6461_v10 = vpop.permute.xlu2 %6460  ;;  %v6137_v34 = vpop.permute.xlu1 %6136  ;;  %v6864_v49 = vsel %vm3137_vm7, %v6800_v14, %v15346_v57  ;;  %v6831_v2 = vsel %vm3137_vm7, %v6767_v12, %v15347_v8  ;;  %v15348_v7 = vld [vmem:[#allocation308_spill] sm:$0xff]  ;;  %v4474_v12 = vld [vmem:[#allocation2 + $0x13a] sm:$0xff] }
 0xb6f   :  { %v6958_v27 = vsel %vm3267_vm8, %v6894_v36, %v6137_v34  ;;  %v6928_v28 = vsel %vm3202_vm6, %v6864_v49, %v15348_v7  ;;  %v15349_v36 = vld [vmem:[#allocation88_spill] sm:$0xff]  ;;  %v15363_v57 = vld [vmem:[#allocation386_spill] sm:$0xff] }
 0xb70   :  { %v6457_v18 = vpop.permute.xlu0 %6456  ;;  %v7022_v20 = vsel %vm3332_vm10, %v6958_v27, %v6393_v23  ;;  %v6735_v23 = vsel %vm3007_vm3, %v6671_v40, %v15334_v16  ;;  %v6895_v34 = vsel %vm3202_vm6, %v6831_v2, %v15349_v36  ;;  %v4442_v16 = vld [vmem:[#allocation2 + $0x2e9] sm:$0xff]  ;;  %v15365_v2 = vld [vmem:[#allocation198_spill] sm:$0xff] }
 0xb71   :  { %v7054_v52 = vsel %vm3332_vm10, %v6990_v53, %v6457_v18  ;;  %v6799_v22 = vsel %vm3072_vm5, %v6735_v23, %v15335_v17  ;;  %v6959_v50 = vsel %vm3267_vm8, %v6895_v34, %v12845_v5  ;;  %v4506_v5 = vld [vmem:[#allocation2 + $0x2ea] sm:$0xff] }
 0xb72   :  { %7737 = vmatmul.msk.f32.gmra.mxu3 %vm3406_vm9, %v7054_v52  ;;  %v6863_v42 = vsel %vm3137_vm7, %v6799_v22, %v15336_v24  ;;  %v3952_v52 = vld [vmem:[#allocation2 + $0x90] sm:$0xff]  ;;  %v15354_v24 = vld [vmem:[#allocation106_spill] sm:$0xff]  ;;  %v15362_v21 = vld [vmem:[#allocation4_spill] sm:$0xff] }
 0xb73   :  { %7705 = vmatmul.msk.f32.gmra.mxu1 %vm3406_vm9, %v7022_v20  ;;  %v6927_v37 = vsel %vm3202_vm6, %v6863_v42, %v15337_v58  ;;  %v12945_v20 = vld [vmem:[%s14009_s2 + $0x1] ss:$0 sm:$0xff]  ;;  %v6576_v45 = vsel %vm14_vm0, %v3952_v52, %v15350_v48  ;;  %v15355_v58 = vld [vmem:[#allocation34_spill] sm:$0xff]  ;;  %v4379_v36 = vld [vmem:[#allocation2 + $0x2f0] sm:$0xff] }
 0xb74   :  { %5966 = vrot.lane.b32.xlu2 %v4377_v29, %s7893_s14  ;;  %6222 = vrot.lane.b32.xlu1 %v4441_v30, %s7894_s15  ;;  %v15351_v29 = vld [vmem:[#allocation380_spill] sm:$0xff]  ;;  %v15369_v52 = vld [vmem:[#allocation273_spill] sm:$0xff] }
 0xb75   :  { %v15367_v34 = vld [vmem:[#allocation132_spill] sm:$0xff] }
 0xb76   :  { %6412 = vrot.lane.b32.xlu0 %v4472_v54, %s7895_s16  ;;  %v12899_v13 = vpop.permute.xlu2 %6206  ;;  %v6459_v55 = vpop.permute.xlu1 %6458  ;;  %v15353_v54 = vld [vmem:[#allocation147_spill] sm:$0xff] }
 0xb78   :  { %v6203_v56 = vpop.permute.xlu0 %6202 }
 0xb79   :  { %v6991_v39 = vsel %vm3267_vm8, %v6927_v37, %v6203_v56  ;;  %v3953_v56 = vld [vmem:[#allocation2 + $0x98] sm:$0xff] }
 0xb7a   :  { %v7055_v44 = vsel %vm3332_vm10, %v6991_v39, %v6459_v55  ;;  %v15357_v39 = vld [vmem:[#allocation410_spill] sm:$0xff] }
 0xb7b   :  { %7738 = vmatmul.msk.f32.gmra.mxu3 %vm3406_vm9, %v7055_v44  ;;  %v6577_v62 = vsel %vm14_vm0, %v3953_v56, %v15357_v39  ;;  %v15358_v44 = vld [vmem:[#allocation91_spill] sm:$0xff]  ;;  %v4507_v56 = vld [vmem:[#allocation2 + $0x2f2] sm:$0xff] }
 0xb7c   :  { %6478 = vrot.lane.b32.xlu2 %v4505_v60, %s7895_s16  ;;  %5968 = vrot.lane.b32.xlu1 %v4378_v33, %s7893_s14  ;;  %v6609_v0 = vsel %vm14_vm0, %v7852_v3, %v15358_v44  ;;  %v6641_v38 = vsel %vm2942_vm4, %v6577_v62, %v15359_v35  ;;  %v15360_v60 = vld [vmem:[#allocation416_spill] sm:$0xff]  ;;  %v15375_v62 = vld [vmem:[#allocation98_spill] sm:$0xff]  ;;  %v15377_v44 = vld [vmem:[#allocation33_spill] sm:$0xff] }
 0xb7d   :  { %v6673_v33 = vsel %vm2942_vm4, %v6609_v0, %v15360_v60  ;;  %v6705_v15 = vsel %vm3007_vm3, %v6641_v38, %v15361_v43  ;;  %v3954_v38 = vld [vmem:[#allocation2 + $0xa8] sm:$0xff]  ;;  %v7854_v43 = vld [vmem:[#allocation2 + $0x260] sm:$0xff] }
 0xb7e   :  { %6158 = vrot.lane.b32.xlu0 %v4409_v9, %s7894_s15  ;;  %v12933_v47 = vpop.permute.xlu2 %6398  ;;  %v6205_v46 = vpop.permute.xlu1 %6204  ;;  %v6737_v49 = vsel %vm3007_vm3, %v6673_v33, %v15363_v57  ;;  %v15364_v9 = vld [vmem:[#allocation81_spill] sm:$0xff]  ;;  %v15378_v60 = vld [vmem:[#allocation124_spill] sm:$0xff] }
 0xb7f   :  { %v6992_v61 = vsel %vm3267_vm8, %v6928_v28, %v6205_v46  ;;  %v6769_v8 = vsel %vm3072_vm5, %v6705_v15, %v15364_v9  ;;  %v6801_v7 = vsel %vm3072_vm5, %v6737_v49, %v15365_v2  ;;  %v15366_v28 = vld [vmem:[#allocation74_spill] sm:$0xff]  ;;  %v6578_v33 = vsel %vm14_vm0, %v3954_v38, %v15378_v60  ;;  %v15379_v15 = vld [vmem:[#allocation321_spill] sm:$0xff]  ;;  %v4380_v9 = vld [vmem:[#allocation2 + $0x300] sm:$0xff] }
 0xb80   :  { %v6395_v27 = vpop.permute.xlu0 %6394  ;;  %v7056_v53 = vsel %vm3332_vm10, %v6992_v61, %v6461_v10  ;;  %v6640_v10 = vsel %vm2942_vm4, %v6576_v45, %v15351_v29  ;;  %v6833_v46 = vsel %vm3137_vm7, %v6769_v8, %v15366_v28  ;;  %v6865_v61 = vsel %vm3137_vm7, %v6801_v7, %v15367_v34  ;;  %v15381_v57 = vld [vmem:[#allocation181_spill] sm:$0xff]  ;;  %v4444_v8 = vld [vmem:[#allocation2 + $0x301] sm:$0xff] }
 0xb81   :  { %v7023_v18 = vsel %vm3332_vm10, %v6959_v50, %v6395_v27  ;;  %v6704_v40 = vsel %vm3007_vm3, %v6640_v10, %v15352_v31  ;;  %v15368_v50 = vld [vmem:[#allocation281_spill] sm:$0xff]  ;;  %v6929_v48 = vsel %vm3202_vm6, %v6865_v61, %v15369_v52  ;;  %v15382_v2 = vld [vmem:[#allocation76_spill] sm:$0xff]  ;;  %v15385_v61 = vld [vmem:[#allocation82_spill] sm:$0xff] }
 0xb82   :  { %7706 = vmatmul.msk.f32.gmra.mxu1 %vm3406_vm9, %v7023_v18  ;;  %v6768_v17 = vsel %vm3072_vm5, %v6704_v40, %v15353_v54  ;;  %v6897_v27 = vsel %vm3202_vm6, %v6833_v46, %v15368_v50  ;;  %v7853_v40 = vld [vmem:[#allocation2 + $0x258] sm:$0xff]  ;;  %v15383_v28 = vld [vmem:[#allocation100_spill] sm:$0xff] }
 0xb83   :  { %7739 = vmatmul.msk.f32.gmra.mxu3 %vm3406_vm9, %v7056_v53  ;;  %v6832_v42 = vsel %vm3137_vm7, %v6768_v17, %v15354_v24  ;;  %v15371_v54 = vld [vmem:[#allocation6_spill] sm:$0xff]  ;;  %v15372_v24 = vld [vmem:[#allocation381_spill] sm:$0xff] }
 0xb84   :  { %6414 = vrot.lane.b32.xlu2 %v4473_v11, %s7895_s16  ;;  %6480 = vrot.lane.b32.xlu1 %v4506_v5, %s7895_s16  ;;  %v7395_v30 = vpop.f32.mrf.mxu3  ;;  %v6896_v19 = vsel %vm3202_vm6, %v6832_v42, %v15356_v1  ;;  %v6993_v11 = vsel %vm3267_vm8, %v6929_v48, %v12899_v13  ;;  %v4443_v13 = vld [vmem:[#allocation2 + $0x2f1] sm:$0xff]  ;;  %v15387_v48 = vld [vmem:[#allocation315_spill] sm:$0xff] }
 0xb85   :  { %v7396_v23 = vadd.f32 %v12945_v20, %v7395_v30  ;;  %v15374_v1 = vld [vmem:[#allocation105_spill] sm:$0xff] }
 0xb86   :  { %6224 = vrot.lane.b32.xlu0 %v4442_v16, %s7894_s15  ;;  %v12961_v22 = vpop.permute.xlu2 %6144  ;;  %v6397_v55 = vpop.permute.xlu1 %6396  ;;  %v15370_v16 = vld [vmem:[#allocation434_spill] sm:$0xff] }
 0xb87   :  { %v7523_v37 = vadd.f32 %v7396_v23, %v15355_v58  ;;  %v6610_v23 = vsel %vm14_vm0, %v7853_v40, %v15370_v16 }
 0xb88   :  { %v6141_v41 = vpop.permute.xlu0 %6140  ;;  %v7299_v63 = vpop.f32.mrf.mxu1  ;;  %v6674_v42 = vsel %vm2942_vm4, %v6610_v23, %v15372_v24  ;;  %v15389_v24 = vld [vmem:[#allocation35_spill] sm:$0xff] }
 0xb89   :  { %v6960_v32 = vsel %vm3267_vm8, %v6896_v19, %v6141_v41  ;;  %7587 = vst.msk [vmem:[%s14010_s3 + $0x100] sm:$0xff] %vm14_vm0, %v7523_v37  ;;  %v7300_v59 = vadd.f32 %v12945_v20, %v7299_v63 }
 0xb8a   :  { %v7024_v51 = vsel %vm3332_vm10, %v6960_v32, %v6397_v55  ;;  %v4411_v55 = vld [vmem:[#allocation2 + $0x141] sm:$0xff] }
 0xb8b   :  { %v7491_v14 = vadd.f32 %v7300_v59, %v15362_v21  ;;  %7707 = vmatmul.msk.f32.gmra.mxu1 %vm3406_vm9, %v7024_v51  ;;  %v15376_v59 = vld [vmem:[#allocation205_spill] sm:$0xff]  ;;  %v6611_v21 = vsel %vm14_vm0, %v7854_v43, %v15379_v15 }
 0xb8c   :  { %6160 = vrot.lane.b32.xlu2 %v4410_v25, %s7894_s15  ;;  %6416 = vrot.lane.b32.xlu1 %v4474_v12, %s7895_s16  ;;  %v15380_v25 = vld [vmem:[#allocation149_spill] sm:$0xff]  ;;  %v6675_v49 = vsel %vm2942_vm4, %v6611_v21, %v15381_v57 }
 0xb8d   :  { %7555 = vst.msk [vmem:[%s14010_s3] sm:$0xff] %vm14_vm0, %v7491_v14  ;;  %v6642_v12 = vsel %vm2942_vm4, %v6578_v33, %v15380_v25  ;;  %v6739_v46 = vsel %vm3007_vm3, %v6675_v49, %v15383_v28  ;;  %v15396_v33 = vld [vmem:[#allocation145_spill] sm:$0xff]  ;;  %v7855_v49 = vld [vmem:[#allocation2 + $0xc0] sm:$0xff] }
 0xb8e   :  { %5970 = vrot.lane.b32.xlu0 %v4379_v36, %s7893_s14  ;;  %v13006_v53 = vpop.permute.xlu2 %6466  ;;  %v6143_v18 = vpop.permute.xlu1 %6142  ;;  %v6706_v7 = vsel %vm3007_vm3, %v6642_v12, %v15382_v2  ;;  %v15384_v36 = vld [vmem:[#allocation444_spill] sm:$0xff]  ;;  %v6803_v50 = vsel %vm3072_vm5, %v6739_v46, %v15385_v61  ;;  %v15397_v25 = vld [vmem:[#allocation37_spill] sm:$0xff]  ;;  %v15401_v61 = vld [vmem:[#allocation86_spill] sm:$0xff] }
 0xb8f   :  { %v6961_v45 = vsel %vm3267_vm8, %v6897_v27, %v6143_v18  ;;  %v6770_v34 = vsel %vm3072_vm5, %v6706_v7, %v15384_v36  ;;  %v4475_v27 = vld [vmem:[#allocation2 + $0x142] sm:$0xff]  ;;  %v7856_v2 = vld [vmem:[#allocation2 + $0x270] sm:$0xff]  ;;  %v15400_v36 = vld [vmem:[#allocation426_spill] sm:$0xff] }
 0xb90   :  { %v6463_v5 = vpop.permute.xlu0 %6462  ;;  %v7302_v29 = vpop.f32.mrf.mxu1  ;;  %v7025_v10 = vsel %vm3332_vm10, %v6961_v45, %v12933_v47  ;;  %v15373_v47 = vld [vmem:[#allocation193_spill] sm:$0xff]  ;;  %v15386_v18 = vld [vmem:[#allocation267_spill] sm:$0xff]  ;;  %v6867_v45 = vsel %vm3137_vm7, %v6803_v50, %v15387_v48  ;;  %v15399_v7 = vld [vmem:[#allocation148_spill] sm:$0xff] }
 0xb91   :  { %v7057_v30 = vsel %vm3332_vm10, %v6993_v11, %v6463_v5  ;;  %v7303_v31 = vadd.f32 %v12945_v20, %v7302_v29  ;;  %v6738_v58 = vsel %vm3007_vm3, %v6674_v42, %v15373_v47  ;;  %v6834_v52 = vsel %vm3137_vm7, %v6770_v34, %v15386_v18  ;;  %v15388_v29 = vld [vmem:[#allocation158_spill] sm:$0xff]  ;;  %v4509_v48 = vld [vmem:[#allocation2 + $0x30a] sm:$0xff] }
 0xb92   :  { %7740 = vmatmul.msk.f32.gmra.mxu3 %vm3406_vm9, %v7057_v30  ;;  %v6802_v19 = vsel %vm3072_vm5, %v6738_v58, %v15374_v1  ;;  %v6931_v30 = vsel %vm3202_vm6, %v6867_v45, %v12485_v6  ;;  %v3955_v6 = vld [vmem:[#allocation2 + $0xb0] sm:$0xff]  ;;  %v15390_v58 = vld [vmem:[#allocation3_spill] sm:$0xff]  ;;  %v6612_v28 = vsel %vm14_vm0, %v7856_v2, %v15399_v7  ;;  %v15403_v45 = vld [vmem:[#allocation238_spill] sm:$0xff] }
 0xb93   :  { %v7492_v17 = vadd.f32 %v7303_v31, %v15371_v54  ;;  %7708 = vmatmul.msk.f32.gmra.mxu1 %vm3406_vm9, %v7025_v10  ;;  %v6866_v32 = vsel %vm3137_vm7, %v6802_v19, %v15375_v62  ;;  %v6898_v10 = vsel %vm3202_vm6, %v6834_v52, %v15388_v29  ;;  %v4508_v1 = vld [vmem:[#allocation2 + $0x302] sm:$0xff]  ;;  %v6676_v50 = vsel %vm2942_vm4, %v6612_v28, %v15401_v61  ;;  %v4476_v52 = vld [vmem:[#allocation2 + $0x152] sm:$0xff] }
 0xb94   :  { %6226 = vrot.lane.b32.xlu2 %v4443_v13, %s7894_s15  ;;  %6162 = vrot.lane.b32.xlu1 %v4411_v55, %s7894_s15  ;;  %v6930_v3 = vsel %vm3202_vm6, %v6866_v32, %v15376_v59  ;;  %v6962_v23 = vsel %vm3267_vm8, %v6898_v10, %v12961_v22  ;;  %v4381_v19 = vld [vmem:[#allocation2 + $0x308] sm:$0xff]  ;;  %v4412_v32 = vld [vmem:[#allocation2 + $0x151] sm:$0xff]  ;;  %v15394_v59 = vld [vmem:[#allocation251_spill] sm:$0xff] }
 0xb95   :  { %7556 = vst.msk [vmem:[%s14010_s3 + $0x8] sm:$0xff] %vm14_vm0, %v7492_v17  ;;  %v7398_v37 = vpop.f32.mrf.mxu3  ;;  %v15404_v29 = vld [vmem:[#allocation68_spill] sm:$0xff]  ;;  %v15419_v61 = vld [vmem:[#allocation406_spill] sm:$0xff] }
 0xb96   :  { %v7399_v41 = vadd.f32 %v12945_v20, %v7398_v37  ;;  %6482 = vrot.lane.b32.xlu0 %v4507_v56, %s7895_s16  ;;  %v13036_v63 = vpop.permute.xlu2 %6212  ;;  %v6465_v39 = vpop.permute.xlu1 %6464  ;;  %v15391_v56 = vld [vmem:[#allocation234_spill] sm:$0xff]  ;;  %v6740_v10 = vsel %vm3007_vm3, %v6676_v50, %v15404_v29  ;;  %v7858_v28 = vld [vmem:[#allocation2 + $0xc8] sm:$0xff] }
 0xb97   :  { %v6579_v22 = vsel %vm14_vm0, %v3955_v6, %v15391_v56  ;;  %v4414_v29 = vld [vmem:[#allocation2 + $0x169] sm:$0xff] }
 0xb98   :  { %v7524_v0 = vadd.f32 %v7399_v41, %v15377_v44  ;;  %v6209_v35 = vpop.permute.xlu0 %6208  ;;  %v15392_v41 = vld [vmem:[#allocation64_spill] sm:$0xff] }
 0xb99   :  { %v6994_v51 = vsel %vm3267_vm8, %v6930_v3, %v6209_v35  ;;  %v15395_v35 = vld [vmem:[#allocation201_spill] sm:$0xff] }
 0xb9a   :  { %7588 = vst.msk [vmem:[%s14010_s3 + $0x108] sm:$0xff] %vm14_vm0, %v7524_v0  ;;  %v7058_v14 = vsel %vm3332_vm10, %v6994_v51, %v6465_v39  ;;  %v15393_v39 = vld [vmem:[#allocation440_spill] sm:$0xff] }
 0xb9b   :  { %7741 = vmatmul.msk.f32.gmra.mxu3 %vm3406_vm9, %v7058_v14 }
 0xb9c   :  { %5972 = vrot.lane.b32.xlu2 %v4380_v9, %s7893_s14  ;;  %6228 = vrot.lane.b32.xlu1 %v4444_v8, %s7894_s15  ;;  %v15398_v9 = vld [vmem:[#allocation119_spill] sm:$0xff] }
 0xb9d   :  { %v6580_v8 = vsel %vm14_vm0, %v7855_v49, %v15398_v9  ;;  %v15417_v9 = vld [vmem:[#allocation36_spill] sm:$0xff] }
 0xb9e   :  { %6418 = vrot.lane.b32.xlu0 %v4475_v27, %s7895_s16  ;;  %v7401_v11 = vpop.f32.mrf.mxu3  ;;  %v13073_v5 = vpop.permute.xlu2 %6404  ;;  %v6644_v34 = vsel %vm2942_vm4, %v6580_v8, %v15400_v36  ;;  %v15402_v27 = vld [vmem:[#allocation5_spill] sm:$0xff] }
 0xb9f   :  { %v7305_v31 = vpop.f32.mrf.mxu1  ;;  %v7402_v40 = vadd.f32 %v12945_v20, %v7401_v11  ;;  %v6211_v16 = vpop.permute.xlu1 %6210  ;;  %v6708_v11 = vsel %vm3007_vm3, %v6644_v34, %v15403_v45  ;;  %v7859_v34 = vld [vmem:[#allocation2 + $0x288] sm:$0xff] }
 0xba0   :  { %v7306_v54 = vadd.f32 %v12945_v20, %v7305_v31  ;;  %v6401_v17 = vpop.permute.xlu0 %6400  ;;  %v6995_v13 = vsel %vm3267_vm8, %v6931_v30, %v6211_v16  ;;  %v15405_v30 = vld [vmem:[#allocation160_spill] sm:$0xff]  ;;  %v6614_v50 = vsel %vm14_vm0, %v7859_v34, %v15419_v61 }
 0xba1   :  { %v7026_v55 = vsel %vm3332_vm10, %v6962_v23, %v6401_v17  ;;  %v7525_v42 = vadd.f32 %v7402_v40, %v15389_v24  ;;  %v7059_v47 = vsel %vm3332_vm10, %v6995_v13, %v13006_v53  ;;  %v6643_v53 = vsel %vm2942_vm4, %v6579_v22, %v15392_v41  ;;  %v15406_v40 = vld [vmem:[#allocation275_spill] sm:$0xff]  ;;  %v4445_v23 = vld [vmem:[#allocation2 + $0x309] sm:$0xff] }
 0xba2   :  { %v7493_v37 = vadd.f32 %v7306_v54, %v15390_v58  ;;  %7709 = vmatmul.msk.f32.gmra.mxu1 %vm3406_vm9, %v7026_v55  ;;  %v6707_v62 = vsel %vm3007_vm3, %v6643_v53, %v15393_v39  ;;  %v6772_v31 = vsel %vm3072_vm5, %v6708_v11, %v15405_v30  ;;  %v6804_v16 = vsel %vm3072_vm5, %v6740_v10, %v15406_v40  ;;  %v15407_v54 = vld [vmem:[#allocation165_spill] sm:$0xff]  ;;  %v7857_v39 = vld [vmem:[#allocation2 + $0x278] sm:$0xff]  ;;  %v15422_v10 = vld [vmem:[#allocation144_spill] sm:$0xff] }
 0xba3   :  { %7589 = vst.msk [vmem:[%s14010_s3 + $0x110] sm:$0xff] %vm14_vm0, %v7525_v42  ;;  %7742 = vmatmul.msk.f32.gmra.mxu3 %vm3406_vm9, %v7059_v47  ;;  %v6771_v3 = vsel %vm3072_vm5, %v6707_v62, %v15394_v59  ;;  %v6836_v17 = vsel %vm3137_vm7, %v6772_v31, %v15407_v54  ;;  %v15408_v13 = vld [vmem:[#allocation225_spill] sm:$0xff]  ;;  %v15409_v42 = vld [vmem:[#allocation339_spill] sm:$0xff] }
 0xba4   :  { %7557 = vst.msk [vmem:[%s14010_s3 + $0x10] sm:$0xff] %vm14_vm0, %v7493_v37  ;;  %6484 = vrot.lane.b32.xlu2 %v4508_v1, %s7895_s16  ;;  %5974 = vrot.lane.b32.xlu1 %v4381_v19, %s7893_s14  ;;  %v6835_v38 = vsel %vm3137_vm7, %v6771_v3, %v15395_v35  ;;  %v6868_v55 = vsel %vm3137_vm7, %v6804_v16, %v15408_v13  ;;  %v15410_v62 = vld [vmem:[#allocation93_spill] sm:$0xff]  ;;  %v4477_v3 = vld [vmem:[#allocation2 + $0x15a] sm:$0xff] }
 0xba5   :  { %v6899_v43 = vsel %vm3202_vm6, %v6835_v38, %v15396_v33  ;;  %v6900_v47 = vsel %vm3202_vm6, %v6836_v17, %v15409_v42  ;;  %v6932_v6 = vsel %vm3202_vm6, %v6868_v55, %v12483_v4  ;;  %v6613_v4 = vsel %vm14_vm0, %v7857_v39, %v15410_v62  ;;  %v15414_v33 = vld [vmem:[#allocation188_spill] sm:$0xff]  ;;  %v4446_v11 = vld [vmem:[#allocation2 + $0x319] sm:$0xff]  ;;  %v15426_v55 = vld [vmem:[#allocation369_spill] sm:$0xff] }
 0xba6   :  { %6164 = vrot.lane.b32.xlu0 %v4412_v32, %s7894_s15  ;;  %v7404_v44 = vpop.f32.mrf.mxu3  ;;  %v13110_v0 = vpop.permute.xlu2 %6150  ;;  %v6996_v37 = vsel %vm3267_vm8, %v6932_v6, %v13036_v63  ;;  %v15411_v32 = vld [vmem:[#allocation7_spill] sm:$0xff]  ;;  %v15424_v16 = vld [vmem:[#allocation126_spill] sm:$0xff] }
 0xba7   :  { %v7405_v51 = vadd.f32 %v12945_v20, %v7404_v44  ;;  %v6403_v60 = vpop.permute.xlu1 %6402  ;;  %v4413_v63 = vld [vmem:[#allocation2 + $0x159] sm:$0xff] }
 0xba8   :  { %v6147_v15 = vpop.permute.xlu0 %6146  ;;  %v7308_v21 = vpop.f32.mrf.mxu1  ;;  %v15412_v44 = vld [vmem:[#allocation75_spill] sm:$0xff] }
 0xba9   :  { %v6963_v14 = vsel %vm3267_vm8, %v6899_v43, %v6147_v15  ;;  %v7526_v12 = vadd.f32 %v7405_v51, %v15397_v25  ;;  %v7309_v57 = vadd.f32 %v12945_v20, %v7308_v21  ;;  %v6677_v35 = vsel %vm2942_vm4, %v6613_v4, %v15412_v44  ;;  %v15423_v31 = vld [vmem:[#allocation195_spill] sm:$0xff] }
 0xbaa   :  { %v7027_v46 = vsel %vm3332_vm10, %v6963_v14, %v6403_v60  ;;  %v4382_v60 = vld [vmem:[#allocation2 + $0x318] sm:$0xff]  ;;  %v15425_v54 = vld [vmem:[#allocation151_spill] sm:$0xff] }
 0xbab   :  { %7590 = vst.msk [vmem:[%s14010_s3 + $0x118] sm:$0xff] %vm14_vm0, %v7526_v12  ;;  %v7494_v18 = vadd.f32 %v7309_v57, %v15402_v27  ;;  %7710 = vmatmul.msk.f32.gmra.mxu1 %vm3406_vm9, %v7027_v46  ;;  %v15415_v14 = vld [vmem:[#allocation202_spill] sm:$0xff]  ;;  %v15416_v57 = vld [vmem:[#allocation228_spill] sm:$0xff]  ;;  %v15418_v46 = vld [vmem:[#allocation297_spill] sm:$0xff] }
 0xbac   :  { %6420 = vrot.lane.b32.xlu2 %v4476_v52, %s7895_s16  ;;  %6486 = vrot.lane.b32.xlu1 %v4509_v48, %s7895_s16  ;;  %v6581_v36 = vsel %vm14_vm0, %v7858_v28, %v15418_v46  ;;  %v15421_v48 = vld [vmem:[#allocation268_spill] sm:$0xff]  ;;  %v4510_v13 = vld [vmem:[#allocation2 + $0x31a] sm:$0xff] }
 0xbad   :  { %7558 = vst.msk [vmem:[%s14010_s3 + $0x18] sm:$0xff] %vm14_vm0, %v7494_v18  ;;  %v15420_v18 = vld [vmem:[#allocation244_spill] sm:$0xff]  ;;  %v6678_v45 = vsel %vm2942_vm4, %v6614_v50, %v15421_v48  ;;  %v15436_v28 = vld [vmem:[#allocation226_spill] sm:$0xff]  ;;  %v7860_v48 = vld [vmem:[#allocation2 + $0x290] sm:$0xff] }
 0xbae   :  { %6230 = vrot.lane.b32.xlu0 %v4445_v23, %s7894_s15  ;;  %v13154_v24 = vpop.permute.xlu2 %6472  ;;  %v6645_v52 = vsel %vm2942_vm4, %v6581_v36, %v15420_v18  ;;  %v6742_v40 = vsel %vm3007_vm3, %v6678_v45, %v15423_v31  ;;  %v15437_v50 = vld [vmem:[#allocation40_spill] sm:$0xff]  ;;  %v15438_v45 = vld [vmem:[#allocation263_spill] sm:$0xff]  ;;  %v4384_v31 = vld [vmem:[#allocation2 + $0x330] sm:$0xff] }
 0xbaf   :  { %v6149_v58 = vpop.permute.xlu1 %6148  ;;  %v6709_v30 = vsel %vm3007_vm3, %v6645_v52, %v15422_v10  ;;  %v6806_v17 = vsel %vm3072_vm5, %v6742_v40, %v15425_v54  ;;  %v15440_v40 = vld [vmem:[#allocation190_spill] sm:$0xff] }
 0xbb0   :  { %v6469_v56 = vpop.permute.xlu0 %6468  ;;  %v6964_v22 = vsel %vm3267_vm8, %v6900_v47, %v6149_v58  ;;  %v7311_v1 = vpop.f32.mrf.mxu1  ;;  %v6773_v23 = vsel %vm3072_vm5, %v6709_v30, %v15424_v16  ;;  %v15427_v47 = vld [vmem:[#allocation393_spill] sm:$0xff]  ;;  %v4511_v30 = vld [vmem:[#allocation2 + $0x322] sm:$0xff] }
 0xbb1   :  { %v7060_v19 = vsel %vm3332_vm10, %v6996_v37, %v6469_v56  ;;  %v7312_v41 = vadd.f32 %v12945_v20, %v7311_v1  ;;  %v7028_v53 = vsel %vm3332_vm10, %v6964_v22, %v13073_v5  ;;  %v15413_v5 = vld [vmem:[#allocation261_spill] sm:$0xff]  ;;  %v6837_v42 = vsel %vm3137_vm7, %v6773_v23, %v15426_v55  ;;  %v15428_v56 = vld [vmem:[#allocation260_spill] sm:$0xff] }
 0xbb2   :  { %7743 = vmatmul.msk.f32.gmra.mxu3 %vm3406_vm9, %v7060_v19  ;;  %v6741_v38 = vsel %vm3007_vm3, %v6677_v35, %v15413_v5  ;;  %v6870_v6 = vsel %vm3137_vm7, %v6806_v17, %v15427_v47  ;;  %v6901_v22 = vsel %vm3202_vm6, %v6837_v42, %v15428_v56  ;;  %v15430_v35 = vld [vmem:[#allocation9_spill] sm:$0xff]  ;;  %v15442_v17 = vld [vmem:[#allocation368_spill] sm:$0xff] }
 0xbb3   :  { %v7495_v59 = vadd.f32 %v7312_v41, %v15411_v32  ;;  %7711 = vmatmul.msk.f32.gmra.mxu1 %vm3406_vm9, %v7028_v53  ;;  %v6805_v43 = vsel %vm3072_vm5, %v6741_v38, %v15414_v33  ;;  %v6934_v1 = vsel %vm3202_vm6, %v6870_v6, %v12504_v26  ;;  %v6965_v39 = vsel %vm3267_vm8, %v6901_v22, %v13110_v0  ;;  %v3958_v26 = vld [vmem:[#allocation2 + $0xd8] sm:$0xff]  ;;  %v15431_v38 = vld [vmem:[#allocation404_spill] sm:$0xff]  ;;  %v15443_v42 = vld [vmem:[#allocation305_spill] sm:$0xff] }
 0xbb4   :  { %6166 = vrot.lane.b32.xlu2 %v4413_v63, %s7894_s15  ;;  %6422 = vrot.lane.b32.xlu1 %v4477_v3, %s7895_s16  ;;  %v6869_v25 = vsel %vm3137_vm7, %v6805_v43, %v15415_v14  ;;  %v15429_v63 = vld [vmem:[#allocation38_spill] sm:$0xff]  ;;  %v6582_v0 = vsel %vm14_vm0, %v3958_v26, %v15431_v38  ;;  %v15432_v33 = vld [vmem:[#allocation152_spill] sm:$0xff]  ;;  %v15433_v43 = vld [vmem:[#allocation133_spill] sm:$0xff] }
 0xbb5   :  { %7559 = vst.msk [vmem:[%s14010_s3 + $0x20] sm:$0xff] %vm14_vm0, %v7495_v59  ;;  %v7407_v51 = vpop.f32.mrf.mxu3  ;;  %v6933_v49 = vsel %vm3202_vm6, %v6869_v25, %v15416_v57  ;;  %v4478_v14 = vld [vmem:[#allocation2 + $0x16a] sm:$0xff]  ;;  %v4479_v26 = vld [vmem:[#allocation2 + $0x172] sm:$0xff] }
 0xbb6   :  { %v7408_v15 = vadd.f32 %v12945_v20, %v7407_v51  ;;  %5976 = vrot.lane.b32.xlu0 %v4382_v60, %s7893_s14  ;;  %v13186_v21 = vpop.permute.xlu2 %6408  ;;  %v4383_v51 = vld [vmem:[#allocation2 + $0x320] sm:$0xff]  ;;  %v15434_v25 = vld [vmem:[#allocation320_spill] sm:$0xff]  ;;  %v4415_v54 = vld [vmem:[#allocation2 + $0x171] sm:$0xff] }
 0xbb7   :  { %v6471_v12 = vpop.permute.xlu1 %6470  ;;  %v4447_v60 = vld [vmem:[#allocation2 + $0x321] sm:$0xff] }
 0xbb8   :  { %v7527_v8 = vadd.f32 %v7408_v15, %v15417_v9  ;;  %v6215_v2 = vpop.permute.xlu0 %6214  ;;  %v15435_v9 = vld [vmem:[#allocation278_spill] sm:$0xff] }
 0xbb9   :  { %v6997_v7 = vsel %vm3267_vm8, %v6933_v49, %v6215_v2 }
 0xbba   :  { %7591 = vst.msk [vmem:[%s14010_s3 + $0x120] sm:$0xff] %vm14_vm0, %v7527_v8  ;;  %v7061_v27 = vsel %vm3332_vm10, %v6997_v7, %v6471_v12 }
 0xbbb   :  { %7744 = vmatmul.msk.f32.gmra.mxu3 %vm3406_vm9, %v7061_v27 }
 0xbbc   :  { %6232 = vrot.lane.b32.xlu2 %v4446_v11, %s7894_s15  ;;  %6168 = vrot.lane.b32.xlu1 %v4414_v29, %s7894_s15  ;;  %v6615_v11 = vsel %vm14_vm0, %v7860_v48, %v15438_v45  ;;  %v15439_v29 = vld [vmem:[#allocation8_spill] sm:$0xff]  ;;  %v15456_v48 = vld [vmem:[#allocation270_spill] sm:$0xff] }
 0xbbd   :  { %v6679_v16 = vsel %vm2942_vm4, %v6615_v11, %v15440_v40 }
 0xbbe   :  { %6488 = vrot.lane.b32.xlu0 %v4510_v13, %s7895_s16  ;;  %v7410_v58 = vpop.f32.mrf.mxu3  ;;  %v13223_v37 = vpop.permute.xlu2 %6154 }
 0xbbf   :  { %v7314_v19 = vpop.f32.mrf.mxu1  ;;  %v7411_v41 = vadd.f32 %v12945_v20, %v7410_v58  ;;  %v6217_v53 = vpop.permute.xlu1 %6216 }
 0xbc0   :  { %v7315_v62 = vadd.f32 %v12945_v20, %v7314_v19  ;;  %v6407_v4 = vpop.permute.xlu0 %6406  ;;  %v6998_v32 = vsel %vm3267_vm8, %v6934_v1, %v6217_v53  ;;  %v7861_v1 = vld [vmem:[#allocation2 + $0xe0] sm:$0xff] }
 0xbc1   :  { %v7029_v59 = vsel %vm3332_vm10, %v6965_v39, %v6407_v4  ;;  %v7528_v3 = vadd.f32 %v7411_v41, %v15429_v63  ;;  %v7062_v44 = vsel %vm3332_vm10, %v6998_v32, %v13154_v24  ;;  %v6646_v24 = vsel %vm2942_vm4, %v6582_v0, %v15432_v33  ;;  %v15444_v19 = vld [vmem:[#allocation207_spill] sm:$0xff]  ;;  %v15449_v0 = vld [vmem:[#allocation246_spill] sm:$0xff] }
 0xbc2   :  { %v7496_v5 = vadd.f32 %v7315_v62, %v15430_v35  ;;  %7712 = vmatmul.msk.f32.gmra.mxu1 %vm3406_vm9, %v7029_v59  ;;  %v6710_v15 = vsel %vm3007_vm3, %v6646_v24, %v15433_v43  ;;  %v6583_v41 = vsel %vm14_vm0, %v7861_v1, %v15444_v19  ;;  %v15445_v62 = vld [vmem:[#allocation128_spill] sm:$0xff]  ;;  %v15446_v59 = vld [vmem:[#allocation327_spill] sm:$0xff]  ;;  %v4512_v35 = vld [vmem:[#allocation2 + $0x332] sm:$0xff] }
 0xbc3   :  { %7592 = vst.msk [vmem:[%s14010_s3 + $0x128] sm:$0xff] %vm14_vm0, %v7528_v3  ;;  %7745 = vmatmul.msk.f32.gmra.mxu3 %vm3406_vm9, %v7062_v44  ;;  %v6774_v12 = vsel %vm3072_vm5, %v6710_v15, %v15434_v25  ;;  %v6647_v4 = vsel %vm2942_vm4, %v6583_v41, %v15445_v62  ;;  %v15447_v3 = vld [vmem:[#allocation10_spill] sm:$0xff]  ;;  %v15450_v24 = vld [vmem:[#allocation420_spill] sm:$0xff] }
 0xbc4   :  { %7560 = vst.msk [vmem:[%s14010_s3 + $0x28] sm:$0xff] %vm14_vm0, %v7496_v5  ;;  %5978 = vrot.lane.b32.xlu2 %v4383_v51, %s7893_s14  ;;  %6234 = vrot.lane.b32.xlu1 %v4447_v60, %s7894_s15  ;;  %v6838_v8 = vsel %vm3137_vm7, %v6774_v12, %v15435_v9  ;;  %v6711_v63 = vsel %vm3007_vm3, %v6647_v4, %v15446_v59  ;;  %v15448_v5 = vld [vmem:[#allocation253_spill] sm:$0xff]  ;;  %v15451_v9 = vld [vmem:[#allocation178_spill] sm:$0xff]  ;;  %v15460_v19 = vld [vmem:[#allocation12_spill] sm:$0xff] }
 0xbc5   :  { %v6902_v46 = vsel %vm3202_vm6, %v6838_v8, %v15436_v28  ;;  %v6775_v38 = vsel %vm3072_vm5, %v6711_v63, %v15448_v5  ;;  %v4448_v33 = vld [vmem:[#allocation2 + $0x331] sm:$0xff]  ;;  %v4449_v4 = vld [vmem:[#allocation2 + $0x339] sm:$0xff]  ;;  %v15463_v59 = vld [vmem:[#allocation248_spill] sm:$0xff] }
 0xbc6   :  { %6424 = vrot.lane.b32.xlu0 %v4478_v14, %s7895_s16  ;;  %v7413_v57 = vpop.f32.mrf.mxu3  ;;  %v13260_v49 = vpop.permute.xlu2 %6220  ;;  %v6839_v51 = vsel %vm3137_vm7, %v6775_v38, %v15449_v0  ;;  %v15466_v5 = vld [vmem:[#allocation254_spill] sm:$0xff] }
 0xbc7   :  { %v7414_v2 = vadd.f32 %v12945_v20, %v7413_v57  ;;  %v5963_v7 = vpop.permute.xlu1 %5962  ;;  %v6903_v43 = vsel %vm3202_vm6, %v6839_v51, %v15450_v24  ;;  %v7862_v57 = vld [vmem:[#allocation2 + $0x2a0] sm:$0xff]  ;;  %v15467_v51 = vld [vmem:[#allocation438_spill] sm:$0xff] }
 0xbc8   :  { %v6153_v36 = vpop.permute.xlu0 %6152  ;;  %v7317_v34 = vpop.f32.mrf.mxu1  ;;  %v6967_v25 = vsel %vm3267_vm8, %v6903_v43, %v13223_v37  ;;  %v6616_v8 = vsel %vm14_vm0, %v7862_v57, %v15451_v9  ;;  %v15455_v37 = vld [vmem:[#allocation277_spill] sm:$0xff]  ;;  %v4513_v0 = vld [vmem:[#allocation2 + $0x33a] sm:$0xff] }
 0xbc9   :  { %v6966_v61 = vsel %vm3267_vm8, %v6902_v46, %v6153_v36  ;;  %v7529_v27 = vadd.f32 %v7414_v2, %v15437_v50  ;;  %v7318_v18 = vadd.f32 %v12945_v20, %v7317_v34  ;;  %v15452_v2 = vld [vmem:[#allocation39_spill] sm:$0xff]  ;;  %v15453_v36 = vld [vmem:[#allocation153_spill] sm:$0xff] }
 0xbca   :  { %v7030_v52 = vsel %vm3332_vm10, %v6966_v61, %v13186_v21  ;;  %v15441_v21 = vld [vmem:[#allocation159_spill] sm:$0xff]  ;;  %v6680_v34 = vsel %vm2942_vm4, %v6616_v8, %v15453_v36 }
 0xbcb   :  { %7713 = vmatmul.msk.f32.gmra.mxu1 %vm3406_vm9, %v7030_v52  ;;  %7593 = vst.msk [vmem:[%s14010_s3 + $0x130] sm:$0xff] %vm14_vm0, %v7529_v27  ;;  %v7497_v10 = vadd.f32 %v7318_v18, %v15439_v29  ;;  %v6743_v23 = vsel %vm3007_vm3, %v6679_v16, %v15441_v21  ;;  %v15454_v61 = vld [vmem:[#allocation363_spill] sm:$0xff]  ;;  %v4385_v29 = vld [vmem:[#allocation2 + $0x338] sm:$0xff] }
 0xbcc   :  { %6490 = vrot.lane.b32.xlu2 %v4511_v30, %s7895_s16  ;;  %5980 = vrot.lane.b32.xlu1 %v4384_v31, %s7893_s14  ;;  %v6807_v13 = vsel %vm3072_vm5, %v6743_v23, %v15442_v17  ;;  %v6744_v50 = vsel %vm3007_vm3, %v6680_v34, %v15454_v61  ;;  %v4416_v18 = vld [vmem:[#allocation2 + $0x181] sm:$0xff]  ;;  %v15457_v17 = vld [vmem:[#allocation41_spill] sm:$0xff] }
 0xbcd   :  { %7561 = vst.msk [vmem:[%s14010_s3 + $0x30] sm:$0xff] %vm14_vm0, %v7497_v10  ;;  %v6871_v47 = vsel %vm3137_vm7, %v6807_v13, %v15443_v42  ;;  %v6808_v27 = vsel %vm3072_vm5, %v6744_v50, %v15455_v37  ;;  %v4480_v52 = vld [vmem:[#allocation2 + $0x182] sm:$0xff] }
 0xbce   :  { %6170 = vrot.lane.b32.xlu0 %v4415_v54, %s7894_s15  ;;  %v13293_v55 = vpop.permute.xlu2 %5966  ;;  %v6935_v58 = vsel %vm3202_vm6, %v6871_v47, %v5963_v7  ;;  %v6872_v45 = vsel %vm3137_vm7, %v6808_v27, %v15456_v48  ;;  %v7863_v47 = vld [vmem:[#allocation2 + $0xf0] sm:$0xff]  ;;  %v15470_v34 = vld [vmem:[#allocation43_spill] sm:$0xff]  ;;  %v4386_v27 = vld [vmem:[#allocation2 + $0x348] sm:$0xff] }
 0xbcf   :  { %v6475_v6 = vpop.permute.xlu1 %6474 }
 0xbd0   :  { %v6219_v56 = vpop.permute.xlu0 %6218  ;;  %v7320_v22 = vpop.f32.mrf.mxu1 }
 0xbd1   :  { %v6999_v53 = vsel %vm3267_vm8, %v6935_v58, %v6219_v56  ;;  %v7321_v39 = vadd.f32 %v12945_v20, %v7320_v22  ;;  %v7864_v56 = vld [vmem:[#allocation2 + $0x2a8] sm:$0xff]  ;;  %v15459_v22 = vld [vmem:[#allocation127_spill] sm:$0xff] }
 0xbd2   :  { %v7063_v32 = vsel %vm3332_vm10, %v6999_v53, %v6475_v6  ;;  %v15458_v6 = vld [vmem:[#allocation69_spill] sm:$0xff]  ;;  %v6617_v1 = vsel %vm14_vm0, %v7864_v56, %v15459_v22  ;;  %v15461_v53 = vld [vmem:[#allocation322_spill] sm:$0xff] }
 0xbd3   :  { %v7498_v44 = vadd.f32 %v7321_v39, %v15447_v3  ;;  %7746 = vmatmul.msk.f32.gmra.mxu3 %vm3406_vm9, %v7063_v32  ;;  %v6584_v58 = vsel %vm14_vm0, %v7863_v47, %v15458_v6  ;;  %v4417_v32 = vld [vmem:[#allocation2 + $0x189] sm:$0xff] }
 0xbd4   :  { %6426 = vrot.lane.b32.xlu2 %v4479_v26, %s7895_s16  ;;  %6492 = vrot.lane.b32.xlu1 %v4512_v35, %s7895_s16  ;;  %v6648_v39 = vsel %vm2942_vm4, %v6584_v58, %v15461_v53  ;;  %v15464_v3 = vld [vmem:[#allocation272_spill] sm:$0xff]  ;;  %v15465_v26 = vld [vmem:[#allocation219_spill] sm:$0xff]  ;;  %v7866_v53 = vld [vmem:[#allocation2 + $0x2b8] sm:$0xff] }
 0xbd5   :  { %7562 = vst.msk [vmem:[%s14010_s3 + $0x38] sm:$0xff] %vm14_vm0, %v7498_v44  ;;  %v7416_v60 = vpop.f32.mrf.mxu3  ;;  %v6712_v63 = vsel %vm3007_vm3, %v6648_v39, %v15463_v59  ;;  %v15478_v39 = vld [vmem:[#allocation367_spill] sm:$0xff]  ;;  %v15480_v59 = vld [vmem:[#allocation258_spill] sm:$0xff] }
 0xbd6   :  { %v7417_v15 = vadd.f32 %v12945_v20, %v7416_v60  ;;  %6236 = vrot.lane.b32.xlu0 %v4448_v33, %s7894_s15  ;;  %v13323_v14 = vpop.permute.xlu2 %6478  ;;  %v6776_v35 = vsel %vm3072_vm5, %v6712_v63, %v15465_v26  ;;  %v15468_v33 = vld [vmem:[#allocation87_spill] sm:$0xff]  ;;  %v15482_v26 = vld [vmem:[#allocation446_spill] sm:$0xff] }
 0xbd7   :  { %v6411_v12 = vpop.permute.xlu1 %6410  ;;  %v6840_v60 = vsel %vm3137_vm7, %v6776_v35, %v15467_v51 }
 0xbd8   :  { %v7530_v7 = vadd.f32 %v7417_v15, %v15452_v2  ;;  %v5965_v28 = vpop.permute.xlu0 %5964  ;;  %v7031_v46 = vsel %vm3332_vm10, %v6967_v25, %v6411_v12  ;;  %v15469_v25 = vld [vmem:[#allocation329_spill] sm:$0xff] }
 0xbd9   :  { %7714 = vmatmul.msk.f32.gmra.mxu1 %vm3406_vm9, %v7031_v46  ;;  %v6936_v11 = vsel %vm3202_vm6, %v6872_v45, %v5965_v28  ;;  %v6904_v12 = vsel %vm3202_vm6, %v6840_v60, %v15469_v25  ;;  %v15472_v45 = vld [vmem:[#allocation11_spill] sm:$0xff] }
 0xbda   :  { %7594 = vst.msk [vmem:[%s14010_s3 + $0x138] sm:$0xff] %vm14_vm0, %v7530_v7  ;;  %v7000_v54 = vsel %vm3267_vm8, %v6936_v11, %v13260_v49  ;;  %v15462_v49 = vld [vmem:[#allocation350_spill] sm:$0xff] }
 0xbdb   :  { %v6681_v62 = vsel %vm2942_vm4, %v6617_v1, %v15462_v49  ;;  %v4514_v1 = vld [vmem:[#allocation2 + $0x34a] sm:$0xff]  ;;  %v6618_v49 = vsel %vm14_vm0, %v7866_v53, %v15478_v39  ;;  %v4483_v39 = vld [vmem:[#allocation2 + $0x1a2] sm:$0xff] }
 0xbdc   :  { %6172 = vrot.lane.b32.xlu2 %v4416_v18, %s7894_s15  ;;  %6428 = vrot.lane.b32.xlu1 %v4480_v52, %s7895_s16  ;;  %v6745_v44 = vsel %vm3007_vm3, %v6681_v62, %v15464_v3  ;;  %v7865_v18 = vld [vmem:[#allocation2 + $0xf8] sm:$0xff]  ;;  %v15471_v52 = vld [vmem:[#allocation176_spill] sm:$0xff]  ;;  %v15479_v62 = vld [vmem:[#allocation13_spill] sm:$0xff]  ;;  %v6682_v63 = vsel %vm2942_vm4, %v6618_v49, %v15480_v59 }
 0xbdd   :  { %v6809_v38 = vsel %vm3072_vm5, %v6745_v44, %v15466_v5  ;;  %v6585_v48 = vsel %vm14_vm0, %v7865_v18, %v15471_v52  ;;  %v15481_v3 = vld [vmem:[#allocation240_spill] sm:$0xff]  ;;  %v15490_v52 = vld [vmem:[#allocation111_spill] sm:$0xff] }
 0xbde   :  { %5982 = vrot.lane.b32.xlu0 %v4385_v29, %s7893_s14  ;;  %v7419_v10 = vpop.f32.mrf.mxu3  ;;  %v13348_v30 = vpop.permute.xlu2 %6414  ;;  %v6873_v24 = vsel %vm3137_vm7, %v6809_v38, %v15468_v33  ;;  %v15473_v29 = vld [vmem:[#allocation237_spill] sm:$0xff]  ;;  %v6746_v44 = vsel %vm3007_vm3, %v6682_v63, %v15481_v3  ;;  %v15497_v49 = vld [vmem:[#allocation372_spill] sm:$0xff] }
 0xbdf   :  { %v7323_v31 = vpop.f32.mrf.mxu1  ;;  %v7420_v40 = vadd.f32 %v12945_v20, %v7419_v10  ;;  %v6157_v16 = vpop.permute.xlu1 %6156  ;;  %v6937_v57 = vsel %vm3202_vm6, %v6873_v24, %v13293_v55  ;;  %v4450_v55 = vld [vmem:[#allocation2 + $0x349] sm:$0xff]  ;;  %v15474_v10 = vld [vmem:[#allocation214_spill] sm:$0xff]  ;;  %v6810_v35 = vsel %vm3072_vm5, %v6746_v44, %v15482_v26 }
 0xbe0   :  { %v7324_v21 = vadd.f32 %v12945_v20, %v7323_v31  ;;  %v6477_v23 = vpop.permute.xlu0 %6476  ;;  %v6968_v2 = vsel %vm3267_vm8, %v6904_v12, %v6157_v16  ;;  %v15475_v16 = vld [vmem:[#allocation422_spill] sm:$0xff]  ;;  %v7867_v12 = vld [vmem:[#allocation2 + $0x108] sm:$0xff] }
 0xbe1   :  { %v7531_v13 = vadd.f32 %v7420_v40, %v15457_v17  ;;  %v7064_v42 = vsel %vm3332_vm10, %v7000_v54, %v6477_v23  ;;  %v4481_v40 = vld [vmem:[#allocation2 + $0x18a] sm:$0xff]  ;;  %v15476_v54 = vld [vmem:[#allocation371_spill] sm:$0xff]  ;;  %v15484_v24 = vld [vmem:[#allocation42_spill] sm:$0xff] }
 0xbe2   :  { %v7499_v41 = vadd.f32 %v7324_v21, %v15460_v19  ;;  %7747 = vmatmul.msk.f32.gmra.mxu3 %vm3406_vm9, %v7064_v42  ;;  %v15477_v42 = vld [vmem:[#allocation318_spill] sm:$0xff]  ;;  %v4387_v19 = vld [vmem:[#allocation2 + $0x350] sm:$0xff] }
 0xbe3   :  { %7595 = vst.msk [vmem:[%s14010_s3 + $0x140] sm:$0xff] %vm14_vm0, %v7531_v13 }
 0xbe4   :  { %7563 = vst.msk [vmem:[%s14010_s3 + $0x40] sm:$0xff] %vm14_vm0, %v7499_v41  ;;  %6238 = vrot.lane.b32.xlu2 %v4449_v4, %s7894_s15  ;;  %6174 = vrot.lane.b32.xlu1 %v4417_v32, %s7894_s15  ;;  %v4418_v32 = vld [vmem:[#allocation2 + $0x199] sm:$0xff] }
 0xbe6   :  { %6494 = vrot.lane.b32.xlu0 %v4513_v0, %s7895_s16  ;;  %v7422_v43 = vpop.f32.mrf.mxu3  ;;  %v13389_v15 = vpop.permute.xlu2 %6160  ;;  %v15483_v0 = vld [vmem:[#allocation395_spill] sm:$0xff] }
 0xbe7   :  { %v7423_v9 = vadd.f32 %v12945_v20, %v7422_v43  ;;  %v6223_v8 = vpop.permute.xlu1 %6222  ;;  %v6874_v51 = vsel %vm3137_vm7, %v6810_v35, %v15483_v0 }
 0xbe8   :  { %v6413_v7 = vpop.permute.xlu0 %6412  ;;  %v7326_v28 = vpop.f32.mrf.mxu1  ;;  %v7001_v46 = vsel %vm3267_vm8, %v6937_v57, %v6223_v8  ;;  %v15485_v57 = vld [vmem:[#allocation252_spill] sm:$0xff] }
 0xbe9   :  { %v7032_v36 = vsel %vm3332_vm10, %v6968_v2, %v6413_v7  ;;  %v7532_v61 = vadd.f32 %v7423_v9, %v15470_v34  ;;  %v7327_v50 = vadd.f32 %v12945_v20, %v7326_v28  ;;  %v7065_v37 = vsel %vm3332_vm10, %v7001_v46, %v13323_v14  ;;  %v4482_v2 = vld [vmem:[#allocation2 + $0x19a] sm:$0xff]  ;;  %v4515_v7 = vld [vmem:[#allocation2 + $0x352] sm:$0xff]  ;;  %v15486_v28 = vld [vmem:[#allocation200_spill] sm:$0xff] }
 0xbea   :  { %7715 = vmatmul.msk.f32.gmra.mxu1 %vm3406_vm9, %v7032_v36  ;;  %7748 = vmatmul.msk.f32.gmra.mxu3 %vm3406_vm9, %v7065_v37  ;;  %v6649_v14 = vsel %vm2942_vm4, %v6585_v48, %v15473_v29  ;;  %v6586_v9 = vsel %vm14_vm0, %v7867_v12, %v15485_v57  ;;  %v15487_v34 = vld [vmem:[#allocation408_spill] sm:$0xff]  ;;  %v15488_v37 = vld [vmem:[#allocation331_spill] sm:$0xff] }
 0xbeb   :  { %7596 = vst.msk [vmem:[%s14010_s3 + $0x148] sm:$0xff] %vm14_vm0, %v7532_v61  ;;  %v7500_v11 = vadd.f32 %v7327_v50, %v15472_v45  ;;  %v6713_v31 = vsel %vm3007_vm3, %v6649_v14, %v15474_v10  ;;  %v6650_v46 = vsel %vm2942_vm4, %v6586_v9, %v15486_v28  ;;  %v4451_v50 = vld [vmem:[#allocation2 + $0x351] sm:$0xff]  ;;  %v15501_v57 = vld [vmem:[#allocation415_spill] sm:$0xff] }
 0xbec   :  { %5984 = vrot.lane.b32.xlu2 %v4386_v27, %s7893_s14  ;;  %6240 = vrot.lane.b32.xlu1 %v4450_v55, %s7894_s15  ;;  %v6777_v21 = vsel %vm3072_vm5, %v6713_v31, %v15475_v16  ;;  %v6714_v61 = vsel %vm3007_vm3, %v6650_v46, %v15487_v34  ;;  %v15489_v55 = vld [vmem:[#allocation336_spill] sm:$0xff]  ;;  %v15491_v16 = vld [vmem:[#allocation265_spill] sm:$0xff]  ;;  %v15502_v9 = vld [vmem:[#allocation439_spill] sm:$0xff] }
 0xbed   :  { %7564 = vst.msk [vmem:[%s14010_s3 + $0x48] sm:$0xff] %vm14_vm0, %v7500_v11  ;;  %v6841_v17 = vsel %vm3137_vm7, %v6777_v21, %v15476_v54  ;;  %v6778_v27 = vsel %vm3072_vm5, %v6714_v61, %v15488_v37  ;;  %v15504_v28 = vld [vmem:[#allocation317_spill] sm:$0xff]  ;;  %v15506_v61 = vld [vmem:[#allocation299_spill] sm:$0xff] }
 0xbee   :  { %6430 = vrot.lane.b32.xlu0 %v4481_v40, %s7895_s16  ;;  %v13425_v23 = vpop.permute.xlu2 %6226  ;;  %v6905_v47 = vsel %vm3202_vm6, %v6841_v17, %v15477_v42  ;;  %v6842_v18 = vsel %vm3137_vm7, %v6778_v27, %v15489_v55  ;;  %v7868_v40 = vld [vmem:[#allocation2 + $0x2c0] sm:$0xff]  ;;  %v15508_v55 = vld [vmem:[#allocation140_spill] sm:$0xff] }
 0xbef   :  { %v5969_v13 = vpop.permute.xlu1 %5968  ;;  %v6906_v48 = vsel %vm3202_vm6, %v6842_v18, %v15490_v52  ;;  %v6619_v21 = vsel %vm14_vm0, %v7868_v40, %v15491_v16  ;;  %v15492_v42 = vld [vmem:[#allocation247_spill] sm:$0xff]  ;;  %v15509_v52 = vld [vmem:[#allocation166_spill] sm:$0xff] }
 0xbf0   :  { %v6159_v6 = vpop.permute.xlu0 %6158  ;;  %v7329_v58 = vpop.f32.mrf.mxu1  ;;  %v6938_v33 = vsel %vm3202_vm6, %v6874_v51, %v5969_v13  ;;  %v6970_v29 = vsel %vm3267_vm8, %v6906_v48, %v13389_v15  ;;  %v4419_v15 = vld [vmem:[#allocation2 + $0x1a1] sm:$0xff] }
 0xbf1   :  { %v6969_v56 = vsel %vm3267_vm8, %v6905_v47, %v6159_v6  ;;  %v7330_v22 = vadd.f32 %v12945_v20, %v7329_v58  ;;  %v6683_v47 = vsel %vm2942_vm4, %v6619_v21, %v15492_v42  ;;  %v15493_v6 = vld [vmem:[#allocation44_spill] sm:$0xff]  ;;  %v15507_v37 = vld [vmem:[#allocation323_spill] sm:$0xff] }
 0xbf2   :  { %v7033_v41 = vsel %vm3332_vm10, %v6969_v56, %v13348_v30  ;;  %v15494_v56 = vld [vmem:[#allocation432_spill] sm:$0xff] }
 0xbf3   :  { %7716 = vmatmul.msk.f32.gmra.mxu1 %vm3406_vm9, %v7033_v41  ;;  %v7501_v4 = vadd.f32 %v7330_v22, %v15479_v62  ;;  %v6747_v22 = vsel %vm3007_vm3, %v6683_v47, %v15494_v56  ;;  %v15496_v41 = vld [vmem:[#allocation358_spill] sm:$0xff]  ;;  %v7871_v47 = vld [vmem:[#allocation2 + $0x120] sm:$0xff]  ;;  %v15513_v56 = vld [vmem:[#allocation301_spill] sm:$0xff] }
 0xbf4   :  { %6496 = vrot.lane.b32.xlu2 %v4514_v1, %s7895_s16  ;;  %5986 = vrot.lane.b32.xlu1 %v4387_v19, %s7893_s14  ;;  %v15495_v1 = vld [vmem:[#allocation15_spill] sm:$0xff]  ;;  %v6811_v53 = vsel %vm3072_vm5, %v6747_v22, %v15496_v41  ;;  %v15515_v41 = vld [vmem:[#allocation92_spill] sm:$0xff] }
 0xbf5   :  { %7565 = vst.msk [vmem:[%s14010_s3 + $0x50] sm:$0xff] %vm14_vm0, %v7501_v4  ;;  %v7425_v30 = vpop.f32.mrf.mxu3  ;;  %v6875_v62 = vsel %vm3137_vm7, %v6811_v53, %v15497_v49  ;;  %v15516_v49 = vld [vmem:[#allocation417_spill] sm:$0xff] }
 0xbf6   :  { %v7426_v5 = vadd.f32 %v12945_v20, %v7425_v30  ;;  %6176 = vrot.lane.b32.xlu0 %v4418_v32, %s7894_s15  ;;  %v13453_v38 = vpop.permute.xlu2 %5972 }
 0xbf7   :  { %v6481_v60 = vpop.permute.xlu1 %6480 }
 0xbf8   :  { %v7533_v43 = vadd.f32 %v7426_v5, %v15484_v24  ;;  %v6225_v25 = vpop.permute.xlu0 %6224  ;;  %v15498_v5 = vld [vmem:[#allocation46_spill] sm:$0xff] }
 0xbf9   :  { %v7002_v8 = vsel %vm3267_vm8, %v6938_v33, %v6225_v25  ;;  %v15499_v33 = vld [vmem:[#allocation146_spill] sm:$0xff]  ;;  %v15500_v25 = vld [vmem:[#allocation208_spill] sm:$0xff] }
 0xbfa   :  { %7597 = vst.msk [vmem:[%s14010_s3 + $0x150] sm:$0xff] %vm14_vm0, %v7533_v43  ;;  %v7066_v36 = vsel %vm3332_vm10, %v7002_v8, %v6481_v60  ;;  %v7869_v60 = vld [vmem:[#allocation2 + $0x110] sm:$0xff] }
 0xbfb   :  { %7749 = vmatmul.msk.f32.gmra.mxu3 %vm3406_vm9, %v7066_v36  ;;  %v6587_v24 = vsel %vm14_vm0, %v7869_v60, %v15499_v33  ;;  %v7870_v43 = vld [vmem:[#allocation2 + $0x2d0] sm:$0xff]  ;;  %v15505_v36 = vld [vmem:[#allocation330_spill] sm:$0xff] }
 0xbfc   :  { %6432 = vrot.lane.b32.xlu2 %v4482_v2, %s7895_s16  ;;  %6498 = vrot.lane.b32.xlu1 %v4515_v7, %s7895_s16  ;;  %v6620_v12 = vsel %vm14_vm0, %v7870_v43, %v15500_v25  ;;  %v15503_v2 = vld [vmem:[#allocation14_spill] sm:$0xff]  ;;  %v15520_v33 = vld [vmem:[#allocation325_spill] sm:$0xff]  ;;  %v15521_v43 = vld [vmem:[#allocation307_spill] sm:$0xff] }
 0xbfd   :  { %v6684_v8 = vsel %vm2942_vm4, %v6620_v12, %v15502_v9  ;;  %v15522_v12 = vld [vmem:[#allocation139_spill] sm:$0xff]  ;;  %v15523_v9 = vld [vmem:[#allocation441_spill] sm:$0xff] }
 0xbfe   :  { %6242 = vrot.lane.b32.xlu0 %v4451_v50, %s7894_s15  ;;  %v7428_v45 = vpop.f32.mrf.mxu3  ;;  %v6485_v11 = vpop.permute.xlu2 %6484  ;;  %v6748_v34 = vsel %vm3007_vm3, %v6684_v8, %v15505_v36 }
 0xbff   :  { %v7332_v14 = vpop.f32.mrf.mxu1  ;;  %v7429_v10 = vadd.f32 %v12945_v20, %v7428_v45  ;;  %v6417_v31 = vpop.permute.xlu1 %6416  ;;  %v6812_v27 = vsel %vm3072_vm5, %v6748_v34, %v15507_v37  ;;  %v15510_v45 = vld [vmem:[#allocation431_spill] sm:$0xff] }
 0xc00   :  { %v7333_v54 = vadd.f32 %v12945_v20, %v7332_v14  ;;  %v5971_v17 = vpop.permute.xlu0 %5970  ;;  %v7034_v13 = vsel %vm3332_vm10, %v6970_v29, %v6417_v31  ;;  %v6876_v48 = vsel %vm3137_vm7, %v6812_v27, %v15509_v52 }
 0xc01   :  { %v7534_v58 = vadd.f32 %v7429_v10, %v15493_v6  ;;  %7717 = vmatmul.msk.f32.gmra.mxu1 %vm3406_vm9, %v7034_v13  ;;  %v6939_v4 = vsel %vm3202_vm6, %v6875_v62, %v5971_v17  ;;  %v6940_v14 = vsel %vm3202_vm6, %v6876_v48, %v13453_v38  ;;  %v15511_v38 = vld [vmem:[#allocation347_spill] sm:$0xff]  ;;  %v15527_v48 = vld [vmem:[#allocation18_spill] sm:$0xff] }
 0xc02   :  { %v7502_v19 = vadd.f32 %v7333_v54, %v15495_v1  ;;  %v7003_v30 = vsel %vm3267_vm8, %v6939_v4, %v13425_v23  ;;  %v6651_v23 = vsel %vm2942_vm4, %v6587_v24, %v15501_v57  ;;  %v6588_v6 = vsel %vm14_vm0, %v7871_v47, %v15511_v38  ;;  %v15514_v1 = vld [vmem:[#allocation306_spill] sm:$0xff] }
 0xc03   :  { %7598 = vst.msk [vmem:[%s14010_s3 + $0x158] sm:$0xff] %vm14_vm0, %v7534_v58  ;;  %v6715_v46 = vsel %vm3007_vm3, %v6651_v23, %v15504_v28  ;;  %v15512_v58 = vld [vmem:[#allocation16_spill] sm:$0xff]  ;;  %v6652_v22 = vsel %vm2942_vm4, %v6588_v6, %v15513_v56  ;;  %v15532_v56 = vld [vmem:[#allocation311_spill] sm:$0xff] }
 0xc04   :  { %7566 = vst.msk [vmem:[%s14010_s3 + $0x58] sm:$0xff] %vm14_vm0, %v7502_v19  ;;  %6178 = vrot.lane.b32.xlu2 %v4419_v15, %s7894_s15  ;;  %v6779_v50 = vsel %vm3072_vm5, %v6715_v46, %v15506_v61  ;;  %v6716_v19 = vsel %vm3007_vm3, %v6652_v22, %v15514_v1  ;;  %v13598_v46 = vld [vmem:[%s14009_s2 + $0x1] ss:$0 sm:$0xff]  ;;  %v7874_v61 = vld [vmem:[#allocation2 + $0x128] sm:$0xff] }
 0xc05   :  { %v6843_v18 = vsel %vm3137_vm7, %v6779_v50, %v15508_v55  ;;  %v6780_v53 = vsel %vm3072_vm5, %v6716_v19, %v15515_v41  ;;  %v15524_v50 = vld [vmem:[#allocation354_spill] sm:$0xff]  ;;  %v15525_v55 = vld [vmem:[#allocation47_spill] sm:$0xff] }
 0xc06   :  { %6434 = vrot.lane.b32.xlu0 %v4483_v39, %s7895_s16  ;;  %v7431_v32 = vpop.f32.mrf.mxu3  ;;  %v6421_v59 = vpop.permute.xlu2 %6420  ;;  %v6907_v29 = vsel %vm3202_vm6, %v6843_v18, %v15510_v45  ;;  %v6844_v62 = vsel %vm3137_vm7, %v6780_v53, %v15516_v49  ;;  %v6589_v37 = vsel %vm14_vm0, %v7874_v61, %v15524_v50  ;;  %v15533_v41 = vld [vmem:[#allocation294_spill] sm:$0xff]  ;;  %v15544_v61 = vld [vmem:[#allocation384_spill] sm:$0xff] }
 0xc07   :  { %v7432_v63 = vadd.f32 %v12945_v20, %v7431_v32  ;;  %v6163_v3 = vpop.permute.xlu1 %6162  ;;  %v15517_v32 = vld [vmem:[#allocation396_spill] sm:$0xff] }
 0xc08   :  { %v6483_v44 = vpop.permute.xlu0 %6482  ;;  %v7335_v26 = vpop.f32.mrf.mxu1  ;;  %v6971_v40 = vsel %vm3267_vm8, %v6907_v29, %v6163_v3  ;;  %v15518_v3 = vld [vmem:[#allocation45_spill] sm:$0xff] }
 0xc09   :  { %v7067_v35 = vsel %vm3332_vm10, %v7003_v30, %v6483_v44  ;;  %v7535_v0 = vadd.f32 %v7432_v63, %v15498_v5  ;;  %v7336_v51 = vadd.f32 %v12945_v20, %v7335_v26  ;;  %v6908_v63 = vsel %vm3202_vm6, %v6844_v62, %v15517_v32  ;;  %v15536_v32 = vld [vmem:[#allocation425_spill] sm:$0xff] }
 0xc0a   :  { %7750 = vmatmul.msk.f32.gmra.mxu3 %vm3406_vm9, %v7067_v35 }
 0xc0b   :  { %7599 = vst.msk [vmem:[%s14010_s3 + $0x160] sm:$0xff] %vm14_vm0, %v7535_v0  ;;  %v7503_v7 = vadd.f32 %v7336_v51, %v15503_v2  ;;  %v7872_v0 = vld [vmem:[#allocation2 + $0x2d8] sm:$0xff] }
 0xc0c   :  { %v15519_v51 = vld [vmem:[#allocation70_spill] sm:$0xff] }
 0xc0d   :  { %7567 = vst.msk [vmem:[%s14010_s3 + $0x60] sm:$0xff] %vm14_vm0, %v7503_v7  ;;  %v6621_v60 = vsel %vm14_vm0, %v7872_v0, %v15519_v51 }
 0xc0e   :  { %v6167_v10 = vpop.permute.xlu2 %6166  ;;  %v6685_v24 = vsel %vm2942_vm4, %v6621_v60, %v15520_v33 }
 0xc0f   :  { %v6229_v31 = vpop.permute.xlu1 %6228  ;;  %v6749_v25 = vsel %vm3007_vm3, %v6685_v24, %v15521_v43 }
 0xc10   :  { %v6419_v16 = vpop.permute.xlu0 %6418  ;;  %v7004_v21 = vsel %vm3267_vm8, %v6940_v14, %v6229_v31  ;;  %v7338_v54 = vpop.f32.mrf.mxu1  ;;  %v6813_v57 = vsel %vm3072_vm5, %v6749_v25, %v15522_v12  ;;  %v15528_v14 = vld [vmem:[#allocation99_spill] sm:$0xff]  ;;  %v7876_v12 = vld [vmem:[#allocation2 + $0x138] sm:$0xff] }
 0xc11   :  { %v7035_v17 = vsel %vm3332_vm10, %v6971_v40, %v6419_v16  ;;  %v7339_v13 = vadd.f32 %v12945_v20, %v7338_v54  ;;  %v7068_v42 = vsel %vm3332_vm10, %v7004_v21, %v6485_v11  ;;  %v6877_v8 = vsel %vm3137_vm7, %v6813_v57, %v15523_v9  ;;  %v15529_v16 = vld [vmem:[#allocation389_spill] sm:$0xff]  ;;  %v15530_v54 = vld [vmem:[#allocation382_spill] sm:$0xff] }
 0xc12   :  { %7718 = vmatmul.msk.f32.gmra.mxu1 %vm3406_vm9, %v7035_v17  ;;  %7751 = vmatmul.msk.f32.gmra.mxu3 %vm3406_vm9, %v7068_v42  ;;  %v15539_v57 = vld [vmem:[#allocation241_spill] sm:$0xff] }
 0xc13   :  { %v7504_v15 = vadd.f32 %v7339_v13, %v15512_v58  ;;  %v15531_v13 = vld [vmem:[#allocation194_spill] sm:$0xff]  ;;  %v7877_v9 = vld [vmem:[#allocation2 + $0x2f0] sm:$0xff] }
 0xc15   :  { %7568 = vst.msk [vmem:[%s14010_s3 + $0x68] sm:$0xff] %vm14_vm0, %v7504_v15  ;;  %v7434_v11 = vpop.f32.mrf.mxu3  ;;  %v7875_v15 = vld [vmem:[#allocation2 + $0x2e8] sm:$0xff] }
 0xc16   :  { %v7435_v39 = vadd.f32 %v12945_v20, %v7434_v11  ;;  %v6233_v35 = vpop.permute.xlu2 %6232  ;;  %v6622_v22 = vsel %vm14_vm0, %v7875_v15, %v15532_v56 }
 0xc17   :  { %v5975_v4 = vpop.permute.xlu1 %5974  ;;  %v6686_v53 = vsel %vm2942_vm4, %v6622_v22, %v15533_v41 }
 0xc18   :  { %v7536_v44 = vadd.f32 %v7435_v39, %v15518_v3  ;;  %v6165_v30 = vpop.permute.xlu0 %6164  ;;  %v6941_v28 = vsel %vm3202_vm6, %v6877_v8, %v5975_v4  ;;  %v15534_v39 = vld [vmem:[#allocation49_spill] sm:$0xff]  ;;  %v15540_v8 = vld [vmem:[#allocation300_spill] sm:$0xff] }
 0xc19   :  { %v6972_v26 = vsel %vm3267_vm8, %v6908_v63, %v6165_v30  ;;  %v15537_v3 = vld [vmem:[#allocation17_spill] sm:$0xff]  ;;  %v15538_v30 = vld [vmem:[#allocation430_spill] sm:$0xff] }
 0xc1a   :  { %7600 = vst.msk [vmem:[%s14010_s3 + $0x168] sm:$0xff] %vm14_vm0, %v7536_v44  ;;  %v7036_v5 = vsel %vm3332_vm10, %v6972_v26, %v6421_v59 }
 0xc1b   :  { %7719 = vmatmul.msk.f32.gmra.mxu1 %vm3406_vm9, %v7036_v5 }
 0xc1e   :  { %v7437_v23 = vpop.f32.mrf.mxu3  ;;  %v5979_v40 = vpop.permute.xlu2 %5978 }
 0xc1f   :  { %v7341_v59 = vpop.f32.mrf.mxu1  ;;  %v7438_v2 = vadd.f32 %v12945_v20, %v7437_v23  ;;  %v6487_v7 = vpop.permute.xlu1 %6486  ;;  %v15526_v20 = vld [vmem:[#allocation266_spill] sm:$0xff]  ;;  %v6590_v23 = vsel %vm14_vm0, %v7876_v12, %v15539_v57  ;;  %v7879_v57 = vld [vmem:[#allocation2 + $0x300] sm:$0xff] }
 0xc20   :  { %v7342_v36 = vadd.f32 %v13598_v46, %v7341_v59  ;;  %v6231_v34 = vpop.permute.xlu0 %6230  ;;  %v6653_v52 = vsel %vm2942_vm4, %v6589_v37, %v15526_v20  ;;  %v6623_v59 = vsel %vm14_vm0, %v7877_v9, %v15540_v8  ;;  %v15545_v37 = vld [vmem:[#allocation411_spill] sm:$0xff]  ;;  %v15547_v20 = vld [vmem:[#allocation390_spill] sm:$0xff] }
 0xc21   :  { %v7005_v27 = vsel %vm3267_vm8, %v6941_v28, %v6231_v34  ;;  %v7537_v18 = vadd.f32 %v7438_v2, %v15525_v55  ;;  %v6717_v31 = vsel %vm3007_vm3, %v6653_v52, %v15528_v14  ;;  %v15541_v2 = vld [vmem:[#allocation94_spill] sm:$0xff]  ;;  %v15549_v14 = vld [vmem:[#allocation259_spill] sm:$0xff] }
 0xc22   :  { %v7505_v45 = vadd.f32 %v7342_v36, %v15527_v48  ;;  %v7069_v29 = vsel %vm3332_vm10, %v7005_v27, %v6487_v7  ;;  %v6781_v21 = vsel %vm3072_vm5, %v6717_v31, %v15529_v16  ;;  %v6654_v7 = vsel %vm2942_vm4, %v6590_v23, %v15541_v2  ;;  %v15543_v36 = vld [vmem:[#allocation19_spill] sm:$0xff]  ;;  %v15546_v55 = vld [vmem:[#allocation366_spill] sm:$0xff]  ;;  %v15562_v2 = vld [vmem:[#allocation376_spill] sm:$0xff] }
 0xc23   :  { %7601 = vst.msk [vmem:[%s14010_s3 + $0x170] sm:$0xff] %vm14_vm0, %v7537_v18  ;;  %7752 = vmatmul.msk.f32.gmra.mxu3 %vm3406_vm9, %v7069_v29  ;;  %v6845_v17 = vsel %vm3137_vm7, %v6781_v21, %v15530_v54  ;;  %v6718_v50 = vsel %vm3007_vm3, %v6654_v7, %v15544_v61  ;;  %v15550_v21 = vld [vmem:[#allocation90_spill] sm:$0xff] }
 0xc24   :  { %7569 = vst.msk [vmem:[%s14010_s3 + $0x70] sm:$0xff] %vm14_vm0, %v7505_v45  ;;  %v6909_v42 = vsel %vm3202_vm6, %v6845_v17, %v15531_v13  ;;  %v6782_v18 = vsel %vm3072_vm5, %v6718_v50, %v15546_v55  ;;  %v15548_v45 = vld [vmem:[#allocation212_spill] sm:$0xff]  ;;  %v15560_v23 = vld [vmem:[#allocation138_spill] sm:$0xff] }
 0xc25   :  { %v6973_v38 = vsel %vm3267_vm8, %v6909_v42, %v6167_v10  ;;  %v15535_v10 = vld [vmem:[#allocation134_spill] sm:$0xff]  ;;  %v6846_v29 = vsel %vm3137_vm7, %v6782_v18, %v15548_v45  ;;  %v6624_v9 = vsel %vm14_vm0, %v7879_v57, %v15560_v23  ;;  %v15578_v57 = vld [vmem:[#allocation51_spill] sm:$0xff] }
 0xc26   :  { %v7440_v47 = vpop.f32.mrf.mxu3  ;;  %v6750_v4 = vsel %vm3007_vm3, %v6686_v53, %v15535_v10  ;;  %v6491_v0 = vpop.permute.xlu2 %6490  ;;  %v6910_v54 = vsel %vm3202_vm6, %v6846_v29, %v15550_v21  ;;  %v15554_v53 = vld [vmem:[#allocation352_spill] sm:$0xff]  ;;  %v15561_v8 = vld [vmem:[#allocation418_spill] sm:$0xff] }
 0xc27   :  { %v7441_v6 = vadd.f32 %v13598_v46, %v7440_v47  ;;  %v6423_v58 = vpop.permute.xlu1 %6422  ;;  %v6814_v63 = vsel %vm3072_vm5, %v6750_v4, %v15536_v32  ;;  %v15556_v4 = vld [vmem:[#allocation85_spill] sm:$0xff] }
 0xc28   :  { %v5977_v1 = vpop.permute.xlu0 %5976  ;;  %v7344_v19 = vpop.f32.mrf.mxu1  ;;  %v7037_v11 = vsel %vm3332_vm10, %v6973_v38, %v6423_v58  ;;  %v6878_v26 = vsel %vm3137_vm7, %v6814_v63, %v15538_v30  ;;  %v15551_v38 = vld [vmem:[#allocation48_spill] sm:$0xff]  ;;  %v15557_v30 = vld [vmem:[#allocation453_spill] sm:$0xff] }
 0xc29   :  { %v7538_v49 = vadd.f32 %v7441_v6, %v15534_v39  ;;  %v7345_v62 = vadd.f32 %v13598_v46, %v7344_v19  ;;  %7720 = vmatmul.msk.f32.gmra.mxu1 %vm3406_vm9, %v7037_v11  ;;  %v6942_v5 = vsel %vm3202_vm6, %v6878_v26, %v5977_v1  ;;  %v15552_v1 = vld [vmem:[#allocation80_spill] sm:$0xff]  ;;  %v15553_v11 = vld [vmem:[#allocation359_spill] sm:$0xff] }
 0xc2a   :  { %v7006_v60 = vsel %vm3267_vm8, %v6942_v5, %v6233_v35  ;;  %v15542_v35 = vld [vmem:[#allocation121_spill] sm:$0xff] }
 0xc2b   :  { %7602 = vst.msk [vmem:[%s14010_s3 + $0x178] sm:$0xff] %vm14_vm0, %v7538_v49  ;;  %v7506_v44 = vadd.f32 %v7345_v62, %v15537_v3  ;;  %v6687_v28 = vsel %vm2942_vm4, %v6623_v59, %v15542_v35  ;;  %v15555_v49 = vld [vmem:[#allocation196_spill] sm:$0xff]  ;;  %v6688_v59 = vsel %vm2942_vm4, %v6624_v9, %v15561_v8  ;;  %v15579_v9 = vld [vmem:[#allocation22_spill] sm:$0xff] }
 0xc2c   :  { %v6751_v27 = vsel %vm3007_vm3, %v6687_v28, %v15545_v37  ;;  %v6752_v7 = vsel %vm3007_vm3, %v6688_v59, %v15562_v2  ;;  %v15563_v35 = vld [vmem:[#allocation220_spill] sm:$0xff]  ;;  %v7882_v59 = vld [vmem:[#allocation2 + $0x158] sm:$0xff]  ;;  %v15580_v2 = vld [vmem:[#allocation319_spill] sm:$0xff] }
 0xc2d   :  { %7570 = vst.msk [vmem:[%s14010_s3 + $0x78] sm:$0xff] %vm14_vm0, %v7506_v44  ;;  %v6815_v52 = vsel %vm3072_vm5, %v6751_v27, %v15547_v20  ;;  %v6816_v28 = vsel %vm3072_vm5, %v6752_v7, %v15563_v35  ;;  %v7880_v20 = vld [vmem:[#allocation2 + $0x150] sm:$0xff]  ;;  %v6593_v7 = vsel %vm14_vm0, %v7882_v59, %v15580_v2  ;;  %v7883_v35 = vld [vmem:[#allocation2 + $0x318] sm:$0xff]  ;;  %v15601_v59 = vld [vmem:[#allocation79_spill] sm:$0xff] }
 0xc2e   :  { %v6879_v31 = vsel %vm3137_vm7, %v6815_v52, %v15549_v14  ;;  %v6427_v13 = vpop.permute.xlu2 %6426  ;;  %v15565_v52 = vld [vmem:[#allocation412_spill] sm:$0xff] }
 0xc2f   :  { %v6169_v51 = vpop.permute.xlu1 %6168  ;;  %v6943_v17 = vsel %vm3202_vm6, %v6879_v31, %v5979_v40  ;;  %v7878_v40 = vld [vmem:[#allocation2 + $0x140] sm:$0xff]  ;;  %v15566_v14 = vld [vmem:[#allocation52_spill] sm:$0xff] }
 0xc30   :  { %v6489_v33 = vpop.permute.xlu0 %6488  ;;  %v7347_v24 = vpop.f32.mrf.mxu1  ;;  %v6974_v47 = vsel %vm3267_vm8, %v6910_v54, %v6169_v51  ;;  %v6591_v19 = vsel %vm14_vm0, %v7878_v40, %v15552_v1 }
 0xc31   :  { %v7070_v43 = vsel %vm3332_vm10, %v7006_v60, %v6489_v33  ;;  %v7348_v25 = vadd.f32 %v13598_v46, %v7347_v24  ;;  %v6655_v41 = vsel %vm2942_vm4, %v6591_v19, %v15553_v11  ;;  %v15558_v33 = vld [vmem:[#allocation50_spill] sm:$0xff]  ;;  %v7881_v11 = vld [vmem:[#allocation2 + $0x308] sm:$0xff] }
 0xc32   :  { %7753 = vmatmul.msk.f32.gmra.mxu3 %vm3406_vm9, %v7070_v43  ;;  %v6719_v39 = vsel %vm3007_vm3, %v6655_v41, %v15554_v53  ;;  %v15559_v43 = vld [vmem:[#allocation21_spill] sm:$0xff] }
 0xc33   :  { %v7507_v34 = vadd.f32 %v7348_v25, %v15543_v36  ;;  %v6783_v62 = vsel %vm3072_vm5, %v6719_v39, %v15555_v49  ;;  %v15573_v41 = vld [vmem:[#allocation413_spill] sm:$0xff] }
 0xc34   :  { %v6847_v32 = vsel %vm3137_vm7, %v6783_v62, %v15556_v4  ;;  %v6625_v53 = vsel %vm14_vm0, %v7881_v11, %v15573_v41  ;;  %v15574_v62 = vld [vmem:[#allocation383_spill] sm:$0xff]  ;;  %v15575_v4 = vld [vmem:[#allocation206_spill] sm:$0xff] }
 0xc35   :  { %7571 = vst.msk [vmem:[%s14010_s3 + $0x80] sm:$0xff] %vm14_vm0, %v7507_v34  ;;  %v7443_v48 = vpop.f32.mrf.mxu3  ;;  %v6911_v26 = vsel %vm3202_vm6, %v6847_v32, %v15557_v30  ;;  %v15564_v34 = vld [vmem:[#allocation143_spill] sm:$0xff]  ;;  %v15593_v41 = vld [vmem:[#allocation442_spill] sm:$0xff] }
 0xc36   :  { %v7444_v16 = vadd.f32 %v13598_v46, %v7443_v48  ;;  %v6173_v51 = vpop.permute.xlu2 %6172  ;;  %v6880_v61 = vsel %vm3137_vm7, %v6816_v28, %v15564_v34  ;;  %v6592_v48 = vsel %vm14_vm0, %v7880_v20, %v15565_v52  ;;  %v15581_v28 = vld [vmem:[#allocation378_spill] sm:$0xff]  ;;  %v15582_v34 = vld [vmem:[#allocation189_spill] sm:$0xff]  ;;  %v15586_v52 = vld [vmem:[#allocation435_spill] sm:$0xff] }
 0xc37   :  { %v6235_v42 = vpop.permute.xlu1 %6234 }
 0xc38   :  { %v7539_v6 = vadd.f32 %v7444_v16, %v15551_v38  ;;  %v6425_v58 = vpop.permute.xlu0 %6424  ;;  %v7007_v15 = vsel %vm3267_vm8, %v6943_v17, %v6235_v42  ;;  %v15567_v16 = vld [vmem:[#allocation324_spill] sm:$0xff]  ;;  %v15568_v17 = vld [vmem:[#allocation182_spill] sm:$0xff] }
 0xc39   :  { %v7038_v56 = vsel %vm3332_vm10, %v6974_v47, %v6425_v58  ;;  %v7071_v22 = vsel %vm3332_vm10, %v7007_v15, %v6491_v0  ;;  %v6656_v21 = vsel %vm2942_vm4, %v6592_v48, %v15567_v16  ;;  %v15569_v47 = vld [vmem:[#allocation20_spill] sm:$0xff]  ;;  %v15589_v16 = vld [vmem:[#allocation337_spill] sm:$0xff] }
 0xc3a   :  { %7603 = vst.msk [vmem:[%s14010_s3 + $0x180] sm:$0xff] %vm14_vm0, %v7539_v6  ;;  %7721 = vmatmul.msk.f32.gmra.mxu1 %vm3406_vm9, %v7038_v56  ;;  %7754 = vmatmul.msk.f32.gmra.mxu3 %vm3406_vm9, %v7071_v22  ;;  %v15570_v6 = vld [vmem:[#allocation71_spill] sm:$0xff]  ;;  %v15571_v15 = vld [vmem:[#allocation448_spill] sm:$0xff] }
 0xc3b   :  { %v15572_v22 = vld [vmem:[#allocation283_spill] sm:$0xff] }
 0xc3e   :  { %v7446_v10 = vpop.f32.mrf.mxu3  ;;  %v6239_v42 = vpop.permute.xlu2 %6238 }
 0xc3f   :  { %v7350_v63 = vpop.f32.mrf.mxu1  ;;  %v7447_v3 = vadd.f32 %v13598_v46, %v7446_v10  ;;  %v5981_v44 = vpop.permute.xlu1 %5980  ;;  %v6689_v10 = vsel %vm2942_vm4, %v6625_v53, %v15574_v62 }
 0xc40   :  { %v7351_v5 = vadd.f32 %v13598_v46, %v7350_v63  ;;  %v6171_v0 = vpop.permute.xlu0 %6170  ;;  %v6944_v27 = vsel %vm3202_vm6, %v6880_v61, %v5981_v44  ;;  %v6753_v32 = vsel %vm3007_vm3, %v6689_v10, %v15575_v4  ;;  %v15576_v63 = vld [vmem:[#allocation95_spill] sm:$0xff]  ;;  %v15577_v44 = vld [vmem:[#allocation109_spill] sm:$0xff]  ;;  %v6657_v61 = vsel %vm2942_vm4, %v6593_v7, %v15582_v34  ;;  %v15603_v34 = vld [vmem:[#allocation204_spill] sm:$0xff] }
 0xc41   :  { %v6975_v60 = vsel %vm3267_vm8, %v6911_v26, %v6171_v0  ;;  %v7540_v24 = vadd.f32 %v7447_v3, %v15558_v33  ;;  %v6817_v3 = vsel %vm3072_vm5, %v6753_v32, %v15576_v63  ;;  %v15595_v4 = vld [vmem:[#allocation155_spill] sm:$0xff] }
 0xc42   :  { %v7508_v25 = vadd.f32 %v7351_v5, %v15559_v43  ;;  %v7039_v12 = vsel %vm3332_vm10, %v6975_v60, %v6427_v13  ;;  %v6720_v13 = vsel %vm3007_vm3, %v6656_v21, %v15568_v17  ;;  %v6881_v30 = vsel %vm3137_vm7, %v6817_v3, %v15577_v44  ;;  %v15596_v44 = vld [vmem:[#allocation101_spill] sm:$0xff] }
 0xc43   :  { %7604 = vst.msk [vmem:[%s14010_s3 + $0x188] sm:$0xff] %vm14_vm0, %v7540_v24  ;;  %7722 = vmatmul.msk.f32.gmra.mxu1 %vm3406_vm9, %v7039_v12  ;;  %v6784_v58 = vsel %vm3072_vm5, %v6720_v13, %v15570_v6 }
 0xc44   :  { %7572 = vst.msk [vmem:[%s14010_s3 + $0x88] sm:$0xff] %vm14_vm0, %v7508_v25  ;;  %v6848_v56 = vsel %vm3137_vm7, %v6784_v58, %v15571_v15 }
 0xc45   :  { %v6912_v40 = vsel %vm3202_vm6, %v6848_v56, %v15572_v22  ;;  %v7884_v22 = vld [vmem:[#allocation2 + $0x168] sm:$0xff] }
 0xc46   :  { %v7449_v36 = vpop.f32.mrf.mxu3  ;;  %v6976_v1 = vsel %vm3267_vm8, %v6912_v40, %v6173_v51  ;;  %v5985_v26 = vpop.permute.xlu2 %5984  ;;  %v15591_v40 = vld [vmem:[#allocation184_spill] sm:$0xff] }
 0xc47   :  { %v7450_v50 = vadd.f32 %v13598_v46, %v7449_v36  ;;  %v6493_v37 = vpop.permute.xlu1 %6492  ;;  %v6626_v36 = vsel %vm14_vm0, %v7883_v35, %v15581_v28  ;;  %v15602_v35 = vld [vmem:[#allocation312_spill] sm:$0xff] }
 0xc48   :  { %v6237_v55 = vpop.permute.xlu0 %6236  ;;  %v7353_v18 = vpop.f32.mrf.mxu1 }
 0xc49   :  { %v7008_v45 = vsel %vm3267_vm8, %v6944_v27, %v6237_v55  ;;  %v7354_v29 = vadd.f32 %v13598_v46, %v7353_v18  ;;  %v7541_v31 = vadd.f32 %v7450_v50, %v15566_v14  ;;  %v15583_v50 = vld [vmem:[#allocation213_spill] sm:$0xff]  ;;  %v15584_v27 = vld [vmem:[#allocation78_spill] sm:$0xff] }
 0xc4a   :  { %v7072_v54 = vsel %vm3332_vm10, %v7008_v45, %v6493_v37  ;;  %v6690_v37 = vsel %vm2942_vm4, %v6626_v36, %v15583_v50  ;;  %v6721_v55 = vsel %vm3007_vm3, %v6657_v61, %v15584_v27  ;;  %v15585_v18 = vld [vmem:[#allocation102_spill] sm:$0xff]  ;;  %v15587_v45 = vld [vmem:[#allocation84_spill] sm:$0xff]  ;;  %v15588_v14 = vld [vmem:[#allocation313_spill] sm:$0xff] }
 0xc4b   :  { %v7509_v38 = vadd.f32 %v7354_v29, %v15569_v47  ;;  %7605 = vst.msk [vmem:[%s14010_s3 + $0x190] sm:$0xff] %vm14_vm0, %v7541_v31  ;;  %7755 = vmatmul.msk.f32.gmra.mxu3 %vm3406_vm9, %v7072_v54  ;;  %v6754_v20 = vsel %vm3007_vm3, %v6690_v37, %v15585_v18  ;;  %v6785_v48 = vsel %vm3072_vm5, %v6721_v55, %v15586_v52  ;;  %v15590_v54 = vld [vmem:[#allocation135_spill] sm:$0xff] }
 0xc4c   :  { %v6818_v29 = vsel %vm3072_vm5, %v6754_v20, %v15587_v45  ;;  %v6849_v31 = vsel %vm3137_vm7, %v6785_v48, %v15588_v14  ;;  %v15604_v18 = vld [vmem:[#allocation55_spill] sm:$0xff]  ;;  %v7886_v45 = vld [vmem:[#allocation2 + $0x170] sm:$0xff] }
 0xc4d   :  { %7573 = vst.msk [vmem:[%s14010_s3 + $0x90] sm:$0xff] %vm14_vm0, %v7509_v38  ;;  %v6882_v21 = vsel %vm3137_vm7, %v6818_v29, %v15589_v16  ;;  %v6913_v17 = vsel %vm3202_vm6, %v6849_v31, %v15590_v54  ;;  %v15605_v29 = vld [vmem:[#allocation60_spill] sm:$0xff]  ;;  %v15606_v16 = vld [vmem:[#allocation407_spill] sm:$0xff] }
 0xc4e   :  { %v6946_v13 = vsel %vm3202_vm6, %v6882_v21, %v5985_v26  ;;  %v15597_v26 = vld [vmem:[#allocation53_spill] sm:$0xff]  ;;  %v6595_v14 = vsel %vm14_vm0, %v7886_v45, %v15605_v29  ;;  %v15607_v54 = vld [vmem:[#allocation23_spill] sm:$0xff] }
 0xc4f   :  { %v6429_v19 = vpop.permute.xlu1 %6428  ;;  %v6659_v21 = vsel %vm2942_vm4, %v6595_v14, %v15606_v16  ;;  %v15622_v45 = vld [vmem:[#allocation63_spill] sm:$0xff] }
 0xc50   :  { %v5983_v39 = vpop.permute.xlu0 %5982  ;;  %v7040_v49 = vsel %vm3332_vm10, %v6976_v1, %v6429_v19  ;;  %v6594_v1 = vsel %vm14_vm0, %v7884_v22, %v15591_v40  ;;  %v15592_v19 = vld [vmem:[#allocation437_spill] sm:$0xff] }
 0xc51   :  { %7723 = vmatmul.msk.f32.gmra.mxu1 %vm3406_vm9, %v7040_v49  ;;  %v6945_v5 = vsel %vm3202_vm6, %v6881_v30, %v5983_v39  ;;  %v6658_v11 = vsel %vm2942_vm4, %v6594_v1, %v15592_v19  ;;  %v15594_v49 = vld [vmem:[#allocation264_spill] sm:$0xff] }
 0xc52   :  { %v7009_v43 = vsel %vm3267_vm8, %v6945_v5, %v6239_v42  ;;  %v6497_v42 = vpop.permute.xlu2 %6496  ;;  %v6722_v53 = vsel %vm3007_vm3, %v6658_v11, %v15593_v41 }
 0xc53   :  { %v6786_v62 = vsel %vm3072_vm5, %v6722_v53, %v15594_v49  ;;  %v15612_v49 = vld [vmem:[#allocation54_spill] sm:$0xff] }
 0xc54   :  { %v6850_v32 = vsel %vm3137_vm7, %v6786_v62, %v15595_v4 }
 0xc55   :  { %v6914_v30 = vsel %vm3202_vm6, %v6850_v32, %v15596_v44  ;;  %v15614_v44 = vld [vmem:[#allocation57_spill] sm:$0xff] }
 0xc56   :  { %v7452_v0 = vpop.f32.mrf.mxu3  ;;  %v7356_v51 = vpop.f32.mrf.mxu1 }
 0xc57   :  { %v7453_v60 = vadd.f32 %v13598_v46, %v7452_v0  ;;  %v7357_v33 = vadd.f32 %v13598_v46, %v7356_v51  ;;  %v6175_v24 = vpop.permute.xlu1 %6174 }
 0xc58   :  { %v6495_v25 = vpop.permute.xlu0 %6494  ;;  %v6977_v38 = vsel %vm3267_vm8, %v6913_v17, %v6175_v24  ;;  %v15598_v24 = vld [vmem:[#allocation24_spill] sm:$0xff] }
 0xc59   :  { %v7073_v12 = vsel %vm3332_vm10, %v7009_v43, %v6495_v25  ;;  %v7542_v23 = vadd.f32 %v7453_v60, %v15578_v57  ;;  %v7510_v8 = vadd.f32 %v7357_v33, %v15579_v9  ;;  %v15599_v57 = vld [vmem:[#allocation242_spill] sm:$0xff] }
 0xc5a   :  { %7756 = vmatmul.msk.f32.gmra.mxu3 %vm3406_vm9, %v7073_v12  ;;  %v6433_v60 = vpop.permute.xlu2 %6432  ;;  %v7885_v12 = vld [vmem:[#allocation2 + $0x320] sm:$0xff]  ;;  %v15600_v9 = vld [vmem:[#allocation66_spill] sm:$0xff] }
 0xc5b   :  { %7606 = vst.msk [vmem:[%s14010_s3 + $0x198] sm:$0xff] %vm14_vm0, %v7542_v23  ;;  %v6627_v23 = vsel %vm14_vm0, %v7885_v12, %v15599_v57  ;;  %v15617_v12 = vld [vmem:[#allocation26_spill] sm:$0xff] }
 0xc5c   :  { %7574 = vst.msk [vmem:[%s14010_s3 + $0x98] sm:$0xff] %vm14_vm0, %v7510_v8  ;;  %v6691_v8 = vsel %vm2942_vm4, %v6627_v23, %v15600_v9 }
 0xc5d   :  { %v6755_v2 = vsel %vm3007_vm3, %v6691_v8, %v15601_v59 }
 0xc5e   :  { %v6819_v28 = vsel %vm3072_vm5, %v6755_v2, %v15602_v35  ;;  %v15618_v2 = vld [vmem:[#allocation58_spill] sm:$0xff]  ;;  %v15619_v35 = vld [vmem:[#allocation28_spill] sm:$0xff] }
 0xc5f   :  { %v6241_v47 = vpop.permute.xlu1 %6240  ;;  %v6883_v61 = vsel %vm3137_vm7, %v6819_v28, %v15603_v34 }
 0xc60   :  { %v6431_v6 = vpop.permute.xlu0 %6430  ;;  %v7010_v58 = vsel %vm3267_vm8, %v6946_v13, %v6241_v47  ;;  %v15608_v13 = vld [vmem:[#allocation271_spill] sm:$0xff]  ;;  %v15609_v47 = vld [vmem:[#allocation137_spill] sm:$0xff] }
 0xc61   :  { %v7041_v15 = vsel %vm3332_vm10, %v6977_v38, %v6431_v6  ;;  %v7074_v56 = vsel %vm3332_vm10, %v7010_v58, %v6497_v42  ;;  %v6723_v42 = vsel %vm3007_vm3, %v6659_v21, %v15608_v13  ;;  %v15610_v58 = vld [vmem:[#allocation142_spill] sm:$0xff] }
 0xc62   :  { %7724 = vmatmul.msk.f32.gmra.mxu1 %vm3406_vm9, %v7041_v15  ;;  %7757 = vmatmul.msk.f32.gmra.mxu3 %vm3406_vm9, %v7074_v56  ;;  %v6787_v38 = vsel %vm3072_vm5, %v6723_v42, %v15609_v47  ;;  %v6179_v6 = vpop.permute.xlu2 %6178  ;;  %v15611_v56 = vld [vmem:[#allocation364_spill] sm:$0xff]  ;;  %v15624_v42 = vld [vmem:[#allocation62_spill] sm:$0xff] }
 0xc63   :  { %v6851_v15 = vsel %vm3137_vm7, %v6787_v38, %v15610_v58  ;;  %v15625_v38 = vld [vmem:[#allocation31_spill] sm:$0xff] }
 0xc64   :  { %v6915_v22 = vsel %vm3202_vm6, %v6851_v15, %v15611_v56 }
 0xc65   :  { %v7455_v39 = vpop.f32.mrf.mxu3  ;;  %v6979_v40 = vsel %vm3267_vm8, %v6915_v22, %v6179_v6  ;;  %v15626_v22 = vld [vmem:[#allocation65_spill] sm:$0xff] }
 0xc66   :  { %v7456_v10 = vadd.f32 %v13598_v46, %v7455_v39 }
 0xc67   :  { %v7359_v63 = vpop.f32.mrf.mxu1  ;;  %v5987_v3 = vpop.permute.xlu1 %5986 }
 0xc68   :  { %v7543_v5 = vadd.f32 %v7456_v10, %v15597_v26  ;;  %v7360_v0 = vadd.f32 %v13598_v46, %v7359_v63  ;;  %v6177_v51 = vpop.permute.xlu0 %6176  ;;  %v6947_v37 = vsel %vm3202_vm6, %v6883_v61, %v5987_v3  ;;  %v15613_v10 = vld [vmem:[#allocation25_spill] sm:$0xff] }
 0xc69   :  { %v6978_v33 = vsel %vm3267_vm8, %v6914_v30, %v6177_v51 }
 0xc6a   :  { %7607 = vst.msk [vmem:[%s14010_s3 + $0x1a0] sm:$0xff] %vm14_vm0, %v7543_v5  ;;  %v7511_v43 = vadd.f32 %v7360_v0, %v15598_v24  ;;  %v7042_v25 = vsel %vm3332_vm10, %v6978_v33, %v6433_v60  ;;  %v15615_v5 = vld [vmem:[#allocation27_spill] sm:$0xff] }
 0xc6b   :  { %7725 = vmatmul.msk.f32.gmra.mxu1 %vm3406_vm9, %v7042_v25  ;;  %v15616_v24 = vld [vmem:[#allocation59_spill] sm:$0xff] }
 0xc6c   :  { %7575 = vst.msk [vmem:[%s14010_s3 + $0xa0] sm:$0xff] %vm14_vm0, %v7511_v43 }
 0xc6d   :  { %v7458_v7 = vpop.f32.mrf.mxu3 }
 0xc6e   :  { %v7459_v36 = vadd.f32 %v13598_v46, %v7458_v7 }
 0xc6f   :  { %v6499_v50 = vpop.permute.xlu1 %6498 }
 0xc70   :  { %v6243_v27 = vpop.permute.xlu0 %6242  ;;  %v7362_v55 = vpop.f32.mrf.mxu1  ;;  %v7544_v20 = vadd.f32 %v7459_v36, %v15604_v18 }
 0xc71   :  { %v7011_v52 = vsel %vm3267_vm8, %v6947_v37, %v6243_v27  ;;  %v7363_v48 = vadd.f32 %v13598_v46, %v7362_v55  ;;  %v15621_v55 = vld [vmem:[#allocation30_spill] sm:$0xff] }
 0xc72   :  { %7608 = vst.msk [vmem:[%s14010_s3 + $0x1a8] sm:$0xff] %vm14_vm0, %v7544_v20  ;;  %v7075_v31 = vsel %vm3332_vm10, %v7011_v52, %v6499_v50  ;;  %v15620_v50 = vld [vmem:[#allocation61_spill] sm:$0xff] }
 0xc73   :  { %v7512_v17 = vadd.f32 %v7363_v48, %v15607_v54  ;;  %7758 = vmatmul.msk.f32.gmra.mxu3 %vm3406_vm9, %v7075_v31  ;;  %v15623_v31 = vld [vmem:[#allocation29_spill] sm:$0xff] }
 0xc75   :  { %7576 = vst.msk [vmem:[%s14010_s3 + $0xa8] sm:$0xff] %vm14_vm0, %v7512_v17 }
 0xc78   :  { %v6435_v1 = vpop.permute.xlu0 %6434 }
 0xc79   :  { %v7043_v19 = vsel %vm3332_vm10, %v6979_v40, %v6435_v1 }
 0xc7a   :  { %7726 = vmatmul.msk.f32.gmra.mxu1 %vm3406_vm9, %v7043_v19  ;;  %v15627_v19 = vld [vmem:[#allocation32_spill] sm:$0xff] }
 0xc7e   :  { %v7461_v11 = vpop.f32.mrf.mxu3  ;;  %v7365_v41 = vpop.f32.mrf.mxu1 }
 0xc7f   :  { %v7462_v53 = vadd.f32 %v13598_v46, %v7461_v11  ;;  %v7366_v39 = vadd.f32 %v13598_v46, %v7365_v41 }
 0xc81   :  { %v7545_v62 = vadd.f32 %v7462_v53, %v15612_v49  ;;  %v7513_v4 = vadd.f32 %v7366_v39, %v15613_v10  ;;  %v15628_v49 = vld [vmem:[#allocation179_spill] sm:$0xff] }
 0xc83   :  { %7609 = vst.msk [vmem:[%s14010_s3 + $0x1b0] sm:$0xff] %vm14_vm0, %v7545_v62 }
 0xc84   :  { %7577 = vst.msk [vmem:[%s14010_s3 + $0xb0] sm:$0xff] %vm14_vm0, %v7513_v4  ;;  %v15629_v4 = vld [vmem:[#allocation150_spill] sm:$0xff] }
 0xc8d   :  { %v7464_v32 = vpop.f32.mrf.mxu3 }
 0xc8e   :  { %v7465_v63 = vadd.f32 %v13598_v46, %v7464_v32 }
 0xc8f   :  { %v7368_v3 = vpop.f32.mrf.mxu1 }
 0xc90   :  { %v7546_v30 = vadd.f32 %v7465_v63, %v15614_v44  ;;  %v7369_v26 = vadd.f32 %v13598_v46, %v7368_v3 }
 0xc92   :  { %7610 = vst.msk [vmem:[%s14010_s3 + $0x1b8] sm:$0xff] %vm14_vm0, %v7546_v30  ;;  %v7514_v0 = vadd.f32 %v7369_v26, %v15615_v5  ;;  %v15630_v26 = vld [vmem:[#allocation180_spill] sm:$0xff] }
 0xc94   :  { %7578 = vst.msk [vmem:[%s14010_s3 + $0xb8] sm:$0xff] %vm14_vm0, %v7514_v0  ;;  %v15631_v0 = vld [vmem:[#allocation154_spill] sm:$0xff] }
 0xc95   :  { %v7467_v51 = vpop.f32.mrf.mxu3 }
 0xc96   :  { %v7468_v60 = vadd.f32 %v13598_v46, %v7467_v51 }
 0xc98   :  { %v7371_v33 = vpop.f32.mrf.mxu1  ;;  %v7547_v43 = vadd.f32 %v7468_v60, %v15616_v24 }
 0xc99   :  { %v7372_v25 = vadd.f32 %v13598_v46, %v7371_v33 }
 0xc9a   :  { %7611 = vst.msk [vmem:[%s14010_s3 + $0x1c0] sm:$0xff] %vm14_vm0, %v7547_v43 }
 0xc9b   :  { %v7515_v57 = vadd.f32 %v7372_v25, %v15617_v12 }
 0xc9d   :  { %7579 = vst.msk [vmem:[%s14010_s3 + $0xc0] sm:$0xff] %vm14_vm0, %v7515_v57 }
 0xca6   :  { %v7470_v23 = vpop.f32.mrf.mxu3  ;;  %v7374_v9 = vpop.f32.mrf.mxu1 }
 0xca7   :  { %v7471_v8 = vadd.f32 %v13598_v46, %v7470_v23  ;;  %v7375_v59 = vadd.f32 %v13598_v46, %v7374_v9 }
 0xca9   :  { %v7548_v7 = vadd.f32 %v7471_v8, %v15618_v2  ;;  %v7516_v28 = vadd.f32 %v7375_v59, %v15619_v35 }
 0xcab   :  { %7612 = vst.msk [vmem:[%s14010_s3 + $0x1c8] sm:$0xff] %vm14_vm0, %v7548_v7 }
 0xcac   :  { %7580 = vst.msk [vmem:[%s14010_s3 + $0xc8] sm:$0xff] %vm14_vm0, %v7516_v28 }
 0xcb5   :  { %v7473_v36 = vpop.f32.mrf.mxu3 }
 0xcb6   :  { %v7474_v34 = vadd.f32 %v13598_v46, %v7473_v36 }
 0xcb7   :  { %v7377_v61 = vpop.f32.mrf.mxu1 }
 0xcb8   :  { %v7549_v37 = vadd.f32 %v7474_v34, %v15620_v50  ;;  %v7378_v27 = vadd.f32 %v13598_v46, %v7377_v61 }
 0xcba   :  { %7613 = vst.msk [vmem:[%s14010_s3 + $0x1d0] sm:$0xff] %vm14_vm0, %v7549_v37  ;;  %v7517_v18 = vadd.f32 %v7378_v27, %v15621_v55 }
 0xcbc   :  { %7581 = vst.msk [vmem:[%s14010_s3 + $0xd0] sm:$0xff] %vm14_vm0, %v7517_v18 }
 0xcbd   :  { %v7476_v20 = vpop.f32.mrf.mxu3 }
 0xcbe   :  { %v7477_v52 = vadd.f32 %v13598_v46, %v7476_v20 }
 0xcc0   :  { %v7380_v48 = vpop.f32.mrf.mxu1  ;;  %v7550_v29 = vadd.f32 %v7477_v52, %v15622_v45 }
 0xcc1   :  { %v7381_v14 = vadd.f32 %v13598_v46, %v7380_v48 }
 0xcc2   :  { %7614 = vst.msk [vmem:[%s14010_s3 + $0x1d8] sm:$0xff] %vm14_vm0, %v7550_v29 }
 0xcc3   :  { %v7518_v16 = vadd.f32 %v7381_v14, %v15623_v31 }
 0xcc5   :  { %7582 = vst.msk [vmem:[%s14010_s3 + $0xd8] sm:$0xff] %vm14_vm0, %v7518_v16 }
 0xcce   :  { %v7479_v21 = vpop.f32.mrf.mxu3  ;;  %v7383_v54 = vpop.f32.mrf.mxu1 }
 0xccf   :  { %v7480_v17 = vadd.f32 %v13598_v46, %v7479_v21  ;;  %v7384_v13 = vadd.f32 %v13598_v46, %v7383_v54 }
 0xcd1   :  { %v7551_v47 = vadd.f32 %v7480_v17, %v15624_v42  ;;  %v7519_v6 = vadd.f32 %v7384_v13, %v15625_v38 }
 0xcd3   :  { %7615 = vst.msk [vmem:[%s14010_s3 + $0x1e0] sm:$0xff] %vm14_vm0, %v7551_v47 }
 0xcd4   :  { %7583 = vst.msk [vmem:[%s14010_s3 + $0xe0] sm:$0xff] %vm14_vm0, %v7519_v6 }
 0xcdd   :  { %v7482_v58 = vpop.f32.mrf.mxu3 }
 0xcde   :  { %v7483_v15 = vadd.f32 %v13598_v46, %v7482_v58 }
 0xcdf   :  { %v7386_v56 = vpop.f32.mrf.mxu1 }
 0xce0   :  { %v7552_v40 = vadd.f32 %v7483_v15, %v15626_v22  ;;  %v7387_v1 = vadd.f32 %v13598_v46, %v7386_v56 }
 0xce2   :  { %7616 = vst.msk [vmem:[%s14010_s3 + $0x1e8] sm:$0xff] %vm14_vm0, %v7552_v40  ;;  %v7520_v11 = vadd.f32 %v7387_v1, %v15627_v19 }
 0xce4   :  { %7584 = vst.msk [vmem:[%s14010_s3 + $0xe8] sm:$0xff] %vm14_vm0, %v7520_v11 }
 0xce5   :  { %v7485_v41 = vpop.f32.mrf.mxu3 }
 0xce6   :  { %v7486_v53 = vadd.f32 %v13598_v46, %v7485_v41 }
 0xce8   :  { %v7389_v39 = vpop.f32.mrf.mxu1  ;;  %v7553_v62 = vadd.f32 %v7486_v53, %v15628_v49 }
 0xce9   :  { %v7390_v10 = vadd.f32 %v13598_v46, %v7389_v39 }
 0xcea   :  { %7617 = vst.msk [vmem:[%s14010_s3 + $0x1f0] sm:$0xff] %vm14_vm0, %v7553_v62 }
 0xceb   :  { %v7521_v32 = vadd.f32 %v7390_v10, %v15629_v4 }
 0xced   :  { %7585 = vst.msk [vmem:[%s14010_s3 + $0xf0] sm:$0xff] %vm14_vm0, %v7521_v32 }
 0xcf6   :  { %v7488_v63 = vpop.f32.mrf.mxu3 }
 0xcf7   :  { %v7392_v3 = vpop.f32.mrf.mxu1  ;;  %v7489_v44 = vadd.f32 %v13598_v46, %v7488_v63 }
 0xcf8   :  { %v7393_v30 = vadd.f32 %v13598_v46, %v7392_v3 }
 0xcf9   :  { %v7554_v5 = vadd.f32 %v7489_v44, %v15630_v26 }
 0xcfa   :  { %v7522_v51 = vadd.f32 %v7393_v30, %v15631_v0 }
 0xcfb   :  { %7618 = vst.msk [vmem:[%s14010_s3 + $0x1f8] sm:$0xff] %vm14_vm0, %v7554_v5 }
 0xcfc   :  { %7586 = vst.msk [vmem:[%s14010_s3 + $0xf8] sm:$0xff] %vm14_vm0, %v7522_v51 }

</bundles_post_ra>
